<compile_context>
chip_gen: v5e
topology: v5e:2x2
jax: 0.10.0
libtpu: 0.0.40
codegen_flags: <defaults>
</compile_context>

<pallas_src>
import numpy as np
import jax
import jax.numpy as jnp
from jax import lax
from jax.experimental import pallas as pl
from jax.experimental.pallas import tpu as pltpu

F32 = jnp.float32
VMEM_SPEC = pl.BlockSpec(memory_space=pltpu.MemorySpace.VMEM)


def _round_up(n, m):
    return ((n + m - 1) // m) * m


def _span(H, W):
    """Lane span per batch image: padded (H+2)*(W+2) frame, 128-aligned."""
    return _round_up((H + 2) * (W + 2), 128)


# --------------------------------------------------------------------------
# In-kernel helpers (values only; everything stays in vregs / VMEM)
# --------------------------------------------------------------------------
def _conv3x3(act, wb, mask, N, Wp2):
    """3x3 'same' conv as a single MXU matmul in the flat layout.

    act  : (cin, N)        flat activation; halo / pad lanes are zero
    wb   : (cout, 9*cin+1) tap-major weights, last column = bias
    mask : (1, N)          1 at interior pixels, 0 at halo / pad lanes

    For every interior output lane l the needed source lane l+d stays inside
    the same image's Sp span (the 1-pixel zero halo is the guard band), so a
    global lane roll is exact there; wrapped lanes only land on positions that
    the trailing mask multiply zeroes -- the zero-padding invariant is kept.
    """
    rows = []
    for dy in range(3):
        for dx in range(3):
            d = (dy - 1) * Wp2 + (dx - 1)
            rows.append(act if d == 0 else pltpu.roll(act, (-d) % N, axis=1))
    rows.append(mask)                                   # bias row -> bias * mask
    stacked = jnp.concatenate(rows, axis=0)             # (9*cin + 1, N)
    y = jnp.dot(wb, stacked, preferred_element_type=F32)
    return y * mask


def _ln_relu(y, gb, S, St, C, HW, eps=1e-5):
    """LayerNorm over [H, W] per (batch, channel) + ReLU, in flat layout.

    y  : (C, N) masked activation (halo / pad lanes zero)
    gb : (2, N) row0 = gamma, row1 = beta (zero at halo / pad lanes)
    S  : (N, B) interior-lane indicator per batch image; St = S^T
    """
    cat = jnp.concatenate([y, y * y], axis=0)                          # (2C, N)
    stats = jnp.dot(cat, S, preferred_element_type=F32) * (1.0 / HW)   # (2C, B)
    mu = stats[:C]
    # TODO(synk): single-pass E[x^2]-E[x]^2 variance in f32; switch to the
    # centered two-pass form if the test tolerance is ever tightened.
    var = stats[C:] - mu * mu
    inv = lax.rsqrt(var + eps)
    ab = jnp.concatenate([inv, -mu * inv], axis=0)                     # (2C, B)
    abn = jnp.dot(ab, St, preferred_element_type=F32)                  # (2C, N)
    z = (y * abn[:C] + abn[C:]) * gb[0:1, :] + gb[1:2, :]
    return jnp.maximum(z, 0.0)                                         # halo stays 0


def _make_decoder_kernel(plan, C):
    """Single fused kernel. `plan` is a static list of (kind, meta, n_consts);
    refs = (x, *consts, out)."""

    def kernel(*refs):
        x_ref = refs[0]
        out_ref = refs[-1]
        pos = [1]

        def take(n):
            vals = [refs[pos[0] + i][...] for i in range(n)]
            pos[0] += n
            return vals

        act = None
        H = W = Wp2 = N = 0
        mask = S = St = None

        for kind, meta, _n in plan:
            if kind == 'stage':
                H, W, Sp, B = meta
                Wp2 = W + 2
                N = B * Sp
                mask, S, St = take(3)
            elif kind == 'dense':
                (wh,) = take(1)
                # homogeneous input (1, B*E+1) @ block-diag weight -> (1, N)
                act = jnp.dot(x_ref[...], wh, preferred_element_type=F32)
            elif kind == 'conv':
                (wb,) = take(1)
                act = _conv3x3(act, wb, mask, N, Wp2)
            elif kind == 'convblock':
                wb1, wb2, wb3, gb = take(4)
                res = act
                h = _conv3x3(act, wb1, mask, N, Wp2)
                h = _conv3x3(h, wb2, mask, N, Wp2)
                h = _conv3x3(h, wb3, mask, N, Wp2)
                act = _ln_relu(h, gb, S, St, C, H * W) + res
            elif kind == 'ident':
                wb1, gb = take(2)
                h = _conv3x3(act, wb1, mask, N, Wp2)
                act = _ln_relu(h, gb, S, St, C, H * W)
            elif kind == 'upsample':
                (u,) = take(1)
                # block-diagonal (N_in, N_out) bilinear matrix, one matmul
                act = jnp.dot(act, u, preferred_element_type=F32)
            elif kind == 'final':
                wbf, q = take(2)
                y = _conv3x3(act, wbf, mask, N, Wp2)        # (1, N)
                # batched interior extraction; single lane-dense store
                out_ref[...] = jnp.dot(y, q, preferred_element_type=F32)

    return kernel


# --------------------------------------------------------------------------
# Host-side (init-time / per-batch-size) constant builders
# --------------------------------------------------------------------------
def _interp_matrix(n_in, n_out):
    """Row interpolation matrix for bilinear upsampling, align_corners=True."""
    A = np.zeros((n_out, n_in), np.float32)
    if n_out == 1 or n_in == 1:
        A[:, 0] = 1.0
        return A
    scale = (n_in - 1) / (n_out - 1)
    for o in range(n_out):
        pos = o * scale
        i0 = int(np.floor(pos))
        i1 = min(i0 + 1, n_in - 1)
        f = pos - i0
        A[o, i0] += 1.0 - f
        A[o, i1] += f
    return A


def _flat_padded(a, H, W, Sp):
    """(H, W) -> (Sp,) flat padded frame: zero halo, zero trailing pad."""
    ap = np.zeros((H + 2, W + 2), np.float32)
    ap[1:H + 1, 1:W + 1] = np.asarray(a, np.float32).reshape(H, W)
    v = np.zeros((Sp,), np.float32)
    v[:(H + 2) * (W + 2)] = ap.reshape(-1)
    return v


def _stage_consts(H, W, Sp, B):
    """mask (1, N), S (N, B), St (B, N) for one spatial stage."""
    mflat = _flat_padded(np.ones((H, W), np.float32), H, W, Sp)
    N = B * Sp
    mask = np.zeros((1, N), np.float32)
    S = np.zeros((N, B), np.float32)
    for b in range(B):
        mask[0, b * Sp:(b + 1) * Sp] = mflat
        S[b * Sp:(b + 1) * Sp, b] = mflat
    return [jnp.asarray(mask), jnp.asarray(S), jnp.asarray(S.T.copy())]


def _conv_wb(w, b):
    """(cout, cin, 3, 3) OIHW + (cout,) bias -> (cout, 9*cin + 1), tap-major."""
    w = np.asarray(w, np.float32)
    cout = w.shape[0]
    wm = w.transpose(0, 2, 3, 1).reshape(cout, -1)        # col = (dy*3+dx)*cin + ci
    bc = np.asarray(b, np.float32).reshape(cout, 1)
    return jnp.asarray(np.concatenate([wm, bc], axis=1))


def _ln_consts(g, be, H, W, Sp, B):
    """gamma / beta in flat layout, tiled over batch: (2, B*Sp)."""
    gf = np.tile(_flat_padded(g, H, W, Sp), B)
    bf = np.tile(_flat_padded(be, H, W, Sp), B)
    return jnp.asarray(np.stack([gf, bf], axis=0))


def _dense_block(wd, bd, H, W, Sp, B, E):
    """Block-diagonal homogeneous dense weight: (B*E + 1, B*Sp).

    (1, B*E+1) input (flattened batch + constant 1) @ this matrix directly
    produces the flat padded layout with the bias folded in and zero halo.
    """
    wd = np.asarray(wd, np.float32)                       # (H*W, E), torch Linear layout
    bd = np.asarray(bd, np.float32)
    wflat = np.zeros((E, Sp), np.float32)
    for e in range(E):
        wflat[e] = _flat_padded(wd[:, e], H, W, Sp)
    bflat = _flat_padded(bd, H, W, Sp)
    Wh = np.zeros((B * E + 1, B * Sp), np.float32)
    for b in range(B):
        Wh[b * E:(b + 1) * E, b * Sp:(b + 1) * Sp] = wflat
        Wh[B * E, b * Sp:(b + 1) * Sp] = bflat
    return jnp.asarray(Wh)


def _upsample_block(ah, awT, H_in, W_in, Sp_in, H_out, W_out, Sp_out, B):
    """Block-diagonal bilinear upsample matrix (B*Sp_in, B*Sp_out)."""
    Ah = np.asarray(ah, np.float32)                       # (Hout, Hin)
    Aw = np.asarray(awT, np.float32).T                    # (Wout, Win)
    K = np.einsum('oi,pj->ijop', Ah, Aw)                  # (Hin, Win, Hout, Wout)
    U = np.zeros((H_in + 2, W_in + 2, H_out + 2, W_out + 2), np.float32)
    U[1:H_in + 1, 1:W_in + 1, 1:H_out + 1, 1:W_out + 1] = K
    Uf = np.zeros((Sp_in, Sp_out), np.float32)
    Uf[:(H_in + 2) * (W_in + 2), :(H_out + 2) * (W_out + 2)] = \
        U.reshape((H_in + 2) * (W_in + 2), (H_out + 2) * (W_out + 2))
    Ub = np.zeros((B * Sp_in, B * Sp_out), np.float32)
    for b in range(B):
        Ub[b * Sp_in:(b + 1) * Sp_in, b * Sp_out:(b + 1) * Sp_out] = Uf
    return jnp.asarray(Ub)


def _extract_block(H, W, Sp, B):
    """Block-diagonal interior-pixel extraction matrix (B*Sp, B*H*W)."""
    Q = np.zeros((H + 2, W + 2, H, W), np.float32)
    for y in range(H):
        for x in range(W):
            Q[y + 1, x + 1, y, x] = 1.0
    Qf = np.zeros((Sp, H * W), np.float32)
    Qf[:(H + 2) * (W + 2), :] = Q.reshape((H + 2) * (W + 2), H * W)
    Qb = np.zeros((B * Sp, B * H * W), np.float32)
    for b in range(B):
        Qb[b * Sp:(b + 1) * Sp, b * H * W:(b + 1) * H * W] = Qf
    return jnp.asarray(Qb)


# --------------------------------------------------------------------------
# Decoder module
# --------------------------------------------------------------------------
class DecoderPallas:
    def __init__(self, original_step_size, upsampling_list, embedding_size,
                 conv_size, pooling_list, key):
        # pooling_list kept for API parity; unused by Decoder.forward (matches torch).
        self.in0, self.in1 = original_step_size
        self.embedding_size = embedding_size
        self.conv_size = conv_size
        keys = iter(jax.random.split(key, 256))

        def nrm(shape, scale=0.1):
            return (scale * jax.random.normal(next(keys), shape)).astype(F32)

        self.p = {
            'dense_w': nrm((self.in0 * self.in1, embedding_size)),
            'dense_b': nrm((self.in0 * self.in1,)),
            'cov2d_w': nrm((conv_size, 1, 3, 3)),
            'cov2d_b': nrm((conv_size,)),
            'cov2d_1_w': nrm((1, conv_size, 3, 3)),
            'cov2d_1_b': nrm((1,)),
        }

        def convblock_params(C, H, W):
            return dict(w1=nrm((C, C, 3, 3)), b1=nrm((C,)),
                        w2=nrm((C, C, 3, 3)), b2=nrm((C,)),
                        w3=nrm((C, C, 3, 3)), b3=nrm((C,)),
                        g=(jnp.ones((H, W)) + nrm((H, W))).astype(F32),
                        be=nrm((H, W)))

        def identblock_params(C, H, W):
            return dict(w1=nrm((C, C, 3, 3)), b1=nrm((C,)),
                        g=(jnp.ones((H, W)) + nrm((H, W))).astype(F32),
                        be=nrm((H, W)))

        blocks = []
        step = list(original_step_size)
        blocks.append(('conv', convblock_params(conv_size, *step)))
        blocks.append(('ident', identblock_params(conv_size, *step)))
        for s in upsampling_list:
            new_step = [step[0] * s, step[1] * s]
            ah = jnp.asarray(_interp_matrix(step[0], new_step[0]))
            awT = jnp.asarray(_interp_matrix(step[1], new_step[1]).T)
            blocks.append(('up', (ah, awT)))
            step = new_step
            blocks.append(('conv', convblock_params(conv_size, *step)))
            blocks.append(('ident', identblock_params(conv_size, *step)))
        self.blocks = blocks
        self.out0, self.out1 = step
        self._cache = {}

    # ---------------- plan / constants (built per batch size B) -------------
    def _build_plan(self, B):
        C = self.conv_size
        E = self.embedding_size
        plan, consts = [], []

        def add(kind, meta, arrs):
            plan.append((kind, meta, len(arrs)))
            consts.extend(arrs)

        H, W = self.in0, self.in1
        Sp = _span(H, W)
        add('stage', (H, W, Sp, B), _stage_consts(H, W, Sp, B))
        add('dense', (), [_dense_block(self.p['dense_w'], self.p['dense_b'],
                                       H, W, Sp, B, E)])
        add('conv', (), [_conv_wb(self.p['cov2d_w'], self.p['cov2d_b'])])

        for kind, blk in self.blocks:
            if kind == 'conv':
                add('convblock', (),
                    [_conv_wb(blk['w1'], blk['b1']),
                     _conv_wb(blk['w2'], blk['b2']),
                     _conv_wb(blk['w3'], blk['b3']),
                     _ln_consts(blk['g'], blk['be'], H, W, Sp, B)])
            elif kind == 'ident':
                add('ident', (),
                    [_conv_wb(blk['w1'], blk['b1']),
                     _ln_consts(blk['g'], blk['be'], H, W, Sp, B)])
            else:                                        # upsample
                ah, awT = blk
                Hn, Wn = int(ah.shape[0]), int(awT.shape[1])
                Spn = _span(Hn, Wn)
                add('upsample', (), [_upsample_block(ah, awT, H, W, Sp,
                                                     Hn, Wn, Spn, B)])
                H, W, Sp = Hn, Wn, Spn
                add('stage', (H, W, Sp, B), _stage_consts(H, W, Sp, B))

        add('final', (), [_conv_wb(self.p['cov2d_1_w'], self.p['cov2d_1_b']),
                          _extract_block(H, W, Sp, B)])
        assert (H, W) == (self.out0, self.out1)
        return plan, consts

    def _build_call(self, B):
        plan, consts = self._build_plan(B)
        kernel = _make_decoder_kernel(plan, self.conv_size)
        out_lanes = B * self.out0 * self.out1
        call = pl.pallas_call(
            kernel,
            out_shape=jax.ShapeDtypeStruct((1, out_lanes), F32),
            in_specs=[VMEM_SPEC] * (1 + len(consts)),
            out_specs=VMEM_SPEC,
        )
        E = self.embedding_size
        out0, out1 = self.out0, self.out1

        def fwd(x, cs):
            xh = jnp.concatenate([x.reshape(1, B * E).astype(F32),
                                  jnp.ones((1, 1), F32)], axis=1)
            out = call(xh, *cs)
            return out.reshape(B, out0, out1)

        return jax.jit(fwd), consts

    def __call__(self, x):
        B = int(x.shape[0])
        entry = self._cache.get(B)
        if entry is None:
            entry = self._build_call(B)
            self._cache[B] = entry
        fn, consts = entry
        return fn(x, consts)


# --------------------------------------------------------------------------
# Pure-JAX reference (for correctness check)
# --------------------------------------------------------------------------
def _conv2d_ref(x, w, b):
    y = lax.conv_general_dilated(x, w, window_strides=(1, 1),
                                 padding=((1, 1), (1, 1)),
                                 dimension_numbers=('NCHW', 'OIHW', 'NCHW'))
    return y + b[None, :, None, None]


def _layernorm_ref(x, g, be, eps=1e-5):
    mu = jnp.mean(x, axis=(2, 3), keepdims=True)
    var = jnp.mean((x - mu) ** 2, axis=(2, 3), keepdims=True)
    return (x - mu) / jnp.sqrt(var + eps) * g[None, None] + be[None, None]


def _convblock_ref(x, p):
    out = _conv2d_ref(x, p['w1'], p['b1'])
    out = _conv2d_ref(out, p['w2'], p['b2'])
    out = _conv2d_ref(out, p['w3'], p['b3'])
    out = jax.nn.relu(_layernorm_ref(out, p['g'], p['be']))
    return out + x


def _identblock_ref(x, p):
    out = _conv2d_ref(x, p['w1'], p['b1'])
    return jax.nn.relu(_layernorm_ref(out, p['g'], p['be']))


def decoder_ref(x, dec):
    p = dec.p
    out = x @ p['dense_w'].T + p['dense_b']
    out = out.reshape(-1, 1, dec.in0, dec.in1)
    out = _conv2d_ref(out, p['cov2d_w'], p['cov2d_b'])
    for kind, blk in dec.blocks:
        if kind == 'conv':
            out = _convblock_ref(out, blk)
        elif kind == 'ident':
            out = _identblock_ref(out, blk)
        else:
            ah, awT = blk
            out = jnp.einsum('oh,bchw,wp->bcop', ah, out, awT)
    out = _conv2d_ref(out, p['cov2d_1_w'], p['cov2d_1_b'])
    return out.reshape(-1, dec.out0, dec.out1)


# --------------------------------------------------------------------------
if __name__ == "__main__":
    key = jax.random.PRNGKey(0)
    k_param, k_x = jax.random.split(key)

    B, embedding_size = 2, 32
    original_step_size = [8, 8]
    upsampling_list = [2]
    conv_size = 4
    pooling_list = [2]  # unused in Decoder.forward (matches the torch module)

    dec = DecoderPallas(original_step_size, upsampling_list, embedding_size,
                        conv_size, pooling_list, k_param)

    x = jax.random.normal(k_x, (B, embedding_size), dtype=F32)

    out = dec(x)
    out = jax.block_until_ready(out)
    assert out.shape == (B, dec.out0, dec.out1)

    ref = decoder_ref(x, dec)
    np.testing.assert_allclose(np.asarray(out), np.asarray(ref),
                               rtol=3e-3, atol=3e-3)
    print("KERNEL_OK")
</pallas_src>

<mosaic_0001>
module attributes {stable_mosaic.version = 11 : i64} {
  func.func @kernel(%arg0: memref<1x65xf32, #tpu.memory_space<vmem>>, %arg1: memref<1x256xf32, #tpu.memory_space<vmem>>, %arg2: memref<256x2xf32, #tpu.memory_space<vmem>>, %arg3: memref<2x256xf32, #tpu.memory_space<vmem>>, %arg4: memref<65x256xf32, #tpu.memory_space<vmem>>, %arg5: memref<4x10xf32, #tpu.memory_space<vmem>>, %arg6: memref<4x37xf32, #tpu.memory_space<vmem>>, %arg7: memref<4x37xf32, #tpu.memory_space<vmem>>, %arg8: memref<4x37xf32, #tpu.memory_space<vmem>>, %arg9: memref<2x256xf32, #tpu.memory_space<vmem>>, %arg10: memref<4x37xf32, #tpu.memory_space<vmem>>, %arg11: memref<2x256xf32, #tpu.memory_space<vmem>>, %arg12: memref<256x768xf32, #tpu.memory_space<vmem>>, %arg13: memref<1x768xf32, #tpu.memory_space<vmem>>, %arg14: memref<768x2xf32, #tpu.memory_space<vmem>>, %arg15: memref<2x768xf32, #tpu.memory_space<vmem>>, %arg16: memref<4x37xf32, #tpu.memory_space<vmem>>, %arg17: memref<4x37xf32, #tpu.memory_space<vmem>>, %arg18: memref<4x37xf32, #tpu.memory_space<vmem>>, %arg19: memref<2x768xf32, #tpu.memory_space<vmem>>, %arg20: memref<4x37xf32, #tpu.memory_space<vmem>>, %arg21: memref<2x768xf32, #tpu.memory_space<vmem>>, %arg22: memref<1x37xf32, #tpu.memory_space<vmem>>, %arg23: memref<768x512xf32, #tpu.memory_space<vmem>>, %arg24: memref<1x512xf32, #tpu.memory_space<vmem>>) attributes {dimension_semantics = [], scalar_prefetch = 0 : i64, scratch_operands = 0 : i64, tpu.core_type = #tpu.core_type<tc>} {
    %c0 = arith.constant 0 : index
    %c0_0 = arith.constant 0 : index
    %0 = vector.load %arg1[%c0, %c0_0] : memref<1x256xf32, #tpu.memory_space<vmem>>, vector<1x256xf32>
    %c0_1 = arith.constant 0 : index
    %c0_2 = arith.constant 0 : index
    %1 = vector.load %arg2[%c0_1, %c0_2] : memref<256x2xf32, #tpu.memory_space<vmem>>, vector<256x2xf32>
    %c0_3 = arith.constant 0 : index
    %c0_4 = arith.constant 0 : index
    %2 = vector.load %arg3[%c0_3, %c0_4] : memref<2x256xf32, #tpu.memory_space<vmem>>, vector<2x256xf32>
    %c0_5 = arith.constant 0 : index
    %c0_6 = arith.constant 0 : index
    %3 = vector.load %arg4[%c0_5, %c0_6] : memref<65x256xf32, #tpu.memory_space<vmem>>, vector<65x256xf32>
    %c0_7 = arith.constant 0 : index
    %c0_8 = arith.constant 0 : index
    %4 = vector.load %arg0[%c0_7, %c0_8] : memref<1x65xf32, #tpu.memory_space<vmem>>, vector<1x65xf32>
    %cst = arith.constant dense<0.000000e+00> : vector<1x256xf32>
    %5 = tpu.matmul %4, %3, %cst {dimension_numbers = #tpu.dot_dimension_numbers<[1], [0], [0], [1], [0, 0, 1, 1], [], []>} : vector<1x65xf32>, vector<65x256xf32>, vector<1x256xf32> -> vector<1x256xf32>
    %c0_9 = arith.constant 0 : index
    %c0_10 = arith.constant 0 : index
    %6 = vector.load %arg5[%c0_9, %c0_10] : memref<4x10xf32, #tpu.memory_space<vmem>>, vector<4x10xf32>
    %c11_i32 = arith.constant 11 : i32
    %7 = tpu.dynamic_rotate %5 by %c11_i32 dim 1 : vector<1x256xf32>, i32 -> vector<1x256xf32>
    %c10_i32 = arith.constant 10 : i32
    %8 = tpu.dynamic_rotate %5 by %c10_i32 dim 1 : vector<1x256xf32>, i32 -> vector<1x256xf32>
    %c9_i32 = arith.constant 9 : i32
    %9 = tpu.dynamic_rotate %5 by %c9_i32 dim 1 : vector<1x256xf32>, i32 -> vector<1x256xf32>
    %c1_i32 = arith.constant 1 : i32
    %10 = tpu.dynamic_rotate %5 by %c1_i32 dim 1 : vector<1x256xf32>, i32 -> vector<1x256xf32>
    %c255_i32 = arith.constant 255 : i32
    %11 = tpu.dynamic_rotate %5 by %c255_i32 dim 1 : vector<1x256xf32>, i32 -> vector<1x256xf32>
    %c247_i32 = arith.constant 247 : i32
    %12 = tpu.dynamic_rotate %5 by %c247_i32 dim 1 : vector<1x256xf32>, i32 -> vector<1x256xf32>
    %c246_i32 = arith.constant 246 : i32
    %13 = tpu.dynamic_rotate %5 by %c246_i32 dim 1 : vector<1x256xf32>, i32 -> vector<1x256xf32>
    %c245_i32 = arith.constant 245 : i32
    %14 = tpu.dynamic_rotate %5 by %c245_i32 dim 1 : vector<1x256xf32>, i32 -> vector<1x256xf32>
    %15 = tpu.concatenate %7, %8, %9, %10, %5, %11, %12, %13, %14, %0 in 0 : vector<1x256xf32>, vector<1x256xf32>, vector<1x256xf32>, vector<1x256xf32>, vector<1x256xf32>, vector<1x256xf32>, vector<1x256xf32>, vector<1x256xf32>, vector<1x256xf32>, vector<1x256xf32> -> vector<10x256xf32>
    %cst_11 = arith.constant dense<0.000000e+00> : vector<4x256xf32>
    %16 = tpu.matmul %6, %15, %cst_11 {dimension_numbers = #tpu.dot_dimension_numbers<[1], [0], [0], [1], [0, 0, 1, 1], [], []>} : vector<4x10xf32>, vector<10x256xf32>, vector<4x256xf32> -> vector<4x256xf32>
    %17 = vector.broadcast %0 : vector<1x256xf32> to vector<4x256xf32>
    %18 = arith.mulf %16, %17 : vector<4x256xf32>
    %c0_12 = arith.constant 0 : index
    %c0_13 = arith.constant 0 : index
    %19 = vector.load %arg6[%c0_12, %c0_13] : memref<4x37xf32, #tpu.memory_space<vmem>>, vector<4x37xf32>
    %c0_14 = arith.constant 0 : index
    %c0_15 = arith.constant 0 : index
    %20 = vector.load %arg7[%c0_14, %c0_15] : memref<4x37xf32, #tpu.memory_space<vmem>>, vector<4x37xf32>
    %c0_16 = arith.constant 0 : index
    %c0_17 = arith.constant 0 : index
    %21 = vector.load %arg8[%c0_16, %c0_17] : memref<4x37xf32, #tpu.memory_space<vmem>>, vector<4x37xf32>
    %c0_18 = arith.constant 0 : index
    %c0_19 = arith.constant 0 : index
    %22 = vector.load %arg9[%c0_18, %c0_19] : memref<2x256xf32, #tpu.memory_space<vmem>>, vector<2x256xf32>
    %c11_i32_20 = arith.constant 11 : i32
    %23 = tpu.dynamic_rotate %18 by %c11_i32_20 dim 1 : vector<4x256xf32>, i32 -> vector<4x256xf32>
    %c10_i32_21 = arith.constant 10 : i32
    %24 = tpu.dynamic_rotate %18 by %c10_i32_21 dim 1 : vector<4x256xf32>, i32 -> vector<4x256xf32>
    %c9_i32_22 = arith.constant 9 : i32
    %25 = tpu.dynamic_rotate %18 by %c9_i32_22 dim 1 : vector<4x256xf32>, i32 -> vector<4x256xf32>
    %c1_i32_23 = arith.constant 1 : i32
    %26 = tpu.dynamic_rotate %18 by %c1_i32_23 dim 1 : vector<4x256xf32>, i32 -> vector<4x256xf32>
    %c255_i32_24 = arith.constant 255 : i32
    %27 = tpu.dynamic_rotate %18 by %c255_i32_24 dim 1 : vector<4x256xf32>, i32 -> vector<4x256xf32>
    %c247_i32_25 = arith.constant 247 : i32
    %28 = tpu.dynamic_rotate %18 by %c247_i32_25 dim 1 : vector<4x256xf32>, i32 -> vector<4x256xf32>
    %c246_i32_26 = arith.constant 246 : i32
    %29 = tpu.dynamic_rotate %18 by %c246_i32_26 dim 1 : vector<4x256xf32>, i32 -> vector<4x256xf32>
    %c245_i32_27 = arith.constant 245 : i32
    %30 = tpu.dynamic_rotate %18 by %c245_i32_27 dim 1 : vector<4x256xf32>, i32 -> vector<4x256xf32>
    %31 = tpu.concatenate %23, %24, %25, %26, %18, %27, %28, %29, %30, %0 in 0 : vector<4x256xf32>, vector<4x256xf32>, vector<4x256xf32>, vector<4x256xf32>, vector<4x256xf32>, vector<4x256xf32>, vector<4x256xf32>, vector<4x256xf32>, vector<4x256xf32>, vector<1x256xf32> -> vector<37x256xf32>
    %cst_28 = arith.constant dense<0.000000e+00> : vector<4x256xf32>
    %32 = tpu.matmul %19, %31, %cst_28 {dimension_numbers = #tpu.dot_dimension_numbers<[1], [0], [0], [1], [0, 0, 1, 1], [], []>} : vector<4x37xf32>, vector<37x256xf32>, vector<4x256xf32> -> vector<4x256xf32>
    %33 = vector.broadcast %0 : vector<1x256xf32> to vector<4x256xf32>
    %34 = arith.mulf %32, %33 : vector<4x256xf32>
    %c11_i32_29 = arith.constant 11 : i32
    %35 = tpu.dynamic_rotate %34 by %c11_i32_29 dim 1 : vector<4x256xf32>, i32 -> vector<4x256xf32>
    %c10_i32_30 = arith.constant 10 : i32
    %36 = tpu.dynamic_rotate %34 by %c10_i32_30 dim 1 : vector<4x256xf32>, i32 -> vector<4x256xf32>
    %c9_i32_31 = arith.constant 9 : i32
    %37 = tpu.dynamic_rotate %34 by %c9_i32_31 dim 1 : vector<4x256xf32>, i32 -> vector<4x256xf32>
    %c1_i32_32 = arith.constant 1 : i32
    %38 = tpu.dynamic_rotate %34 by %c1_i32_32 dim 1 : vector<4x256xf32>, i32 -> vector<4x256xf32>
    %c255_i32_33 = arith.constant 255 : i32
    %39 = tpu.dynamic_rotate %34 by %c255_i32_33 dim 1 : vector<4x256xf32>, i32 -> vector<4x256xf32>
    %c247_i32_34 = arith.constant 247 : i32
    %40 = tpu.dynamic_rotate %34 by %c247_i32_34 dim 1 : vector<4x256xf32>, i32 -> vector<4x256xf32>
    %c246_i32_35 = arith.constant 246 : i32
    %41 = tpu.dynamic_rotate %34 by %c246_i32_35 dim 1 : vector<4x256xf32>, i32 -> vector<4x256xf32>
    %c245_i32_36 = arith.constant 245 : i32
    %42 = tpu.dynamic_rotate %34 by %c245_i32_36 dim 1 : vector<4x256xf32>, i32 -> vector<4x256xf32>
    %43 = tpu.concatenate %35, %36, %37, %38, %34, %39, %40, %41, %42, %0 in 0 : vector<4x256xf32>, vector<4x256xf32>, vector<4x256xf32>, vector<4x256xf32>, vector<4x256xf32>, vector<4x256xf32>, vector<4x256xf32>, vector<4x256xf32>, vector<4x256xf32>, vector<1x256xf32> -> vector<37x256xf32>
    %cst_37 = arith.constant dense<0.000000e+00> : vector<4x256xf32>
    %44 = tpu.matmul %20, %43, %cst_37 {dimension_numbers = #tpu.dot_dimension_numbers<[1], [0], [0], [1], [0, 0, 1, 1], [], []>} : vector<4x37xf32>, vector<37x256xf32>, vector<4x256xf32> -> vector<4x256xf32>
    %45 = vector.broadcast %0 : vector<1x256xf32> to vector<4x256xf32>
    %46 = arith.mulf %44, %45 : vector<4x256xf32>
    %c11_i32_38 = arith.constant 11 : i32
    %47 = tpu.dynamic_rotate %46 by %c11_i32_38 dim 1 : vector<4x256xf32>, i32 -> vector<4x256xf32>
    %c10_i32_39 = arith.constant 10 : i32
    %48 = tpu.dynamic_rotate %46 by %c10_i32_39 dim 1 : vector<4x256xf32>, i32 -> vector<4x256xf32>
    %c9_i32_40 = arith.constant 9 : i32
    %49 = tpu.dynamic_rotate %46 by %c9_i32_40 dim 1 : vector<4x256xf32>, i32 -> vector<4x256xf32>
    %c1_i32_41 = arith.constant 1 : i32
    %50 = tpu.dynamic_rotate %46 by %c1_i32_41 dim 1 : vector<4x256xf32>, i32 -> vector<4x256xf32>
    %c255_i32_42 = arith.constant 255 : i32
    %51 = tpu.dynamic_rotate %46 by %c255_i32_42 dim 1 : vector<4x256xf32>, i32 -> vector<4x256xf32>
    %c247_i32_43 = arith.constant 247 : i32
    %52 = tpu.dynamic_rotate %46 by %c247_i32_43 dim 1 : vector<4x256xf32>, i32 -> vector<4x256xf32>
    %c246_i32_44 = arith.constant 246 : i32
    %53 = tpu.dynamic_rotate %46 by %c246_i32_44 dim 1 : vector<4x256xf32>, i32 -> vector<4x256xf32>
    %c245_i32_45 = arith.constant 245 : i32
    %54 = tpu.dynamic_rotate %46 by %c245_i32_45 dim 1 : vector<4x256xf32>, i32 -> vector<4x256xf32>
    %55 = tpu.concatenate %47, %48, %49, %50, %46, %51, %52, %53, %54, %0 in 0 : vector<4x256xf32>, vector<4x256xf32>, vector<4x256xf32>, vector<4x256xf32>, vector<4x256xf32>, vector<4x256xf32>, vector<4x256xf32>, vector<4x256xf32>, vector<4x256xf32>, vector<1x256xf32> -> vector<37x256xf32>
    %cst_46 = arith.constant dense<0.000000e+00> : vector<4x256xf32>
    %56 = tpu.matmul %21, %55, %cst_46 {dimension_numbers = #tpu.dot_dimension_numbers<[1], [0], [0], [1], [0, 0, 1, 1], [], []>} : vector<4x37xf32>, vector<37x256xf32>, vector<4x256xf32> -> vector<4x256xf32>
    %57 = vector.broadcast %0 : vector<1x256xf32> to vector<4x256xf32>
    %58 = arith.mulf %56, %57 : vector<4x256xf32>
    %59 = arith.mulf %58, %58 : vector<4x256xf32>
    %60 = tpu.concatenate %58, %59 in 0 : vector<4x256xf32>, vector<4x256xf32> -> vector<8x256xf32>
    %cst_47 = arith.constant dense<0.000000e+00> : vector<8x2xf32>
    %61 = tpu.matmul %60, %1, %cst_47 {dimension_numbers = #tpu.dot_dimension_numbers<[1], [0], [0], [1], [0, 0, 1, 1], [], []>} : vector<8x256xf32>, vector<256x2xf32>, vector<8x2xf32> -> vector<8x2xf32>
    %cst_48 = arith.constant 1.562500e-02 : f32
    %62 = vector.broadcast %cst_48 : f32 to vector<8x2xf32>
    %63 = arith.mulf %61, %62 : vector<8x2xf32>
    %64 = vector.extract_strided_slice %63 {offsets = [0, 0], sizes = [4, 2], strides = [1, 1]} : vector<8x2xf32> to vector<4x2xf32>
    %65 = vector.extract_strided_slice %63 {offsets = [4, 0], sizes = [4, 2], strides = [1, 1]} : vector<8x2xf32> to vector<4x2xf32>
    %66 = arith.mulf %64, %64 : vector<4x2xf32>
    %67 = arith.subf %65, %66 : vector<4x2xf32>
    %cst_49 = arith.constant 9.99999974E-6 : f32
    %68 = vector.broadcast %cst_49 : f32 to vector<4x2xf32>
    %69 = arith.addf %67, %68 : vector<4x2xf32>
    %70 = math.rsqrt %69 : vector<4x2xf32>
    %cst_50 = arith.constant 0.000000e+00 : f32
    %71 = vector.broadcast %cst_50 : f32 to vector<4x2xf32>
    %72 = arith.subf %71, %64 : vector<4x2xf32>
    %73 = arith.mulf %72, %70 : vector<4x2xf32>
    %74 = tpu.concatenate %70, %73 in 0 : vector<4x2xf32>, vector<4x2xf32> -> vector<8x2xf32>
    %cst_51 = arith.constant dense<0.000000e+00> : vector<8x256xf32>
    %75 = tpu.matmul %74, %2, %cst_51 {dimension_numbers = #tpu.dot_dimension_numbers<[1], [0], [0], [1], [0, 0, 1, 1], [], []>} : vector<8x2xf32>, vector<2x256xf32>, vector<8x256xf32> -> vector<8x256xf32>
    %76 = vector.extract_strided_slice %75 {offsets = [0, 0], sizes = [4, 256], strides = [1, 1]} : vector<8x256xf32> to vector<4x256xf32>
    %77 = arith.mulf %58, %76 : vector<4x256xf32>
    %78 = vector.extract_strided_slice %75 {offsets = [4, 0], sizes = [4, 256], strides = [1, 1]} : vector<8x256xf32> to vector<4x256xf32>
    %79 = arith.addf %77, %78 : vector<4x256xf32>
    %80 = vector.extract_strided_slice %22 {offsets = [0, 0], sizes = [1, 256], strides = [1, 1]} : vector<2x256xf32> to vector<1x256xf32>
    %81 = vector.broadcast %80 : vector<1x256xf32> to vector<4x256xf32>
    %82 = arith.mulf %79, %81 : vector<4x256xf32>
    %83 = vector.extract_strided_slice %22 {offsets = [1, 0], sizes = [1, 256], strides = [1, 1]} : vector<2x256xf32> to vector<1x256xf32>
    %84 = vector.broadcast %83 : vector<1x256xf32> to vector<4x256xf32>
    %85 = arith.addf %82, %84 : vector<4x256xf32>
    %cst_52 = arith.constant 0.000000e+00 : f32
    %86 = vector.broadcast %cst_52 : f32 to vector<4x256xf32>
    %87 = arith.maximumf %85, %86 : vector<4x256xf32>
    %88 = arith.addf %87, %18 : vector<4x256xf32>
    %c0_53 = arith.constant 0 : index
    %c0_54 = arith.constant 0 : index
    %89 = vector.load %arg10[%c0_53, %c0_54] : memref<4x37xf32, #tpu.memory_space<vmem>>, vector<4x37xf32>
    %c0_55 = arith.constant 0 : index
    %c0_56 = arith.constant 0 : index
    %90 = vector.load %arg11[%c0_55, %c0_56] : memref<2x256xf32, #tpu.memory_space<vmem>>, vector<2x256xf32>
    %c11_i32_57 = arith.constant 11 : i32
    %91 = tpu.dynamic_rotate %88 by %c11_i32_57 dim 1 : vector<4x256xf32>, i32 -> vector<4x256xf32>
    %c10_i32_58 = arith.constant 10 : i32
    %92 = tpu.dynamic_rotate %88 by %c10_i32_58 dim 1 : vector<4x256xf32>, i32 -> vector<4x256xf32>
    %c9_i32_59 = arith.constant 9 : i32
    %93 = tpu.dynamic_rotate %88 by %c9_i32_59 dim 1 : vector<4x256xf32>, i32 -> vector<4x256xf32>
    %c1_i32_60 = arith.constant 1 : i32
    %94 = tpu.dynamic_rotate %88 by %c1_i32_60 dim 1 : vector<4x256xf32>, i32 -> vector<4x256xf32>
    %c255_i32_61 = arith.constant 255 : i32
    %95 = tpu.dynamic_rotate %88 by %c255_i32_61 dim 1 : vector<4x256xf32>, i32 -> vector<4x256xf32>
    %c247_i32_62 = arith.constant 247 : i32
    %96 = tpu.dynamic_rotate %88 by %c247_i32_62 dim 1 : vector<4x256xf32>, i32 -> vector<4x256xf32>
    %c246_i32_63 = arith.constant 246 : i32
    %97 = tpu.dynamic_rotate %88 by %c246_i32_63 dim 1 : vector<4x256xf32>, i32 -> vector<4x256xf32>
    %c245_i32_64 = arith.constant 245 : i32
    %98 = tpu.dynamic_rotate %88 by %c245_i32_64 dim 1 : vector<4x256xf32>, i32 -> vector<4x256xf32>
    %99 = tpu.concatenate %91, %92, %93, %94, %88, %95, %96, %97, %98, %0 in 0 : vector<4x256xf32>, vector<4x256xf32>, vector<4x256xf32>, vector<4x256xf32>, vector<4x256xf32>, vector<4x256xf32>, vector<4x256xf32>, vector<4x256xf32>, vector<4x256xf32>, vector<1x256xf32> -> vector<37x256xf32>
    %cst_65 = arith.constant dense<0.000000e+00> : vector<4x256xf32>
    %100 = tpu.matmul %89, %99, %cst_65 {dimension_numbers = #tpu.dot_dimension_numbers<[1], [0], [0], [1], [0, 0, 1, 1], [], []>} : vector<4x37xf32>, vector<37x256xf32>, vector<4x256xf32> -> vector<4x256xf32>
    %101 = vector.broadcast %0 : vector<1x256xf32> to vector<4x256xf32>
    %102 = arith.mulf %100, %101 : vector<4x256xf32>
    %103 = arith.mulf %102, %102 : vector<4x256xf32>
    %104 = tpu.concatenate %102, %103 in 0 : vector<4x256xf32>, vector<4x256xf32> -> vector<8x256xf32>
    %cst_66 = arith.constant dense<0.000000e+00> : vector<8x2xf32>
    %105 = tpu.matmul %104, %1, %cst_66 {dimension_numbers = #tpu.dot_dimension_numbers<[1], [0], [0], [1], [0, 0, 1, 1], [], []>} : vector<8x256xf32>, vector<256x2xf32>, vector<8x2xf32> -> vector<8x2xf32>
    %cst_67 = arith.constant 1.562500e-02 : f32
    %106 = vector.broadcast %cst_67 : f32 to vector<8x2xf32>
    %107 = arith.mulf %105, %106 : vector<8x2xf32>
    %108 = vector.extract_strided_slice %107 {offsets = [0, 0], sizes = [4, 2], strides = [1, 1]} : vector<8x2xf32> to vector<4x2xf32>
    %109 = vector.extract_strided_slice %107 {offsets = [4, 0], sizes = [4, 2], strides = [1, 1]} : vector<8x2xf32> to vector<4x2xf32>
    %110 = arith.mulf %108, %108 : vector<4x2xf32>
    %111 = arith.subf %109, %110 : vector<4x2xf32>
    %cst_68 = arith.constant 9.99999974E-6 : f32
    %112 = vector.broadcast %cst_68 : f32 to vector<4x2xf32>
    %113 = arith.addf %111, %112 : vector<4x2xf32>
    %114 = math.rsqrt %113 : vector<4x2xf32>
    %cst_69 = arith.constant 0.000000e+00 : f32
    %115 = vector.broadcast %cst_69 : f32 to vector<4x2xf32>
    %116 = arith.subf %115, %108 : vector<4x2xf32>
    %117 = arith.mulf %116, %114 : vector<4x2xf32>
    %118 = tpu.concatenate %114, %117 in 0 : vector<4x2xf32>, vector<4x2xf32> -> vector<8x2xf32>
    %cst_70 = arith.constant dense<0.000000e+00> : vector<8x256xf32>
    %119 = tpu.matmul %118, %2, %cst_70 {dimension_numbers = #tpu.dot_dimension_numbers<[1], [0], [0], [1], [0, 0, 1, 1], [], []>} : vector<8x2xf32>, vector<2x256xf32>, vector<8x256xf32> -> vector<8x256xf32>
    %120 = vector.extract_strided_slice %119 {offsets = [0, 0], sizes = [4, 256], strides = [1, 1]} : vector<8x256xf32> to vector<4x256xf32>
    %121 = arith.mulf %102, %120 : vector<4x256xf32>
    %122 = vector.extract_strided_slice %119 {offsets = [4, 0], sizes = [4, 256], strides = [1, 1]} : vector<8x256xf32> to vector<4x256xf32>
    %123 = arith.addf %121, %122 : vector<4x256xf32>
    %124 = vector.extract_strided_slice %90 {offsets = [0, 0], sizes = [1, 256], strides = [1, 1]} : vector<2x256xf32> to vector<1x256xf32>
    %125 = vector.broadcast %124 : vector<1x256xf32> to vector<4x256xf32>
    %126 = arith.mulf %123, %125 : vector<4x256xf32>
    %127 = vector.extract_strided_slice %90 {offsets = [1, 0], sizes = [1, 256], strides = [1, 1]} : vector<2x256xf32> to vector<1x256xf32>
    %128 = vector.broadcast %127 : vector<1x256xf32> to vector<4x256xf32>
    %129 = arith.addf %126, %128 : vector<4x256xf32>
    %cst_71 = arith.constant 0.000000e+00 : f32
    %130 = vector.broadcast %cst_71 : f32 to vector<4x256xf32>
    %131 = arith.maximumf %129, %130 : vector<4x256xf32>
    %c0_72 = arith.constant 0 : index
    %c0_73 = arith.constant 0 : index
    %132 = vector.load %arg12[%c0_72, %c0_73] : memref<256x768xf32, #tpu.memory_space<vmem>>, vector<256x768xf32>
    %cst_74 = arith.constant dense<0.000000e+00> : vector<4x768xf32>
    %133 = tpu.matmul %131, %132, %cst_74 {dimension_numbers = #tpu.dot_dimension_numbers<[1], [0], [0], [1], [0, 0, 1, 1], [], []>} : vector<4x256xf32>, vector<256x768xf32>, vector<4x768xf32> -> vector<4x768xf32>
    %c0_75 = arith.constant 0 : index
    %c0_76 = arith.constant 0 : index
    %134 = vector.load %arg13[%c0_75, %c0_76] : memref<1x768xf32, #tpu.memory_space<vmem>>, vector<1x768xf32>
    %c0_77 = arith.constant 0 : index
    %c0_78 = arith.constant 0 : index
    %135 = vector.load %arg14[%c0_77, %c0_78] : memref<768x2xf32, #tpu.memory_space<vmem>>, vector<768x2xf32>
    %c0_79 = arith.constant 0 : index
    %c0_80 = arith.constant 0 : index
    %136 = vector.load %arg15[%c0_79, %c0_80] : memref<2x768xf32, #tpu.memory_space<vmem>>, vector<2x768xf32>
    %c0_81 = arith.constant 0 : index
    %c0_82 = arith.constant 0 : index
    %137 = vector.load %arg16[%c0_81, %c0_82] : memref<4x37xf32, #tpu.memory_space<vmem>>, vector<4x37xf32>
    %c0_83 = arith.constant 0 : index
    %c0_84 = arith.constant 0 : index
    %138 = vector.load %arg17[%c0_83, %c0_84] : memref<4x37xf32, #tpu.memory_space<vmem>>, vector<4x37xf32>
    %c0_85 = arith.constant 0 : index
    %c0_86 = arith.constant 0 : index
    %139 = vector.load %arg18[%c0_85, %c0_86] : memref<4x37xf32, #tpu.memory_space<vmem>>, vector<4x37xf32>
    %c0_87 = arith.constant 0 : index
    %c0_88 = arith.constant 0 : index
    %140 = vector.load %arg19[%c0_87, %c0_88] : memref<2x768xf32, #tpu.memory_space<vmem>>, vector<2x768xf32>
    %c19_i32 = arith.constant 19 : i32
    %141 = tpu.dynamic_rotate %133 by %c19_i32 dim 1 : vector<4x768xf32>, i32 -> vector<4x768xf32>
    %c18_i32 = arith.constant 18 : i32
    %142 = tpu.dynamic_rotate %133 by %c18_i32 dim 1 : vector<4x768xf32>, i32 -> vector<4x768xf32>
    %c17_i32 = arith.constant 17 : i32
    %143 = tpu.dynamic_rotate %133 by %c17_i32 dim 1 : vector<4x768xf32>, i32 -> vector<4x768xf32>
    %c1_i32_89 = arith.constant 1 : i32
    %144 = tpu.dynamic_rotate %133 by %c1_i32_89 dim 1 : vector<4x768xf32>, i32 -> vector<4x768xf32>
    %c767_i32 = arith.constant 767 : i32
    %145 = tpu.dynamic_rotate %133 by %c767_i32 dim 1 : vector<4x768xf32>, i32 -> vector<4x768xf32>
    %c751_i32 = arith.constant 751 : i32
    %146 = tpu.dynamic_rotate %133 by %c751_i32 dim 1 : vector<4x768xf32>, i32 -> vector<4x768xf32>
    %c750_i32 = arith.constant 750 : i32
    %147 = tpu.dynamic_rotate %133 by %c750_i32 dim 1 : vector<4x768xf32>, i32 -> vector<4x768xf32>
    %c749_i32 = arith.constant 749 : i32
    %148 = tpu.dynamic_rotate %133 by %c749_i32 dim 1 : vector<4x768xf32>, i32 -> vector<4x768xf32>
    %149 = tpu.concatenate %141, %142, %143, %144, %133, %145, %146, %147, %148, %134 in 0 : vector<4x768xf32>, vector<4x768xf32>, vector<4x768xf32>, vector<4x768xf32>, vector<4x768xf32>, vector<4x768xf32>, vector<4x768xf32>, vector<4x768xf32>, vector<4x768xf32>, vector<1x768xf32> -> vector<37x768xf32>
    %cst_90 = arith.constant dense<0.000000e+00> : vector<4x768xf32>
    %150 = tpu.matmul %137, %149, %cst_90 {dimension_numbers = #tpu.dot_dimension_numbers<[1], [0], [0], [1], [0, 0, 1, 1], [], []>} : vector<4x37xf32>, vector<37x768xf32>, vector<4x768xf32> -> vector<4x768xf32>
    %151 = vector.broadcast %134 : vector<1x768xf32> to vector<4x768xf32>
    %152 = arith.mulf %150, %151 : vector<4x768xf32>
    %c19_i32_91 = arith.constant 19 : i32
    %153 = tpu.dynamic_rotate %152 by %c19_i32_91 dim 1 : vector<4x768xf32>, i32 -> vector<4x768xf32>
    %c18_i32_92 = arith.constant 18 : i32
    %154 = tpu.dynamic_rotate %152 by %c18_i32_92 dim 1 : vector<4x768xf32>, i32 -> vector<4x768xf32>
    %c17_i32_93 = arith.constant 17 : i32
    %155 = tpu.dynamic_rotate %152 by %c17_i32_93 dim 1 : vector<4x768xf32>, i32 -> vector<4x768xf32>
    %c1_i32_94 = arith.constant 1 : i32
    %156 = tpu.dynamic_rotate %152 by %c1_i32_94 dim 1 : vector<4x768xf32>, i32 -> vector<4x768xf32>
    %c767_i32_95 = arith.constant 767 : i32
    %157 = tpu.dynamic_rotate %152 by %c767_i32_95 dim 1 : vector<4x768xf32>, i32 -> vector<4x768xf32>
    %c751_i32_96 = arith.constant 751 : i32
    %158 = tpu.dynamic_rotate %152 by %c751_i32_96 dim 1 : vector<4x768xf32>, i32 -> vector<4x768xf32>
    %c750_i32_97 = arith.constant 750 : i32
    %159 = tpu.dynamic_rotate %152 by %c750_i32_97 dim 1 : vector<4x768xf32>, i32 -> vector<4x768xf32>
    %c749_i32_98 = arith.constant 749 : i32
    %160 = tpu.dynamic_rotate %152 by %c749_i32_98 dim 1 : vector<4x768xf32>, i32 -> vector<4x768xf32>
    %161 = tpu.concatenate %153, %154, %155, %156, %152, %157, %158, %159, %160, %134 in 0 : vector<4x768xf32>, vector<4x768xf32>, vector<4x768xf32>, vector<4x768xf32>, vector<4x768xf32>, vector<4x768xf32>, vector<4x768xf32>, vector<4x768xf32>, vector<4x768xf32>, vector<1x768xf32> -> vector<37x768xf32>
    %cst_99 = arith.constant dense<0.000000e+00> : vector<4x768xf32>
    %162 = tpu.matmul %138, %161, %cst_99 {dimension_numbers = #tpu.dot_dimension_numbers<[1], [0], [0], [1], [0, 0, 1, 1], [], []>} : vector<4x37xf32>, vector<37x768xf32>, vector<4x768xf32> -> vector<4x768xf32>
    %163 = vector.broadcast %134 : vector<1x768xf32> to vector<4x768xf32>
    %164 = arith.mulf %162, %163 : vector<4x768xf32>
    %c19_i32_100 = arith.constant 19 : i32
    %165 = tpu.dynamic_rotate %164 by %c19_i32_100 dim 1 : vector<4x768xf32>, i32 -> vector<4x768xf32>
    %c18_i32_101 = arith.constant 18 : i32
    %166 = tpu.dynamic_rotate %164 by %c18_i32_101 dim 1 : vector<4x768xf32>, i32 -> vector<4x768xf32>
    %c17_i32_102 = arith.constant 17 : i32
    %167 = tpu.dynamic_rotate %164 by %c17_i32_102 dim 1 : vector<4x768xf32>, i32 -> vector<4x768xf32>
    %c1_i32_103 = arith.constant 1 : i32
    %168 = tpu.dynamic_rotate %164 by %c1_i32_103 dim 1 : vector<4x768xf32>, i32 -> vector<4x768xf32>
    %c767_i32_104 = arith.constant 767 : i32
    %169 = tpu.dynamic_rotate %164 by %c767_i32_104 dim 1 : vector<4x768xf32>, i32 -> vector<4x768xf32>
    %c751_i32_105 = arith.constant 751 : i32
    %170 = tpu.dynamic_rotate %164 by %c751_i32_105 dim 1 : vector<4x768xf32>, i32 -> vector<4x768xf32>
    %c750_i32_106 = arith.constant 750 : i32
    %171 = tpu.dynamic_rotate %164 by %c750_i32_106 dim 1 : vector<4x768xf32>, i32 -> vector<4x768xf32>
    %c749_i32_107 = arith.constant 749 : i32
    %172 = tpu.dynamic_rotate %164 by %c749_i32_107 dim 1 : vector<4x768xf32>, i32 -> vector<4x768xf32>
    %173 = tpu.concatenate %165, %166, %167, %168, %164, %169, %170, %171, %172, %134 in 0 : vector<4x768xf32>, vector<4x768xf32>, vector<4x768xf32>, vector<4x768xf32>, vector<4x768xf32>, vector<4x768xf32>, vector<4x768xf32>, vector<4x768xf32>, vector<4x768xf32>, vector<1x768xf32> -> vector<37x768xf32>
    %cst_108 = arith.constant dense<0.000000e+00> : vector<4x768xf32>
    %174 = tpu.matmul %139, %173, %cst_108 {dimension_numbers = #tpu.dot_dimension_numbers<[1], [0], [0], [1], [0, 0, 1, 1], [], []>} : vector<4x37xf32>, vector<37x768xf32>, vector<4x768xf32> -> vector<4x768xf32>
    %175 = vector.broadcast %134 : vector<1x768xf32> to vector<4x768xf32>
    %176 = arith.mulf %174, %175 : vector<4x768xf32>
    %177 = arith.mulf %176, %176 : vector<4x768xf32>
    %178 = tpu.concatenate %176, %177 in 0 : vector<4x768xf32>, vector<4x768xf32> -> vector<8x768xf32>
    %cst_109 = arith.constant dense<0.000000e+00> : vector<8x2xf32>
    %179 = tpu.matmul %178, %135, %cst_109 {dimension_numbers = #tpu.dot_dimension_numbers<[1], [0], [0], [1], [0, 0, 1, 1], [], []>} : vector<8x768xf32>, vector<768x2xf32>, vector<8x2xf32> -> vector<8x2xf32>
    %cst_110 = arith.constant 3.906250e-03 : f32
    %180 = vector.broadcast %cst_110 : f32 to vector<8x2xf32>
    %181 = arith.mulf %179, %180 : vector<8x2xf32>
    %182 = vector.extract_strided_slice %181 {offsets = [0, 0], sizes = [4, 2], strides = [1, 1]} : vector<8x2xf32> to vector<4x2xf32>
    %183 = vector.extract_strided_slice %181 {offsets = [4, 0], sizes = [4, 2], strides = [1, 1]} : vector<8x2xf32> to vector<4x2xf32>
    %184 = arith.mulf %182, %182 : vector<4x2xf32>
    %185 = arith.subf %183, %184 : vector<4x2xf32>
    %cst_111 = arith.constant 9.99999974E-6 : f32
    %186 = vector.broadcast %cst_111 : f32 to vector<4x2xf32>
    %187 = arith.addf %185, %186 : vector<4x2xf32>
    %188 = math.rsqrt %187 : vector<4x2xf32>
    %cst_112 = arith.constant 0.000000e+00 : f32
    %189 = vector.broadcast %cst_112 : f32 to vector<4x2xf32>
    %190 = arith.subf %189, %182 : vector<4x2xf32>
    %191 = arith.mulf %190, %188 : vector<4x2xf32>
    %192 = tpu.concatenate %188, %191 in 0 : vector<4x2xf32>, vector<4x2xf32> -> vector<8x2xf32>
    %cst_113 = arith.constant dense<0.000000e+00> : vector<8x768xf32>
    %193 = tpu.matmul %192, %136, %cst_113 {dimension_numbers = #tpu.dot_dimension_numbers<[1], [0], [0], [1], [0, 0, 1, 1], [], []>} : vector<8x2xf32>, vector<2x768xf32>, vector<8x768xf32> -> vector<8x768xf32>
    %194 = vector.extract_strided_slice %193 {offsets = [0, 0], sizes = [4, 768], strides = [1, 1]} : vector<8x768xf32> to vector<4x768xf32>
    %195 = arith.mulf %176, %194 : vector<4x768xf32>
    %196 = vector.extract_strided_slice %193 {offsets = [4, 0], sizes = [4, 768], strides = [1, 1]} : vector<8x768xf32> to vector<4x768xf32>
    %197 = arith.addf %195, %196 : vector<4x768xf32>
    %198 = vector.extract_strided_slice %140 {offsets = [0, 0], sizes = [1, 768], strides = [1, 1]} : vector<2x768xf32> to vector<1x768xf32>
    %199 = vector.broadcast %198 : vector<1x768xf32> to vector<4x768xf32>
    %200 = arith.mulf %197, %199 : vector<4x768xf32>
    %201 = vector.extract_strided_slice %140 {offsets = [1, 0], sizes = [1, 768], strides = [1, 1]} : vector<2x768xf32> to vector<1x768xf32>
    %202 = vector.broadcast %201 : vector<1x768xf32> to vector<4x768xf32>
    %203 = arith.addf %200, %202 : vector<4x768xf32>
    %cst_114 = arith.constant 0.000000e+00 : f32
    %204 = vector.broadcast %cst_114 : f32 to vector<4x768xf32>
    %205 = arith.maximumf %203, %204 : vector<4x768xf32>
    %206 = arith.addf %205, %133 : vector<4x768xf32>
    %c0_115 = arith.constant 0 : index
    %c0_116 = arith.constant 0 : index
    %207 = vector.load %arg20[%c0_115, %c0_116] : memref<4x37xf32, #tpu.memory_space<vmem>>, vector<4x37xf32>
    %c0_117 = arith.constant 0 : index
    %c0_118 = arith.constant 0 : index
    %208 = vector.load %arg21[%c0_117, %c0_118] : memref<2x768xf32, #tpu.memory_space<vmem>>, vector<2x768xf32>
    %c19_i32_119 = arith.constant 19 : i32
    %209 = tpu.dynamic_rotate %206 by %c19_i32_119 dim 1 : vector<4x768xf32>, i32 -> vector<4x768xf32>
    %c18_i32_120 = arith.constant 18 : i32
    %210 = tpu.dynamic_rotate %206 by %c18_i32_120 dim 1 : vector<4x768xf32>, i32 -> vector<4x768xf32>
    %c17_i32_121 = arith.constant 17 : i32
    %211 = tpu.dynamic_rotate %206 by %c17_i32_121 dim 1 : vector<4x768xf32>, i32 -> vector<4x768xf32>
    %c1_i32_122 = arith.constant 1 : i32
    %212 = tpu.dynamic_rotate %206 by %c1_i32_122 dim 1 : vector<4x768xf32>, i32 -> vector<4x768xf32>
    %c767_i32_123 = arith.constant 767 : i32
    %213 = tpu.dynamic_rotate %206 by %c767_i32_123 dim 1 : vector<4x768xf32>, i32 -> vector<4x768xf32>
    %c751_i32_124 = arith.constant 751 : i32
    %214 = tpu.dynamic_rotate %206 by %c751_i32_124 dim 1 : vector<4x768xf32>, i32 -> vector<4x768xf32>
    %c750_i32_125 = arith.constant 750 : i32
    %215 = tpu.dynamic_rotate %206 by %c750_i32_125 dim 1 : vector<4x768xf32>, i32 -> vector<4x768xf32>
    %c749_i32_126 = arith.constant 749 : i32
    %216 = tpu.dynamic_rotate %206 by %c749_i32_126 dim 1 : vector<4x768xf32>, i32 -> vector<4x768xf32>
    %217 = tpu.concatenate %209, %210, %211, %212, %206, %213, %214, %215, %216, %134 in 0 : vector<4x768xf32>, vector<4x768xf32>, vector<4x768xf32>, vector<4x768xf32>, vector<4x768xf32>, vector<4x768xf32>, vector<4x768xf32>, vector<4x768xf32>, vector<4x768xf32>, vector<1x768xf32> -> vector<37x768xf32>
    %cst_127 = arith.constant dense<0.000000e+00> : vector<4x768xf32>
    %218 = tpu.matmul %207, %217, %cst_127 {dimension_numbers = #tpu.dot_dimension_numbers<[1], [0], [0], [1], [0, 0, 1, 1], [], []>} : vector<4x37xf32>, vector<37x768xf32>, vector<4x768xf32> -> vector<4x768xf32>
    %219 = vector.broadcast %134 : vector<1x768xf32> to vector<4x768xf32>
    %220 = arith.mulf %218, %219 : vector<4x768xf32>
    %221 = arith.mulf %220, %220 : vector<4x768xf32>
    %222 = tpu.concatenate %220, %221 in 0 : vector<4x768xf32>, vector<4x768xf32> -> vector<8x768xf32>
    %cst_128 = arith.constant dense<0.000000e+00> : vector<8x2xf32>
    %223 = tpu.matmul %222, %135, %cst_128 {dimension_numbers = #tpu.dot_dimension_numbers<[1], [0], [0], [1], [0, 0, 1, 1], [], []>} : vector<8x768xf32>, vector<768x2xf32>, vector<8x2xf32> -> vector<8x2xf32>
    %cst_129 = arith.constant 3.906250e-03 : f32
    %224 = vector.broadcast %cst_129 : f32 to vector<8x2xf32>
    %225 = arith.mulf %223, %224 : vector<8x2xf32>
    %226 = vector.extract_strided_slice %225 {offsets = [0, 0], sizes = [4, 2], strides = [1, 1]} : vector<8x2xf32> to vector<4x2xf32>
    %227 = vector.extract_strided_slice %225 {offsets = [4, 0], sizes = [4, 2], strides = [1, 1]} : vector<8x2xf32> to vector<4x2xf32>
    %228 = arith.mulf %226, %226 : vector<4x2xf32>
    %229 = arith.subf %227, %228 : vector<4x2xf32>
    %cst_130 = arith.constant 9.99999974E-6 : f32
    %230 = vector.broadcast %cst_130 : f32 to vector<4x2xf32>
    %231 = arith.addf %229, %230 : vector<4x2xf32>
    %232 = math.rsqrt %231 : vector<4x2xf32>
    %cst_131 = arith.constant 0.000000e+00 : f32
    %233 = vector.broadcast %cst_131 : f32 to vector<4x2xf32>
    %234 = arith.subf %233, %226 : vector<4x2xf32>
    %235 = arith.mulf %234, %232 : vector<4x2xf32>
    %236 = tpu.concatenate %232, %235 in 0 : vector<4x2xf32>, vector<4x2xf32> -> vector<8x2xf32>
    %cst_132 = arith.constant dense<0.000000e+00> : vector<8x768xf32>
    %237 = tpu.matmul %236, %136, %cst_132 {dimension_numbers = #tpu.dot_dimension_numbers<[1], [0], [0], [1], [0, 0, 1, 1], [], []>} : vector<8x2xf32>, vector<2x768xf32>, vector<8x768xf32> -> vector<8x768xf32>
    %238 = vector.extract_strided_slice %237 {offsets = [0, 0], sizes = [4, 768], strides = [1, 1]} : vector<8x768xf32> to vector<4x768xf32>
    %239 = arith.mulf %220, %238 : vector<4x768xf32>
    %240 = vector.extract_strided_slice %237 {offsets = [4, 0], sizes = [4, 768], strides = [1, 1]} : vector<8x768xf32> to vector<4x768xf32>
    %241 = arith.addf %239, %240 : vector<4x768xf32>
    %242 = vector.extract_strided_slice %208 {offsets = [0, 0], sizes = [1, 768], strides = [1, 1]} : vector<2x768xf32> to vector<1x768xf32>
    %243 = vector.broadcast %242 : vector<1x768xf32> to vector<4x768xf32>
    %244 = arith.mulf %241, %243 : vector<4x768xf32>
    %245 = vector.extract_strided_slice %208 {offsets = [1, 0], sizes = [1, 768], strides = [1, 1]} : vector<2x768xf32> to vector<1x768xf32>
    %246 = vector.broadcast %245 : vector<1x768xf32> to vector<4x768xf32>
    %247 = arith.addf %244, %246 : vector<4x768xf32>
    %cst_133 = arith.constant 0.000000e+00 : f32
    %248 = vector.broadcast %cst_133 : f32 to vector<4x768xf32>
    %249 = arith.maximumf %247, %248 : vector<4x768xf32>
    %c0_134 = arith.constant 0 : index
    %c0_135 = arith.constant 0 : index
    %250 = vector.load %arg22[%c0_134, %c0_135] : memref<1x37xf32, #tpu.memory_space<vmem>>, vector<1x37xf32>
    %c0_136 = arith.constant 0 : index
    %c0_137 = arith.constant 0 : index
    %251 = vector.load %arg23[%c0_136, %c0_137] : memref<768x512xf32, #tpu.memory_space<vmem>>, vector<768x512xf32>
    %c19_i32_138 = arith.constant 19 : i32
    %252 = tpu.dynamic_rotate %249 by %c19_i32_138 dim 1 : vector<4x768xf32>, i32 -> vector<4x768xf32>
    %c18_i32_139 = arith.constant 18 : i32
    %253 = tpu.dynamic_rotate %249 by %c18_i32_139 dim 1 : vector<4x768xf32>, i32 -> vector<4x768xf32>
    %c17_i32_140 = arith.constant 17 : i32
    %254 = tpu.dynamic_rotate %249 by %c17_i32_140 dim 1 : vector<4x768xf32>, i32 -> vector<4x768xf32>
    %c1_i32_141 = arith.constant 1 : i32
    %255 = tpu.dynamic_rotate %249 by %c1_i32_141 dim 1 : vector<4x768xf32>, i32 -> vector<4x768xf32>
    %c767_i32_142 = arith.constant 767 : i32
    %256 = tpu.dynamic_rotate %249 by %c767_i32_142 dim 1 : vector<4x768xf32>, i32 -> vector<4x768xf32>
    %c751_i32_143 = arith.constant 751 : i32
    %257 = tpu.dynamic_rotate %249 by %c751_i32_143 dim 1 : vector<4x768xf32>, i32 -> vector<4x768xf32>
    %c750_i32_144 = arith.constant 750 : i32
    %258 = tpu.dynamic_rotate %249 by %c750_i32_144 dim 1 : vector<4x768xf32>, i32 -> vector<4x768xf32>
    %c749_i32_145 = arith.constant 749 : i32
    %259 = tpu.dynamic_rotate %249 by %c749_i32_145 dim 1 : vector<4x768xf32>, i32 -> vector<4x768xf32>
    %260 = tpu.concatenate %252, %253, %254, %255, %249, %256, %257, %258, %259, %134 in 0 : vector<4x768xf32>, vector<4x768xf32>, vector<4x768xf32>, vector<4x768xf32>, vector<4x768xf32>, vector<4x768xf32>, vector<4x768xf32>, vector<4x768xf32>, vector<4x768xf32>, vector<1x768xf32> -> vector<37x768xf32>
    %cst_146 = arith.constant dense<0.000000e+00> : vector<1x768xf32>
    %261 = tpu.matmul %250, %260, %cst_146 {dimension_numbers = #tpu.dot_dimension_numbers<[1], [0], [0], [1], [0, 0, 1, 1], [], []>} : vector<1x37xf32>, vector<37x768xf32>, vector<1x768xf32> -> vector<1x768xf32>
    %262 = arith.mulf %261, %134 : vector<1x768xf32>
    %cst_147 = arith.constant dense<0.000000e+00> : vector<1x512xf32>
    %263 = tpu.matmul %262, %251, %cst_147 {dimension_numbers = #tpu.dot_dimension_numbers<[1], [0], [0], [1], [0, 0, 1, 1], [], []>} : vector<1x768xf32>, vector<768x512xf32>, vector<1x512xf32> -> vector<1x512xf32>
    %c0_148 = arith.constant 0 : index
    %c0_149 = arith.constant 0 : index
    %264 = vector.load %arg24[%c0_148, %c0_149] : memref<1x512xf32, #tpu.memory_space<vmem>>, vector<1x512xf32>
    tpu.vector_store %arg24[%c0_148, %c0_149], %263 {strides = array<i32>} : memref<1x512xf32, #tpu.memory_space<vmem>>, vector<1x512xf32>,
    return
  }
}

</mosaic_0001>

<bundles_post_ra>
// kernel: fwd.1
= control target key start
LH: loop header
LB: loop body
LE: loop exit
PB: predicated region body
PF: predicated region fallthrough
CT: control target
= control target key end

     0   :  { %s10614_s0 = inlined_call_operand.vmem [shape: f32[1,65], index: 0, kind: input, shape index: {}]   ;;  %s10615_s1 = inlined_call_operand.hbm [shape: f32[1,256], index: 1, kind: input, shape index: {}]   ;;  %s10616_s2 = inlined_call_operand.vmem [shape: f32[256,2], index: 2, kind: input, shape index: {}]   ;;  %s10617_s3 = inlined_call_operand.hbm [shape: f32[2,256], index: 3, kind: input, shape index: {}]   ;;  %s10618_s4 = inlined_call_operand.hbm [shape: f32[65,256], index: 4, kind: input, shape index: {}]   ;;  %s10619_s5 = inlined_call_operand.hbm [shape: f32[4,10], index: 5, kind: input, shape index: {}]   ;;  %s10620_s6 = inlined_call_operand.hbm [shape: f32[4,37], index: 6, kind: input, shape index: {}]   ;;  %s10621_s7 = inlined_call_operand.hbm [shape: f32[4,37], index: 7, kind: input, shape index: {}]   ;;  %s10622_s8 = inlined_call_operand.hbm [shape: f32[4,37], index: 8, kind: input, shape index: {}]   ;;  %s10623_s9 = inlined_call_operand.hbm [shape: f32[2,256], index: 9, kind: input, shape index: {}]   ;;  %s10624_s10 = inlined_call_operand.hbm [shape: f32[4,37], index: 10, kind: input, shape index: {}]   ;;  %s10625_s11 = inlined_call_operand.hbm [shape: f32[2,256], index: 11, kind: input, shape index: {}]   ;;  %s10626_s12 = inlined_call_operand.hbm [shape: f32[256,768], index: 12, kind: input, shape index: {}]   ;;  %s10627_s13 = inlined_call_operand.hbm [shape: f32[1,768], index: 13, kind: input, shape index: {}]   ;;  %s10628_s14 = inlined_call_operand.vmem [shape: f32[768,2], index: 14, kind: input, shape index: {}]   ;;  %s10629_s15 = inlined_call_operand.hbm [shape: f32[2,768], index: 15, kind: input, shape index: {}]   ;;  %s10630_s16 = inlined_call_operand.hbm [shape: f32[4,37], index: 16, kind: input, shape index: {}]   ;;  %s10631_s17 = inlined_call_operand.hbm [shape: f32[4,37], index: 17, kind: input, shape index: {}]   ;;  %s10632_s18 = inlined_call_operand.hbm [shape: f32[4,37], index: 18, kind: input, shape index: {}]   ;;  %s10633_s19 = inlined_call_operand.hbm [shape: f32[2,768], index: 19, kind: input, shape index: {}]   ;;  %s10634_s20 = inlined_call_operand.hbm [shape: f32[4,37], index: 20, kind: input, shape index: {}]   ;;  %s10635_s21 = inlined_call_operand.hbm [shape: f32[2,768], index: 21, kind: input, shape index: {}]   ;;  %s10636_s22 = inlined_call_operand.hbm [shape: f32[1,37], index: 22, kind: input, shape index: {}]   ;;  %s10637_s23 = inlined_call_operand.hbm [shape: f32[768,512], index: 23, kind: input, shape index: {}]   ;;  %s10638_s24 = inlined_call_operand.vmem [shape: f32[1,512], index: 24, kind: output, shape index: {}]  }
   0x1   :  { %10659 = sst [smem:[#allocation45_spill]] %s10614_s0 }
   0x2   :  { %10660 = sst [smem:[#allocation46_spill]] %s10615_s1 }
   0x3   :  { %10661 = sst [smem:[#allocation47_spill]] %s10616_s2 }
   0x4   :  { %10662 = sst [smem:[#allocation48_spill]] %s10617_s3 }
   0x5   :  { %10663 = sst [smem:[#allocation49_spill]] %s10618_s4 }
   0x6   :  { %10664 = sst [smem:[#allocation50_spill]] %s10619_s5 }
   0x7   :  { %10665 = sst [smem:[#allocation51_spill]] %s10620_s6 }
   0x8   :  { %10666 = sst [smem:[#allocation52_spill]] %s10621_s7 }
   0x9   :  { %10667 = sst [smem:[#allocation53_spill]] %s10622_s8 }
   0xa   :  { %10668 = sst [smem:[#allocation54_spill]] %s10628_s14 }
   0xb   :  { %10669 = sst [smem:[#allocation55_spill]] %s10638_s24 }
   0xc   :  { %29 = vsyncpa [#allocation3], 0 }
   0xd   :  { %30 = vsyncpa [#allocation5], 0 }
   0xe   :  { %31 = vsyncpa [#allocation8], 0 }
   0xf   :  { %32 = vsyncpa [#allocation11], 0 }
  0x10   :  { %33 = vsyncpa [#allocation14], 0 }
  0x11   :  { %34 = vsyncpa [#allocation17], 0 }
  0x12   :  { %35 = vsyncpa [#allocation20], 0 }
  0x13   :  { %36 = vsyncpa [#allocation23], 0 }
  0x14   :  { %37 = vsyncpa [#allocation26], 0 }
  0x15   :  { %38 = vsyncpa [#allocation29], 0  ;;  %s10670_s27 = sld [smem:[#allocation48_spill]] }
  0x1b   :  { %s60_s28 = sshll.u32 %s10670_s27, 4  ;;  %s61_s28 = int_to_ptr.hbm [resolvable:$true] %s60_s28 }
  0x1c   :  { %39 = vsyncpa [#allocation32], 0  ;;  %s7224_s6 = smov [#allocation4]   ;;  %s10671_s7 = sld [smem:[#allocation50_spill]] }
  0x1d   :  { %s62_s2 = sshll.u32 %s7224_s6, 4  ;;  %s7225_s3 = smov [#allocation7]   ;;  %s63_s2 = int_to_ptr.vmem [resolvable:$true] %s62_s2 }
  0x1e   :  { %65 = dma.hbm_to_vmem [thread:$0]  %s61_s28, 64, %s63_s2, [#allocation5]  }
  0x1f   :  { %s86_s25 = sshll.u32 %s7225_s3, 4  ;;  %s10672_s1 = sld [smem:[#allocation52_spill]]  ;;  %s87_s25 = int_to_ptr.vmem [resolvable:$true] %s86_s25 }
  0x20   :  { %s128_s27 = sshll.u32 %s10623_s9, 4  ;;  %s7226_s6 = smov [#allocation10]   ;;  %s129_s27 = int_to_ptr.hbm [resolvable:$true] %s128_s27 }
  0x21   :  { %s108_s14 = sshll.u32 %s7226_s6, 4  ;;  %s7227_s28 = smov [#allocation13]   ;;  %s109_s14 = int_to_ptr.vmem [resolvable:$true] %s108_s14 }
  0x22   :  { %s84_s30 = sshll.u32 %s10671_s7, 4  ;;  %s130_s2 = sshll.u32 %s7227_s28, 4  ;;  %s85_s30 = int_to_ptr.hbm [resolvable:$true] %s84_s30  ;;  %s131_s2 = int_to_ptr.vmem [resolvable:$true] %s130_s2 }
  0x23   :  { %89 = dma.hbm_to_vmem [thread:$0]  %s85_s30, 64, %s87_s25, [#allocation8]  }
  0x24   :  { %s150_s7 = sshll.u32 %s10625_s11, 4  ;;  %s174_s25 = sshll.u32 %s10627_s13, 4  ;;  %s151_s7 = int_to_ptr.hbm [resolvable:$true] %s150_s7  ;;  %s175_s25 = int_to_ptr.hbm [resolvable:$true] %s174_s25 }
  0x25   :  { %s106_s24 = sshll.u32 %s10672_s1, 4  ;;  %s7228_s8 = smov [#allocation16]   ;;  %s107_s24 = int_to_ptr.hbm [resolvable:$true] %s106_s24 }
  0x26   :  { %111 = dma.hbm_to_vmem [thread:$0]  %s107_s24, 64, %s109_s14, [#allocation11]  }
  0x27   :  { %133 = dma.hbm_to_vmem [thread:$0]  %s129_s27, 64, %s131_s2, [#allocation14]  }
  0x28   :  { %s152_s9 = sshll.u32 %s7228_s8, 4  ;;  %s7229_s4 = smov [#allocation19]   ;;  %s153_s9 = int_to_ptr.vmem [resolvable:$true] %s152_s9 }
  0x29   :  { %155 = dma.hbm_to_vmem [thread:$0]  %s151_s7, 64, %s153_s9, [#allocation17]  }
  0x2a   :  { %s176_s14 = sshll.u32 %s7229_s4, 4  ;;  %s198_s5 = sshll.u32 %s10630_s16, 4  ;;  %s177_s14 = int_to_ptr.vmem [resolvable:$true] %s176_s14  ;;  %s199_s5 = int_to_ptr.hbm [resolvable:$true] %s198_s5 }
  0x2b   :  { %179 = dma.hbm_to_vmem [thread:$0]  %s175_s25, 96, %s177_s14, [#allocation20]  }
  0x2c   :  { %s220_s27 = sshll.u32 %s10632_s18, 4  ;;  %s7230_s6 = smov [#allocation22]   ;;  %s221_s27 = int_to_ptr.hbm [resolvable:$true] %s220_s27 }
  0x2d   :  { %s200_s13 = sshll.u32 %s7230_s6, 4  ;;  %s7231_s28 = smov [#allocation25]   ;;  %s201_s13 = int_to_ptr.vmem [resolvable:$true] %s200_s13 }
  0x2e   :  { %203 = dma.hbm_to_vmem [thread:$0]  %s199_s5, 64, %s201_s13, [#allocation23]  }
  0x2f   :  { %s222_s2 = sshll.u32 %s7231_s28, 4  ;;  %s242_s7 = sshll.u32 %s10634_s20, 4  ;;  %s223_s2 = int_to_ptr.vmem [resolvable:$true] %s222_s2  ;;  %s243_s7 = int_to_ptr.hbm [resolvable:$true] %s242_s7 }
  0x30   :  { %225 = dma.hbm_to_vmem [thread:$0]  %s221_s27, 64, %s223_s2, [#allocation26]  }
  0x31   :  { %s264_s30 = sshll.u32 %s10636_s22, 4  ;;  %s7232_s25 = smov [#allocation28]   ;;  %s265_s30 = int_to_ptr.hbm [resolvable:$true] %s264_s30 }
  0x32   :  { %s244_s18 = sshll.u32 %s7232_s25, 4  ;;  %s7233_s8 = smov [#allocation31]   ;;  %s245_s18 = int_to_ptr.vmem [resolvable:$true] %s244_s18 }
  0x33   :  { %247 = dma.hbm_to_vmem [thread:$0]  %s243_s7, 64, %s245_s18, [#allocation29]  }
  0x34   :  { %s266_s9 = sshll.u32 %s7233_s8, 4  ;;  %s10673_s24 = sld [smem:[#allocation46_spill]]  ;;  %s267_s9 = int_to_ptr.vmem [resolvable:$true] %s266_s9 }
  0x35   :  { %269 = dma.hbm_to_vmem [thread:$0]  %s265_s30, 16, %s267_s9, [#allocation32]  }
  0x36   :  { %s10674_s11 = sld [smem:[#allocation49_spill]]  ;;  %s7234_s27 = smov [#allocation2]  }
  0x37   :  { %s49_s22 = sshll.u32 %s7234_s27, 4  ;;  %s7235_s6 = smov [#allocation6]   ;;  %s50_s22 = int_to_ptr.vmem [resolvable:$true] %s49_s22 }
  0x38   :  { %s72_s13 = sshll.u32 %s7235_s6, 4  ;;  %s7236_s28 = smov 256   ;;  %s73_s13 = int_to_ptr.vmem [resolvable:$true] %s72_s13 }
  0x39   :  { %s7237_s2 = smov 16   ;;  %s10675_s7 = sld [smem:[#allocation51_spill]] }
  0x3a   :  { %s47_s1 = sshll.u32 %s10673_s24, 4  ;;  %s7238_s3 = smov [#allocation9]   ;;  %s48_s1 = int_to_ptr.hbm [resolvable:$true] %s47_s1 }
  0x3b   :  { %52 = dma.hbm_to_vmem [thread:$0]  %s48_s1, 32, %s50_s22, [#allocation3]  }
  0x3c   :  { %s70_s26 = sshll.u32 %s10674_s11, 4  ;;  %s97_s30 = sshll.u32 %s7238_s3, 4  ;;  %s71_s26 = int_to_ptr.hbm [resolvable:$true] %s70_s26  ;;  %s98_s30 = int_to_ptr.vmem [resolvable:$true] %s97_s30 }
  0x3d   :  { %78 = dma.hbm_to_vmem [thread:$0]  %s71_s26, 2304, %s73_s13, [#allocation5], %s7236_s28, %s7236_s28, %s7237_s2  }
  0x3e   :  { %s10676_s8 = sld [smem:[#allocation53_spill]]  ;;  %s7239_s4 = smov [#allocation12]  }
  0x3f   :  { %s95_s16 = sshll.u32 %s10675_s7, 4  ;;  %s119_s14 = sshll.u32 %s7239_s4, 4  ;;  %s96_s16 = int_to_ptr.hbm [resolvable:$true] %s95_s16  ;;  %s120_s14 = int_to_ptr.vmem [resolvable:$true] %s119_s14 }
  0x40   :  { %100 = dma.hbm_to_vmem [thread:$0]  %s96_s16, 64, %s98_s30, [#allocation8]  }
  0x41   :  { %s139_s20 = sshll.u32 %s10624_s10, 4  ;;  %s160_s26 = sshll.u32 %s10626_s12, 4  ;;  %s140_s20 = int_to_ptr.hbm [resolvable:$true] %s139_s20  ;;  %s161_s26 = int_to_ptr.hbm [resolvable:$true] %s160_s26 }
  0x42   :  { %s7240_s27 = smov [#allocation15]   ;;  %s7241_s6 = smov [#allocation18]  }
  0x43   :  { %s141_s22 = sshll.u32 %s7240_s27, 4  ;;  %s162_s13 = sshll.u32 %s7241_s6, 4  ;;  %s142_s22 = int_to_ptr.vmem [resolvable:$true] %s141_s22  ;;  %s163_s13 = int_to_ptr.vmem [resolvable:$true] %s162_s13 }
  0x44   :  { %s117_s9 = sshll.u32 %s10676_s8, 4  ;;  %s7242_s28 = smov 768   ;;  %s118_s9 = int_to_ptr.hbm [resolvable:$true] %s117_s9 }
  0x45   :  { %122 = dma.hbm_to_vmem [thread:$0]  %s118_s9, 64, %s120_s14, [#allocation11]  }
  0x46   :  { %144 = dma.hbm_to_vmem [thread:$0]  %s140_s20, 64, %s142_s22, [#allocation14]  }
  0x47   :  { %s7243_s2 = smov 48   ;;  %s187_s0 = sshll.u32 %s10629_s15, 4  ;;  %s188_s0 = int_to_ptr.hbm [resolvable:$true] %s187_s0 }
  0x48   :  { %168 = dma.hbm_to_vmem [thread:$0]  %s161_s26, 24576, %s163_s13, [#allocation17], %s7242_s28, %s7242_s28, %s7243_s2  }
  0x49   :  { %s7244_s7 = smov [#allocation21]   ;;  %s209_s30 = sshll.u32 %s10631_s17, 4  ;;  %s210_s30 = int_to_ptr.hbm [resolvable:$true] %s209_s30 }
  0x4a   :  { %s189_s16 = sshll.u32 %s7244_s7, 4  ;;  %s7245_s25 = smov [#allocation24]   ;;  %s190_s16 = int_to_ptr.vmem [resolvable:$true] %s189_s16 }
  0x4b   :  { %192 = dma.hbm_to_vmem [thread:$0]  %s188_s0, 192, %s190_s16, [#allocation20]  }
  0x4c   :  { %s211_s18 = sshll.u32 %s7245_s25, 4  ;;  %s231_s4 = sshll.u32 %s10633_s19, 4  ;;  %s212_s18 = int_to_ptr.vmem [resolvable:$true] %s211_s18  ;;  %s232_s4 = int_to_ptr.hbm [resolvable:$true] %s231_s4 }
  0x4d   :  { %214 = dma.hbm_to_vmem [thread:$0]  %s210_s30, 64, %s212_s18, [#allocation23]  }
  0x4e   :  { %s253_s24 = sshll.u32 %s10635_s21, 4  ;;  %s7246_s1 = smov [#allocation27]   ;;  %s254_s24 = int_to_ptr.hbm [resolvable:$true] %s253_s24 }
  0x4f   :  { %s233_s20 = sshll.u32 %s7246_s1, 4  ;;  %s7247_s17 = smov [#allocation30]   ;;  %s234_s20 = int_to_ptr.vmem [resolvable:$true] %s233_s20 }
  0x50   :  { %236 = dma.hbm_to_vmem [thread:$0]  %s232_s4, 192, %s234_s20, [#allocation26]  }
  0x51   :  { %s255_s5 = sshll.u32 %s7247_s17, 4  ;;  %s274_s27 = sshll.u32 %s10637_s23, 4  ;;  %s256_s5 = int_to_ptr.vmem [resolvable:$true] %s255_s5  ;;  %s275_s27 = int_to_ptr.hbm [resolvable:$true] %s274_s27 }
  0x52   :  { %258 = dma.hbm_to_vmem [thread:$0]  %s254_s24, 192, %s256_s5, [#allocation29]  }
  0x53   :  { %s7248_s19 = smov [#allocation33]   ;;  %s7249_s6 = smov 512  }
  0x54   :  { %s276_s22 = sshll.u32 %s7248_s19, 4  ;;  %s7250_s13 = smov 32   ;;  %s277_s22 = int_to_ptr.vmem [resolvable:$true] %s276_s22 }
  0x55   :  { %282 = dma.hbm_to_vmem [thread:$0]  %s275_s27, 49152, %s277_s22, [#allocation32], %s7249_s6, %s7249_s6, %s7250_s13  }
  0x56   :  { %7202 = dma.done.wait [#allocation3], 32  }
  0x57   :  { %7203 = vsyncadd [#allocation3], 4294967264 }
  0x58   :  { %7204 = dma.done.wait [#allocation5], 2368  }
  0x59   :  { %7205 = vsyncadd [#allocation5], 4294964928 }
  0x5a   :  { %7206 = dma.done.wait [#allocation8], 128  }
  0x5b   :  { %7207 = vsyncadd [#allocation8], 4294967168 }
  0x5c   :  { %7208 = dma.done.wait [#allocation11], 128  }
  0x5d   :  { %7209 = vsyncadd [#allocation11], 4294967168 }
  0x5e   :  { %7210 = dma.done.wait [#allocation14], 128  }
  0x5f   :  { %7211 = vsyncadd [#allocation14], 4294967168 }
  0x60   :  { %7212 = dma.done.wait [#allocation17], 24640  }
  0x61   :  { %7213 = vsyncadd [#allocation17], 4294942656 }
  0x62   :  { %7214 = dma.done.wait [#allocation20], 288  }
  0x63   :  { %7215 = vsyncadd [#allocation20], 4294967008 }
  0x64   :  { %7216 = dma.done.wait [#allocation23], 128  }
  0x65   :  { %7217 = vsyncadd [#allocation23], 4294967168 }
  0x66   :  { %7218 = dma.done.wait [#allocation26], 256  }
  0x67   :  { %7219 = vsyncadd [#allocation26], 4294967040 }
  0x68   :  { %7220 = dma.done.wait [#allocation29], 256  }
  0x69   :  { %7221 = vsyncadd [#allocation29], 4294967040 }
  0x6a   :  { %7222 = dma.done.wait [#allocation32], 49168  }
  0x6b   :  { %7223 = vsyncadd [#allocation32], 4294918128  ;;  %vm10641_vm0 = vcmask 1040384   ;;  %v417_v0 = vld [vmem:[#allocation6 + $0x80] sm:$0x1]  ;;  %v415_v2 = vld [vmem:[#allocation6 + $0x70] sm:$0xff]  ;;  %v10642_v22 = vlaneseq }
  0x6c   :  { %v418_v1 = vld [vmem:[#allocation6 + $0x88] sm:$0x1]  ;;  %5744 = vmatpush.msk.msra.mxu0 %vm10641_vm0, %v417_v0  ;;  %v416_v3 = vld [vmem:[#allocation6 + $0x78] sm:$0xff]  ;;  %v413_v4 = vld [vmem:[#allocation6 + $0x60] sm:$0xff]  ;;  %s10677_s28 = sld [smem:[#allocation45_spill]]  ;;  %vm420_vm1 = vcmask 531456  }
  0x6d   :  { %5746 = vmatpush.msk.msra.mxu1 %vm10641_vm0, %v418_v1  ;;  %v414_v5 = vld [vmem:[#allocation6 + $0x68] sm:$0xff]  ;;  %v411_v6 = vld [vmem:[#allocation6 + $0x50] sm:$0xff]  ;;  %v412_v7 = vld [vmem:[#allocation6 + $0x58] sm:$0xff]  ;;  %s7251_s2 = smov 127   ;;  %s7252_s29 = smov 11   ;;  %v7476_v24 = vand.u32 127, %v10642_v22 }
  0x6e   :  { %439 = vmatpush.msra.mxu0 %v415_v2  ;;  %v409_v8 = vld [vmem:[#allocation6 + $0x40] sm:$0xff]  ;;  %v410_v9 = vld [vmem:[#allocation6 + $0x48] sm:$0xff]  ;;  %v407_v10 = vld [vmem:[#allocation6 + $0x30] sm:$0xff]  ;;  %s7253_s10 = smov 10   ;;  %s7254_s0 = smov 119   ;;  %vm579_vm8 = vcmask 1041408  }
  0x6f   :  { %459 = vmatpush.msra.mxu1 %v416_v3  ;;  %v408_v11 = vld [vmem:[#allocation6 + $0x38] sm:$0xff]  ;;  %v405_v12 = vld [vmem:[#allocation6 + $0x20] sm:$0xff]  ;;  %v406_v13 = vld [vmem:[#allocation6 + $0x28] sm:$0xff]  ;;  %s7255_s7 = smov 1   ;;  %s7256_s16 = smov 9   ;;  %vm506_vm2 = vcmp.lt.s32.totalorder %v7476_v24, 127 }
  0x70   :  { %440 = vmatpush.msra.mxu0 %v413_v4  ;;  %v403_v14 = vld [vmem:[#allocation6 + $0x10] sm:$0xff]  ;;  %v404_v15 = vld [vmem:[#allocation6 + $0x18] sm:$0xff]  ;;  %v401_v16 = vld [vmem:[#allocation6] sm:$0xff]  ;;  %s7257_s12 = smov 117   ;;  %s7258_s3 = smov 118   ;;  %vm485_vm3 = vcmp.lt.s32.totalorder %v7476_v24, 10 }
  0x71   :  { %460 = vmatpush.msra.mxu1 %v414_v5  ;;  %v402_v17 = vld [vmem:[#allocation6 + $0x8] sm:$0xff]  ;;  %vm478_vm4 = vcmp.lt.s32.totalorder %v7476_v24, 11  ;;  %vm499_vm5 = vcmp.lt.s32.totalorder %v7476_v24, 1  ;;  %vm492_vm6 = vcmp.lt.s32.totalorder %v7476_v24, 9  ;;  %vm513_vm7 = vcmp.lt.s32.totalorder %v7476_v24, 119  ;;  %s10678_s18 = sld [smem:[#allocation47_spill]] }
  0x72   :  { %441 = vmatpush.msra.mxu0 %v411_v6  ;;  %v419_v18 = vld [vmem:[%s10677_s28] sm:$0x1]  ;;  %vm582_vm9 = vcmask 1042432   ;;  %vm585_vm10 = vcmask 1043456   ;;  %v367_v54 = vld [vmem:[#allocation2] sm:$0x3] }
  0x73   :  { %461 = vmatpush.msra.mxu1 %v412_v7  ;;  %vm527_vm11 = vcmp.lt.s32.totalorder %v7476_v24, 117  ;;  %v7515_v1 = vperm.slane %v367_v54, 0  ;;  %v7517_v2 = vperm.slane %v367_v54, 1  ;;  %vm588_vm12 = vcmask 1044480   ;;  %s10690_s28 = sld [smem:[#allocation54_spill]] }
  0x74   :  { %442 = vmatpush.msra.mxu0 %v409_v8  ;;  %vm520_vm13 = vcmp.lt.s32.totalorder %v7476_v24, 118  ;;  %vm591_vm14 = vcmask 1045504   ;;  %vm594_vm15 = vcmask 1046528  }
  0x75   :  { %462 = vmatpush.msra.mxu1 %v410_v9 }
  0x76   :  { %443 = vmatpush.msra.mxu0 %v407_v10 }
  0x77   :  { %463 = vmatpush.msra.mxu1 %v408_v11 }
  0x78   :  { %444 = vmatpush.msra.mxu0 %v405_v12 }
  0x79   :  { %464 = vmatpush.msra.mxu1 %v406_v13 }
  0x7a   :  { %445 = vmatpush.msra.mxu0 %v403_v14 }
  0x7b   :  { %465 = vmatpush.msra.mxu1 %v404_v15 }
  0x7c   :  { %446 = vmatpush.msra.mxu0 %v401_v16 }
  0x7d   :  { %466 = vmatpush.msra.mxu1 %v402_v17  ;;  %5745 = vmatmul.msk.f32.vlgmr.msra.gmra.mxu0 %vm420_vm1, %v419_v18 }
  0x7e   :  { %5747 = vmatmul.msk.f32.vlgmr.msra.gmra.mxu1 %vm420_vm1, %v419_v18  ;;  %vm599_vm1 = vcmask 80896  }
  0xfa   :  { %v7458_v19 = vpop.f32.mrf.mxu0 }
  0xfb   :  { %v7460_v20 = vpop.f32.mrf.mxu1  ;;  %v550_v34 = vrot.slane %v7458_v19, 4 }
  0xfc   :  { %v5921_v21 = vpack.i.bf16 %v7460_v20, %v7458_v19  ;;  %v551_v35 = vrot.slane %v7460_v20, 4 }
  0xfe   :  { %5922 = vrot.lane.b32.xlu2 %v5921_v21, %s7251_s2  ;;  %5912 = vrot.lane.b32.xlu1 %v5921_v21, %s7252_s29 }
  0xff   :  { %5902 = vrot.lane.b32.xlu0 %v5921_v21, %s7253_s10 }
 0x106   :  { %5927 = vrot.lane.b32.xlu2 %v5921_v21, %s7254_s0  ;;  %5917 = vrot.lane.b32.xlu1 %v5921_v21, %s7255_s7 }
 0x107   :  { %5907 = vrot.lane.b32.xlu0 %v5921_v21, %s7256_s16 }
 0x10e   :  { %525 = vrot.lane.b32.xlu2 %v7460_v20, %s7257_s12  ;;  %523 = vrot.lane.b32.xlu1 %v7458_v19, %s7257_s12 }
 0x10f   :  { %5932 = vrot.lane.b32.xlu0 %v5921_v21, %s7258_s3 }
 0x158   :  { %v5923_v23 = vpop.permute.xlu2 %5922 }
 0x159   :  { %v5925_v25 = vunpack.i.h.bf16 %v5923_v23  ;;  %v5924_v26 = vunpack.i.l.bf16 %v5923_v23 }
 0x15b   :  { %v7481_v31 = vsel %vm506_vm2, %v5924_v26, %v5925_v25  ;;  %v7485_v32 = vsel %vm506_vm2, %v5925_v25, %v5924_v26 }
 0x15c   :  { %v556_v36 = vrot.slane %v7481_v31, 3  ;;  %v557_v37 = vrot.slane %v7485_v32, 3  ;;  %v471_v32 = vld [vmem:[#allocation7] sm:$0xf] }
 0x160   :  { %v5928_v33 = vpop.permute.xlu2 %5927 }
 0x161   :  { %v5930_v40 = vunpack.i.h.bf16 %v5928_v33  ;;  %v5929_v51 = vunpack.i.l.bf16 %v5928_v33 }
 0x163   :  { %v514_v3 = vsel %vm513_vm7, %v5929_v51, %v5930_v40  ;;  %v515_v9 = vsel %vm513_vm7, %v5930_v40, %v5929_v51 }
 0x164   :  { %v562_v20 = vrot.slane %v514_v3, 2 }
 0x168   :  { %v526_v6 = vpop.permute.xlu2 %525 }
 0x170   :  { %v5913_v27 = vpop.permute.xlu1 %5912 }
 0x171   :  { %v5903_v28 = vpop.permute.xlu0 %5902  ;;  %v5915_v42 = vunpack.i.h.bf16 %v5913_v27  ;;  %v5914_v43 = vunpack.i.l.bf16 %v5913_v27  ;;  %v563_v27 = vrot.slane %v515_v9, 2 }
 0x172   :  { %v5905_v29 = vunpack.i.h.bf16 %v5903_v28  ;;  %v5904_v30 = vunpack.i.l.bf16 %v5903_v28 }
 0x173   :  { %v479_v59 = vsel %vm478_vm4, %v5914_v43, %v5915_v42  ;;  %v480_v60 = vsel %vm478_vm4, %v5915_v42, %v5914_v43 }
 0x174   :  { %v486_v38 = vsel %vm485_vm3, %v5904_v30, %v5905_v29  ;;  %v487_v39 = vsel %vm485_vm3, %v5905_v29, %v5904_v30 }
 0x175   :  { %v532_v47 = vrot.slane %v487_v39, 7  ;;  %v533_v48 = vrot.slane %v486_v38, 7 }
 0x177   :  { %v577_v63 = vsel %vm10641_vm0, %v480_v60, %v532_v47  ;;  %v578_v0 = vsel %vm10641_vm0, %v479_v59, %v533_v48 }
 0x178   :  { %v5918_v41 = vpop.permute.xlu1 %5917 }
 0x179   :  { %v5920_v44 = vunpack.i.h.bf16 %v5918_v41  ;;  %v5919_v45 = vunpack.i.l.bf16 %v5918_v41  ;;  %v5908_v46 = vpop.permute.xlu0 %5907 }
 0x17a   :  { %v5910_v49 = vunpack.i.h.bf16 %v5908_v46  ;;  %v5909_v50 = vunpack.i.l.bf16 %v5908_v46 }
 0x17b   :  { %v500_v52 = vsel %vm499_vm5, %v5919_v45, %v5920_v44  ;;  %v501_v53 = vsel %vm499_vm5, %v5920_v44, %v5919_v45 }
 0x17c   :  { %v544_v55 = vrot.slane %v501_v53, 5  ;;  %v545_v56 = vrot.slane %v500_v52, 5  ;;  %v493_v57 = vsel %vm492_vm6, %v5909_v50, %v5910_v49  ;;  %v494_v58 = vsel %vm492_vm6, %v5910_v49, %v5909_v50 }
 0x17d   :  { %v538_v61 = vrot.slane %v494_v58, 6  ;;  %v539_v62 = vrot.slane %v493_v57, 6 }
 0x17f   :  { %v580_v4 = vsel %vm579_vm8, %v577_v63, %v538_v61  ;;  %v581_v5 = vsel %vm579_vm8, %v578_v0, %v539_v62 }
 0x180   :  { %v524_v7 = vpop.permute.xlu1 %523  ;;  %v583_v8 = vsel %vm582_vm9, %v580_v4, %v544_v55  ;;  %v584_v10 = vsel %vm582_vm9, %v581_v5, %v545_v56  ;;  %vm737_vm9 = vcmask 302080  }
 0x181   :  { %v5933_v11 = vpop.permute.xlu0 %5932  ;;  %v528_v12 = vsel %vm527_vm11, %v524_v7, %v526_v6  ;;  %v529_v13 = vsel %vm527_vm11, %v526_v6, %v524_v7  ;;  %v586_v14 = vsel %vm585_vm10, %v583_v8, %v550_v34  ;;  %v587_v15 = vsel %vm585_vm10, %v584_v10, %v551_v35 }
 0x182   :  { %v5935_v16 = vunpack.i.h.bf16 %v5933_v11  ;;  %v5934_v17 = vunpack.i.l.bf16 %v5933_v11  ;;  %v597_v18 = vsel %vm10641_vm0, %v528_v12, %v7515_v1  ;;  %v598_v19 = vsel %vm10641_vm0, %v529_v13, %v7517_v2 }
 0x183   :  { %5748 = vmatpush.msk.msra.mxu2 %vm579_vm8, %v597_v18  ;;  %5750 = vmatpush.msk.msra.mxu3 %vm579_vm8, %v598_v19  ;;  %v589_v21 = vsel %vm588_vm12, %v586_v14, %v556_v36  ;;  %v590_v23 = vsel %vm588_vm12, %v587_v15, %v557_v37  ;;  %vm1135_vm0 = vcmask 15360  }
 0x184   :  { %v521_v25 = vsel %vm520_vm13, %v5934_v17, %v5935_v16  ;;  %v522_v26 = vsel %vm520_vm13, %v5935_v16, %v5934_v17  ;;  %v592_v30 = vsel %vm591_vm14, %v589_v21, %v562_v20  ;;  %v593_v31 = vsel %vm591_vm14, %v590_v23, %v563_v27 }
 0x185   :  { %v568_v28 = vrot.slane %v521_v25, 1  ;;  %v569_v29 = vrot.slane %v522_v26, 1 }
 0x187   :  { %v595_v33 = vsel %vm594_vm15, %v592_v30, %v568_v28  ;;  %v596_v34 = vsel %vm594_vm15, %v593_v31, %v569_v29 }
 0x188   :  { %624 = vmatpush.msra.mxu2 %v595_v33  ;;  %644 = vmatpush.msra.mxu3 %v596_v34 }
 0x189   :  { %5749 = vmatmul.msk.f32.vlgmr.msra.gmra.mxu2 %vm599_vm1, %v471_v32  ;;  %5751 = vmatmul.msk.f32.vlgmr.msra.gmra.mxu3 %vm599_vm1, %v471_v32 }
 0x20c   :  { %v626_v35 = vpop.f32.mrf.mxu2  ;;  %v646_v36 = vpop.f32.mrf.mxu3 }
 0x20d   :  { %v7547_v37 = vmul.f32 %v626_v35, %v7515_v1  ;;  %v7550_v38 = vmul.f32 %v646_v36, %v7517_v2  ;;  %v651_v35 = vld [vmem:[#allocation9] sm:$0xf] }
 0x20f   :  { %699 = vrot.lane.b32.xlu2 %v7550_v38, %s7257_s12  ;;  %697 = vrot.lane.b32.xlu1 %v7547_v37, %s7257_s12  ;;  %v5936_v39 = vpack.i.bf16 %v7550_v38, %v7547_v37 }
 0x211   :  { %5937 = vrot.lane.b32.xlu0 %v5936_v39, %s7258_s3 }
 0x217   :  { %5952 = vrot.lane.b32.xlu2 %v5936_v39, %s7255_s7  ;;  %5947 = vrot.lane.b32.xlu1 %v5936_v39, %s7254_s0 }
 0x219   :  { %5942 = vrot.lane.b32.xlu0 %v5936_v39, %s7251_s2 }
 0x21f   :  { %5967 = vrot.lane.b32.xlu2 %v5936_v39, %s7252_s29  ;;  %5962 = vrot.lane.b32.xlu1 %v5936_v39, %s7256_s16 }
 0x221   :  { %5957 = vrot.lane.b32.xlu0 %v5936_v39, %s7253_s10 }
 0x269   :  { %v700_v40 = vpop.permute.xlu2 %699 }
 0x271   :  { %v5953_v49 = vpop.permute.xlu2 %5952 }
 0x272   :  { %v5955_v55 = vunpack.i.h.bf16 %v5953_v49  ;;  %v5954_v56 = vunpack.i.l.bf16 %v5953_v49 }
 0x274   :  { %v678_v9 = vsel %vm499_vm5, %v5955_v55, %v5954_v56  ;;  %v677_v10 = vsel %vm499_vm5, %v5954_v56, %v5955_v55 }
 0x275   :  { %v711_v19 = vrot.slane %v678_v9, 4  ;;  %v712_v20 = vrot.slane %v677_v10, 4 }
 0x279   :  { %v5968_v8 = vpop.permute.xlu2 %5967 }
 0x27a   :  { %v5970_v16 = vunpack.i.h.bf16 %v5968_v8  ;;  %v5969_v17 = vunpack.i.l.bf16 %v5968_v8 }
 0x27c   :  { %v660_v33 = vsel %vm478_vm4, %v5970_v16, %v5969_v17  ;;  %v659_v34 = vsel %vm478_vm4, %v5969_v17, %v5970_v16 }
 0x281   :  { %v698_v41 = vpop.permute.xlu1 %697 }
 0x282   :  { %v701_v42 = vsel %vm527_vm11, %v698_v41, %v700_v40  ;;  %v702_v43 = vsel %vm527_vm11, %v700_v40, %v698_v41 }
 0x283   :  { %v5938_v44 = vpop.permute.xlu0 %5937  ;;  %v735_v45 = vsel %vm585_vm10, %v701_v42, %v7515_v1  ;;  %v736_v46 = vsel %vm585_vm10, %v702_v43, %v7517_v2 }
 0x284   :  { %v5940_v47 = vunpack.i.h.bf16 %v5938_v44  ;;  %v5939_v48 = vunpack.i.l.bf16 %v5938_v44  ;;  %5752 = vmatpush.msk.msrb.mxu2 %vm588_vm12, %v735_v45  ;;  %5754 = vmatpush.msk.msrb.mxu3 %vm588_vm12, %v736_v46 }
 0x286   :  { %v695_v50 = vsel %vm520_vm13, %v5939_v48, %v5940_v47  ;;  %v696_v51 = vsel %vm520_vm13, %v5940_v47, %v5939_v48 }
 0x287   :  { %v723_v58 = vrot.slane %v695_v50, 4  ;;  %v724_v59 = vrot.slane %v696_v51, 4 }
 0x289   :  { %v5948_v52 = vpop.permute.xlu1 %5947 }
 0x28a   :  { %v5950_v53 = vunpack.i.h.bf16 %v5948_v52  ;;  %v5949_v54 = vunpack.i.l.bf16 %v5948_v52 }
 0x28b   :  { %v5943_v57 = vpop.permute.xlu0 %5942 }
 0x28c   :  { %v5945_v60 = vunpack.i.h.bf16 %v5943_v57  ;;  %v5944_v61 = vunpack.i.l.bf16 %v5943_v57  ;;  %v689_v62 = vsel %vm513_vm7, %v5949_v54, %v5950_v53  ;;  %v690_v63 = vsel %vm513_vm7, %v5950_v53, %v5949_v54 }
 0x28d   :  { %v733_v0 = vsel %vm585_vm10, %v689_v62, %v723_v58  ;;  %v734_v3 = vsel %vm585_vm10, %v690_v63, %v724_v59 }
 0x28e   :  { %759 = vmatpush.msrb.mxu2 %v733_v0  ;;  %779 = vmatpush.msrb.mxu3 %v734_v3  ;;  %v683_v4 = vsel %vm506_vm2, %v5944_v61, %v5945_v60  ;;  %v684_v5 = vsel %vm506_vm2, %v5945_v60, %v5944_v61 }
 0x28f   :  { %v717_v6 = vrot.slane %v683_v4, 4  ;;  %v718_v7 = vrot.slane %v684_v5, 4 }
 0x291   :  { %v5963_v11 = vpop.permute.xlu1 %5962  ;;  %v731_v12 = vsel %vm585_vm10, %v7547_v37, %v717_v6  ;;  %v732_v13 = vsel %vm585_vm10, %v7550_v38, %v718_v7 }
 0x292   :  { %v5965_v14 = vunpack.i.h.bf16 %v5963_v11  ;;  %v5964_v15 = vunpack.i.l.bf16 %v5963_v11  ;;  %760 = vmatpush.msrb.mxu2 %v731_v12  ;;  %780 = vmatpush.msrb.mxu3 %v732_v13 }
 0x293   :  { %v5958_v18 = vpop.permute.xlu0 %5957 }
 0x294   :  { %v5960_v21 = vunpack.i.h.bf16 %v5958_v18  ;;  %v5959_v23 = vunpack.i.l.bf16 %v5958_v18  ;;  %v672_v25 = vsel %vm492_vm6, %v5965_v14, %v5964_v15  ;;  %v671_v26 = vsel %vm492_vm6, %v5964_v15, %v5965_v14 }
 0x295   :  { %v729_v27 = vsel %vm585_vm10, %v672_v25, %v711_v19  ;;  %v730_v28 = vsel %vm585_vm10, %v671_v26, %v712_v20 }
 0x296   :  { %761 = vmatpush.msrb.mxu2 %v729_v27  ;;  %781 = vmatpush.msrb.mxu3 %v730_v28  ;;  %v666_v29 = vsel %vm485_vm3, %v5960_v21, %v5959_v23  ;;  %v665_v30 = vsel %vm485_vm3, %v5959_v23, %v5960_v21 }
 0x297   :  { %v705_v31 = vrot.slane %v666_v29, 4  ;;  %v706_v32 = vrot.slane %v665_v30, 4 }
 0x299   :  { %v727_v36 = vsel %vm585_vm10, %v660_v33, %v705_v31  ;;  %v728_v39 = vsel %vm585_vm10, %v659_v34, %v706_v32 }
 0x29a   :  { %762 = vmatpush.msrb.mxu2 %v727_v36  ;;  %782 = vmatpush.msrb.mxu3 %v728_v39 }
 0x29b   :  { %5753 = vmatmul.msk.f32.vlgmr.msrb.gmra.mxu2 %vm737_vm9, %v651_v35  ;;  %5755 = vmatmul.msk.f32.vlgmr.msrb.gmra.mxu3 %vm737_vm9, %v651_v35 }
 0x31e   :  { %v764_v40 = vpop.f32.mrf.mxu2  ;;  %v784_v41 = vpop.f32.mrf.mxu3 }
 0x31f   :  { %v787_v42 = vmul.f32 %v764_v40, %v7515_v1  ;;  %v788_v43 = vmul.f32 %v784_v41, %v7517_v2 }
 0x321   :  { %833 = vrot.lane.b32.xlu2 %v788_v43, %s7257_s12  ;;  %831 = vrot.lane.b32.xlu1 %v787_v42, %s7257_s12  ;;  %v5971_v44 = vpack.i.bf16 %v788_v43, %v787_v42 }
 0x323   :  { %5972 = vrot.lane.b32.xlu0 %v5971_v44, %s7258_s3 }
 0x329   :  { %5987 = vrot.lane.b32.xlu2 %v5971_v44, %s7255_s7  ;;  %5982 = vrot.lane.b32.xlu1 %v5971_v44, %s7254_s0 }
 0x32b   :  { %5977 = vrot.lane.b32.xlu0 %v5971_v44, %s7251_s2 }
 0x331   :  { %6002 = vrot.lane.b32.xlu2 %v5971_v44, %s7252_s29  ;;  %5997 = vrot.lane.b32.xlu1 %v5971_v44, %s7256_s16 }
 0x333   :  { %5992 = vrot.lane.b32.xlu0 %v5971_v44, %s7253_s10 }
 0x37b   :  { %v834_v45 = vpop.permute.xlu2 %833 }
 0x383   :  { %v5988_v54 = vpop.permute.xlu2 %5987 }
 0x384   :  { %v5990_v60 = vunpack.i.h.bf16 %v5988_v54  ;;  %v5989_v61 = vunpack.i.l.bf16 %v5988_v54  ;;  %v7713_v54 = vld [vmem:[%s10678_s18 + $0xf0] sm:$0xff] }
 0x386   :  { %v812_v14 = vsel %vm499_vm5, %v5990_v60, %v5989_v61  ;;  %v811_v15 = vsel %vm499_vm5, %v5989_v61, %v5990_v60 }
 0x387   :  { %v845_v26 = vrot.slane %v812_v14, 4  ;;  %v846_v27 = vrot.slane %v811_v15, 4  ;;  %v7792_v14 = vld [vmem:[%s10678_s18 + $0x40] sm:$0xff] }
 0x388   :  { %v7797_v15 = vld [vmem:[%s10678_s18 + $0xc0] sm:$0xff] }
 0x38b   :  { %v6003_v13 = vpop.permute.xlu2 %6002 }
 0x38c   :  { %v6005_v21 = vunpack.i.h.bf16 %v6003_v13  ;;  %v6004_v23 = vunpack.i.l.bf16 %v6003_v13 }
 0x38e   :  { %v794_v40 = vsel %vm478_vm4, %v6005_v21, %v6004_v23  ;;  %v793_v41 = vsel %vm478_vm4, %v6004_v23, %v6005_v21 }
 0x393   :  { %v832_v46 = vpop.permute.xlu1 %831 }
 0x394   :  { %v835_v47 = vsel %vm527_vm11, %v832_v46, %v834_v45  ;;  %v836_v48 = vsel %vm527_vm11, %v834_v45, %v832_v46 }
 0x395   :  { %v5973_v49 = vpop.permute.xlu0 %5972  ;;  %v869_v50 = vsel %vm585_vm10, %v835_v47, %v7515_v1  ;;  %v870_v51 = vsel %vm585_vm10, %v836_v48, %v7517_v2 }
 0x396   :  { %v5975_v52 = vunpack.i.h.bf16 %v5973_v49  ;;  %v5974_v53 = vunpack.i.l.bf16 %v5973_v49  ;;  %5756 = vmatpush.msk.msra.mxu2 %vm588_vm12, %v869_v50  ;;  %5758 = vmatpush.msk.msra.mxu3 %vm588_vm12, %v870_v51  ;;  %v7696_v50 = vld [vmem:[%s10678_s18 + $0x78] sm:$0xff] }
 0x397   :  { %v7701_v51 = vld [vmem:[%s10678_s18 + $0xf8] sm:$0xff] }
 0x398   :  { %v829_v55 = vsel %vm520_vm13, %v5974_v53, %v5975_v52  ;;  %v830_v56 = vsel %vm520_vm13, %v5975_v52, %v5974_v53  ;;  %v7706_v52 = vld [vmem:[%s10678_s18 + $0x70] sm:$0xff] }
 0x399   :  { %v857_v63 = vrot.slane %v829_v55, 4  ;;  %v858_v0 = vrot.slane %v830_v56, 4  ;;  %v7718_v55 = vld [vmem:[%s10678_s18 + $0x68] sm:$0xff] }
 0x39a   :  { %v7723_v56 = vld [vmem:[%s10678_s18 + $0xe8] sm:$0xff] }
 0x39b   :  { %v5983_v57 = vpop.permute.xlu1 %5982 }
 0x39c   :  { %v5985_v58 = vunpack.i.h.bf16 %v5983_v57  ;;  %v5984_v59 = vunpack.i.l.bf16 %v5983_v57  ;;  %v7730_v57 = vld [vmem:[%s10678_s18 + $0x60] sm:$0xff] }
 0x39d   :  { %v5978_v62 = vpop.permute.xlu0 %5977 }
 0x39e   :  { %v5980_v3 = vunpack.i.h.bf16 %v5978_v62  ;;  %v5979_v4 = vunpack.i.l.bf16 %v5978_v62  ;;  %v823_v5 = vsel %vm513_vm7, %v5984_v59, %v5985_v58  ;;  %v824_v6 = vsel %vm513_vm7, %v5985_v58, %v5984_v59  ;;  %v7735_v58 = vld [vmem:[%s10678_s18 + $0xe0] sm:$0xff]  ;;  %v7748_v62 = vld [vmem:[%s10678_s18 + $0x58] sm:$0xff] }
 0x39f   :  { %v867_v7 = vsel %vm585_vm10, %v823_v5, %v857_v63  ;;  %v868_v8 = vsel %vm585_vm10, %v824_v6, %v858_v0  ;;  %v7753_v63 = vld [vmem:[%s10678_s18 + $0xd8] sm:$0xff] }
 0x3a0   :  { %892 = vmatpush.msra.mxu2 %v867_v7  ;;  %912 = vmatpush.msra.mxu3 %v868_v8  ;;  %v817_v9 = vsel %vm506_vm2, %v5979_v4, %v5980_v3  ;;  %v818_v10 = vsel %vm506_vm2, %v5980_v3, %v5979_v4  ;;  %v7764_v7 = vld [vmem:[%s10678_s18 + $0x50] sm:$0xff] }
 0x3a1   :  { %v851_v11 = vrot.slane %v817_v9, 4  ;;  %v852_v12 = vrot.slane %v818_v10, 4  ;;  %v7769_v8 = vld [vmem:[%s10678_s18 + $0xd0] sm:$0xff]  ;;  %v7776_v10 = vld [vmem:[%s10678_s18 + $0x48] sm:$0xff] }
 0x3a3   :  { %v5998_v16 = vpop.permute.xlu1 %5997  ;;  %v865_v17 = vsel %vm585_vm10, %v787_v42, %v851_v11  ;;  %v866_v18 = vsel %vm585_vm10, %v788_v43, %v852_v12  ;;  %v652_v42 = vld [vmem:[#allocation10] sm:$0xf] }
 0x3a4   :  { %v6000_v19 = vunpack.i.h.bf16 %v5998_v16  ;;  %v5999_v20 = vunpack.i.l.bf16 %v5998_v16  ;;  %893 = vmatpush.msra.mxu2 %v865_v17  ;;  %913 = vmatpush.msra.mxu3 %v866_v18  ;;  %v7781_v11 = vld [vmem:[%s10678_s18 + $0xc8] sm:$0xff] }
 0x3a5   :  { %v5993_v25 = vpop.permute.xlu0 %5992 }
 0x3a6   :  { %v5995_v28 = vunpack.i.h.bf16 %v5993_v25  ;;  %v5994_v29 = vunpack.i.l.bf16 %v5993_v25  ;;  %v806_v30 = vsel %vm492_vm6, %v6000_v19, %v5999_v20  ;;  %v805_v31 = vsel %vm492_vm6, %v5999_v20, %v6000_v19  ;;  %v7804_v19 = vld [vmem:[%s10678_s18 + $0x38] sm:$0xff] }
 0x3a7   :  { %v863_v32 = vsel %vm585_vm10, %v806_v30, %v845_v26  ;;  %v864_v33 = vsel %vm585_vm10, %v805_v31, %v846_v27  ;;  %v7809_v20 = vld [vmem:[%s10678_s18 + $0xb8] sm:$0xff] }
 0x3a8   :  { %894 = vmatpush.msra.mxu2 %v863_v32  ;;  %914 = vmatpush.msra.mxu3 %v864_v33  ;;  %v800_v34 = vsel %vm485_vm3, %v5995_v28, %v5994_v29  ;;  %v799_v35 = vsel %vm485_vm3, %v5994_v29, %v5995_v28  ;;  %v7820_v32 = vld [vmem:[%s10678_s18 + $0x30] sm:$0xff] }
 0x3a9   :  { %v839_v36 = vrot.slane %v800_v34, 4  ;;  %v840_v39 = vrot.slane %v799_v35, 4  ;;  %v7825_v33 = vld [vmem:[%s10678_s18 + $0xb0] sm:$0xff] }
 0x3ab   :  { %v861_v43 = vsel %vm585_vm10, %v794_v40, %v839_v36  ;;  %v862_v44 = vsel %vm585_vm10, %v793_v41, %v840_v39  ;;  %v7838_v40 = vld [vmem:[%s10678_s18 + $0x28] sm:$0xff] }
 0x3ac   :  { %895 = vmatpush.msra.mxu2 %v861_v43  ;;  %915 = vmatpush.msra.mxu3 %v862_v44  ;;  %v7843_v41 = vld [vmem:[%s10678_s18 + $0xa8] sm:$0xff] }
 0x3ad   :  { %5757 = vmatmul.msk.f32.vlgmr.msra.gmra.mxu2 %vm737_vm9, %v652_v42  ;;  %5759 = vmatmul.msk.f32.vlgmr.msra.gmra.mxu3 %vm737_vm9, %v652_v42 }
 0x3ae   :  { %1065 = vmatpush.msrb.mxu2 %v7696_v50  ;;  %1085 = vmatpush.msrb.mxu3 %v7701_v51 }
 0x3b0   :  { %1066 = vmatpush.msrb.mxu2 %v7706_v52  ;;  %1086 = vmatpush.msrb.mxu3 %v7713_v54 }
 0x3b2   :  { %1067 = vmatpush.msrb.mxu2 %v7718_v55  ;;  %1087 = vmatpush.msrb.mxu3 %v7723_v56 }
 0x3b4   :  { %1068 = vmatpush.msrb.mxu2 %v7730_v57  ;;  %1088 = vmatpush.msrb.mxu3 %v7735_v58 }
 0x3b6   :  { %1069 = vmatpush.msrb.mxu2 %v7748_v62  ;;  %1089 = vmatpush.msrb.mxu3 %v7753_v63 }
 0x3b8   :  { %1070 = vmatpush.msrb.mxu2 %v7764_v7  ;;  %1090 = vmatpush.msrb.mxu3 %v7769_v8 }
 0x3ba   :  { %1071 = vmatpush.msrb.mxu2 %v7776_v10  ;;  %1091 = vmatpush.msrb.mxu3 %v7781_v11 }
 0x3bc   :  { %1072 = vmatpush.msrb.mxu2 %v7792_v14  ;;  %1092 = vmatpush.msrb.mxu3 %v7797_v15 }
 0x3be   :  { %1073 = vmatpush.msrb.mxu2 %v7804_v19  ;;  %1093 = vmatpush.msrb.mxu3 %v7809_v20 }
 0x3c0   :  { %1074 = vmatpush.msrb.mxu2 %v7820_v32  ;;  %1094 = vmatpush.msrb.mxu3 %v7825_v33 }
 0x3c2   :  { %1075 = vmatpush.msrb.mxu2 %v7838_v40  ;;  %1095 = vmatpush.msrb.mxu3 %v7843_v41 }
 0x430   :  { %v897_v45 = vpop.f32.mrf.mxu2  ;;  %v917_v46 = vpop.f32.mrf.mxu3 }
 0x431   :  { %v7675_v47 = vmul.f32 %v897_v45, %v7515_v1  ;;  %v7678_v48 = vmul.f32 %v917_v46, %v7517_v2 }
 0x433   :  { %966 = vrot.lane.b32.xlu2 %v7678_v48, %s7257_s12  ;;  %964 = vrot.lane.b32.xlu1 %v7675_v47, %s7257_s12  ;;  %v6006_v49 = vpack.i.bf16 %v7678_v48, %v7675_v47 }
 0x435   :  { %6007 = vrot.lane.b32.xlu0 %v6006_v49, %s7258_s3 }
 0x43b   :  { %6022 = vrot.lane.b32.xlu2 %v6006_v49, %s7255_s7  ;;  %6017 = vrot.lane.b32.xlu1 %v6006_v49, %s7254_s0 }
 0x43d   :  { %6012 = vrot.lane.b32.xlu0 %v6006_v49, %s7251_s2 }
 0x443   :  { %6037 = vrot.lane.b32.xlu2 %v6006_v49, %s7252_s29  ;;  %6032 = vrot.lane.b32.xlu1 %v6006_v49, %s7256_s16 }
 0x445   :  { %6027 = vrot.lane.b32.xlu0 %v6006_v49, %s7253_s10  ;;  %v7854_v49 = vld [vmem:[%s10678_s18 + $0x20] sm:$0xff] }
 0x446   :  { %1076 = vmatpush.msrb.mxu2 %v7854_v49 }
 0x48d   :  { %v967_v53 = vpop.permute.xlu2 %966 }
 0x495   :  { %v6023_v9 = vpop.permute.xlu2 %6022 }
 0x496   :  { %v6025_v21 = vunpack.i.h.bf16 %v6023_v9  ;;  %v6024_v23 = vunpack.i.l.bf16 %v6023_v9 }
 0x498   :  { %v945_v45 = vsel %vm499_vm5, %v6025_v21, %v6024_v23  ;;  %v944_v46 = vsel %vm499_vm5, %v6024_v23, %v6025_v21 }
 0x499   :  { %v978_v9 = vrot.slane %v945_v45, 4  ;;  %v7931_v45 = vld [vmem:[%s10678_s18 + $0x80] sm:$0xff] }
 0x49d   :  { %v6038_v44 = vpop.permute.xlu2 %6037 }
 0x4a5   :  { %v965_v59 = vpop.permute.xlu1 %964 }
 0x4a6   :  { %v968_v60 = vsel %vm527_vm11, %v965_v59, %v967_v53  ;;  %v969_v61 = vsel %vm527_vm11, %v967_v53, %v965_v59  ;;  %v7859_v53 = vld [vmem:[%s10678_s18 + $0xa0] sm:$0xff] }
 0x4a7   :  { %v6008_v0 = vpop.permute.xlu0 %6007  ;;  %v1002_v3 = vsel %vm585_vm10, %v968_v60, %v7515_v1  ;;  %v1003_v4 = vsel %vm585_vm10, %v969_v61, %v7517_v2  ;;  %1096 = vmatpush.msrb.mxu3 %v7859_v53 }
 0x4a8   :  { %v6010_v5 = vunpack.i.h.bf16 %v6008_v0  ;;  %v6009_v6 = vunpack.i.l.bf16 %v6008_v0  ;;  %5760 = vmatpush.msk.msrb.mxu0 %vm588_vm12, %v1002_v3  ;;  %5762 = vmatpush.msk.msrb.mxu1 %vm588_vm12, %v1003_v4  ;;  %v6040_v4 = vunpack.i.h.bf16 %v6038_v44 }
 0x4aa   :  { %v962_v12 = vsel %vm520_vm13, %v6009_v6, %v6010_v5  ;;  %v963_v13 = vsel %vm520_vm13, %v6010_v5, %v6009_v6  ;;  %v6039_v5 = vunpack.i.l.bf16 %v6038_v44  ;;  %v7924_v44 = vld [vmem:[%s10678_s18] sm:$0xff] }
 0x4ab   :  { %v990_v26 = vrot.slane %v962_v12, 4  ;;  %v991_v27 = vrot.slane %v963_v13, 4  ;;  %v979_v12 = vrot.slane %v944_v46, 4 }
 0x4ad   :  { %v6018_v16 = vpop.permute.xlu1 %6017 }
 0x4ae   :  { %v6020_v17 = vunpack.i.h.bf16 %v6018_v16  ;;  %v6019_v18 = vunpack.i.l.bf16 %v6018_v16 }
 0x4af   :  { %v6013_v25 = vpop.permute.xlu0 %6012 }
 0x4b0   :  { %v6015_v28 = vunpack.i.h.bf16 %v6013_v25  ;;  %v6014_v29 = vunpack.i.l.bf16 %v6013_v25  ;;  %v956_v30 = vsel %vm513_vm7, %v6019_v18, %v6020_v17  ;;  %v957_v31 = vsel %vm513_vm7, %v6020_v17, %v6019_v18 }
 0x4b1   :  { %v1000_v34 = vsel %vm585_vm10, %v956_v30, %v990_v26  ;;  %v1001_v35 = vsel %vm585_vm10, %v957_v31, %v991_v27  ;;  %v927_v27 = vsel %vm478_vm4, %v6040_v4, %v6039_v5 }
 0x4b2   :  { %1025 = vmatpush.msrb.mxu0 %v1000_v34  ;;  %1045 = vmatpush.msrb.mxu1 %v1001_v35  ;;  %v950_v36 = vsel %vm506_vm2, %v6014_v29, %v6015_v28  ;;  %v951_v39 = vsel %vm506_vm2, %v6015_v28, %v6014_v29  ;;  %v926_v28 = vsel %vm478_vm4, %v6039_v5, %v6040_v4  ;;  %v653_v29 = vld [vmem:[#allocation12] sm:$0xf]  ;;  %v7890_v34 = vld [vmem:[%s10678_s18 + $0x18] sm:$0xff] }
 0x4b3   :  { %v984_v42 = vrot.slane %v950_v36, 4  ;;  %v985_v43 = vrot.slane %v951_v39, 4  ;;  %v7895_v35 = vld [vmem:[%s10678_s18 + $0x98] sm:$0xff]  ;;  %1077 = vmatpush.msrb.mxu2 %v7890_v34  ;;  %v7902_v36 = vld [vmem:[%s10678_s18 + $0x10] sm:$0xff] }
 0x4b4   :  { %1097 = vmatpush.msrb.mxu3 %v7895_v35  ;;  %v7907_v39 = vld [vmem:[%s10678_s18 + $0x90] sm:$0xff] }
 0x4b5   :  { %v6033_v59 = vpop.permute.xlu1 %6032  ;;  %v998_v60 = vsel %vm585_vm10, %v7675_v47, %v984_v42  ;;  %v999_v61 = vsel %vm585_vm10, %v7678_v48, %v985_v43  ;;  %1078 = vmatpush.msrb.mxu2 %v7902_v36  ;;  %v7914_v42 = vld [vmem:[%s10678_s18 + $0x8] sm:$0xff] }
 0x4b6   :  { %v6035_v0 = vunpack.i.h.bf16 %v6033_v59  ;;  %v6034_v3 = vunpack.i.l.bf16 %v6033_v59  ;;  %1026 = vmatpush.msrb.mxu0 %v998_v60  ;;  %1046 = vmatpush.msrb.mxu1 %v999_v61  ;;  %v7919_v43 = vld [vmem:[%s10678_s18 + $0x88] sm:$0xff] }
 0x4b7   :  { %v6028_v6 = vpop.permute.xlu0 %6027  ;;  %1098 = vmatpush.msrb.mxu3 %v7907_v39  ;;  %1079 = vmatpush.msrb.mxu2 %v7914_v42 }
 0x4b8   :  { %v6030_v47 = vunpack.i.h.bf16 %v6028_v6  ;;  %v6029_v13 = vunpack.i.l.bf16 %v6028_v6  ;;  %v939_v48 = vsel %vm492_vm6, %v6035_v0, %v6034_v3  ;;  %v938_v16 = vsel %vm492_vm6, %v6034_v3, %v6035_v0 }
 0x4b9   :  { %v996_v17 = vsel %vm585_vm10, %v939_v48, %v978_v9  ;;  %v997_v18 = vsel %vm585_vm10, %v938_v16, %v979_v12  ;;  %1099 = vmatpush.msrb.mxu3 %v7919_v43  ;;  %1080 = vmatpush.msrb.mxu2 %v7924_v44  ;;  %v400_v12 = vld [vmem:[#allocation4] sm:$0xf] }
 0x4ba   :  { %1027 = vmatpush.msrb.mxu0 %v996_v17  ;;  %1047 = vmatpush.msrb.mxu1 %v997_v18  ;;  %v933_v21 = vsel %vm485_vm3, %v6030_v47, %v6029_v13  ;;  %v932_v23 = vsel %vm485_vm3, %v6029_v13, %v6030_v47  ;;  %1132 = vst [vmem:[#allocation1] ss:$4 sm:$0xff] %v400_v12 }
 0x4bb   :  { %v972_v25 = vrot.slane %v933_v21, 4  ;;  %v973_v26 = vrot.slane %v932_v23, 4  ;;  %1100 = vmatpush.msrb.mxu3 %v7931_v45 }
 0x4bd   :  { %v994_v30 = vsel %vm585_vm10, %v927_v27, %v972_v25  ;;  %v995_v31 = vsel %vm585_vm10, %v926_v28, %v973_v26 }
 0x4be   :  { %1028 = vmatpush.msrb.mxu0 %v994_v30  ;;  %1048 = vmatpush.msrb.mxu1 %v995_v31 }
 0x4bf   :  { %5761 = vmatmul.msk.f32.vlgmr.msrb.gmra.mxu0 %vm737_vm9, %v653_v29  ;;  %5763 = vmatmul.msk.f32.vlgmr.msrb.gmra.mxu1 %vm737_vm9, %v653_v29 }
 0x4c1   :  { %v1133_v18 = vld.sshfl [vmem:[#allocation1] sm:$0xff pattern:$0x73625140]  ;;  %v1134_v21 = vld.sshfl [vmem:[#allocation1 + $0x8] sm:$0xff pattern:$0x73625140] }
 0x4c2   :  { %5764 = vmatpush.msk.msra.mxu0 %vm579_vm8, %v1133_v18  ;;  %5766 = vmatpush.msk.msra.mxu1 %vm579_vm8, %v1134_v21  ;;  %1425 = vst [vmem:[#allocation1] ss:$4 sm:$0xff] %v400_v12 }
 0x53c   :  { %v1030_v46 = vpop.f32.mrf.mxu0  ;;  %v1050_v59 = vpop.f32.mrf.mxu1 }
 0x53d   :  { %v1053_v60 = vmul.f32 %v1030_v46, %v7515_v1  ;;  %v1054_v61 = vmul.f32 %v1050_v59, %v7517_v2 }
 0x53f   :  { %v1055_v0 = vmul.f32 %v1053_v60, %v1053_v60  ;;  %v1056_v3 = vmul.f32 %v1054_v61, %v1054_v61 }
 0x541   :  { %v1059_v4 = vrot.slane %v1055_v0, 4  ;;  %v1060_v5 = vrot.slane %v1056_v3, 4 }
 0x543   :  { %v1063_v6 = vsel %vm585_vm10, %v1053_v60, %v1059_v4  ;;  %v1064_v9 = vsel %vm585_vm10, %v1054_v61, %v1060_v5 }
 0x544   :  { %1081 = vmatmul.f32.vlgmr.msrb.gmra.mxu2 %v1063_v6  ;;  %1101 = vmatmul.f32.vlgmr.msrb.gmra.mxu3 %v1064_v9  ;;  %v654_v9 = vld [vmem:[#allocation13] sm:$0xf] }
 0x545   :  { %v1194_v12 = vperm.slane %v654_v9, 0 }
 0x547   :  { %v1198_v18 = vperm.slane %v1194_v12, 0 }
 0x5c7   :  { %v1082_v47 = vpop.f32.mrf.mxu2  ;;  %v1102_v13 = vpop.f32.mrf.mxu3 }
 0x5c8   :  { %v1103_v48 = vadd.f32 %v1102_v13, %v1082_v47  ;;  %v1195_v47 = vperm.slane %v654_v9, 2  ;;  %v1202_v13 = vperm.slane %v654_v9, 1 }
 0x5ca   :  { %v1105_v16 = vmul.f32 0.015625, %v1103_v48  ;;  %v1203_v48 = vperm.slane %v654_v9, 3 }
 0x5cc   :  { %v1106_v17 = vmul.f32 %v1105_v16, %v1105_v16  ;;  %v1122_v0 = vsub.f32 0.0, %v1105_v16 }
 0x5ce   :  { %v1108_v23 = vrot.slane %v1106_v17, 4 }
 0x5d0   :  { %v1110_v25 = vsub.f32 %v1105_v16, %v1108_v23  ;;  %v1199_v23 = vperm.slane %v1195_v47, 0 }
 0x5d2   :  { %v1111_v26 = vadd.f32 1e-05, %v1110_v25 }
 0x5d4   :  { %6601 = vrsqrt.f32 %v1111_v26  ;;  %vm1118_vm15 = vweird.f32 %v1111_v26 }
 0x5da   :  { %v6602_v27 = vpop.eup %6601 }
 0x5db   :  { %v1113_v28 = vmul.f32 %v6602_v27, %v1111_v26  ;;  %vm1119_vm14 = vweird.f32 %v6602_v27 }
 0x5dc   :  { %vm1120_vm1 = vmor %vm1118_vm15, %vm1119_vm14  ;;  %vm2071_vm14 = vcmp.lt.s32.totalorder %v7476_v24, 18  ;;  %vm2052_vm15 = vcmp.lt.s32.totalorder %v7476_v24, 19 }
 0x5dd   :  { %v1114_v29 = vmul.f32 %v6602_v27, %v1113_v28 }
 0x5df   :  { %v1115_v30 = vmul.f32 0.5, %v1114_v29  ;;  %v1206_v29 = vperm.slane %v1202_v13, 1 }
 0x5e1   :  { %v1116_v31 = vsub.f32 1.5, %v1115_v30 }
 0x5e3   :  { %v1117_v46 = vmul.f32 %v6602_v27, %v1116_v31  ;;  %v1207_v31 = vperm.slane %v1203_v48, 1 }
 0x5e5   :  { %v1121_v59 = vsel %vm1120_vm1, %v6602_v27, %v1117_v46  ;;  %vm2090_vm1 = vcmp.lt.s32.totalorder %v7476_v24, 17 }
 0x5e6   :  { %v1124_v3 = vrot.slane %v1121_v59, 4 }
 0x5e8   :  { %v1126_v4 = vmul.f32 %v1124_v3, %v1122_v0 }
 0x5ea   :  { %v1128_v5 = vrot.slane %v1126_v4, 4 }
 0x5ec   :  { %v1130_v6 = vsel %vm585_vm10, %v1124_v3, %v1128_v5 }
 0x5ed   :  { %5765 = vmatmul.msk.f32.vlgmr.msra.gmra.mxu0 %vm1135_vm0, %v1130_v6  ;;  %5767 = vmatmul.msk.f32.vlgmr.msra.gmra.mxu1 %vm1135_vm0, %v1130_v6 }
 0x66a   :  { %v1160_v17 = vpop.f32.mrf.mxu0  ;;  %v1180_v21 = vpop.f32.mrf.mxu1 }
 0x66b   :  { %v1183_v16 = vmul.f32 %v1160_v17, %v1053_v60  ;;  %v1187_v25 = vrot.slane %v1160_v17, 4  ;;  %v1184_v26 = vmul.f32 %v1180_v21, %v1054_v61  ;;  %v1188_v27 = vrot.slane %v1180_v21, 4 }
 0x66d   :  { %v1191_v28 = vadd.f32 %v1187_v25, %v1183_v16  ;;  %v1192_v30 = vadd.f32 %v1188_v27, %v1184_v26 }
 0x66f   :  { %v1200_v46 = vmul.f32 %v1198_v18, %v1191_v28  ;;  %v1201_v59 = vmul.f32 %v1199_v23, %v1192_v30 }
 0x671   :  { %v1208_v0 = vadd.f32 %v1206_v29, %v1200_v46  ;;  %v1209_v3 = vadd.f32 %v1207_v31, %v1201_v59 }
 0x673   :  { %v1210_v4 = vmax.f32 %v1208_v0, 0.0  ;;  %v1211_v5 = vmax.f32 %v1209_v3, 0.0 }
 0x675   :  { %v1212_v6 = vadd.f32 %v1210_v4, %v7547_v37  ;;  %v1213_v9 = vadd.f32 %v1211_v5, %v7550_v38 }
 0x677   :  { %1260 = vrot.lane.b32.xlu2 %v1213_v9, %s7257_s12  ;;  %1258 = vrot.lane.b32.xlu1 %v1212_v6, %s7257_s12  ;;  %v6041_v60 = vpack.i.bf16 %v1213_v9, %v1212_v6  ;;  %s7263_s12 = smov 17  }
 0x679   :  { %6042 = vrot.lane.b32.xlu0 %v6041_v60, %s7258_s3  ;;  %s7264_s3 = smov 18  }
 0x67f   :  { %6057 = vrot.lane.b32.xlu2 %v6041_v60, %s7255_s7  ;;  %6052 = vrot.lane.b32.xlu1 %v6041_v60, %s7254_s0  ;;  %s7261_s0 = smov 111  }
 0x681   :  { %6047 = vrot.lane.b32.xlu0 %v6041_v60, %s7251_s2 }
 0x687   :  { %6072 = vrot.lane.b32.xlu2 %v6041_v60, %s7252_s29  ;;  %6067 = vrot.lane.b32.xlu1 %v6041_v60, %s7256_s16  ;;  %s7259_s29 = smov 109   ;;  %s7262_s16 = smov 19  }
 0x689   :  { %6062 = vrot.lane.b32.xlu0 %v6041_v60, %s7253_s10  ;;  %s7260_s10 = smov 110  }
 0x6d1   :  { %v1261_v37 = vpop.permute.xlu2 %1260 }
 0x6d9   :  { %v6058_v21 = vpop.permute.xlu2 %6057 }
 0x6da   :  { %v6060_v28 = vunpack.i.h.bf16 %v6058_v21  ;;  %v6059_v29 = vunpack.i.l.bf16 %v6058_v21 }
 0x6e9   :  { %v1259_v38 = vpop.permute.xlu1 %1258 }
 0x6ea   :  { %v1262_v61 = vsel %vm527_vm11, %v1259_v38, %v1261_v37  ;;  %v1263_v12 = vsel %vm527_vm11, %v1261_v37, %v1259_v38  ;;  %vm2164_vm11 = vcmp.lt.s32.totalorder %v7476_v24, 110 }
 0x6eb   :  { %v1296_v47 = vsel %vm585_vm10, %v1262_v61, %v7515_v1  ;;  %v1297_v13 = vsel %vm585_vm10, %v1263_v12, %v7517_v2  ;;  %v6043_v48 = vpop.permute.xlu0 %6042 }
 0x6ec   :  { %v6045_v17 = vunpack.i.h.bf16 %v6043_v48  ;;  %v6044_v18 = vunpack.i.l.bf16 %v6043_v48  ;;  %5768 = vmatpush.msk.msrb.mxu0 %vm588_vm12, %v1296_v47  ;;  %5770 = vmatpush.msk.msrb.mxu1 %vm588_vm12, %v1297_v13  ;;  %v1238_v47 = vsel %vm499_vm5, %v6059_v29, %v6060_v28  ;;  %v1239_v13 = vsel %vm499_vm5, %v6060_v28, %v6059_v29  ;;  %v6073_v48 = vpop.permute.xlu2 %6072 }
 0x6ee   :  { %v1256_v23 = vsel %vm520_vm13, %v6044_v18, %v6045_v17  ;;  %v1257_v16 = vsel %vm520_vm13, %v6045_v17, %v6044_v18  ;;  %vm2145_vm13 = vcmp.lt.s32.totalorder %v7476_v24, 111 }
 0x6ef   :  { %v1284_v31 = vrot.slane %v1256_v23, 4  ;;  %v1285_v46 = vrot.slane %v1257_v16, 4 }
 0x6f1   :  { %v6053_v25 = vpop.permute.xlu1 %6052 }
 0x6f2   :  { %v6055_v26 = vunpack.i.h.bf16 %v6053_v25  ;;  %v6054_v27 = vunpack.i.l.bf16 %v6053_v25  ;;  %v6075_v25 = vunpack.i.h.bf16 %v6073_v48 }
 0x6f3   :  { %v6048_v30 = vpop.permute.xlu0 %6047 }
 0x6f4   :  { %v6050_v59 = vunpack.i.h.bf16 %v6048_v30  ;;  %v6049_v0 = vunpack.i.l.bf16 %v6048_v30  ;;  %v1250_v3 = vsel %vm513_vm7, %v6054_v27, %v6055_v26  ;;  %v1251_v4 = vsel %vm513_vm7, %v6055_v26, %v6054_v27 }
 0x6f5   :  { %v1294_v5 = vsel %vm585_vm10, %v1250_v3, %v1284_v31  ;;  %v1295_v60 = vsel %vm585_vm10, %v1251_v4, %v1285_v46  ;;  %v6074_v26 = vunpack.i.l.bf16 %v6073_v48  ;;  %v1272_v30 = vrot.slane %v1239_v13, 4  ;;  %v1577_v13 = vld [vmem:[#allocation18 + $0x248] sm:$0xff] }
 0x6f6   :  { %v1244_v37 = vsel %vm506_vm2, %v6049_v0, %v6050_v59  ;;  %v1245_v38 = vsel %vm506_vm2, %v6050_v59, %v6049_v0  ;;  %1319 = vmatpush.msrb.mxu0 %v1294_v5  ;;  %1339 = vmatpush.msrb.mxu1 %v1295_v60  ;;  %v1273_v31 = vrot.slane %v1238_v47, 4  ;;  %v1673_v48 = vld [vmem:[#allocation18 + $0x548] sm:$0xff]  ;;  %vm2183_vm7 = vcmp.lt.s32.totalorder %v7476_v24, 109  ;;  %v4639_v24 = vld [vmem:[#allocation33 + $0x5c0] sm:$0xff] }
 0x6f7   :  { %v1278_v61 = vrot.slane %v1244_v37, 4  ;;  %v1279_v12 = vrot.slane %v1245_v38, 4  ;;  %v1221_v60 = vsel %vm478_vm4, %v6075_v25, %v6074_v26  ;;  %v1220_v37 = vsel %vm478_vm4, %v6074_v26, %v6075_v25  ;;  %v1214_v38 = vld [vmem:[#allocation15] sm:$0xf]  ;;  %v1660_v25 = vld [vmem:[#allocation18 + $0x4e0] sm:$0xff]  ;;  %v1565_v26 = vld [vmem:[#allocation18 + $0x1e8] sm:$0xff] }
 0x6f9   :  { %v6068_v17 = vpop.permute.xlu1 %6067  ;;  %v1292_v18 = vsel %vm585_vm10, %v1212_v6, %v1278_v61  ;;  %v1293_v21 = vsel %vm585_vm10, %v1213_v9, %v1279_v12 }
 0x6fa   :  { %v6070_v23 = vunpack.i.h.bf16 %v6068_v17  ;;  %v6069_v16 = vunpack.i.l.bf16 %v6068_v17  ;;  %1320 = vmatpush.msrb.mxu0 %v1292_v18  ;;  %1340 = vmatpush.msrb.mxu1 %v1293_v21  ;;  %v1570_v17 = vld [vmem:[#allocation18 + $0x210] sm:$0xff]  ;;  %v1571_v21 = vld [vmem:[#allocation18 + $0x218] sm:$0xff] }
 0x6fb   :  { %v6063_v27 = vpop.permute.xlu0 %6062  ;;  %v1666_v18 = vld [vmem:[#allocation18 + $0x510] sm:$0xff] }
 0x6fc   :  { %v6065_v46 = vunpack.i.h.bf16 %v6063_v27  ;;  %v6064_v59 = vunpack.i.l.bf16 %v6063_v27  ;;  %v1233_v28 = vsel %vm492_vm6, %v6070_v23, %v6069_v16  ;;  %v1232_v29 = vsel %vm492_vm6, %v6069_v16, %v6070_v23  ;;  %v1667_v23 = vld [vmem:[#allocation18 + $0x518] sm:$0xff]  ;;  %v1564_v16 = vld [vmem:[#allocation18 + $0x1e0] sm:$0xff]  ;;  %v1661_v27 = vld [vmem:[#allocation18 + $0x4e8] sm:$0xff] }
 0x6fd   :  { %v1290_v6 = vsel %vm585_vm10, %v1233_v28, %v1272_v30  ;;  %v1291_v9 = vsel %vm585_vm10, %v1232_v29, %v1273_v31  ;;  %v1558_v30 = vld [vmem:[#allocation18 + $0x1b0] sm:$0xff]  ;;  %v1552_v28 = vld [vmem:[#allocation18 + $0x180] sm:$0xff] }
 0x6fe   :  { %v1226_v0 = vsel %vm485_vm3, %v6064_v59, %v6065_v46  ;;  %v1227_v3 = vsel %vm485_vm3, %v6065_v46, %v6064_v59  ;;  %1321 = vmatpush.msrb.mxu0 %v1290_v6  ;;  %1341 = vmatpush.msrb.mxu1 %v1291_v9  ;;  %v1654_v31 = vld [vmem:[#allocation18 + $0x4b0] sm:$0xff]  ;;  %v1559_v46 = vld [vmem:[#allocation18 + $0x1b8] sm:$0xff]  ;;  %v1648_v29 = vld [vmem:[#allocation18 + $0x480] sm:$0xff] }
 0x6ff   :  { %v1266_v4 = vrot.slane %v1227_v3, 4  ;;  %v1267_v5 = vrot.slane %v1226_v0, 4  ;;  %v1655_v59 = vld [vmem:[#allocation18 + $0x4b8] sm:$0xff]  ;;  %v1553_v9 = vld [vmem:[#allocation18 + $0x188] sm:$0xff] }
 0x700   :  { %v1649_v0 = vld [vmem:[#allocation18 + $0x488] sm:$0xff] }
 0x701   :  { %v1288_v61 = vsel %vm585_vm10, %v1221_v60, %v1266_v4  ;;  %v1289_v12 = vsel %vm585_vm10, %v1220_v37, %v1267_v5  ;;  %v1546_v4 = vld [vmem:[#allocation18 + $0x150] sm:$0xff]  ;;  %v1547_v60 = vld [vmem:[#allocation18 + $0x158] sm:$0xff] }
 0x702   :  { %1322 = vmatpush.msrb.mxu0 %v1288_v61  ;;  %1342 = vmatpush.msrb.mxu1 %v1289_v12  ;;  %v1642_v5 = vld [vmem:[#allocation18 + $0x450] sm:$0xff]  ;;  %v1643_v37 = vld [vmem:[#allocation18 + $0x458] sm:$0xff]  ;;  %v1540_v61 = vld [vmem:[#allocation18 + $0x120] sm:$0xff] }
 0x703   :  { %5769 = vmatmul.msk.f32.vlgmr.msrb.gmra.mxu0 %vm737_vm9, %v1214_v38  ;;  %5771 = vmatmul.msk.f32.vlgmr.msrb.gmra.mxu1 %vm737_vm9, %v1214_v38  ;;  %v1636_v12 = vld [vmem:[#allocation18 + $0x420] sm:$0xff] }
 0x704   :  { %1359 = vmatpush.msra.mxu0 %v7696_v50  ;;  %1379 = vmatpush.msra.mxu1 %v7701_v51 }
 0x706   :  { %1360 = vmatpush.msra.mxu0 %v7706_v52  ;;  %1380 = vmatpush.msra.mxu1 %v7713_v54 }
 0x708   :  { %1361 = vmatpush.msra.mxu0 %v7718_v55  ;;  %1381 = vmatpush.msra.mxu1 %v7723_v56 }
 0x70a   :  { %1362 = vmatpush.msra.mxu0 %v7730_v57  ;;  %1382 = vmatpush.msra.mxu1 %v7735_v58 }
 0x70c   :  { %1363 = vmatpush.msra.mxu0 %v7748_v62  ;;  %1383 = vmatpush.msra.mxu1 %v7753_v63 }
 0x70e   :  { %1364 = vmatpush.msra.mxu0 %v7764_v7  ;;  %1384 = vmatpush.msra.mxu1 %v7769_v8 }
 0x710   :  { %1365 = vmatpush.msra.mxu0 %v7776_v10  ;;  %1385 = vmatpush.msra.mxu1 %v7781_v11  ;;  %v1426_v10 = vld.sshfl [vmem:[#allocation1] sm:$0xff pattern:$0x73625140] }
 0x711   :  { %v8051_v11 = vld [vmem:[#allocation21] sm:$0xff]  ;;  %5772 = vmatpush.msk.msra.mxu2 %vm579_vm8, %v1426_v10 }
 0x712   :  { %1366 = vmatpush.msra.mxu0 %v7792_v14  ;;  %1386 = vmatpush.msra.mxu1 %v7797_v15  ;;  %v1427_v14 = vld.sshfl [vmem:[#allocation1 + $0x8] sm:$0xff pattern:$0x73625140] }
 0x713   :  { %5774 = vmatpush.msk.msra.mxu3 %vm579_vm8, %v1427_v14  ;;  %3416 = vst [vmem:[#allocation1] ss:$4 sm:$0xff] %v8051_v11  ;;  %v1625_v10 = vld [vmem:[#allocation18 + $0x3c8] sm:$0xff] }
 0x714   :  { %1367 = vmatpush.msra.mxu0 %v7804_v19  ;;  %1387 = vmatpush.msra.mxu1 %v7809_v20  ;;  %v1594_v19 = vld [vmem:[#allocation18 + $0x2d0] sm:$0xff] }
 0x715   :  { %v1690_v20 = vld [vmem:[#allocation18 + $0x5d0] sm:$0xff]  ;;  %1696 = vmatpush.msrb.mxu2 %v1594_v19 }
 0x716   :  { %1368 = vmatpush.msra.mxu0 %v7820_v32  ;;  %1388 = vmatpush.msra.mxu1 %v7825_v33  ;;  %v1595_v32 = vld [vmem:[#allocation18 + $0x2d8] sm:$0xff]  ;;  %v1618_v19 = vld [vmem:[#allocation18 + $0x390] sm:$0xff] }
 0x717   :  { %1716 = vmatpush.msrb.mxu3 %v1690_v20  ;;  %v1523_v20 = vld [vmem:[#allocation18 + $0x98] sm:$0xff] }
 0x718   :  { %1369 = vmatpush.msra.mxu0 %v7838_v40  ;;  %1389 = vmatpush.msra.mxu1 %v7843_v41  ;;  %v1691_v40 = vld [vmem:[#allocation18 + $0x5d8] sm:$0xff]  ;;  %v1588_v41 = vld [vmem:[#allocation18 + $0x2a0] sm:$0xff] }
 0x719   :  { %1697 = vmatpush.msrb.mxu2 %v1588_v41  ;;  %v1612_v41 = vld [vmem:[#allocation18 + $0x360] sm:$0xff] }
 0x71a   :  { %1370 = vmatpush.msra.mxu0 %v7854_v49  ;;  %1390 = vmatpush.msra.mxu1 %v7859_v53  ;;  %v1684_v49 = vld [vmem:[#allocation18 + $0x5a0] sm:$0xff]  ;;  %v1589_v53 = vld [vmem:[#allocation18 + $0x2a8] sm:$0xff] }
 0x71b   :  { %1717 = vmatpush.msrb.mxu3 %v1684_v49 }
 0x71c   :  { %1371 = vmatpush.msra.mxu0 %v7890_v34  ;;  %1391 = vmatpush.msra.mxu1 %v7895_v35  ;;  %v1685_v34 = vld [vmem:[#allocation18 + $0x5a8] sm:$0xff]  ;;  %v1582_v35 = vld [vmem:[#allocation18 + $0x270] sm:$0xff] }
 0x71d   :  { %1698 = vmatpush.msrb.mxu2 %v1582_v35  ;;  %v1613_v35 = vld [vmem:[#allocation18 + $0x368] sm:$0xff] }
 0x71e   :  { %1372 = vmatpush.msra.mxu0 %v7902_v36  ;;  %1392 = vmatpush.msra.mxu1 %v7907_v39  ;;  %v1678_v39 = vld [vmem:[#allocation18 + $0x570] sm:$0xff] }
 0x71f   :  { %1718 = vmatpush.msrb.mxu3 %v1678_v39  ;;  %v1606_v39 = vld [vmem:[#allocation18 + $0x330] sm:$0xff] }
 0x720   :  { %1373 = vmatpush.msra.mxu0 %v7914_v42  ;;  %1393 = vmatpush.msra.mxu1 %v7919_v43  ;;  %v1583_v42 = vld [vmem:[#allocation18 + $0x278] sm:$0xff] }
 0x721   :  { %v1679_v43 = vld [vmem:[#allocation18 + $0x578] sm:$0xff] }
 0x722   :  { %1374 = vmatpush.msra.mxu0 %v7924_v44  ;;  %1394 = vmatpush.msra.mxu1 %v7931_v45  ;;  %v1576_v44 = vld [vmem:[#allocation18 + $0x240] sm:$0xff] }
 0x723   :  { %v1672_v45 = vld [vmem:[#allocation18 + $0x540] sm:$0xff]  ;;  %1699 = vmatpush.msrb.mxu2 %v1576_v44  ;;  %v1607_v44 = vld [vmem:[#allocation18 + $0x338] sm:$0xff] }
 0x724   :  { %1736 = vmatpush.msrb.mxu0 %v1595_v32  ;;  %1756 = vmatpush.msrb.mxu1 %v1691_v40  ;;  %v1619_v32 = vld [vmem:[#allocation18 + $0x398] sm:$0xff]  ;;  %v1516_v40 = vld [vmem:[#allocation18 + $0x60] sm:$0xff] }
 0x725   :  { %1719 = vmatpush.msrb.mxu3 %v1672_v45  ;;  %1700 = vmatpush.msrb.mxu2 %v1570_v17  ;;  %v1504_v45 = vld [vmem:[#allocation18] sm:$0xff] }
 0x726   :  { %1737 = vmatpush.msrb.mxu0 %v1589_v53  ;;  %1757 = vmatpush.msrb.mxu1 %v1685_v34  ;;  %v1517_v34 = vld [vmem:[#allocation18 + $0x68] sm:$0xff] }
 0x727   :  { %1720 = vmatpush.msrb.mxu3 %v1666_v18  ;;  %1701 = vmatpush.msrb.mxu2 %v1564_v16  ;;  %v1596_v18 = vld [vmem:[#allocation18 + $0x2e0] sm:$0xff]  ;;  %v1693_v16 = vld [vmem:[#allocation18 + $0x5e8] sm:$0xff] }
 0x728   :  { %1738 = vmatpush.msrb.mxu0 %v1583_v42  ;;  %1758 = vmatpush.msrb.mxu1 %v1679_v43  ;;  %v1511_v43 = vld [vmem:[#allocation18 + $0x38] sm:$0xff] }
 0x729   :  { %1721 = vmatpush.msrb.mxu3 %v1660_v25  ;;  %1702 = vmatpush.msrb.mxu2 %v1558_v30  ;;  %v1590_v25 = vld [vmem:[#allocation18 + $0x2b0] sm:$0xff]  ;;  %v1687_v30 = vld [vmem:[#allocation18 + $0x5b8] sm:$0xff] }
 0x72a   :  { %1739 = vmatpush.msrb.mxu0 %v1577_v13  ;;  %1759 = vmatpush.msrb.mxu1 %v1673_v48  ;;  %v1601_v48 = vld [vmem:[#allocation18 + $0x308] sm:$0xff] }
 0x72b   :  { %1722 = vmatpush.msrb.mxu3 %v1654_v31  ;;  %1703 = vmatpush.msrb.mxu2 %v1552_v28  ;;  %v1584_v31 = vld [vmem:[#allocation18 + $0x280] sm:$0xff]  ;;  %v1681_v28 = vld [vmem:[#allocation18 + $0x588] sm:$0xff] }
 0x72c   :  { %1740 = vmatpush.msrb.mxu0 %v1571_v21  ;;  %1760 = vmatpush.msrb.mxu1 %v1667_v23  ;;  %v1692_v21 = vld [vmem:[#allocation18 + $0x5e0] sm:$0xff]  ;;  %v1597_v23 = vld [vmem:[#allocation18 + $0x2e8] sm:$0xff] }
 0x72d   :  { %1723 = vmatpush.msrb.mxu3 %v1648_v29  ;;  %1704 = vmatpush.msrb.mxu2 %v1546_v4  ;;  %v1578_v29 = vld [vmem:[#allocation18 + $0x250] sm:$0xff]  ;;  %v1668_v4 = vld [vmem:[#allocation18 + $0x520] sm:$0xff] }
 0x72e   :  { %1741 = vmatpush.msrb.mxu0 %v1565_v26  ;;  %1761 = vmatpush.msrb.mxu1 %v1661_v27  ;;  %v1686_v26 = vld [vmem:[#allocation18 + $0x5b0] sm:$0xff]  ;;  %v1591_v27 = vld [vmem:[#allocation18 + $0x2b8] sm:$0xff] }
 0x72f   :  { %1724 = vmatpush.msrb.mxu3 %v1642_v5  ;;  %1705 = vmatpush.msrb.mxu2 %v1540_v61  ;;  %v1573_v5 = vld [vmem:[#allocation18 + $0x228] sm:$0xff]  ;;  %v1567_v61 = vld [vmem:[#allocation18 + $0x1f8] sm:$0xff] }
 0x730   :  { %1742 = vmatpush.msrb.mxu0 %v1559_v46  ;;  %1762 = vmatpush.msrb.mxu1 %v1655_v59  ;;  %v1680_v46 = vld [vmem:[#allocation18 + $0x580] sm:$0xff]  ;;  %v1585_v59 = vld [vmem:[#allocation18 + $0x288] sm:$0xff] }
 0x731   :  { %1725 = vmatpush.msrb.mxu3 %v1636_v12  ;;  %v1663_v12 = vld [vmem:[#allocation18 + $0x4f8] sm:$0xff] }
 0x732   :  { %1743 = vmatpush.msrb.mxu0 %v1553_v9  ;;  %1763 = vmatpush.msrb.mxu1 %v1649_v0  ;;  %v1579_v9 = vld [vmem:[#allocation18 + $0x258] sm:$0xff] }
 0x733   :  { %v1675_v0 = vld [vmem:[#allocation18 + $0x558] sm:$0xff] }
 0x734   :  { %1744 = vmatpush.msrb.mxu0 %v1547_v60  ;;  %1764 = vmatpush.msrb.mxu1 %v1643_v37  ;;  %v1669_v60 = vld [vmem:[#allocation18 + $0x528] sm:$0xff]  ;;  %v1566_v37 = vld [vmem:[#allocation18 + $0x1f0] sm:$0xff] }
 0x780   :  { %v1324_v50 = vpop.f32.mrf.mxu0  ;;  %v1344_v51 = vpop.f32.mrf.mxu1 }
 0x781   :  { %v8036_v52 = vmul.f32 %v1324_v50, %v7515_v1  ;;  %v8039_v54 = vmul.f32 %v1344_v51, %v7517_v2  ;;  %v1541_v50 = vld [vmem:[#allocation18 + $0x128] sm:$0xff] }
 0x782   :  { %v1637_v51 = vld [vmem:[#allocation18 + $0x428] sm:$0xff]  ;;  %1745 = vmatpush.msrb.mxu0 %v1541_v50  ;;  %v1560_v50 = vld [vmem:[#allocation18 + $0x1c0] sm:$0xff] }
 0x783   :  { %v1349_v55 = vmul.f32 %v8036_v52, %v8036_v52  ;;  %v1350_v56 = vmul.f32 %v8039_v54, %v8039_v54  ;;  %1765 = vmatpush.msrb.mxu1 %v1637_v51  ;;  %v1656_v51 = vld [vmem:[#allocation18 + $0x4c0] sm:$0xff] }
 0x785   :  { %v1353_v57 = vrot.slane %v1349_v55, 4  ;;  %v1354_v58 = vrot.slane %v1350_v56, 4  ;;  %v1534_v56 = vld [vmem:[#allocation18 + $0xf0] sm:$0xff] }
 0x786   :  { %1706 = vmatpush.msrb.mxu2 %v1534_v56  ;;  %v1657_v56 = vld [vmem:[#allocation18 + $0x4c8] sm:$0xff] }
 0x787   :  { %v1357_v62 = vsel %vm585_vm10, %v8036_v52, %v1353_v57  ;;  %v1358_v63 = vsel %vm585_vm10, %v8039_v54, %v1354_v58  ;;  %v1630_v57 = vld [vmem:[#allocation18 + $0x3f0] sm:$0xff]  ;;  %v1535_v58 = vld [vmem:[#allocation18 + $0xf8] sm:$0xff] }
 0x788   :  { %1375 = vmatmul.f32.vlgmr.msra.gmra.mxu0 %v1357_v62  ;;  %1395 = vmatmul.f32.vlgmr.msra.gmra.mxu1 %v1358_v63  ;;  %v1631_v62 = vld [vmem:[#allocation18 + $0x3f8] sm:$0xff] }
 0x789   :  { %1726 = vmatpush.msrb.mxu3 %v1630_v57  ;;  %1746 = vmatpush.msrb.mxu0 %v1535_v58  ;;  %v1554_v57 = vld [vmem:[#allocation18 + $0x190] sm:$0xff] }
 0x78a   :  { %1766 = vmatpush.msrb.mxu1 %v1631_v62  ;;  %v1650_v58 = vld [vmem:[#allocation18 + $0x490] sm:$0xff]  ;;  %v1555_v62 = vld [vmem:[#allocation18 + $0x198] sm:$0xff] }
 0x78c   :  { %1767 = vmatpush.msrb.mxu1 %v1625_v10  ;;  %v1645_v10 = vld [vmem:[#allocation18 + $0x468] sm:$0xff] }
 0x78e   :  { %1768 = vmatpush.msrb.mxu1 %v1619_v32  ;;  %v1536_v32 = vld [vmem:[#allocation18 + $0x100] sm:$0xff] }
 0x790   :  { %1769 = vmatpush.msrb.mxu1 %v1613_v35  ;;  %v1627_v35 = vld [vmem:[#allocation18 + $0x3d8] sm:$0xff] }
 0x792   :  { %1770 = vmatpush.msrb.mxu1 %v1607_v44  ;;  %v1518_v44 = vld [vmem:[#allocation18 + $0x70] sm:$0xff] }
 0x794   :  { %1771 = vmatpush.msrb.mxu1 %v1601_v48  ;;  %v1608_v48 = vld [vmem:[#allocation18 + $0x340] sm:$0xff] }
 0x796   :  { %1836 = vmatpush.msra.mxu1 %v1693_v16  ;;  %v1507_v16 = vld [vmem:[#allocation18 + $0x18] sm:$0xff] }
 0x798   :  { %1837 = vmatpush.msra.mxu1 %v1687_v30 }
 0x79a   :  { %1838 = vmatpush.msra.mxu1 %v1681_v28 }
 0x79c   :  { %1839 = vmatpush.msra.mxu1 %v1675_v0 }
 0x79e   :  { %1840 = vmatpush.msra.mxu1 %v1669_v60 }
 0x7a0   :  { %1841 = vmatpush.msra.mxu1 %v1663_v12 }
 0x7a2   :  { %1842 = vmatpush.msra.mxu1 %v1657_v56 }
 0x805   :  { %v1376_v1 = vpop.f32.mrf.mxu0  ;;  %v1396_v7 = vpop.f32.mrf.mxu1 }
 0x806   :  { %v1397_v2 = vadd.f32 %v1396_v7, %v1376_v1  ;;  %v1528_v1 = vld [vmem:[#allocation18 + $0xc0] sm:$0xff] }
 0x807   :  { %v1624_v7 = vld [vmem:[#allocation18 + $0x3c0] sm:$0xff]  ;;  %1707 = vmatpush.msrb.mxu2 %v1528_v1 }
 0x808   :  { %v8049_v8 = vmul.f32 0.015625, %v1397_v2  ;;  %v1529_v2 = vld [vmem:[#allocation18 + $0xc8] sm:$0xff]  ;;  %1727 = vmatpush.msrb.mxu3 %v1624_v7  ;;  %v1548_v1 = vld [vmem:[#allocation18 + $0x160] sm:$0xff] }
 0x809   :  { %1747 = vmatpush.msrb.mxu0 %v1529_v2  ;;  %v1644_v7 = vld [vmem:[#allocation18 + $0x460] sm:$0xff]  ;;  %v1549_v2 = vld [vmem:[#allocation18 + $0x168] sm:$0xff] }
 0x80a   :  { %v1400_v15 = vmul.f32 %v8049_v8, %v8049_v8  ;;  %v1416_v49 = vsub.f32 0.0, %v8049_v8  ;;  %1728 = vmatpush.msrb.mxu3 %v1618_v19  ;;  %v1543_v19 = vld [vmem:[#allocation18 + $0x138] sm:$0xff] }
 0x80b   :  { %1748 = vmatpush.msrb.mxu0 %v1523_v20  ;;  %v1639_v20 = vld [vmem:[#allocation18 + $0x438] sm:$0xff] }
 0x80c   :  { %v1402_v33 = vrot.slane %v1400_v15, 4  ;;  %v1522_v15 = vld [vmem:[#allocation18 + $0x90] sm:$0xff]  ;;  %1729 = vmatpush.msrb.mxu3 %v1612_v41  ;;  %v1633_v41 = vld [vmem:[#allocation18 + $0x408] sm:$0xff] }
 0x80d   :  { %1708 = vmatpush.msrb.mxu2 %v1522_v15  ;;  %1749 = vmatpush.msrb.mxu0 %v1517_v34  ;;  %v1638_v15 = vld [vmem:[#allocation18 + $0x430] sm:$0xff]  ;;  %v1531_v34 = vld [vmem:[#allocation18 + $0xd8] sm:$0xff] }
 0x80e   :  { %v1404_v36 = vsub.f32 %v8049_v8, %v1402_v33  ;;  %1730 = vmatpush.msrb.mxu3 %v1606_v39  ;;  %v1505_v8 = vld [vmem:[#allocation18 + $0x8] sm:$0xff]  ;;  %v1620_v39 = vld [vmem:[#allocation18 + $0x3a0] sm:$0xff] }
 0x80f   :  { %1709 = vmatpush.msrb.mxu2 %v1516_v40  ;;  %1750 = vmatpush.msrb.mxu0 %v1511_v43  ;;  %v1537_v40 = vld [vmem:[#allocation18 + $0x108] sm:$0xff] }
 0x810   :  { %v8059_v47 = vadd.f32 1e-05, %v1404_v36  ;;  %v1510_v36 = vld [vmem:[#allocation18 + $0x30] sm:$0xff]  ;;  %v1621_v43 = vld [vmem:[#allocation18 + $0x3a8] sm:$0xff] }
 0x811   :  { %1710 = vmatpush.msrb.mxu2 %v1510_v36  ;;  %1751 = vmatpush.msrb.mxu0 %v1505_v8  ;;  %v1524_v36 = vld [vmem:[#allocation18 + $0xa0] sm:$0xff] }
 0x812   :  { %6603 = vrsqrt.f32 %v8059_v47  ;;  %vm1412_vm4 = vweird.f32 %v8059_v47  ;;  %v1512_v8 = vld [vmem:[#allocation18 + $0x40] sm:$0xff] }
 0x813   :  { %1711 = vmatpush.msrb.mxu2 %v1504_v45  ;;  %1816 = vmatpush.msra.mxu0 %v1597_v23  ;;  %v1614_v45 = vld [vmem:[#allocation18 + $0x370] sm:$0xff] }
 0x814   :  { %v1602_v23 = vld [vmem:[#allocation18 + $0x310] sm:$0xff] }
 0x815   :  { %1817 = vmatpush.msra.mxu0 %v1591_v27 }
 0x817   :  { %1818 = vmatpush.msra.mxu0 %v1585_v59 }
 0x818   :  { %v6604_v6 = vpop.eup %6603 }
 0x819   :  { %v1407_v3 = vmul.f32 %v6604_v6, %v8059_v47  ;;  %vm1413_vm3 = vweird.f32 %v6604_v6  ;;  %v1600_v47 = vld [vmem:[#allocation18 + $0x300] sm:$0xff]  ;;  %1819 = vmatpush.msra.mxu0 %v1579_v9 }
 0x81a   :  { %vm1414_vm6 = vmor %vm1412_vm4, %vm1413_vm3  ;;  %1731 = vmatpush.msrb.mxu3 %v1600_v47  ;;  %v1519_v47 = vld [vmem:[#allocation18 + $0x78] sm:$0xff] }
 0x81b   :  { %v1408_v38 = vmul.f32 %v6604_v6, %v1407_v3  ;;  %v1572_v3 = vld [vmem:[#allocation18 + $0x220] sm:$0xff]  ;;  %1820 = vmatpush.msra.mxu0 %v1573_v5 }
 0x81d   :  { %v1409_v55 = vmul.f32 0.5, %v1408_v38  ;;  %v1662_v38 = vld [vmem:[#allocation18 + $0x4f0] sm:$0xff]  ;;  %1821 = vmatpush.msra.mxu0 %v1567_v61 }
 0x81f   :  { %v1410_v63 = vsub.f32 1.5, %v1409_v55  ;;  %v1561_v55 = vld [vmem:[#allocation18 + $0x1c8] sm:$0xff] }
 0x820   :  { %1822 = vmatpush.msra.mxu0 %v1561_v55 }
 0x821   :  { %v1411_v14 = vmul.f32 %v6604_v6, %v1410_v63  ;;  %v1651_v63 = vld [vmem:[#allocation18 + $0x498] sm:$0xff] }
 0x822   :  { %1823 = vmatpush.msra.mxu0 %v1555_v62  ;;  %1843 = vmatpush.msra.mxu1 %v1651_v63  ;;  %v1592_v62 = vld [vmem:[#allocation18 + $0x2c0] sm:$0xff] }
 0x823   :  { %v1415_v33 = vsel %vm1414_vm6, %v6604_v6, %v1411_v14  ;;  %v1674_v6 = vld [vmem:[#allocation18 + $0x550] sm:$0xff]  ;;  %v1688_v63 = vld [vmem:[#allocation18 + $0x5c0] sm:$0xff] }
 0x824   :  { %v1418_v53 = vrot.slane %v1415_v33, 4  ;;  %v1542_v14 = vld [vmem:[#allocation18 + $0x130] sm:$0xff]  ;;  %1824 = vmatpush.msra.mxu0 %v1549_v2  ;;  %1844 = vmatpush.msra.mxu1 %v1645_v10  ;;  %v1632_v33 = vld [vmem:[#allocation18 + $0x400] sm:$0xff] }
 0x825   :  { %v1586_v2 = vld [vmem:[#allocation18 + $0x290] sm:$0xff] }
 0x826   :  { %v1420_v42 = vmul.f32 %v1418_v53, %v1416_v49  ;;  %1825 = vmatpush.msra.mxu0 %v1543_v19  ;;  %1845 = vmatpush.msra.mxu1 %v1639_v20  ;;  %v1530_v49 = vld [vmem:[#allocation18 + $0xd0] sm:$0xff]  ;;  %v1580_v19 = vld [vmem:[#allocation18 + $0x260] sm:$0xff] }
 0x827   :  { %v1682_v10 = vld [vmem:[#allocation18 + $0x590] sm:$0xff]  ;;  %v1676_v20 = vld [vmem:[#allocation18 + $0x560] sm:$0xff] }
 0x828   :  { %v1422_v13 = vrot.slane %v1420_v42, 4  ;;  %1826 = vmatpush.msra.mxu0 %v1537_v40  ;;  %1846 = vmatpush.msra.mxu1 %v1633_v41  ;;  %v1525_v42 = vld [vmem:[#allocation18 + $0xa8] sm:$0xff]  ;;  %v1574_v40 = vld [vmem:[#allocation18 + $0x230] sm:$0xff] }
 0x829   :  { %v1670_v41 = vld [vmem:[#allocation18 + $0x530] sm:$0xff] }
 0x82a   :  { %v1424_v17 = vsel %vm585_vm10, %v1418_v53, %v1422_v13  ;;  %v1626_v53 = vld [vmem:[#allocation18 + $0x3d0] sm:$0xff]  ;;  %1827 = vmatpush.msra.mxu0 %v1531_v34  ;;  %1847 = vmatpush.msra.mxu1 %v1627_v35  ;;  %v1615_v13 = vld [vmem:[#allocation18 + $0x378] sm:$0xff]  ;;  %v1568_v34 = vld [vmem:[#allocation18 + $0x200] sm:$0xff] }
 0x82b   :  { %5773 = vmatmul.msk.f32.vlgmr.msra.gmra.mxu2 %vm1135_vm0, %v1424_v17  ;;  %5775 = vmatmul.msk.f32.vlgmr.msra.gmra.mxu3 %vm1135_vm0, %v1424_v17  ;;  %v1513_v17 = vld [vmem:[#allocation18 + $0x48] sm:$0xff]  ;;  %v1664_v35 = vld [vmem:[#allocation18 + $0x500] sm:$0xff] }
 0x82c   :  { %1776 = vmatpush.msra.mxu2 %v1596_v18  ;;  %1796 = vmatpush.msra.mxu3 %v1692_v21  ;;  %v1609_v18 = vld [vmem:[#allocation18 + $0x348] sm:$0xff]  ;;  %v1506_v21 = vld [vmem:[#allocation18 + $0x10] sm:$0xff] }
 0x82d   :  { %1828 = vmatpush.msra.mxu0 %v1525_v42  ;;  %1848 = vmatpush.msra.mxu1 %v1621_v43  ;;  %v1562_v42 = vld [vmem:[#allocation18 + $0x1d0] sm:$0xff] }
 0x82e   :  { %1777 = vmatpush.msra.mxu2 %v1590_v25  ;;  %1797 = vmatpush.msra.mxu3 %v1686_v26  ;;  %v1603_v25 = vld [vmem:[#allocation18 + $0x318] sm:$0xff]  ;;  %v1658_v43 = vld [vmem:[#allocation18 + $0x4d0] sm:$0xff] }
 0x82f   :  { %1829 = vmatpush.msra.mxu0 %v1519_v47  ;;  %1849 = vmatpush.msra.mxu1 %v1615_v13  ;;  %v1215_v26 = vld [vmem:[#allocation16] sm:$0xf]  ;;  %v1556_v47 = vld [vmem:[#allocation18 + $0x1a0] sm:$0xff] }
 0x830   :  { %1778 = vmatpush.msra.mxu2 %v1584_v31  ;;  %1798 = vmatpush.msra.mxu3 %v1680_v46  ;;  %v1486_v27 = vperm.slane %v1215_v26, 0  ;;  %v1487_v30 = vperm.slane %v1215_v26, 2  ;;  %v1494_v31 = vperm.slane %v1215_v26, 1  ;;  %v1495_v46 = vperm.slane %v1215_v26, 3  ;;  %v1652_v13 = vld [vmem:[#allocation18 + $0x4a0] sm:$0xff]  ;;  %v1545_v26 = vld [vmem:[#allocation18 + $0x148] sm:$0xff] }
 0x831   :  { %1830 = vmatpush.msra.mxu0 %v1513_v17  ;;  %1850 = vmatpush.msra.mxu1 %v1609_v18  ;;  %v1550_v17 = vld [vmem:[#allocation18 + $0x170] sm:$0xff] }
 0x832   :  { %1779 = vmatpush.msra.mxu2 %v1578_v29  ;;  %1799 = vmatpush.msra.mxu3 %v1674_v6  ;;  %v1490_v28 = vperm.slane %v1486_v27, 0  ;;  %v1491_v6 = vperm.slane %v1487_v30, 0  ;;  %v1498_v60 = vperm.slane %v1494_v31, 1  ;;  %v1646_v18 = vld [vmem:[#allocation18 + $0x470] sm:$0xff]  ;;  %v1641_v27 = vld [vmem:[#allocation18 + $0x448] sm:$0xff] }
 0x833   :  { %1831 = vmatpush.msra.mxu0 %v1507_v16  ;;  %1851 = vmatpush.msra.mxu1 %v1603_v25  ;;  %v1544_v16 = vld [vmem:[#allocation18 + $0x140] sm:$0xff]  ;;  %v1538_v30 = vld [vmem:[#allocation18 + $0x110] sm:$0xff] }
 0x834   :  { %1780 = vmatpush.msra.mxu2 %v1572_v3  ;;  %1800 = vmatpush.msra.mxu3 %v1668_v4  ;;  %v1640_v25 = vld [vmem:[#allocation18 + $0x440] sm:$0xff]  ;;  %v1634_v31 = vld [vmem:[#allocation18 + $0x410] sm:$0xff] }
 0x836   :  { %1781 = vmatpush.msra.mxu2 %v1566_v37  ;;  %1801 = vmatpush.msra.mxu3 %v1662_v38  ;;  %v1499_v38 = vperm.slane %v1495_v46, 1  ;;  %v1539_v46 = vld [vmem:[#allocation18 + $0x118] sm:$0xff] }
 0x838   :  { %1782 = vmatpush.msra.mxu2 %v1560_v50  ;;  %1802 = vmatpush.msra.mxu3 %v1656_v51 }
 0x83a   :  { %1783 = vmatpush.msra.mxu2 %v1554_v57  ;;  %1803 = vmatpush.msra.mxu3 %v1650_v58  ;;  %v1598_v57 = vld [vmem:[#allocation18 + $0x2f0] sm:$0xff] }
 0x83b   :  { %v1694_v58 = vld [vmem:[#allocation18 + $0x5f0] sm:$0xff] }
 0x83c   :  { %1784 = vmatpush.msra.mxu2 %v1548_v1  ;;  %1804 = vmatpush.msra.mxu3 %v1644_v7  ;;  %v1593_v1 = vld [vmem:[#allocation18 + $0x2c8] sm:$0xff] }
 0x83d   :  { %v1689_v7 = vld [vmem:[#allocation18 + $0x5c8] sm:$0xff] }
 0x83e   :  { %1785 = vmatpush.msra.mxu2 %v1542_v14  ;;  %1805 = vmatpush.msra.mxu3 %v1638_v15  ;;  %v1587_v14 = vld [vmem:[#allocation18 + $0x298] sm:$0xff] }
 0x83f   :  { %v1683_v15 = vld [vmem:[#allocation18 + $0x598] sm:$0xff] }
 0x840   :  { %1786 = vmatpush.msra.mxu2 %v1536_v32  ;;  %1806 = vmatpush.msra.mxu3 %v1632_v33  ;;  %v1581_v32 = vld [vmem:[#allocation18 + $0x268] sm:$0xff] }
 0x841   :  { %v1677_v33 = vld [vmem:[#allocation18 + $0x568] sm:$0xff] }
 0x842   :  { %1787 = vmatpush.msra.mxu2 %v1530_v49  ;;  %1807 = vmatpush.msra.mxu3 %v1626_v53  ;;  %v1575_v49 = vld [vmem:[#allocation18 + $0x238] sm:$0xff] }
 0x843   :  { %v1671_v53 = vld [vmem:[#allocation18 + $0x538] sm:$0xff] }
 0x844   :  { %1788 = vmatpush.msra.mxu2 %v1524_v36  ;;  %1808 = vmatpush.msra.mxu3 %v1620_v39  ;;  %v1569_v36 = vld [vmem:[#allocation18 + $0x208] sm:$0xff] }
 0x845   :  { %v1665_v39 = vld [vmem:[#allocation18 + $0x508] sm:$0xff] }
 0x846   :  { %1789 = vmatpush.msra.mxu2 %v1518_v44  ;;  %1809 = vmatpush.msra.mxu3 %v1614_v45  ;;  %v1563_v44 = vld [vmem:[#allocation18 + $0x1d8] sm:$0xff] }
 0x847   :  { %v1659_v45 = vld [vmem:[#allocation18 + $0x4d8] sm:$0xff] }
 0x848   :  { %1790 = vmatpush.msra.mxu2 %v1512_v8  ;;  %1810 = vmatpush.msra.mxu3 %v1608_v48  ;;  %v1557_v8 = vld [vmem:[#allocation18 + $0x1a8] sm:$0xff] }
 0x849   :  { %v1653_v48 = vld [vmem:[#allocation18 + $0x4a8] sm:$0xff] }
 0x84a   :  { %1791 = vmatpush.msra.mxu2 %v1506_v21  ;;  %1811 = vmatpush.msra.mxu3 %v1602_v23  ;;  %v1551_v21 = vld [vmem:[#allocation18 + $0x178] sm:$0xff] }
 0x84b   :  { %v1647_v23 = vld [vmem:[#allocation18 + $0x478] sm:$0xff] }
 0x8ae   :  { %v1452_v59 = vpop.f32.mrf.mxu2  ;;  %v1472_v29 = vpop.f32.mrf.mxu3 }
 0x8af   :  { %v1475_v9 = vmul.f32 %v1452_v59, %v8036_v52  ;;  %v1479_v0 = vrot.slane %v1452_v59, 4  ;;  %v1476_v3 = vmul.f32 %v1472_v29, %v8039_v54  ;;  %v1480_v4 = vrot.slane %v1472_v29, 4  ;;  %v1599_v52 = vld [vmem:[#allocation18 + $0x2f8] sm:$0xff]  ;;  %v1628_v29 = vld [vmem:[#allocation18 + $0x3e0] sm:$0xff] }
 0x8b0   :  { %v1695_v54 = vld [vmem:[#allocation18 + $0x5f8] sm:$0xff] }
 0x8b1   :  { %v1483_v5 = vadd.f32 %v1479_v0, %v1475_v9  ;;  %v1484_v37 = vadd.f32 %v1480_v4, %v1476_v3  ;;  %v1635_v59 = vld [vmem:[#allocation18 + $0x418] sm:$0xff]  ;;  %v1629_v9 = vld [vmem:[#allocation18 + $0x3e8] sm:$0xff]  ;;  %v1526_v0 = vld [vmem:[#allocation18 + $0xb0] sm:$0xff] }
 0x8b2   :  { %v1622_v3 = vld [vmem:[#allocation18 + $0x3b0] sm:$0xff]  ;;  %v1527_v4 = vld [vmem:[#allocation18 + $0xb8] sm:$0xff] }
 0x8b3   :  { %v1492_v61 = vmul.f32 %v1490_v28, %v1483_v5  ;;  %v1493_v12 = vmul.f32 %v1491_v6, %v1484_v37  ;;  %v1532_v28 = vld [vmem:[#allocation18 + $0xe0] sm:$0xff]  ;;  %v1533_v6 = vld [vmem:[#allocation18 + $0xe8] sm:$0xff]  ;;  %v1623_v5 = vld [vmem:[#allocation18 + $0x3b8] sm:$0xff] }
 0x8b4   :  { %v1616_v37 = vld [vmem:[#allocation18 + $0x380] sm:$0xff] }
 0x8b5   :  { %v1500_v50 = vadd.f32 %v1498_v60, %v1492_v61  ;;  %v1501_v51 = vadd.f32 %v1499_v38, %v1493_v12  ;;  %v1520_v60 = vld [vmem:[#allocation18 + $0x80] sm:$0xff]  ;;  %v1521_v38 = vld [vmem:[#allocation18 + $0x88] sm:$0xff]  ;;  %v1514_v12 = vld [vmem:[#allocation18 + $0x50] sm:$0xff] }
 0x8b6   :  { %v1617_v61 = vld [vmem:[#allocation18 + $0x388] sm:$0xff] }
 0x8b7   :  { %v8071_v55 = vmax.f32 %v1500_v50, 0.0  ;;  %v8073_v56 = vmax.f32 %v1501_v51, 0.0  ;;  %v1610_v50 = vld [vmem:[#allocation18 + $0x350] sm:$0xff]  ;;  %v1515_v51 = vld [vmem:[#allocation18 + $0x58] sm:$0xff] }
 0x8b9   :  { %1712 = vmatmul.f32.vlgmr.msrb.gmra.mxu2 %v8071_v55  ;;  %1732 = vmatmul.f32.vlgmr.msrb.gmra.mxu3 %v8073_v56 }
 0x8ba   :  { %1752 = vmatmul.f32.vlgmr.msrb.gmra.mxu0 %v8071_v55  ;;  %1772 = vmatmul.f32.vlgmr.msrb.gmra.mxu1 %v8073_v56 }
 0x8bb   :  { %1856 = vmatpush.msrb.mxu2 %v1598_v57  ;;  %1876 = vmatpush.msrb.mxu3 %v1694_v58  ;;  %v1611_v57 = vld [vmem:[#allocation18 + $0x358] sm:$0xff]  ;;  %v1508_v58 = vld [vmem:[#allocation18 + $0x20] sm:$0xff] }
 0x8bc   :  { %1896 = vmatpush.msrb.mxu0 %v1599_v52  ;;  %1916 = vmatpush.msrb.mxu1 %v1695_v54  ;;  %v1604_v52 = vld [vmem:[#allocation18 + $0x320] sm:$0xff]  ;;  %v1509_v54 = vld [vmem:[#allocation18 + $0x28] sm:$0xff] }
 0x8bd   :  { %1857 = vmatpush.msrb.mxu2 %v1592_v62  ;;  %1877 = vmatpush.msrb.mxu3 %v1688_v63  ;;  %v1605_v62 = vld [vmem:[#allocation18 + $0x328] sm:$0xff] }
 0x8be   :  { %1897 = vmatpush.msrb.mxu0 %v1593_v1  ;;  %1917 = vmatpush.msrb.mxu1 %v1689_v7 }
 0x8bf   :  { %1858 = vmatpush.msrb.mxu2 %v1586_v2  ;;  %1878 = vmatpush.msrb.mxu3 %v1682_v10 }
 0x8c0   :  { %1898 = vmatpush.msrb.mxu0 %v1587_v14  ;;  %1918 = vmatpush.msrb.mxu1 %v1683_v15 }
 0x8c1   :  { %1859 = vmatpush.msrb.mxu2 %v1580_v19  ;;  %1879 = vmatpush.msrb.mxu3 %v1676_v20 }
 0x8c2   :  { %1899 = vmatpush.msrb.mxu0 %v1581_v32  ;;  %1919 = vmatpush.msrb.mxu1 %v1677_v33 }
 0x8c3   :  { %1792 = vmatmul.f32.vlgmr.msra.gmra.mxu2 %v8071_v55  ;;  %1812 = vmatmul.f32.vlgmr.msra.gmra.mxu3 %v8073_v56 }
 0x8c4   :  { %1832 = vmatmul.f32.vlgmr.msra.gmra.mxu0 %v8071_v55  ;;  %1852 = vmatmul.f32.vlgmr.msra.gmra.mxu1 %v8073_v56 }
 0x8c5   :  { %1860 = vmatpush.msrb.mxu2 %v1574_v40  ;;  %1880 = vmatpush.msrb.mxu3 %v1670_v41 }
 0x8c6   :  { %1900 = vmatpush.msrb.mxu0 %v1575_v49  ;;  %1920 = vmatpush.msrb.mxu1 %v1671_v53 }
 0x8c7   :  { %1861 = vmatpush.msrb.mxu2 %v1568_v34  ;;  %1881 = vmatpush.msrb.mxu3 %v1664_v35 }
 0x8c8   :  { %1901 = vmatpush.msrb.mxu0 %v1569_v36  ;;  %1921 = vmatpush.msrb.mxu1 %v1665_v39 }
 0x8c9   :  { %1862 = vmatpush.msrb.mxu2 %v1562_v42  ;;  %1882 = vmatpush.msrb.mxu3 %v1658_v43 }
 0x8ca   :  { %1902 = vmatpush.msrb.mxu0 %v1563_v44  ;;  %1922 = vmatpush.msrb.mxu1 %v1659_v45 }
 0x8cb   :  { %1863 = vmatpush.msrb.mxu2 %v1556_v47  ;;  %1883 = vmatpush.msrb.mxu3 %v1652_v13 }
 0x8cc   :  { %1903 = vmatpush.msrb.mxu0 %v1557_v8  ;;  %1923 = vmatpush.msrb.mxu1 %v1653_v48  ;;  %v8148_v8 = vld [vmem:[#allocation19] sm:$0x3f] }
 0x8cd   :  { %1864 = vmatpush.msrb.mxu2 %v1550_v17  ;;  %1884 = vmatpush.msrb.mxu3 %v1646_v18  ;;  %v8152_v48 = vperm.slane %v8148_v8, 0 }
 0x8ce   :  { %1904 = vmatpush.msrb.mxu0 %v1551_v21  ;;  %1924 = vmatpush.msrb.mxu1 %v1647_v23 }
 0x8cf   :  { %1865 = vmatpush.msrb.mxu2 %v1544_v16  ;;  %1885 = vmatpush.msrb.mxu3 %v1640_v25 }
 0x8d0   :  { %1905 = vmatpush.msrb.mxu0 %v1545_v26  ;;  %1925 = vmatpush.msrb.mxu1 %v1641_v27 }
 0x8d1   :  { %1866 = vmatpush.msrb.mxu2 %v1538_v30  ;;  %1886 = vmatpush.msrb.mxu3 %v1634_v31 }
 0x8d2   :  { %1906 = vmatpush.msrb.mxu0 %v1539_v46  ;;  %1926 = vmatpush.msrb.mxu1 %v1635_v59 }
 0x8d3   :  { %1867 = vmatpush.msrb.mxu2 %v1532_v28  ;;  %1887 = vmatpush.msrb.mxu3 %v1628_v29 }
 0x8d4   :  { %1907 = vmatpush.msrb.mxu0 %v1533_v6  ;;  %1927 = vmatpush.msrb.mxu1 %v1629_v9 }
 0x8d5   :  { %1868 = vmatpush.msrb.mxu2 %v1526_v0  ;;  %1888 = vmatpush.msrb.mxu3 %v1622_v3 }
 0x8d6   :  { %1908 = vmatpush.msrb.mxu0 %v1527_v4  ;;  %1928 = vmatpush.msrb.mxu1 %v1623_v5  ;;  %v8191_v5 = vperm.slane %v8148_v8, 1 }
 0x8d7   :  { %1869 = vmatpush.msrb.mxu2 %v1520_v60  ;;  %1889 = vmatpush.msrb.mxu3 %v1616_v37 }
 0x8d8   :  { %1909 = vmatpush.msrb.mxu0 %v1521_v38  ;;  %1929 = vmatpush.msrb.mxu1 %v1617_v61 }
 0x8d9   :  { %1870 = vmatpush.msrb.mxu2 %v1514_v12  ;;  %1890 = vmatpush.msrb.mxu3 %v1610_v50 }
 0x8da   :  { %1910 = vmatpush.msrb.mxu0 %v1515_v51  ;;  %1930 = vmatpush.msrb.mxu1 %v1611_v57 }
 0x8db   :  { %1871 = vmatpush.msrb.mxu2 %v1508_v58  ;;  %1891 = vmatpush.msrb.mxu3 %v1604_v52  ;;  %v8208_v52 = vperm.slane %v8148_v8, 5 }
 0x8dc   :  { %1911 = vmatpush.msrb.mxu0 %v1509_v54  ;;  %1931 = vmatpush.msrb.mxu1 %v1605_v62 }
 0x8dd   :  { %1872 = vmatmul.f32.vlgmr.msrb.gmra.mxu2 %v8071_v55  ;;  %1892 = vmatmul.f32.vlgmr.msrb.gmra.mxu3 %v8073_v56 }
 0x8de   :  { %1912 = vmatmul.f32.vlgmr.msrb.gmra.mxu0 %v8071_v55  ;;  %1932 = vmatmul.f32.vlgmr.msrb.gmra.mxu1 %v8073_v56 }
 0x937   :  { %v1753_v63 = vpop.f32.mrf.mxu0  ;;  %v1773_v1 = vpop.f32.mrf.mxu1 }
 0x938   :  { %v8087_v7 = vadd.f32 %v1773_v1, %v1753_v63 }
 0x93a   :  { %2173 = vrot.lane.b32.xlu2 %v8087_v7, %s7259_s29 }
 0x93c   :  { %v1713_v2 = vpop.f32.mrf.mxu2  ;;  %v1733_v10 = vpop.f32.mrf.mxu3 }
 0x93d   :  { %v8091_v14 = vadd.f32 %v1733_v10, %v1713_v2 }
 0x93f   :  { %2171 = vrot.lane.b32.xlu1 %v8091_v14, %s7259_s29  ;;  %v6076_v55 = vpack.i.bf16 %v8087_v7, %v8091_v14 }
 0x941   :  { %v1833_v15 = vpop.f32.mrf.mxu0  ;;  %v1853_v56 = vpop.f32.mrf.mxu1  ;;  %6077 = vrot.lane.b32.xlu0 %v6076_v55, %s7260_s10 }
 0x942   :  { %v8098_v19 = vadd.f32 %v1853_v56, %v1833_v15 }
 0x944   :  { %2177 = vrot.lane.b32.xlu2 %v8098_v19, %s7259_s29 }
 0x946   :  { %v1793_v20 = vpop.f32.mrf.mxu2  ;;  %v1813_v32 = vpop.f32.mrf.mxu3 }
 0x947   :  { %v8102_v33 = vadd.f32 %v1813_v32, %v1793_v20  ;;  %6087 = vrot.lane.b32.xlu1 %v6076_v55, %s7261_s0 }
 0x949   :  { %v6106_v40 = vpack.i.bf16 %v8102_v33, %v8087_v7  ;;  %6082 = vrot.lane.b32.xlu0 %v6076_v55, %s7251_s2  ;;  %v6091_v41 = vpack.i.bf16 %v8098_v19, %v8102_v33 }
 0x94c   :  { %6107 = vrot.lane.b32.xlu2 %v6106_v40, %s7255_s7 }
 0x94f   :  { %2175 = vrot.lane.b32.xlu1 %v8102_v33, %s7259_s29 }
 0x951   :  { %6092 = vrot.lane.b32.xlu0 %v6091_v41, %s7260_s10 }
 0x954   :  { %6122 = vrot.lane.b32.xlu2 %v6106_v40, %s7262_s16 }
 0x957   :  { %6102 = vrot.lane.b32.xlu1 %v6091_v41, %s7261_s0 }
 0x959   :  { %6097 = vrot.lane.b32.xlu0 %v6091_v41, %s7251_s2 }
 0x95b   :  { %v1913_v49 = vpop.f32.mrf.mxu0  ;;  %v1933_v53 = vpop.f32.mrf.mxu1 }
 0x95c   :  { %v8117_v34 = vadd.f32 %v1933_v53, %v1913_v49 }
 0x95e   :  { %v6126_v35 = vpack.i.bf16 %v8117_v34, %v8091_v14 }
 0x95f   :  { %6117 = vrot.lane.b32.xlu1 %v6106_v40, %s7263_s12 }
 0x960   :  { %6127 = vrot.lane.b32.xlu2 %v6126_v35, %s7255_s7  ;;  %v1873_v36 = vpop.f32.mrf.mxu2  ;;  %v1893_v39 = vpop.f32.mrf.mxu3 }
 0x961   :  { %6112 = vrot.lane.b32.xlu0 %v6106_v40, %s7264_s3  ;;  %v8127_v42 = vadd.f32 %v1893_v39, %v1873_v36 }
 0x963   :  { %v6146_v43 = vpack.i.bf16 %v8117_v34, %v8127_v42  ;;  %v6161_v44 = vpack.i.bf16 %v8127_v42, %v8098_v19 }
 0x967   :  { %6137 = vrot.lane.b32.xlu1 %v6126_v35, %s7263_s12 }
 0x968   :  { %6142 = vrot.lane.b32.xlu2 %v6126_v35, %s7262_s16 }
 0x969   :  { %6132 = vrot.lane.b32.xlu0 %v6126_v35, %s7264_s3 }
 0x96f   :  { %2179 = vrot.lane.b32.xlu1 %v8127_v42, %s7259_s29 }
 0x970   :  { %2181 = vrot.lane.b32.xlu2 %v8117_v34, %s7259_s29 }
 0x971   :  { %6147 = vrot.lane.b32.xlu0 %v6146_v43, %s7260_s10 }
 0x977   :  { %6157 = vrot.lane.b32.xlu1 %v6146_v43, %s7261_s0 }
 0x978   :  { %6162 = vrot.lane.b32.xlu2 %v6161_v44, %s7255_s7 }
 0x979   :  { %6152 = vrot.lane.b32.xlu0 %v6146_v43, %s7251_s2 }
 0x97f   :  { %6172 = vrot.lane.b32.xlu1 %v6161_v44, %s7263_s12 }
 0x980   :  { %6177 = vrot.lane.b32.xlu2 %v6161_v44, %s7262_s16 }
 0x981   :  { %6167 = vrot.lane.b32.xlu0 %v6161_v44, %s7264_s3 }
 0x994   :  { %v2174_v45 = vpop.permute.xlu2 %2173 }
 0x99e   :  { %v8144_v47 = vpop.permute.xlu2 %2177 }
 0x9a6   :  { %v8146_v13 = vpop.permute.xlu2 %6107 }
 0x9a7   :  { %v6109_v39 = vunpack.i.l.bf16 %v8146_v13 }
 0x9ae   :  { %v8154_v17 = vpop.permute.xlu2 %6122 }
 0x9b1   :  { %v2172_v18 = vpop.permute.xlu1 %2171 }
 0x9b2   :  { %v2188_v21 = vsel %vm2183_vm7, %v2172_v18, %v2174_v45 }
 0x9b3   :  { %v2299_v23 = vsel %vm585_vm10, %v2188_v21, %v8152_v48  ;;  %v8160_v16 = vpop.permute.xlu0 %6077  ;;  %v8250_v21 = vperm.slane %v8148_v8, 2 }
 0x9b4   :  { %v6080_v25 = vunpack.i.h.bf16 %v8160_v16  ;;  %v6079_v26 = vunpack.i.l.bf16 %v8160_v16  ;;  %5776 = vmatpush.msk.msra.mxu2 %vm588_vm12, %v2299_v23 }
 0x9b6   :  { %v2169_v27 = vsel %vm2164_vm11, %v6079_v26, %v6080_v25 }
 0x9b7   :  { %v2250_v29 = vrot.slane %v2169_v27, 4 }
 0x9b9   :  { %v8170_v30 = vpop.permute.xlu1 %6087 }
 0x9ba   :  { %v8173_v31 = vpop.permute.xlu2 %6127  ;;  %v6090_v46 = vunpack.i.h.bf16 %v8170_v30  ;;  %v6089_v59 = vunpack.i.l.bf16 %v8170_v30 }
 0x9bb   :  { %v8177_v28 = vpop.permute.xlu0 %6082  ;;  %v6130_v53 = vunpack.i.h.bf16 %v8173_v31  ;;  %v6129_v35 = vunpack.i.l.bf16 %v8173_v31 }
 0x9bc   :  { %v6085_v6 = vunpack.i.h.bf16 %v8177_v28  ;;  %v6084_v9 = vunpack.i.l.bf16 %v8177_v28  ;;  %v2150_v0 = vsel %vm2145_vm13, %v6089_v59, %v6090_v46 }
 0x9bd   :  { %v2293_v3 = vsel %vm585_vm10, %v2150_v0, %v2250_v29  ;;  %v2113_v43 = vsel %vm499_vm5, %v6129_v35, %v6109_v39  ;;  %v2114_v44 = vsel %vm499_vm5, %v6130_v53, %v6129_v35 }
 0x9be   :  { %v2131_v4 = vsel %vm506_vm2, %v6084_v9, %v6085_v6  ;;  %2338 = vmatpush.msra.mxu2 %v2293_v3  ;;  %v2215_v27 = vrot.slane %v2113_v43, 4 }
 0x9bf   :  { %v2232_v60 = vrot.slane %v2131_v4, 4 }
 0x9c1   :  { %v2176_v37 = vpop.permute.xlu1 %2175  ;;  %v2287_v38 = vsel %vm585_vm10, %v8091_v14, %v2232_v60 }
 0x9c2   :  { %v8195_v61 = vpop.permute.xlu2 %6142  ;;  %v2187_v12 = vsel %vm2183_vm7, %v2174_v45, %v2176_v37  ;;  %2339 = vmatpush.msra.mxu2 %v2287_v38  ;;  %v6110_v45 = vunpack.i.h.bf16 %v8146_v13 }
 0x9c3   :  { %v2300_v50 = vsel %vm585_vm10, %v2187_v12, %v8191_v5  ;;  %v8201_v51 = vpop.permute.xlu0 %6092  ;;  %v6145_v4 = vunpack.i.h.bf16 %v8195_v61  ;;  %v6144_v60 = vunpack.i.l.bf16 %v8195_v61 }
 0x9c4   :  { %v6094_v57 = vunpack.i.l.bf16 %v8201_v51  ;;  %5778 = vmatpush.msk.msra.mxu3 %vm588_vm12, %v2300_v50  ;;  %v6095_v29 = vunpack.i.h.bf16 %v8201_v51 }
 0x9c6   :  { %v2168_v58 = vsel %vm2164_vm11, %v6080_v25, %v6094_v57  ;;  %v2214_v25 = vrot.slane %v2114_v44, 4 }
 0x9c7   :  { %v2251_v10 = vrot.slane %v2168_v58, 4 }
 0x9c9   :  { %v8210_v54 = vpop.permute.xlu1 %6102 }
 0x9ca   :  { %v8212_v62 = vpop.permute.xlu2 %2181  ;;  %v6104_v63 = vunpack.i.l.bf16 %v8210_v54 }
 0x9cb   :  { %v2189_v1 = vsel %vm2183_vm7, %v8212_v62, %v2172_v18  ;;  %v8218_v2 = vpop.permute.xlu0 %6097  ;;  %v6124_v18 = vunpack.i.l.bf16 %v8154_v17 }
 0x9cc   :  { %v2304_v55 = vsel %vm585_vm10, %v2189_v1, %v8208_v52  ;;  %v6099_v15 = vunpack.i.l.bf16 %v8218_v2  ;;  %v2149_v56 = vsel %vm2145_vm13, %v6090_v46, %v6104_v63  ;;  %v8257_v46 = vperm.slane %v8148_v8, 3 }
 0x9cd   :  { %5786 = vmatpush.msk.msra.mxu1 %vm588_vm12, %v2304_v55  ;;  %v2294_v20 = vsel %vm585_vm10, %v2149_v56, %v2251_v10  ;;  %v6100_v38 = vunpack.i.h.bf16 %v8218_v2  ;;  %v2186_v56 = vsel %vm2183_vm7, %v2176_v37, %v8144_v47  ;;  %v8294_v37 = vperm.slane %v8148_v8, 4 }
 0x9ce   :  { %v2130_v32 = vsel %vm506_vm2, %v6085_v6, %v6099_v15  ;;  %2358 = vmatpush.msra.mxu3 %v2294_v20  ;;  %v6105_v20 = vunpack.i.h.bf16 %v8210_v54  ;;  %v2058_v8 = vsel %vm2052_vm15, %v6145_v4, %v6144_v60 }
 0x9cf   :  { %v2233_v40 = vrot.slane %v2130_v32, 4  ;;  %v2129_v44 = vsel %vm506_vm2, %v6099_v15, %v6100_v38  ;;  %v2057_v15 = vsel %vm2052_vm15, %v6144_v60, %v6124_v18 }
 0x9d1   :  { %v8231_v41 = vpop.permute.xlu1 %6117  ;;  %v2288_v49 = vsel %vm585_vm10, %v8087_v7, %v2233_v40 }
 0x9d2   :  { %2359 = vmatpush.msra.mxu3 %v2288_v49  ;;  %v6119_v6 = vunpack.i.l.bf16 %v8231_v41  ;;  %v2167_v49 = vsel %vm2164_vm11, %v6094_v57, %v6095_v29 }
 0x9d3   :  { %v8237_v36 = vpop.permute.xlu0 %6112 }
 0x9d4   :  { %v6114_v12 = vunpack.i.l.bf16 %v8237_v36  ;;  %v6115_v57 = vunpack.i.h.bf16 %v8237_v36 }
 0x9d9   :  { %v8253_v23 = vpop.permute.xlu1 %6137 }
 0x9da   :  { %v6140_v0 = vunpack.i.h.bf16 %v8253_v23  ;;  %v6139_v3 = vunpack.i.l.bf16 %v8253_v23 }
 0x9db   :  { %v8267_v50 = vpop.permute.xlu0 %6132 }
 0x9dc   :  { %v6135_v58 = vunpack.i.h.bf16 %v8267_v50  ;;  %v6134_v1 = vunpack.i.l.bf16 %v8267_v50  ;;  %v2096_v10 = vsel %vm2090_vm1, %v6140_v0, %v6139_v3  ;;  %v2095_v55 = vsel %vm2090_vm1, %v6139_v3, %v6119_v6 }
 0x9dd   :  { %v2281_v32 = vsel %vm585_vm10, %v2096_v10, %v2214_v25  ;;  %v2282_v40 = vsel %vm585_vm10, %v2095_v55, %v2215_v27  ;;  %v2112_v3 = vsel %vm499_vm5, %v6109_v39, %v6110_v45  ;;  %v8315_v10 = vld [vmem:[#allocation22] sm:$0xf]  ;;  %v6120_v55 = vunpack.i.h.bf16 %v8231_v41 }
 0x9de   :  { %v2076_v35 = vsel %vm2071_vm14, %v6134_v1, %v6114_v12  ;;  %v2077_v43 = vsel %vm2071_vm14, %v6135_v58, %v6134_v1  ;;  %2340 = vmatpush.msra.mxu2 %v2281_v32  ;;  %2360 = vmatpush.msra.mxu3 %v2282_v40  ;;  %v2301_v1 = vsel %vm585_vm10, %v2186_v56, %v8250_v21 }
 0x9df   :  { %v2196_v25 = vrot.slane %v2077_v43, 4  ;;  %v2197_v27 = vrot.slane %v2076_v35, 4  ;;  %v2148_v56 = vsel %vm2145_vm13, %v6104_v63, %v6105_v20  ;;  %v2252_v43 = vrot.slane %v2167_v49, 4 }
 0x9e1   :  { %v2180_v32 = vpop.permute.xlu1 %2179  ;;  %v2275_v39 = vsel %vm585_vm10, %v2058_v8, %v2196_v25  ;;  %v2276_v40 = vsel %vm585_vm10, %v2057_v15, %v2197_v27  ;;  %v2234_v25 = vrot.slane %v2129_v44, 4  ;;  %v2075_v27 = vsel %vm2071_vm14, %v6114_v12, %v6115_v57 }
 0x9e2   :  { %v2184_v60 = vsel %vm2183_vm7, %v2180_v32, %v8212_v62  ;;  %v2185_v35 = vsel %vm2183_vm7, %v8144_v47, %v2180_v32  ;;  %2341 = vmatpush.msra.mxu2 %v2275_v39  ;;  %2361 = vmatpush.msra.mxu3 %v2276_v40  ;;  %v2295_v12 = vsel %vm585_vm10, %v2148_v56, %v2252_v43  ;;  %v6125_v44 = vunpack.i.h.bf16 %v8154_v17  ;;  %v6163_v32 = vpop.permute.xlu2 %6162 }
 0x9e3   :  { %v2302_v63 = vsel %vm585_vm10, %v2185_v35, %v8257_v46  ;;  %v2303_v8 = vsel %vm585_vm10, %v2184_v60, %v8294_v37  ;;  %v6148_v62 = vpop.permute.xlu0 %6147  ;;  %5779 = vmatmul.msk.f32.vlgmr.msra.gmra.mxu3 %vm737_vm9, %v8315_v10  ;;  %v2094_v15 = vsel %vm2090_vm1, %v6119_v6, %v6120_v55  ;;  %5777 = vmatmul.msk.f32.vlgmr.msra.gmra.mxu2 %vm737_vm9, %v8315_v10  ;;  %v2216_v39 = vrot.slane %v2112_v3, 4 }
 0x9e4   :  { %5780 = vmatpush.msk.msrb.mxu2 %vm588_vm12, %v2301_v1  ;;  %v6150_v47 = vunpack.i.h.bf16 %v6148_v62  ;;  %v6149_v49 = vunpack.i.l.bf16 %v6148_v62  ;;  %5782 = vmatpush.msk.msrb.mxu3 %vm588_vm12, %v2302_v63  ;;  %v2289_v1 = vsel %vm585_vm10, %v8102_v33, %v2234_v25  ;;  %v2198_v40 = vrot.slane %v2075_v27, 4 }
 0x9e5   :  { %5784 = vmatpush.msk.msra.mxu0 %vm588_vm12, %v2303_v8  ;;  %v2283_v6 = vsel %vm585_vm10, %v2094_v15, %v2216_v39  ;;  %v2056_v3 = vsel %vm2052_vm15, %v6124_v18, %v6125_v44  ;;  %v6165_v27 = vunpack.i.h.bf16 %v6163_v32  ;;  %v6164_v63 = vunpack.i.l.bf16 %v6163_v32 }
 0x9e6   :  { %2378 = vmatpush.msrb.mxu2 %v2295_v12  ;;  %v2165_v56 = vsel %vm2164_vm11, %v6149_v49, %v6150_v47  ;;  %v2166_v60 = vsel %vm2164_vm11, %v6095_v29, %v6149_v49  ;;  %v2170_v43 = vsel %vm2164_vm11, %v6150_v47, %v6079_v26  ;;  %v2277_v29 = vsel %vm585_vm10, %v2056_v3, %v2198_v40 }
 0x9e7   :  { %v2253_v62 = vrot.slane %v2166_v60, 4  ;;  %v2254_v49 = vrot.slane %v2165_v56, 4  ;;  %v2110_v2 = vsel %vm499_vm5, %v6164_v63, %v6165_v27  ;;  %v2111_v28 = vsel %vm499_vm5, %v6110_v45, %v6164_v63 }
 0x9e8   :  { %2379 = vmatpush.msrb.mxu2 %v2289_v1  ;;  %v2255_v1 = vrot.slane %v2170_v43, 4  ;;  %v2109_v13 = vsel %vm499_vm5, %v6165_v27, %v6130_v53  ;;  %v2218_v63 = vrot.slane %v2110_v2, 4 }
 0x9e9   :  { %v6158_v35 = vpop.permute.xlu1 %6157 }
 0x9ea   :  { %2380 = vmatpush.msrb.mxu2 %v2283_v6  ;;  %v6160_v51 = vunpack.i.h.bf16 %v6158_v35  ;;  %v6159_v25 = vunpack.i.l.bf16 %v6158_v35 }
 0x9eb   :  { %v6153_v8 = vpop.permute.xlu0 %6152 }
 0x9ec   :  { %2381 = vmatpush.msrb.mxu2 %v2277_v29  ;;  %v6155_v12 = vunpack.i.h.bf16 %v6153_v8  ;;  %v6154_v15 = vunpack.i.l.bf16 %v6153_v8  ;;  %v2147_v16 = vsel %vm2145_vm13, %v6105_v20, %v6159_v25  ;;  %v2146_v26 = vsel %vm2145_vm13, %v6159_v25, %v6160_v51 }
 0x9ed   :  { %v2296_v18 = vsel %vm585_vm10, %v2147_v16, %v2253_v62  ;;  %v2297_v47 = vsel %vm585_vm10, %v2146_v26, %v2254_v49  ;;  %v2151_v32 = vsel %vm2145_vm13, %v6160_v51, %v6089_v59  ;;  %5781 = vmatmul.msk.f32.vlgmr.msrb.gmra.mxu2 %vm737_vm9, %v8315_v10  ;;  %v2217_v29 = vrot.slane %v2111_v28, 4 }
 0x9ee   :  { %v2127_v39 = vsel %vm506_vm2, %v6154_v15, %v6155_v12  ;;  %v2128_v54 = vsel %vm506_vm2, %v6100_v38, %v6154_v15  ;;  %v2132_v20 = vsel %vm506_vm2, %v6155_v12, %v6084_v9  ;;  %2398 = vmatpush.msrb.mxu3 %v2296_v18  ;;  %2418 = vmatpush.msra.mxu0 %v2297_v47  ;;  %v6178_v38 = vpop.permute.xlu2 %6177  ;;  %v2219_v15 = vrot.slane %v2109_v13, 4 }
 0x9ef   :  { %v2298_v30 = vsel %vm585_vm10, %v2151_v32, %v2255_v1  ;;  %v2235_v59 = vrot.slane %v2128_v54, 4  ;;  %v2236_v40 = vrot.slane %v2127_v39, 4  ;;  %v2237_v56 = vrot.slane %v2132_v20, 4 }
 0x9f0   :  { %2438 = vmatpush.msra.mxu1 %v2298_v30  ;;  %v6180_v45 = vunpack.i.h.bf16 %v6178_v38  ;;  %v6179_v51 = vunpack.i.l.bf16 %v6178_v38 }
 0x9f1   :  { %v6173_v9 = vpop.permute.xlu1 %6172  ;;  %v2290_v60 = vsel %vm585_vm10, %v8098_v19, %v2235_v59  ;;  %v2291_v6 = vsel %vm585_vm10, %v8127_v42, %v2236_v40  ;;  %v2292_v35 = vsel %vm585_vm10, %v8117_v34, %v2237_v56 }
 0x9f2   :  { %v6175_v3 = vunpack.i.h.bf16 %v6173_v9  ;;  %v6174_v43 = vunpack.i.l.bf16 %v6173_v9  ;;  %2399 = vmatpush.msrb.mxu3 %v2290_v60  ;;  %2419 = vmatpush.msra.mxu0 %v2291_v6  ;;  %v2055_v50 = vsel %vm2052_vm15, %v6125_v44, %v6179_v51  ;;  %v2053_v36 = vsel %vm2052_vm15, %v6180_v45, %v6145_v4 }
 0x9f3   :  { %2439 = vmatpush.msra.mxu1 %v2292_v35  ;;  %v6168_v25 = vpop.permute.xlu0 %6167 }
 0x9f4   :  { %v6170_v8 = vunpack.i.h.bf16 %v6168_v25  ;;  %v6169_v62 = vunpack.i.l.bf16 %v6168_v25  ;;  %v2093_v31 = vsel %vm2090_vm1, %v6120_v55, %v6174_v43  ;;  %v2092_v53 = vsel %vm2090_vm1, %v6174_v43, %v6175_v3 }
 0x9f5   :  { %v2284_v27 = vsel %vm585_vm10, %v2093_v31, %v2217_v29  ;;  %v2285_v49 = vsel %vm585_vm10, %v2092_v53, %v2218_v63  ;;  %v2091_v12 = vsel %vm2090_vm1, %v6175_v3, %v6140_v0 }
 0x9f6   :  { %v2072_v41 = vsel %vm2071_vm14, %v6170_v8, %v6135_v58  ;;  %v2073_v55 = vsel %vm2071_vm14, %v6169_v62, %v6170_v8  ;;  %v2074_v16 = vsel %vm2071_vm14, %v6115_v57, %v6169_v62  ;;  %2400 = vmatpush.msrb.mxu3 %v2284_v27  ;;  %2420 = vmatpush.msra.mxu0 %v2285_v49 }
 0x9f7   :  { %v2286_v23 = vsel %vm585_vm10, %v2091_v12, %v2219_v15  ;;  %v2199_v26 = vrot.slane %v2074_v16, 4  ;;  %v2200_v0 = vrot.slane %v2073_v55, 4  ;;  %v2201_v18 = vrot.slane %v2072_v41, 4 }
 0x9f8   :  { %2440 = vmatpush.msra.mxu1 %v2286_v23  ;;  %v2054_v58 = vsel %vm2052_vm15, %v6179_v51, %v6180_v45 }
 0x9f9   :  { %v2278_v57 = vsel %vm585_vm10, %v2055_v50, %v2199_v26  ;;  %v2279_v47 = vsel %vm585_vm10, %v2054_v58, %v2200_v0  ;;  %v2280_v32 = vsel %vm585_vm10, %v2053_v36, %v2201_v18 }
 0x9fa   :  { %2401 = vmatpush.msrb.mxu3 %v2278_v57  ;;  %2421 = vmatpush.msra.mxu0 %v2279_v47 }
 0x9fb   :  { %2441 = vmatpush.msra.mxu1 %v2280_v32  ;;  %5785 = vmatmul.msk.f32.vlgmr.msra.gmra.mxu0 %vm737_vm9, %v8315_v10 }
 0x9fc   :  { %5787 = vmatmul.msk.f32.vlgmr.msra.gmra.mxu1 %vm737_vm9, %v8315_v10  ;;  %5783 = vmatmul.msk.f32.vlgmr.msrb.gmra.mxu3 %vm737_vm9, %v8315_v10 }
 0xa66   :  { %v2363_v17 = vpop.f32.mrf.mxu3  ;;  %v2343_v4 = vpop.f32.mrf.mxu2 }
 0xa67   :  { %v8457_v61 = vmul.f32 %v2363_v17, %v8191_v5  ;;  %v8462_v44 = vmul.f32 %v2343_v4, %v8152_v48 }
 0xa69   :  { %2580 = vrot.lane.b32.xlu1 %v8457_v61, %s7259_s29  ;;  %2578 = vrot.lane.b32.xlu0 %v8462_v44, %s7259_s29  ;;  %v6186_v1 = vpack.i.bf16 %v8457_v61, %v8462_v44 }
 0xa70   :  { %v2383_v40 = vpop.f32.mrf.mxu2 }
 0xa71   :  { %6187 = vrot.lane.b32.xlu1 %v6186_v1, %s7255_s7  ;;  %v8490_v56 = vmul.f32 %v2383_v40, %v8250_v21 }
 0xa73   :  { %v6236_v2 = vpack.i.bf16 %v8490_v56, %v8457_v61 }
 0xa78   :  { %v2423_v20 = vpop.f32.mrf.mxu0 }
 0xa79   :  { %v2443_v10 = vpop.f32.mrf.mxu1  ;;  %6202 = vrot.lane.b32.xlu1 %v6186_v1, %s7264_s3  ;;  %v8478_v30 = vmul.f32 %v2423_v20, %v8294_v37 }
 0xa7a   :  { %v8471_v39 = vmul.f32 %v2443_v10, %v8208_v52 }
 0xa7c   :  { %v6196_v54 = vpack.i.bf16 %v8471_v39, %v8462_v44  ;;  %v6216_v59 = vpack.i.bf16 %v8478_v30, %v8471_v39 }
 0xa7e   :  { %6197 = vrot.lane.b32.xlu0 %v6196_v54, %s7261_s0  ;;  %6182 = vrot.lane.b32.xlu2 %v6196_v54, %s7260_s10 }
 0xa7f   :  { %v2403_v28 = vpop.f32.mrf.mxu3 }
 0xa80   :  { %v8502_v38 = vmul.f32 %v2403_v28, %v8257_v46 }
 0xa81   :  { %6212 = vrot.lane.b32.xlu1 %v6186_v1, %s7262_s16 }
 0xa82   :  { %v6251_v9 = vpack.i.bf16 %v8502_v38, %v8478_v30  ;;  %v6276_v60 = vpack.i.bf16 %v8490_v56, %v8502_v38 }
 0xa86   :  { %6217 = vrot.lane.b32.xlu0 %v6216_v59, %s7255_s7  ;;  %6192 = vrot.lane.b32.xlu2 %v6196_v54, %s7251_s2 }
 0xa89   :  { %2588 = vrot.lane.b32.xlu1 %v8471_v39, %s7259_s29 }
 0xa8e   :  { %6227 = vrot.lane.b32.xlu0 %v6216_v59, %s7263_s12  ;;  %6207 = vrot.lane.b32.xlu2 %v6186_v1, %s7263_s12 }
 0xa91   :  { %2586 = vrot.lane.b32.xlu1 %v8478_v30, %s7259_s29 }
 0xa96   :  { %6222 = vrot.lane.b32.xlu2 %v6216_v59, %s7264_s3  ;;  %6237 = vrot.lane.b32.xlu0 %v6236_v2, %s7260_s10 }
 0xa99   :  { %6247 = vrot.lane.b32.xlu1 %v6236_v2, %s7261_s0 }
 0xa9e   :  { %6232 = vrot.lane.b32.xlu2 %v6216_v59, %s7262_s16  ;;  %6242 = vrot.lane.b32.xlu0 %v6236_v2, %s7251_s2 }
 0xaa1   :  { %2584 = vrot.lane.b32.xlu1 %v8502_v38, %s7259_s29 }
 0xaa6   :  { %2582 = vrot.lane.b32.xlu2 %v8490_v56, %s7259_s29  ;;  %6252 = vrot.lane.b32.xlu0 %v6251_v9, %s7260_s10 }
 0xaa9   :  { %6277 = vrot.lane.b32.xlu1 %v6276_v60, %s7263_s12 }
 0xaae   :  { %6257 = vrot.lane.b32.xlu2 %v6251_v9, %s7251_s2  ;;  %6262 = vrot.lane.b32.xlu0 %v6251_v9, %s7261_s0 }
 0xab6   :  { %6267 = vrot.lane.b32.xlu2 %v6276_v60, %s7255_s7  ;;  %6272 = vrot.lane.b32.xlu0 %v6276_v60, %s7264_s3 }
 0xabe   :  { %6282 = vrot.lane.b32.xlu2 %v6276_v60, %s7262_s16 }
 0xad8   :  { %v8519_v6 = vpop.permute.xlu2 %6182 }
 0xad9   :  { %v6184_v18 = vunpack.i.l.bf16 %v8519_v6  ;;  %v10648_v10 = vunpack.i.h.bf16 %v8519_v6 }
 0xadb   :  { %v2581_v35 = vpop.permute.xlu1 %2580  ;;  %v8521_v13 = vpop.permute.xlu0 %2578 }
 0xadc   :  { %v2594_v3 = vsel %vm2183_vm7, %v8521_v13, %v2581_v35 }
 0xadd   :  { %v2692_v45 = vsel %vm585_vm10, %v2594_v3, %v8152_v48 }
 0xade   :  { %5788 = vmatpush.msk.msra.mxu2 %vm588_vm12, %v2692_v45 }
 0xae0   :  { %v8526_v43 = vpop.permute.xlu2 %6192 }
 0xae1   :  { %v10649_v16 = vunpack.i.h.bf16 %v8526_v43  ;;  %v6194_v23 = vunpack.i.l.bf16 %v8526_v43 }
 0xae3   :  { %v8531_v51 = vpop.permute.xlu1 %6187  ;;  %v2541_v58 = vsel %vm506_vm2, %v10649_v16, %v6194_v23 }
 0xae4   :  { %v10646_v26 = vunpack.i.h.bf16 %v8531_v51  ;;  %v6189_v0 = vunpack.i.l.bf16 %v8531_v51  ;;  %v2643_v9 = vrot.slane %v2541_v58, 4 }
 0xae6   :  { %v2522_v36 = vsel %vm499_vm5, %v6189_v0, %v10646_v26 }
 0xae7   :  { %v2621_v3 = vrot.slane %v2522_v36, 4 }
 0xae8   :  { %v8533_v25 = vpop.permute.xlu2 %6207 }
 0xae9   :  { %v10644_v32 = vunpack.i.h.bf16 %v8533_v25  ;;  %v6209_v17 = vunpack.i.l.bf16 %v8533_v25 }
 0xaeb   :  { %v8535_v29 = vpop.permute.xlu1 %6202  ;;  %v2504_v58 = vsel %vm2090_vm1, %v6209_v17, %v10644_v32  ;;  %v8623_v32 = vsel %vm585_vm10, %v8471_v39, %v2643_v9 }
 0xaec   :  { %v10643_v4 = vunpack.i.h.bf16 %v8535_v29  ;;  %v6204_v1 = vunpack.i.l.bf16 %v8535_v29 }
 0xaee   :  { %v2486_v45 = vsel %vm2071_vm14, %v6204_v1, %v10643_v4 }
 0xaf0   :  { %v8537_v63 = vpop.permute.xlu0 %6197  ;;  %v8539_v8 = vpop.permute.xlu2 %6222 }
 0xaf1   :  { %v10650_v40 = vunpack.i.l.bf16 %v8537_v63  ;;  %v6224_v36 = vunpack.i.l.bf16 %v8539_v8 }
 0xaf3   :  { %v8541_v62 = vpop.permute.xlu1 %6212  ;;  %v2487_v39 = vsel %vm2071_vm14, %v6224_v36, %v6204_v1 }
 0xaf4   :  { %v6214_v26 = vunpack.i.l.bf16 %v8541_v62 }
 0xaf8   :  { %v8543_v31 = vpop.permute.xlu0 %6217  ;;  %v8545_v53 = vpop.permute.xlu2 %6232 }
 0xafb   :  { %v8547_v27 = vpop.permute.xlu1 %2588 }
 0xb00   :  { %v8549_v49 = vpop.permute.xlu0 %6227  ;;  %v2583_v12 = vpop.permute.xlu2 %2582 }
 0xb01   :  { %v2593_v15 = vsel %vm2183_vm7, %v2581_v35, %v2583_v12 }
 0xb02   :  { %v2693_v41 = vsel %vm585_vm10, %v2593_v15, %v8191_v5 }
 0xb03   :  { %5790 = vmatpush.msk.msra.mxu3 %vm588_vm12, %v2693_v41  ;;  %v8556_v55 = vpop.permute.xlu1 %2586 }
 0xb08   :  { %v8563_v50 = vpop.permute.xlu0 %6237 }
 0xb09   :  { %v10647_v57 = vunpack.i.h.bf16 %v8563_v50  ;;  %v6239_v47 = vunpack.i.l.bf16 %v8563_v50 }
 0xb0b   :  { %v2575_v54 = vsel %vm2164_vm11, %v6239_v47, %v10647_v57  ;;  %v2576_v20 = vsel %vm2164_vm11, %v6184_v18, %v6239_v47  ;;  %v8586_v59 = vpop.permute.xlu1 %6247  ;;  %v6219_v47 = vunpack.i.l.bf16 %v8543_v31  ;;  %v6234_v57 = vunpack.i.l.bf16 %v8545_v53 }
 0xb0c   :  { %v10645_v2 = vunpack.i.h.bf16 %v8586_v59  ;;  %v6249_v28 = vunpack.i.l.bf16 %v8586_v59  ;;  %v2656_v60 = vrot.slane %v2576_v20, 4  ;;  %v2657_v35 = vrot.slane %v2575_v54, 4  ;;  %v8609_v54 = vpop.permute.xlu2 %6257 }
 0xb0d   :  { %v2523_v9 = vsel %vm499_vm5, %v6219_v47, %v6189_v0 }
 0xb0e   :  { %v2558_v15 = vsel %vm2145_vm13, %v10650_v40, %v6249_v28  ;;  %v2557_v41 = vsel %vm2145_vm13, %v6249_v28, %v10645_v2  ;;  %v8617_v28 = vsel %vm2164_vm11, %v10648_v10, %v6184_v18  ;;  %v10651_v18 = vunpack.i.h.bf16 %v8541_v62 }
 0xb0f   :  { %v2686_v20 = vsel %vm585_vm10, %v2558_v15, %v2656_v60  ;;  %v2687_v22 = vsel %vm585_vm10, %v2557_v41, %v2657_v35  ;;  %v2675_v35 = vsel %vm585_vm10, %v2504_v58, %v2621_v3  ;;  %v2603_v15 = vrot.slane %v2486_v45, 4 }
 0xb10   :  { %v8619_v4 = vpop.permute.xlu0 %6242  ;;  %2731 = vmatpush.msra.mxu2 %v2686_v20  ;;  %2751 = vmatpush.msra.mxu3 %v2687_v22  ;;  %v6225_v41 = vunpack.i.h.bf16 %v8539_v8  ;;  %v6229_v20 = vunpack.i.l.bf16 %v8549_v49 }
 0xb11   :  { %v6245_v2 = vunpack.i.h.bf16 %v8619_v4  ;;  %v6244_v60 = vunpack.i.l.bf16 %v8619_v4 }
 0xb13   :  { %v2585_v3 = vpop.permute.xlu1 %2584  ;;  %v2539_v45 = vsel %vm506_vm2, %v6244_v60, %v6245_v2  ;;  %v2540_v58 = vsel %vm506_vm2, %v6194_v23, %v6244_v60  ;;  %v2482_v23 = vsel %vm2071_vm14, %v6225_v41, %v6224_v36  ;;  %v6220_v60 = vunpack.i.h.bf16 %v8543_v31 }
 0xb14   :  { %v2591_v10 = vsel %vm2183_vm7, %v2585_v3, %v8556_v55  ;;  %v2592_v1 = vsel %vm2183_vm7, %v2583_v12, %v2585_v3  ;;  %v2638_v22 = vrot.slane %v2540_v58, 4  ;;  %v2639_v40 = vrot.slane %v2539_v45, 4 }
 0xb15   :  { %v2694_v0 = vsel %vm585_vm10, %v2592_v1, %v8250_v21  ;;  %v2695_v16 = vsel %vm585_vm10, %v2591_v10, %v8257_v46  ;;  %v2505_v12 = vsel %vm2090_vm1, %v6229_v20, %v6209_v17  ;;  %v2468_v10 = vsel %vm2052_vm15, %v6214_v26, %v10651_v18 }
 0xb16   :  { %5792 = vmatpush.msk.msrb.mxu0 %vm588_vm12, %v2694_v0  ;;  %5794 = vmatpush.msk.msrb.mxu1 %vm588_vm12, %v2695_v16  ;;  %v6235_v3 = vunpack.i.h.bf16 %v8545_v53  ;;  %v2680_v45 = vsel %vm585_vm10, %v8462_v44, %v2638_v22  ;;  %v2681_v36 = vsel %vm585_vm10, %v8457_v61, %v2639_v40  ;;  %v2620_v58 = vrot.slane %v2523_v9, 4  ;;  %v6268_v22 = vpop.permute.xlu2 %6267 }
 0xb17   :  { %v2595_v16 = vsel %vm2183_vm7, %v8547_v27, %v8521_v13  ;;  %v6230_v17 = vunpack.i.h.bf16 %v8549_v49  ;;  %2732 = vmatpush.msra.mxu2 %v2680_v45  ;;  %2752 = vmatpush.msra.mxu3 %v2681_v36  ;;  %v2469_v0 = vsel %vm2052_vm15, %v6234_v57, %v6214_v26  ;;  %v2602_v18 = vrot.slane %v2487_v39, 4 }
 0xb18   :  { %v6253_v1 = vpop.permute.xlu0 %6252  ;;  %v2590_v61 = vsel %vm2183_vm7, %v8556_v55, %v8547_v27  ;;  %v6260_v44 = vunpack.i.h.bf16 %v8609_v54  ;;  %v6259_v40 = vunpack.i.l.bf16 %v8609_v54  ;;  %v2674_v13 = vsel %vm585_vm10, %v2505_v12, %v2620_v58  ;;  %v8698_v58 = vld [vmem:[#allocation24] sm:$0xf] }
 0xb19   :  { %v2518_v9 = vsel %vm499_vm5, %v6220_v60, %v6219_v47  ;;  %2733 = vmatpush.msra.mxu2 %v2674_v13  ;;  %2753 = vmatpush.msra.mxu3 %v2675_v35  ;;  %v2669_v26 = vsel %vm585_vm10, %v2468_v10, %v2603_v15  ;;  %v10679_v39 = vunpack.i.l.bf16 %v8537_v63  ;;  %v10680_v27 = vunpack.i.h.bf16 %v8537_v63 }
 0xb1a   :  { %v2661_v54 = vrot.slane %v8617_v28, 4  ;;  %v6255_v45 = vunpack.i.h.bf16 %v6253_v1  ;;  %v6254_v12 = vunpack.i.l.bf16 %v6253_v1  ;;  %v2668_v36 = vsel %vm585_vm10, %v2469_v0, %v2602_v18 }
 0xb1b   :  { %v2559_v55 = vsel %vm2145_vm13, %v10680_v27, %v10679_v39  ;;  %v2464_v47 = vsel %vm2052_vm15, %v6235_v3, %v6234_v57  ;;  %v2697_v35 = vsel %vm585_vm10, %v2595_v16, %v8208_v52  ;;  %v2696_v15 = vsel %vm585_vm10, %v2590_v61, %v8294_v37  ;;  %2734 = vmatpush.msra.mxu2 %v2668_v36 }
 0xb1c   :  { %v6270_v10 = vunpack.i.h.bf16 %v6268_v22  ;;  %2754 = vmatpush.msra.mxu3 %v2669_v26  ;;  %v2607_v28 = vrot.slane %v2482_v23, 4  ;;  %v10681_v1 = vunpack.i.h.bf16 %v8526_v43  ;;  %v2537_v0 = vsel %vm506_vm2, %v6260_v44, %v6259_v40  ;;  %v6278_v23 = vpop.permute.xlu1 %6277  ;;  %5789 = vmatmul.msk.f32.vlgmr.msra.gmra.mxu2 %vm737_vm9, %v8698_v58 }
 0xb1d   :  { %5796 = vmatpush.msk.msrb.mxu2 %vm588_vm12, %v2696_v15  ;;  %v2500_v57 = vsel %vm2090_vm1, %v6230_v17, %v6229_v20  ;;  %v2538_v43 = vsel %vm506_vm2, %v6245_v2, %v6260_v44  ;;  %v2691_v16 = vsel %vm585_vm10, %v2559_v55, %v2661_v54  ;;  %5791 = vmatmul.msk.f32.vlgmr.msra.gmra.mxu3 %vm737_vm9, %v8698_v58  ;;  %v2625_v61 = vrot.slane %v2518_v9, 4 }
 0xb1e   :  { %v2536_v18 = vsel %vm506_vm2, %v6259_v40, %v10681_v1  ;;  %5798 = vmatpush.msk.msrb.mxu3 %vm588_vm12, %v2697_v35  ;;  %v2673_v40 = vsel %vm585_vm10, %v2464_v47, %v2607_v28  ;;  %v6269_v13 = vunpack.i.l.bf16 %v6268_v22  ;;  %v10682_v20 = vunpack.i.h.bf16 %v8519_v6 }
 0xb1f   :  { %v2573_v2 = vsel %vm2164_vm11, %v6255_v45, %v6254_v12  ;;  %v10683_v44 = vunpack.i.h.bf16 %v8563_v50  ;;  %v10684_v39 = vunpack.i.h.bf16 %v8531_v51  ;;  %v2679_v6 = vsel %vm585_vm10, %v2500_v57, %v2625_v61 }
 0xb20   :  { %v2572_v4 = vsel %vm2164_vm11, %v6254_v12, %v10682_v20  ;;  %2831 = vmatpush.msrb.mxu3 %v2691_v16  ;;  %v6263_v22 = vpop.permute.xlu0 %6262  ;;  %v2641_v27 = vrot.slane %v2537_v0, 4  ;;  %v2642_v55 = vrot.slane %v2536_v18, 4  ;;  %v6280_v54 = vunpack.i.h.bf16 %v6278_v23 }
 0xb21   :  { %v2574_v26 = vsel %vm2164_vm11, %v10683_v44, %v6255_v45  ;;  %v2521_v9 = vsel %vm499_vm5, %v10684_v39, %v6270_v10  ;;  %v6265_v36 = vunpack.i.h.bf16 %v6263_v22  ;;  %v6264_v47 = vunpack.i.l.bf16 %v6263_v22 }
 0xb22   :  { %2832 = vmatpush.msrb.mxu3 %v8623_v32  ;;  %v2640_v50 = vrot.slane %v2538_v43, 4  ;;  %v6279_v12 = vunpack.i.l.bf16 %v6278_v23  ;;  %v2658_v35 = vrot.slane %v2574_v26, 4  ;;  %v2659_v45 = vrot.slane %v2573_v2, 4  ;;  %v6283_v43 = vpop.permute.xlu2 %6282 }
 0xb23   :  { %v2660_v15 = vrot.slane %v2572_v4, 4  ;;  %v2519_v51 = vsel %vm499_vm5, %v6269_v13, %v6220_v60  ;;  %v10685_v28 = vunpack.i.h.bf16 %v8586_v59  ;;  %v2555_v18 = vsel %vm2145_vm13, %v6265_v36, %v6264_v47 }
 0xb24   :  { %2833 = vmatpush.msrb.mxu3 %v2679_v6  ;;  %v10686_v32 = vunpack.i.h.bf16 %v8537_v63  ;;  %v2520_v31 = vsel %vm499_vm5, %v6270_v10, %v6269_v13  ;;  %v2689_v60 = vsel %vm585_vm10, %v2555_v18, %v2659_v45  ;;  %v10687_v23 = vunpack.i.h.bf16 %v8533_v25 }
 0xb25   :  { %v2556_v1 = vsel %vm2145_vm13, %v10685_v28, %v6265_v36  ;;  %2791 = vmatpush.msrb.mxu1 %v2689_v60  ;;  %v2682_v16 = vsel %vm585_vm10, %v8490_v56, %v2640_v50  ;;  %v2622_v10 = vrot.slane %v2521_v9, 4  ;;  %v2502_v61 = vsel %vm2090_vm1, %v6280_v54, %v6279_v12 }
 0xb26   :  { %v2554_v0 = vsel %vm2145_vm13, %v6264_v47, %v10686_v32  ;;  %v2688_v57 = vsel %vm585_vm10, %v2556_v1, %v2658_v35  ;;  %2834 = vmatpush.msrb.mxu3 %v2673_v40  ;;  %v2503_v63 = vsel %vm2090_vm1, %v10687_v23, %v6280_v54  ;;  %v2501_v40 = vsel %vm2090_vm1, %v6279_v12, %v6230_v17 }
 0xb27   :  { %v2690_v59 = vsel %vm585_vm10, %v2554_v0, %v2660_v15  ;;  %2771 = vmatpush.msrb.mxu0 %v2688_v57  ;;  %v2683_v25 = vsel %vm585_vm10, %v8502_v38, %v2641_v27  ;;  %v2684_v13 = vsel %vm585_vm10, %v8478_v30, %v2642_v55  ;;  %v2623_v20 = vrot.slane %v2520_v31, 4  ;;  %5799 = vmatmul.msk.f32.vlgmr.msrb.gmra.mxu3 %vm737_vm9, %v8698_v58 }
 0xb28   :  { %2811 = vmatpush.msrb.mxu2 %v2690_v59  ;;  %v2624_v4 = vrot.slane %v2519_v51, 4  ;;  %v6285_v56 = vunpack.i.h.bf16 %v6283_v43  ;;  %v6284_v2 = vunpack.i.l.bf16 %v6283_v43  ;;  %2792 = vmatpush.msrb.mxu1 %v2683_v25  ;;  %v6273_v49 = vpop.permute.xlu0 %6272  ;;  %v2676_v44 = vsel %vm585_vm10, %v2503_v63, %v2622_v10 }
 0xb29   :  { %2772 = vmatpush.msrb.mxu0 %v2682_v16  ;;  %v6275_v17 = vunpack.i.h.bf16 %v6273_v49  ;;  %v6274_v26 = vunpack.i.l.bf16 %v6273_v49  ;;  %v2677_v38 = vsel %vm585_vm10, %v2502_v61, %v2623_v20  ;;  %v10688_v30 = vunpack.i.h.bf16 %v8535_v29 }
 0xb2a   :  { %2812 = vmatpush.msrb.mxu2 %v2684_v13  ;;  %v2678_v39 = vsel %vm585_vm10, %v2501_v40, %v2624_v4  ;;  %2793 = vmatpush.msrb.mxu1 %v2677_v38  ;;  %v10689_v36 = vunpack.i.h.bf16 %v8541_v62  ;;  %v2466_v29 = vsel %vm2052_vm15, %v6285_v56, %v6284_v2  ;;  %v2465_v8 = vsel %vm2052_vm15, %v6284_v2, %v6235_v3 }
 0xb2b   :  { %2773 = vmatpush.msrb.mxu0 %v2676_v44  ;;  %v2485_v9 = vsel %vm2071_vm14, %v10688_v30, %v6275_v17  ;;  %v2483_v22 = vsel %vm2071_vm14, %v6274_v26, %v6225_v41  ;;  %v2484_v6 = vsel %vm2071_vm14, %v6275_v17, %v6274_v26 }
 0xb2c   :  { %2813 = vmatpush.msrb.mxu2 %v2678_v39  ;;  %v2604_v27 = vrot.slane %v2485_v9, 4  ;;  %v2605_v55 = vrot.slane %v2484_v6, 4  ;;  %v2606_v54 = vrot.slane %v2483_v22, 4  ;;  %v2467_v47 = vsel %vm2052_vm15, %v10689_v36, %v6285_v56 }
 0xb2e   :  { %v2670_v41 = vsel %vm585_vm10, %v2467_v47, %v2604_v27  ;;  %v2671_v50 = vsel %vm585_vm10, %v2466_v29, %v2605_v55  ;;  %v2672_v12 = vsel %vm585_vm10, %v2465_v8, %v2606_v54 }
 0xb2f   :  { %2774 = vmatpush.msrb.mxu0 %v2670_v41  ;;  %2794 = vmatpush.msrb.mxu1 %v2671_v50 }
 0xb30   :  { %2814 = vmatpush.msrb.mxu2 %v2672_v12  ;;  %5793 = vmatmul.msk.f32.vlgmr.msrb.gmra.mxu0 %vm737_vm9, %v8698_v58 }
 0xb31   :  { %5795 = vmatmul.msk.f32.vlgmr.msrb.gmra.mxu1 %vm737_vm9, %v8698_v58  ;;  %5797 = vmatmul.msk.f32.vlgmr.msrb.gmra.mxu2 %vm737_vm9, %v8698_v58 }
 0xb9f   :  { %v2736_v62 = vpop.f32.mrf.mxu2 }
 0xba0   :  { %v8816_v53 = vmul.f32 %v2736_v62, %v8152_v48  ;;  %v2756_v51 = vpop.f32.mrf.mxu3 }
 0xba1   :  { %v8833_v28 = vmul.f32 %v2756_v51, %v8191_v5 }
 0xba2   :  { %2971 = vrot.lane.b32.xlu1 %v8816_v53, %s7259_s29 }
 0xba3   :  { %v6311_v1 = vpack.i.bf16 %v8833_v28, %v8816_v53 }
 0xbaa   :  { %v2836_v32 = vpop.f32.mrf.mxu3 }
 0xbab   :  { %v8850_v31 = vmul.f32 %v2836_v32, %v8208_v52 }
 0xbad   :  { %v2776_v3 = vpop.f32.mrf.mxu0  ;;  %v6341_v60 = vpack.i.bf16 %v8850_v31, %v8816_v53 }
 0xbae   :  { %v8821_v35 = vmul.f32 %v2776_v3, %v8250_v21  ;;  %v2796_v45 = vpop.f32.mrf.mxu1 }
 0xbaf   :  { %v8824_v15 = vmul.f32 %v2796_v45, %v8257_v46 }
 0xbb0   :  { %2975 = vrot.lane.b32.xlu0 %v8821_v35, %s7259_s29  ;;  %v6316_v18 = vpack.i.bf16 %v8821_v35, %v8833_v28 }
 0xbb1   :  { %2977 = vrot.lane.b32.xlu1 %v8824_v15, %s7259_s29  ;;  %v6286_v58 = vpack.i.bf16 %v8824_v15, %v8821_v35 }
 0xbb3   :  { %6287 = vrot.lane.b32.xlu2 %v6286_v58, %s7260_s10 }
 0xbb4   :  { %v2816_v0 = vpop.f32.mrf.mxu2 }
 0xbb5   :  { %v8854_v57 = vmul.f32 %v2816_v0, %v8294_v37 }
 0xbb7   :  { %v6336_v59 = vpack.i.bf16 %v8854_v57, %v8824_v15  ;;  %v6366_v43 = vpack.i.bf16 %v8850_v31, %v8854_v57 }
 0xbb8   :  { %6297 = vrot.lane.b32.xlu0 %v6286_v58, %s7261_s0 }
 0xbb9   :  { %6312 = vrot.lane.b32.xlu1 %v6311_v1, %s7261_s0 }
 0xbbb   :  { %6292 = vrot.lane.b32.xlu2 %v6286_v58, %s7251_s2 }
 0xbc0   :  { %6302 = vrot.lane.b32.xlu0 %v6311_v1, %s7260_s10 }
 0xbc1   :  { %6317 = vrot.lane.b32.xlu1 %v6316_v18, %s7255_s7 }
 0xbc3   :  { %2973 = vrot.lane.b32.xlu2 %v8833_v28, %s7259_s29 }
 0xbc8   :  { %6307 = vrot.lane.b32.xlu0 %v6311_v1, %s7251_s2 }
 0xbc9   :  { %6332 = vrot.lane.b32.xlu1 %v6316_v18, %s7262_s16 }
 0xbcb   :  { %6322 = vrot.lane.b32.xlu2 %v6316_v18, %s7264_s3 }
 0xbd0   :  { %2979 = vrot.lane.b32.xlu0 %v8854_v57, %s7259_s29 }
 0xbd1   :  { %6342 = vrot.lane.b32.xlu1 %v6341_v60, %s7255_s7 }
 0xbd3   :  { %6337 = vrot.lane.b32.xlu2 %v6336_v59, %s7255_s7 }
 0xbd8   :  { %6327 = vrot.lane.b32.xlu0 %v6316_v18, %s7263_s12 }
 0xbd9   :  { %6362 = vrot.lane.b32.xlu1 %v6341_v60, %s7262_s16 }
 0xbdb   :  { %6347 = vrot.lane.b32.xlu2 %v6341_v60, %s7264_s3 }
 0xbe0   :  { %6352 = vrot.lane.b32.xlu0 %v6341_v60, %s7263_s12 }
 0xbe1   :  { %6367 = vrot.lane.b32.xlu1 %v6366_v43, %s7251_s2 }
 0xbe3   :  { %6357 = vrot.lane.b32.xlu2 %v6366_v43, %s7260_s10 }
 0xbe8   :  { %2981 = vrot.lane.b32.xlu0 %v8850_v31, %s7259_s29 }
 0xbe9   :  { %6382 = vrot.lane.b32.xlu1 %v6336_v59, %s7263_s12 }
 0xbeb   :  { %6372 = vrot.lane.b32.xlu2 %v6366_v43, %s7261_s0 }
 0xbf0   :  { %6377 = vrot.lane.b32.xlu0 %v6336_v59, %s7264_s3 }
 0xbf3   :  { %6387 = vrot.lane.b32.xlu2 %v6336_v59, %s7262_s16 }
 0xc0d   :  { %v8878_v23 = vpop.permute.xlu2 %6287 }
 0xc0e   :  { %v6290_v4 = vunpack.i.h.bf16 %v8878_v23  ;;  %v6289_v49 = vunpack.i.l.bf16 %v8878_v23 }
 0xc10   :  { %v2967_v39 = vsel %vm2164_vm11, %v6289_v49, %v6290_v4 }
 0xc11   :  { %v3051_v55 = vrot.slane %v2967_v39, 4 }
 0xc14   :  { %v8882_v16 = vpop.permute.xlu1 %2971 }
 0xc15   :  { %v8880_v63 = vpop.permute.xlu2 %6292 }
 0xc16   :  { %v6295_v44 = vunpack.i.h.bf16 %v8880_v63  ;;  %v6294_v17 = vunpack.i.l.bf16 %v8880_v63 }
 0xc18   :  { %v2931_v30 = vsel %vm506_vm2, %v6294_v17, %v6295_v44 }
 0xc19   :  { %v3033_v54 = vrot.slane %v2931_v30, 4 }
 0xc1b   :  { %v3075_v8 = vsel %vm585_vm10, %v8821_v35, %v3033_v54 }
 0xc1d   :  { %v2974_v10 = vpop.permute.xlu2 %2973 }
 0xc1e   :  { %v2987_v61 = vsel %vm2183_vm7, %v8882_v16, %v2974_v10 }
 0xc1f   :  { %v3085_v40 = vsel %vm585_vm10, %v2987_v61, %v8152_v48 }
 0xc20   :  { %5800 = vmatpush.msk.msra.mxu0 %vm588_vm12, %v3085_v40 }
 0xc22   :  { %v2976_v25 = vpop.permute.xlu0 %2975 }
 0xc23   :  { %v2986_v13 = vsel %vm2183_vm7, %v2974_v10, %v2976_v25  ;;  %v2978_v20 = vpop.permute.xlu1 %2977 }
 0xc24   :  { %v3086_v56 = vsel %vm585_vm10, %v2986_v13, %v8191_v5  ;;  %v2985_v2 = vsel %vm2183_vm7, %v2976_v25, %v2978_v20 }
 0xc25   :  { %v3087_v26 = vsel %vm585_vm10, %v2985_v2, %v8250_v21  ;;  %v8902_v38 = vpop.permute.xlu2 %6322  ;;  %5802 = vmatpush.msk.msra.mxu1 %vm588_vm12, %v3086_v56 }
 0xc26   :  { %5804 = vmatpush.msk.msra.mxu2 %vm588_vm12, %v3087_v26 }
 0xc2a   :  { %v6298_v9 = vpop.permute.xlu0 %6297 }
 0xc2b   :  { %v6300_v22 = vunpack.i.h.bf16 %v6298_v9  ;;  %v6299_v6 = vunpack.i.l.bf16 %v6298_v9  ;;  %v8912_v27 = vpop.permute.xlu1 %6312 }
 0xc2c   :  { %v6315_v3 = vunpack.i.h.bf16 %v8912_v27  ;;  %v10657_v45 = vunpack.i.l.bf16 %v8912_v27 }
 0xc2d   :  { %v8914_v36 = vpop.permute.xlu2 %6337  ;;  %v2949_v47 = vsel %vm2145_vm13, %v6299_v6, %v6300_v22 }
 0xc2e   :  { %v3081_v29 = vsel %vm585_vm10, %v2949_v47, %v3051_v55  ;;  %v2951_v32 = vsel %vm2145_vm13, %v10657_v45, %v6315_v3  ;;  %v2950_v0 = vsel %vm2145_vm13, %v6315_v3, %v6299_v6  ;;  %v6324_v47 = vunpack.i.l.bf16 %v8902_v38 }
 0xc2f   :  { %3164 = vmatpush.msra.mxu2 %v3081_v29 }
 0xc31   :  { %3165 = vmatpush.msra.mxu2 %v3075_v8 }
 0xc32   :  { %v8921_v41 = vpop.permute.xlu0 %6302 }
 0xc33   :  { %v8923_v50 = vpop.permute.xlu1 %6317  ;;  %v6305_v12 = vunpack.i.h.bf16 %v8921_v41  ;;  %v6304_v62 = vunpack.i.l.bf16 %v8921_v41 }
 0xc34   :  { %v6319_v55 = vunpack.i.l.bf16 %v8923_v50 }
 0xc35   :  { %v2968_v58 = vsel %vm2164_vm11, %v6305_v12, %v6289_v49  ;;  %v2969_v35 = vsel %vm2164_vm11, %v6304_v62, %v6305_v12  ;;  %v8935_v51 = vpop.permute.xlu2 %6347 }
 0xc36   :  { %v3049_v1 = vrot.slane %v2969_v35, 4  ;;  %v3050_v18 = vrot.slane %v2968_v58, 4 }
 0xc38   :  { %v3079_v60 = vsel %vm585_vm10, %v2951_v32, %v3049_v1  ;;  %v3080_v59 = vsel %vm585_vm10, %v2950_v0, %v3050_v18 }
 0xc39   :  { %3124 = vmatpush.msra.mxu0 %v3079_v60  ;;  %3144 = vmatpush.msra.mxu1 %v3080_v59  ;;  %v10654_v59 = vunpack.i.h.bf16 %v8935_v51 }
 0xc3a   :  { %v8945_v43 = vpop.permute.xlu0 %6307 }
 0xc3b   :  { %v8947_v23 = vpop.permute.xlu1 %6332  ;;  %v6310_v10 = vunpack.i.h.bf16 %v8945_v43  ;;  %v6309_v61 = vunpack.i.l.bf16 %v8945_v43 }
 0xc3c   :  { %v10652_v3 = vunpack.i.h.bf16 %v8947_v23 }
 0xc3d   :  { %v2932_v40 = vsel %vm506_vm2, %v6310_v10, %v6294_v17  ;;  %v2933_v25 = vsel %vm506_vm2, %v6309_v61, %v6310_v10  ;;  %v8957_v13 = vpop.permute.xlu2 %6357 }
 0xc3e   :  { %v3031_v56 = vrot.slane %v2933_v25, 4  ;;  %v3032_v2 = vrot.slane %v2932_v40, 4  ;;  %v6359_v26 = vunpack.i.l.bf16 %v8957_v13 }
 0xc40   :  { %v3073_v49 = vsel %vm585_vm10, %v8816_v53, %v3031_v56  ;;  %v3074_v39 = vsel %vm585_vm10, %v8833_v28, %v3032_v2  ;;  %v6320_v53 = vunpack.i.h.bf16 %v8923_v50  ;;  %v2966_v28 = vsel %vm2164_vm11, %v6290_v4, %v6359_v26 }
 0xc41   :  { %3125 = vmatpush.msra.mxu0 %v3073_v49  ;;  %3145 = vmatpush.msra.mxu1 %v3074_v39  ;;  %v3052_v8 = vrot.slane %v2966_v28, 4  ;;  %v6334_v4 = vunpack.i.l.bf16 %v8947_v23  ;;  %v1952_v28 = vld [vmem:[%s10690_s28 + $0x78] sm:$0xff] }
 0xc42   :  { %v8964_v17 = vpop.permute.xlu0 %2979  ;;  %v2914_v12 = vsel %vm499_vm5, %v6319_v55, %v6320_v53 }
 0xc43   :  { %v2984_v30 = vsel %vm2183_vm7, %v2978_v20, %v8964_v17  ;;  %v8969_v9 = vpop.permute.xlu1 %6342  ;;  %v10653_v20 = vunpack.i.h.bf16 %v8902_v38  ;;  %v3015_v10 = vrot.slane %v2914_v12, 4  ;;  %v2860_v2 = vsel %vm2052_vm15, %v6334_v4, %v10652_v3 }
 0xc44   :  { %v3088_v6 = vsel %vm585_vm10, %v2984_v30, %v8257_v46  ;;  %v10656_v40 = vunpack.i.h.bf16 %v8969_v9  ;;  %v6344_v25 = vunpack.i.l.bf16 %v8969_v9 }
 0xc45   :  { %v8979_v54 = vpop.permute.xlu2 %6372  ;;  %5806 = vmatpush.msk.msra.mxu3 %vm588_vm12, %v3088_v6  ;;  %v2878_v18 = vsel %vm2071_vm14, %v6324_v47, %v10653_v20 }
 0xc46   :  { %v10658_v29 = vunpack.i.l.bf16 %v8979_v54  ;;  %v2997_v39 = vrot.slane %v2878_v18, 4  ;;  %v2916_v12 = vsel %vm499_vm5, %v10656_v40, %v6344_v25  ;;  %v9035_v18 = vld [vmem:[#allocation25] sm:$0xf] }
 0xc48   :  { %v2948_v58 = vsel %vm2145_vm13, %v6300_v22, %v10658_v29  ;;  %v6349_v22 = vunpack.i.l.bf16 %v8935_v51  ;;  %v3063_v6 = vsel %vm585_vm10, %v2860_v2, %v2997_v39 }
 0xc49   :  { %v3082_v35 = vsel %vm585_vm10, %v2948_v58, %v3052_v8 }
 0xc4a   :  { %v8996_v1 = vpop.permute.xlu0 %6327  ;;  %3184 = vmatpush.msra.mxu3 %v3082_v35  ;;  %v2880_v30 = vsel %vm2071_vm14, %v10654_v59, %v6349_v22  ;;  %v2879_v8 = vsel %vm2071_vm14, %v6349_v22, %v6324_v47  ;;  %v1951_v47 = vld [vmem:[%s10690_s28 + $0x70] sm:$0xff]  ;;  %v6360_v22 = vunpack.i.h.bf16 %v8957_v13  ;;  %v6340_v13 = vunpack.i.h.bf16 %v8914_v36 }
 0xc4b   :  { %v10655_v32 = vunpack.i.h.bf16 %v8996_v1  ;;  %v6329_v0 = vunpack.i.l.bf16 %v8996_v1  ;;  %v9004_v60 = vpop.permute.xlu1 %6362  ;;  %v2995_v3 = vrot.slane %v2880_v30, 4  ;;  %v2996_v59 = vrot.slane %v2879_v8, 4 }
 0xc4c   :  { %v6365_v58 = vunpack.i.h.bf16 %v9004_v60  ;;  %v6364_v35 = vunpack.i.l.bf16 %v9004_v60  ;;  %v2965_v63 = vsel %vm2164_vm11, %v6359_v26, %v6360_v22  ;;  %v1948_v26 = vld [vmem:[%s10690_s28 + $0x58] sm:$0xff]  ;;  %v1941_v60 = vld [vmem:[%s10690_s28 + $0x20] sm:$0xff] }
 0xc4d   :  { %v2896_v56 = vsel %vm2090_vm1, %v6329_v0, %v10655_v32  ;;  %v1950_v32 = vld [vmem:[%s10690_s28 + $0x68] sm:$0xff] }
 0xc4e   :  { %v3069_v49 = vsel %vm585_vm10, %v2896_v56, %v3015_v10  ;;  %v6339_v10 = vunpack.i.l.bf16 %v8914_v36  ;;  %v2915_v56 = vsel %vm499_vm5, %v6344_v25, %v6319_v55  ;;  %v3013_v25 = vrot.slane %v2916_v12, 4 }
 0xc4f   :  { %3166 = vmatpush.msra.mxu2 %v3069_v49  ;;  %v3014_v29 = vrot.slane %v2915_v56, 4  ;;  %v2862_v30 = vsel %vm2052_vm15, %v6365_v58, %v6364_v35  ;;  %v2970_v56 = vsel %vm2164_vm11, %v6360_v22, %v6304_v62  ;;  %v1947_v22 = vld [vmem:[%s10690_s28 + $0x50] sm:$0xff] }
 0xc50   :  { %v3061_v62 = vsel %vm585_vm10, %v2862_v30, %v2995_v3  ;;  %v10692_v3 = vunpack.i.l.bf16 %v8912_v27  ;;  %v10693_v30 = vunpack.i.h.bf16 %v8969_v9 }
 0xc51   :  { %3167 = vmatpush.msra.mxu2 %v3063_v6 }
 0xc52   :  { %v9040_v2 = vpop.permute.xlu0 %6352  ;;  %5805 = vmatmul.msk.f32.vlgmr.msra.gmra.mxu2 %vm737_vm9, %v9035_v18 }
 0xc53   :  { %v6355_v49 = vunpack.i.h.bf16 %v9040_v2  ;;  %v6354_v39 = vunpack.i.l.bf16 %v9040_v2  ;;  %v6368_v6 = vpop.permute.xlu1 %6367  ;;  %3268 = vmatpush.msrb.mxu2 %v1952_v28  ;;  %v6375_v28 = vunpack.i.h.bf16 %v8979_v54  ;;  %v1944_v2 = vld [vmem:[%s10690_s28 + $0x38] sm:$0xff] }
 0xc54   :  { %v6370_v20 = vunpack.i.h.bf16 %v6368_v6  ;;  %v6369_v55 = vunpack.i.l.bf16 %v6368_v6  ;;  %v2861_v6 = vsel %vm2052_vm15, %v6364_v35, %v6334_v4 }
 0xc55   :  { %v2898_v40 = vsel %vm2090_vm1, %v6355_v49, %v6354_v39  ;;  %v2897_v45 = vsel %vm2090_vm1, %v6354_v39, %v6329_v0  ;;  %3269 = vmatpush.msrb.mxu2 %v1951_v47  ;;  %v1949_v0 = vld [vmem:[%s10690_s28 + $0x60] sm:$0xff]  ;;  %v3062_v43 = vsel %vm585_vm10, %v2861_v6, %v2996_v59  ;;  %v10694_v6 = vunpack.i.h.bf16 %v8996_v1 }
 0xc56   :  { %v2930_v8 = vsel %vm506_vm2, %v6295_v44, %v6369_v55  ;;  %v3067_v12 = vsel %vm585_vm10, %v2898_v40, %v3013_v25  ;;  %v3068_v44 = vsel %vm585_vm10, %v2897_v45, %v3014_v29  ;;  %v2934_v4 = vsel %vm506_vm2, %v6370_v20, %v6309_v61 }
 0xc57   :  { %3126 = vmatpush.msra.mxu0 %v3067_v12  ;;  %v3034_v40 = vrot.slane %v2930_v8, 4  ;;  %3270 = vmatpush.msrb.mxu2 %v1950_v32  ;;  %v2929_v41 = vsel %vm506_vm2, %v6369_v55, %v6370_v20  ;;  %v2913_v45 = vsel %vm499_vm5, %v6320_v53, %v6339_v10  ;;  %v10691_v29 = vunpack.i.l.bf16 %v8979_v54  ;;  %v1946_v12 = vld [vmem:[%s10690_s28 + $0x48] sm:$0xff] }
 0xc58   :  { %3146 = vmatpush.msra.mxu1 %v3068_v44  ;;  %v3053_v53 = vrot.slane %v2965_v63, 4  ;;  %v2952_v32 = vsel %vm2145_vm13, %v6375_v28, %v10692_v3  ;;  %v3035_v27 = vrot.slane %v2929_v41, 4  ;;  %v3036_v54 = vrot.slane %v2934_v4, 4  ;;  %v1945_v63 = vld [vmem:[%s10690_s28 + $0x40] sm:$0xff]  ;;  %v6388_v44 = vpop.permute.xlu2 %6387 }
 0xc59   :  { %3127 = vmatpush.msra.mxu0 %v3061_v62  ;;  %v3076_v61 = vsel %vm585_vm10, %v8824_v15, %v3034_v40  ;;  %3271 = vmatpush.msrb.mxu2 %v1949_v0  ;;  %v2947_v50 = vsel %vm2145_vm13, %v10691_v29, %v6375_v28  ;;  %v3054_v15 = vrot.slane %v2970_v56, 4  ;;  %v2912_v25 = vsel %vm499_vm5, %v6339_v10, %v6340_v13 }
 0xc5a   :  { %3147 = vmatpush.msra.mxu1 %v3062_v43  ;;  %3185 = vmatpush.msra.mxu3 %v3076_v61  ;;  %v2982_v20 = vpop.permute.xlu0 %2981  ;;  %v2911_v28 = vsel %vm499_vm5, %v6340_v13, %v10693_v30  ;;  %v3016_v8 = vrot.slane %v2913_v45, 4  ;;  %v3083_v10 = vsel %vm585_vm10, %v2947_v50, %v3053_v53  ;;  %v3077_v40 = vsel %vm585_vm10, %v8854_v57, %v3035_v27  ;;  %v1982_v30 = vld [vmem:[%s10690_s28 + $0x168] sm:$0xff] }
 0xc5b   :  { %v2983_v59 = vsel %vm2183_vm7, %v8964_v17, %v2982_v20  ;;  %v2988_v35 = vsel %vm2183_vm7, %v2982_v20, %v8882_v16  ;;  %v6383_v47 = vpop.permute.xlu1 %6382  ;;  %5801 = vmatmul.msk.f32.vlgmr.msra.gmra.mxu0 %vm737_vm9, %v9035_v18  ;;  %5803 = vmatmul.msk.f32.vlgmr.msra.gmra.mxu1 %vm737_vm9, %v9035_v18  ;;  %v3084_v9 = vsel %vm585_vm10, %v2952_v32, %v3054_v15  ;;  %v3017_v41 = vrot.slane %v2912_v25, 4  ;;  %v1942_v32 = vld [vmem:[%s10690_s28 + $0x28] sm:$0xff] }
 0xc5c   :  { %v3089_v17 = vsel %vm585_vm10, %v2983_v59, %v8294_v37  ;;  %v3090_v39 = vsel %vm585_vm10, %v2988_v35, %v8208_v52  ;;  %v6385_v16 = vunpack.i.h.bf16 %v6383_v47  ;;  %v6384_v55 = vunpack.i.l.bf16 %v6383_v47  ;;  %3272 = vmatpush.msrb.mxu2 %v1948_v26  ;;  %v1966_v25 = vld [vmem:[%s10690_s28 + $0xe8] sm:$0xff] }
 0xc5d   :  { %5808 = vmatpush.msk.msrb.mxu0 %vm588_vm12, %v3089_v17  ;;  %5810 = vmatpush.msk.msrb.mxu1 %vm588_vm12, %v3090_v39  ;;  %v3078_v4 = vsel %vm585_vm10, %v8850_v31, %v3036_v54  ;;  %v3018_v62 = vrot.slane %v2911_v28, 4  ;;  %v6390_v43 = vunpack.i.h.bf16 %v6388_v44  ;;  %v6389_v57 = vunpack.i.l.bf16 %v6388_v44  ;;  %v1943_v31 = vld [vmem:[%s10690_s28 + $0x30] sm:$0xff]  ;;  %v1965_v28 = vld [vmem:[%s10690_s28 + $0xe0] sm:$0xff] }
 0xc5e   :  { %v2895_v36 = vsel %vm2090_vm1, %v10694_v6, %v6384_v55  ;;  %3273 = vmatpush.msrb.mxu2 %v1947_v22  ;;  %v2894_v56 = vsel %vm2090_vm1, %v6384_v55, %v6385_v16  ;;  %v2893_v1 = vsel %vm2090_vm1, %v6385_v16, %v6355_v49  ;;  %v10695_v20 = vunpack.i.h.bf16 %v8935_v51  ;;  %v1967_v39 = vld [vmem:[%s10690_s28 + $0xf0] sm:$0xff]  ;;  %v1940_v16 = vld [vmem:[%s10690_s28 + $0x18] sm:$0xff]  ;;  %v1981_v6 = vld [vmem:[%s10690_s28 + $0x160] sm:$0xff] }
 0xc5f   :  { %v3070_v0 = vsel %vm585_vm10, %v2895_v36, %v3016_v8  ;;  %3204 = vmatpush.msrb.mxu0 %v3083_v10  ;;  %3224 = vmatpush.msrb.mxu1 %v3084_v9  ;;  %v3071_v13 = vsel %vm585_vm10, %v2894_v56, %v3017_v41  ;;  %v3072_v45 = vsel %vm585_vm10, %v2893_v1, %v3018_v62  ;;  %v10696_v53 = vunpack.i.h.bf16 %v8902_v38  ;;  %v1983_v55 = vld [vmem:[%s10690_s28 + $0x170] sm:$0xff]  ;;  %v1938_v8 = vld [vmem:[%s10690_s28 + $0x8] sm:$0xff]  ;;  %v1964_v36 = vld [vmem:[%s10690_s28 + $0xd8] sm:$0xff] }
 0xc60   :  { %3186 = vmatpush.msra.mxu3 %v3070_v0  ;;  %3274 = vmatpush.msrb.mxu2 %v1946_v12  ;;  %v10697_v51 = vunpack.i.h.bf16 %v8947_v23  ;;  %v2858_v27 = vsel %vm2052_vm15, %v6389_v57, %v6390_v43  ;;  %v2857_v38 = vsel %vm2052_vm15, %v6390_v43, %v6365_v58  ;;  %v1968_v23 = vld [vmem:[%s10690_s28 + $0xf8] sm:$0xff]  ;;  %v1937_v10 = vld [vmem:[%s10690_s28] sm:$0xff]  ;;  %v1999_v9 = vld [vmem:[%s10690_s28 + $0x1f0] sm:$0xff] }
 0xc61   :  { %3205 = vmatpush.msrb.mxu0 %v3077_v40  ;;  %3225 = vmatpush.msrb.mxu1 %v3078_v4  ;;  %v1984_v58 = vld [vmem:[%s10690_s28 + $0x178] sm:$0xff]  ;;  %v1963_v1 = vld [vmem:[%s10690_s28 + $0xd0] sm:$0xff]  ;;  %v1962_v4 = vld [vmem:[%s10690_s28 + $0xc8] sm:$0xff] }
 0xc62   :  { %v6378_v49 = vpop.permute.xlu0 %6377  ;;  %3275 = vmatpush.msrb.mxu2 %v1945_v63  ;;  %v2859_v47 = vsel %vm2052_vm15, %v10697_v51, %v6389_v57  ;;  %v2000_v12 = vld [vmem:[%s10690_s28 + $0x1f8] sm:$0xff]  ;;  %v1998_v63 = vld [vmem:[%s10690_s28 + $0x1e8] sm:$0xff]  ;;  %v2015_v44 = vld [vmem:[%s10690_s28 + $0x270] sm:$0xff] }
 0xc63   :  { %v6380_v61 = vunpack.i.h.bf16 %v6378_v49  ;;  %v6379_v26 = vunpack.i.l.bf16 %v6378_v49  ;;  %3206 = vmatpush.msrb.mxu0 %v3071_v13  ;;  %3226 = vmatpush.msrb.mxu1 %v3072_v45  ;;  %v2016_v0 = vld [vmem:[%s10690_s28 + $0x278] sm:$0xff]  ;;  %v1979_v40 = vld [vmem:[%s10690_s28 + $0x150] sm:$0xff]  ;;  %v1997_v41 = vld [vmem:[%s10690_s28 + $0x1e0] sm:$0xff] }
 0xc64   :  { %3276 = vmatpush.msrb.mxu2 %v1944_v2  ;;  %v1980_v56 = vld [vmem:[%s10690_s28 + $0x158] sm:$0xff]  ;;  %v2014_v62 = vld [vmem:[%s10690_s28 + $0x268] sm:$0xff]  ;;  %v1961_v49 = vld [vmem:[%s10690_s28 + $0xc0] sm:$0xff] }
 0xc65   :  { %v2875_v29 = vsel %vm2071_vm14, %v6380_v61, %v10695_v20  ;;  %v2876_v50 = vsel %vm2071_vm14, %v6379_v26, %v6380_v61  ;;  %v2877_v3 = vsel %vm2071_vm14, %v10696_v53, %v6379_v26  ;;  %v1978_v2 = vld [vmem:[%s10690_s28 + $0x148] sm:$0xff]  ;;  %v2013_v13 = vld [vmem:[%s10690_s28 + $0x260] sm:$0xff]  ;;  %v1960_v43 = vld [vmem:[%s10690_s28 + $0xb8] sm:$0xff] }
 0xc66   :  { %v2998_v15 = vrot.slane %v2877_v3, 4  ;;  %v2999_v59 = vrot.slane %v2876_v50, 4  ;;  %v3000_v35 = vrot.slane %v2875_v29, 4  ;;  %3277 = vmatpush.msrb.mxu2 %v1943_v31  ;;  %v1977_v45 = vld [vmem:[%s10690_s28 + $0x140] sm:$0xff]  ;;  %v2012_v57 = vld [vmem:[%s10690_s28 + $0x258] sm:$0xff]  ;;  %v1959_v61 = vld [vmem:[%s10690_s28 + $0xb0] sm:$0xff] }
 0xc67   :  { %v2011_v26 = vld [vmem:[%s10690_s28 + $0x250] sm:$0xff]  ;;  %v1958_v31 = vld [vmem:[%s10690_s28 + $0xa8] sm:$0xff]  ;;  %v1957_v29 = vld [vmem:[%s10690_s28 + $0xa0] sm:$0xff] }
 0xc68   :  { %v3064_v54 = vsel %vm585_vm10, %v2859_v47, %v2998_v15  ;;  %v3065_v22 = vsel %vm585_vm10, %v2858_v27, %v2999_v59  ;;  %v3066_v17 = vsel %vm585_vm10, %v2857_v38, %v3000_v35  ;;  %3278 = vmatpush.msrb.mxu2 %v1942_v32  ;;  %v2010_v20 = vld [vmem:[%s10690_s28 + $0x248] sm:$0xff]  ;;  %v1956_v50 = vld [vmem:[%s10690_s28 + $0x98] sm:$0xff]  ;;  %v1955_v53 = vld [vmem:[%s10690_s28 + $0x90] sm:$0xff] }
 0xc69   :  { %3187 = vmatpush.msra.mxu3 %v3064_v54  ;;  %3207 = vmatpush.msrb.mxu0 %v3065_v22  ;;  %v1954_v3 = vld [vmem:[%s10690_s28 + $0x88] sm:$0xff]  ;;  %v1953_v32 = vld [vmem:[%s10690_s28 + $0x80] sm:$0xff]  ;;  %v2032_v15 = vld [vmem:[%s10690_s28 + $0x2f8] sm:$0xff] }
 0xc6a   :  { %3227 = vmatpush.msrb.mxu1 %v3066_v17  ;;  %5807 = vmatmul.msk.f32.vlgmr.msra.gmra.mxu3 %vm737_vm9, %v9035_v18  ;;  %v2031_v59 = vld [vmem:[%s10690_s28 + $0x2f0] sm:$0xff]  ;;  %v2030_v35 = vld [vmem:[%s10690_s28 + $0x2e8] sm:$0xff]  ;;  %v2029_v51 = vld [vmem:[%s10690_s28 + $0x2e0] sm:$0xff] }
 0xc6b   :  { %5809 = vmatmul.msk.f32.vlgmr.msrb.gmra.mxu0 %vm737_vm9, %v9035_v18  ;;  %5811 = vmatmul.msk.f32.vlgmr.msrb.gmra.mxu1 %vm737_vm9, %v9035_v18  ;;  %v1939_v18 = vld [vmem:[%s10690_s28 + $0x10] sm:$0xff]  ;;  %v2028_v47 = vld [vmem:[%s10690_s28 + $0x2d8] sm:$0xff]  ;;  %v2026_v38 = vld [vmem:[%s10690_s28 + $0x2c8] sm:$0xff] }
 0xc6c   :  { %3288 = vmatpush.msrb.mxu3 %v1968_v23  ;;  %3279 = vmatpush.msrb.mxu2 %v1941_v60  ;;  %v2027_v27 = vld [vmem:[%s10690_s28 + $0x2d0] sm:$0xff]  ;;  %v1976_v54 = vld [vmem:[%s10690_s28 + $0x138] sm:$0xff]  ;;  %v2009_v17 = vld [vmem:[%s10690_s28 + $0x240] sm:$0xff] }
 0xc6d   :  { %3308 = vmatpush.msra.mxu0 %v1984_v58  ;;  %3328 = vmatpush.msra.mxu1 %v2000_v12  ;;  %v1996_v22 = vld [vmem:[%s10690_s28 + $0x1d8] sm:$0xff]  ;;  %v2025_v23 = vld [vmem:[%s10690_s28 + $0x2c0] sm:$0xff]  ;;  %v1975_v60 = vld [vmem:[%s10690_s28 + $0x130] sm:$0xff] }
 0xc6e   :  { %3289 = vmatpush.msrb.mxu3 %v1967_v39  ;;  %3280 = vmatpush.msrb.mxu2 %v1940_v16  ;;  %v1995_v58 = vld [vmem:[%s10690_s28 + $0x1d0] sm:$0xff]  ;;  %v2008_v39 = vld [vmem:[%s10690_s28 + $0x238] sm:$0xff]  ;;  %v2006_v12 = vld [vmem:[%s10690_s28 + $0x228] sm:$0xff] }
 0xc6f   :  { %3309 = vmatpush.msra.mxu0 %v1983_v55  ;;  %3329 = vmatpush.msra.mxu1 %v1999_v9  ;;  %v2024_v16 = vld [vmem:[%s10690_s28 + $0x2b8] sm:$0xff]  ;;  %v1974_v55 = vld [vmem:[%s10690_s28 + $0x128] sm:$0xff]  ;;  %v2005_v9 = vld [vmem:[%s10690_s28 + $0x220] sm:$0xff] }
 0xc70   :  { %3290 = vmatpush.msrb.mxu3 %v1966_v25  ;;  %3281 = vmatpush.msrb.mxu2 %v1939_v18  ;;  %v1994_v25 = vld [vmem:[%s10690_s28 + $0x1c8] sm:$0xff]  ;;  %v2007_v18 = vld [vmem:[%s10690_s28 + $0x230] sm:$0xff] }
 0xc71   :  { %3310 = vmatpush.msra.mxu0 %v1982_v30  ;;  %3330 = vmatpush.msra.mxu1 %v1998_v63  ;;  %v2023_v30 = vld [vmem:[%s10690_s28 + $0x2b0] sm:$0xff]  ;;  %v2004_v63 = vld [vmem:[%s10690_s28 + $0x218] sm:$0xff] }
 0xc72   :  { %3291 = vmatpush.msrb.mxu3 %v1965_v28  ;;  %3282 = vmatpush.msrb.mxu2 %v1938_v8  ;;  %v1973_v28 = vld [vmem:[%s10690_s28 + $0x120] sm:$0xff] }
 0xc73   :  { %3311 = vmatpush.msra.mxu0 %v1981_v6  ;;  %3331 = vmatpush.msra.mxu1 %v1997_v41  ;;  %v1993_v8 = vld [vmem:[%s10690_s28 + $0x1c0] sm:$0xff]  ;;  %v2022_v6 = vld [vmem:[%s10690_s28 + $0x2a8] sm:$0xff]  ;;  %v2003_v41 = vld [vmem:[%s10690_s28 + $0x210] sm:$0xff] }
 0xc74   :  { %3292 = vmatpush.msrb.mxu3 %v1964_v36  ;;  %3283 = vmatpush.msrb.mxu2 %v1937_v10  ;;  %v1972_v36 = vld [vmem:[%s10690_s28 + $0x118] sm:$0xff] }
 0xc75   :  { %3312 = vmatpush.msra.mxu0 %v1980_v56  ;;  %3332 = vmatpush.msra.mxu1 %v1996_v22  ;;  %v1992_v10 = vld [vmem:[%s10690_s28 + $0x1b8] sm:$0xff]  ;;  %v1971_v56 = vld [vmem:[%s10690_s28 + $0x110] sm:$0xff] }
 0xc76   :  { %3348 = vmatpush.msra.mxu2 %v2016_v0  ;;  %3293 = vmatpush.msrb.mxu3 %v1963_v1  ;;  %v2021_v0 = vld [vmem:[%s10690_s28 + $0x2a0] sm:$0xff]  ;;  %v9408_v1 = vld [vmem:[%s10690_s28 + $0x1b0] sm:$0xff] }
 0xc77   :  { %3313 = vmatpush.msra.mxu0 %v1979_v40  ;;  %3333 = vmatpush.msra.mxu1 %v1995_v58  ;;  %v1970_v40 = vld [vmem:[%s10690_s28 + $0x108] sm:$0xff] }
 0xc78   :  { %3349 = vmatpush.msra.mxu2 %v2015_v44  ;;  %3294 = vmatpush.msrb.mxu3 %v1962_v4  ;;  %v2020_v44 = vld [vmem:[%s10690_s28 + $0x298] sm:$0xff]  ;;  %v9423_v4 = vld [vmem:[%s10690_s28 + $0x1a8] sm:$0xff] }
 0xc79   :  { %3314 = vmatpush.msra.mxu0 %v1978_v2  ;;  %3334 = vmatpush.msra.mxu1 %v1994_v25  ;;  %v1969_v2 = vld [vmem:[%s10690_s28 + $0x100] sm:$0xff] }
 0xc7a   :  { %3350 = vmatpush.msra.mxu2 %v2014_v62  ;;  %3295 = vmatpush.msrb.mxu3 %v1961_v49  ;;  %v2019_v62 = vld [vmem:[%s10690_s28 + $0x290] sm:$0xff]  ;;  %v9438_v49 = vld [vmem:[%s10690_s28 + $0x1a0] sm:$0xff] }
 0xc7b   :  { %3315 = vmatpush.msra.mxu0 %v1977_v45  ;;  %3335 = vmatpush.msra.mxu1 %v1993_v8  ;;  %v2018_v45 = vld [vmem:[%s10690_s28 + $0x288] sm:$0xff] }
 0xc7c   :  { %3351 = vmatpush.msra.mxu2 %v2013_v13  ;;  %3296 = vmatpush.msrb.mxu3 %v1960_v43  ;;  %v2002_v13 = vld [vmem:[%s10690_s28 + $0x208] sm:$0xff]  ;;  %v9450_v43 = vld [vmem:[%s10690_s28 + $0x198] sm:$0xff] }
 0xc7d   :  { %3316 = vmatpush.msra.mxu0 %v1976_v54  ;;  %3336 = vmatpush.msra.mxu1 %v1992_v10 }
 0xc7e   :  { %3352 = vmatpush.msra.mxu2 %v2012_v57  ;;  %3297 = vmatpush.msrb.mxu3 %v1959_v61  ;;  %v2001_v57 = vld [vmem:[%s10690_s28 + $0x200] sm:$0xff] }
 0xc7f   :  { %3317 = vmatpush.msra.mxu0 %v1975_v60  ;;  %3337 = vmatpush.msra.mxu1 %v9408_v1  ;;  %v2017_v61 = vld [vmem:[%s10690_s28 + $0x280] sm:$0xff] }
 0xc80   :  { %3353 = vmatpush.msra.mxu2 %v2011_v26  ;;  %3298 = vmatpush.msrb.mxu3 %v1958_v31  ;;  %v9461_v26 = vld [vmem:[%s10690_s28 + $0x190] sm:$0xff] }
 0xc81   :  { %3318 = vmatpush.msra.mxu0 %v1974_v55  ;;  %3338 = vmatpush.msra.mxu1 %v9423_v4 }
 0xc82   :  { %3354 = vmatpush.msra.mxu2 %v2010_v20  ;;  %3299 = vmatpush.msrb.mxu3 %v1957_v29  ;;  %v9467_v20 = vld [vmem:[%s10690_s28 + $0x188] sm:$0xff] }
 0xc83   :  { %3319 = vmatpush.msra.mxu0 %v1973_v28  ;;  %3339 = vmatpush.msra.mxu1 %v9438_v49 }
 0xc84   :  { %3300 = vmatpush.msrb.mxu3 %v1956_v50  ;;  %3355 = vmatpush.msra.mxu2 %v2009_v17  ;;  %v9476_v50 = vld [vmem:[%s10690_s28 + $0x180] sm:$0xff] }
 0xc85   :  { %3320 = vmatpush.msra.mxu0 %v1972_v36  ;;  %3340 = vmatpush.msra.mxu1 %v9450_v43 }
 0xc86   :  { %3301 = vmatpush.msrb.mxu3 %v1955_v53  ;;  %3356 = vmatpush.msra.mxu2 %v2008_v39 }
 0xc87   :  { %3321 = vmatpush.msra.mxu0 %v1971_v56  ;;  %3341 = vmatpush.msra.mxu1 %v9461_v26 }
 0xc88   :  { %3302 = vmatpush.msrb.mxu3 %v1954_v3  ;;  %3357 = vmatpush.msra.mxu2 %v2007_v18 }
 0xc89   :  { %3322 = vmatpush.msra.mxu0 %v1970_v40  ;;  %3342 = vmatpush.msra.mxu1 %v9467_v20 }
 0xc8a   :  { %3303 = vmatpush.msrb.mxu3 %v1953_v32  ;;  %3358 = vmatpush.msra.mxu2 %v2006_v12 }
 0xc8b   :  { %3323 = vmatpush.msra.mxu0 %v1969_v2  ;;  %3343 = vmatpush.msra.mxu1 %v9476_v50 }
 0xc8c   :  { %3368 = vmatpush.msra.mxu3 %v2032_v15  ;;  %3359 = vmatpush.msra.mxu2 %v2005_v9 }
 0xc8e   :  { %3369 = vmatpush.msra.mxu3 %v2031_v59  ;;  %3360 = vmatpush.msra.mxu2 %v2004_v63 }
 0xc90   :  { %3370 = vmatpush.msra.mxu3 %v2030_v35  ;;  %3361 = vmatpush.msra.mxu2 %v2003_v41 }
 0xc92   :  { %3371 = vmatpush.msra.mxu3 %v2029_v51  ;;  %3362 = vmatpush.msra.mxu2 %v2002_v13 }
 0xc94   :  { %3372 = vmatpush.msra.mxu3 %v2028_v47  ;;  %3363 = vmatpush.msra.mxu2 %v2001_v57 }
 0xc96   :  { %3373 = vmatpush.msra.mxu3 %v2027_v27 }
 0xc98   :  { %3374 = vmatpush.msra.mxu3 %v2026_v38 }
 0xc9a   :  { %3375 = vmatpush.msra.mxu3 %v2025_v23 }
 0xc9c   :  { %3376 = vmatpush.msra.mxu3 %v2024_v16 }
 0xc9e   :  { %3377 = vmatpush.msra.mxu3 %v2023_v30 }
 0xca0   :  { %3378 = vmatpush.msra.mxu3 %v2022_v6 }
 0xca2   :  { %3379 = vmatpush.msra.mxu3 %v2021_v0 }
 0xca4   :  { %3380 = vmatpush.msra.mxu3 %v2020_v44 }
 0xca6   :  { %3381 = vmatpush.msra.mxu3 %v2019_v62 }
 0xca8   :  { %3382 = vmatpush.msra.mxu3 %v2018_v45 }
 0xcaa   :  { %3383 = vmatpush.msra.mxu3 %v2017_v61  ;;  %v3419_v61 = vld.sshfl [vmem:[#allocation1] sm:$0xff pattern:$0x73625140] }
 0xcab   :  { %5812 = vmatpush.msk.msrb.mxu0 %vm579_vm8, %v3419_v61 }
 0xcd5   :  { %v3169_v31 = vpop.f32.mrf.mxu2 }
 0xcd6   :  { %v9470_v29 = vmul.f32 %v3169_v31, %v8250_v21  ;;  %v3420_v31 = vld.sshfl [vmem:[#allocation1 + $0x8] sm:$0xff pattern:$0x73625140] }
 0xcd7   :  { %5814 = vmatpush.msk.msrb.mxu1 %vm579_vm8, %v3420_v31 }
 0xcd8   :  { %v3129_v53 = vpop.f32.mrf.mxu0  ;;  %v3149_v3 = vpop.f32.mrf.mxu1  ;;  %v3240_v32 = vmul.f32 %v9470_v29, %v9470_v29 }
 0xcd9   :  { %v9482_v15 = vmul.f32 %v3129_v53, %v8152_v48  ;;  %v9485_v59 = vmul.f32 %v3149_v3, %v8191_v5  ;;  %v3421_v3 = vld.sshfl [vmem:[#allocation1 + $0x10] sm:$0xff pattern:$0x73625140] }
 0xcda   :  { %v3252_v35 = vrot.slane %v3240_v32, 4  ;;  %v3422_v32 = vld.sshfl [vmem:[#allocation1 + $0x18] sm:$0xff pattern:$0x73625140] }
 0xcdb   :  { %v3238_v51 = vmul.f32 %v9482_v15, %v9482_v15  ;;  %v3239_v47 = vmul.f32 %v9485_v59, %v9485_v59  ;;  %4224 = vst [vmem:[#allocation1] ss:$4 sm:$0xff] %v8051_v11 }
 0xcdc   :  { %v3264_v27 = vsel %vm585_vm10, %v9470_v29, %v3252_v35 }
 0xcdd   :  { %v3250_v38 = vrot.slane %v3238_v51, 4  ;;  %v3251_v54 = vrot.slane %v3239_v47, 4  ;;  %3324 = vmatmul.f32.vlgmr.msra.gmra.mxu0 %v3264_v27  ;;  %v2034_v27 = vld [vmem:[#allocation21 + $0x8] sm:$0xf] }
 0xcde   :  { %5816 = vmatpush.msk.msra.mxu0 %vm579_vm8, %v3421_v3  ;;  %3418 = vst [vmem:[#allocation1 + $0x20] ss:$4 sm:$0xff] %v2034_v27 }
 0xcdf   :  { %v3262_v22 = vsel %vm585_vm10, %v9482_v15, %v3250_v38  ;;  %v3263_v17 = vsel %vm585_vm10, %v9485_v59, %v3251_v54 }
 0xce0   :  { %3284 = vmatmul.f32.vlgmr.msrb.gmra.mxu2 %v3262_v22  ;;  %3304 = vmatmul.f32.vlgmr.msrb.gmra.mxu3 %v3263_v17 }
 0xce5   :  { %v3423_v17 = vld.sshfl [vmem:[#allocation1 + $0x20] sm:$0xff pattern:$0x73625140] }
 0xce8   :  { %v3209_v23 = vpop.f32.mrf.mxu0  ;;  %v3229_v60 = vpop.f32.mrf.mxu1 }
 0xce9   :  { %v9499_v58 = vmul.f32 %v3209_v23, %v8294_v37  ;;  %v9502_v39 = vmul.f32 %v3229_v60, %v8208_v52  ;;  %v3424_v23 = vld.sshfl [vmem:[#allocation1 + $0x28] sm:$0xff pattern:$0x73625140] }
 0xcea   :  { %4226 = vst [vmem:[#allocation1 + $0x20] ss:$4 sm:$0xff] %v2034_v27 }
 0xceb   :  { %v3242_v16 = vmul.f32 %v9499_v58, %v9499_v58  ;;  %v3243_v55 = vmul.f32 %v9502_v39, %v9502_v39 }
 0xced   :  { %v3254_v25 = vrot.slane %v3242_v16, 4  ;;  %v3255_v18 = vrot.slane %v3243_v55, 4  ;;  %v3189_v30 = vpop.f32.mrf.mxu3 }
 0xcee   :  { %v9509_v28 = vmul.f32 %v3189_v30, %v8257_v46 }
 0xcef   :  { %v3266_v8 = vsel %vm585_vm10, %v9499_v58, %v3254_v25  ;;  %v3267_v12 = vsel %vm585_vm10, %v9502_v39, %v3255_v18 }
 0xcf0   :  { %v3241_v6 = vmul.f32 %v9509_v28, %v9509_v28  ;;  %3364 = vmatmul.f32.vlgmr.msra.gmra.mxu2 %v3266_v8  ;;  %3384 = vmatmul.f32.vlgmr.msra.gmra.mxu3 %v3267_v12 }
 0xcf2   :  { %v3253_v36 = vrot.slane %v3241_v6, 4  ;;  %v2038_v6 = vld [vmem:[#allocation27] sm:$0xff] }
 0xcf3   :  { %v3618_v27 = vperm.slane %v2038_v6, 5 }
 0xcf4   :  { %v3265_v10 = vsel %vm585_vm10, %v9509_v28, %v3253_v36  ;;  %v3592_v36 = vperm.slane %v2038_v6, 0 }
 0xcf5   :  { %3344 = vmatmul.f32.vlgmr.msra.gmra.mxu1 %v3265_v10  ;;  %v3593_v10 = vperm.slane %v2038_v6, 2 }
 0xcf6   :  { %5818 = vmatpush.msk.msra.mxu1 %vm579_vm8, %v3422_v32 }
 0xd5a   :  { %v3325_v63 = vpop.f32.mrf.mxu0 }
 0xd63   :  { %v3285_v9 = vpop.f32.mrf.mxu2  ;;  %v3305_v0 = vpop.f32.mrf.mxu3 }
 0xd64   :  { %v3306_v56 = vadd.f32 %v3305_v0, %v3285_v9  ;;  %v3616_v9 = vperm.slane %v2038_v6, 1  ;;  %v3617_v0 = vperm.slane %v2038_v6, 3 }
 0xd66   :  { %v3326_v44 = vadd.f32 %v3325_v63, %v3306_v56  ;;  %v3604_v63 = vperm.slane %v3592_v36, 0  ;;  %v3629_v31 = vperm.slane %v3617_v0, 1 }
 0xd72   :  { %v3345_v40 = vpop.f32.mrf.mxu1 }
 0xd73   :  { %v3346_v41 = vadd.f32 %v3345_v40, %v3326_v44  ;;  %v3365_v62 = vpop.f32.mrf.mxu2  ;;  %v3385_v13 = vpop.f32.mrf.mxu3  ;;  %v3605_v40 = vperm.slane %v3593_v10, 0 }
 0xd75   :  { %v3366_v2 = vadd.f32 %v3365_v62, %v3346_v41 }
 0xd77   :  { %v3386_v45 = vadd.f32 %v3385_v13, %v3366_v2 }
 0xd79   :  { %v3388_v57 = vmul.f32 0.00390625, %v3386_v45 }
 0xd7b   :  { %v3389_v53 = vmul.f32 %v3388_v57, %v3388_v57  ;;  %v3405_v18 = vsub.f32 0.0, %v3388_v57 }
 0xd7d   :  { %v3391_v35 = vrot.slane %v3389_v53, 4  ;;  %v3594_v53 = vperm.slane %v2038_v6, 4 }
 0xd7f   :  { %v3393_v51 = vsub.f32 %v3388_v57, %v3391_v35  ;;  %v3628_v57 = vperm.slane %v3616_v9, 1  ;;  %v3595_v35 = vperm.slane %v2038_v6, 6 }
 0xd81   :  { %v3394_v47 = vadd.f32 1e-05, %v3393_v51 }
 0xd83   :  { %6605 = vrsqrt.f32 %v3394_v47  ;;  %vm3401_vm4 = vweird.f32 %v3394_v47 }
 0xd89   :  { %v6606_v38 = vpop.eup %6605 }
 0xd8a   :  { %v3396_v54 = vmul.f32 %v6606_v38, %v3394_v47  ;;  %vm3402_vm3 = vweird.f32 %v6606_v38 }
 0xd8b   :  { %vm3403_vm6 = vmor %vm3401_vm4, %vm3402_vm3 }
 0xd8c   :  { %v3397_v22 = vmul.f32 %v6606_v38, %v3396_v54  ;;  %v3606_v54 = vperm.slane %v3594_v53, 0 }
 0xd8e   :  { %v3398_v60 = vmul.f32 0.5, %v3397_v22 }
 0xd90   :  { %v3399_v16 = vsub.f32 1.5, %v3398_v60 }
 0xd92   :  { %v3400_v55 = vmul.f32 %v6606_v38, %v3399_v16 }
 0xd94   :  { %v3404_v25 = vsel %vm3403_vm6, %v6606_v38, %v3400_v55 }
 0xd95   :  { %v3407_v11 = vrot.slane %v3404_v25, 4  ;;  %v3607_v25 = vperm.slane %v3595_v35, 0 }
 0xd97   :  { %v3409_v30 = vmul.f32 %v3407_v11, %v3405_v18 }
 0xd99   :  { %v3411_v8 = vrot.slane %v3409_v30, 4 }
 0xd9b   :  { %v3413_v12 = vsel %vm585_vm10, %v3407_v11, %v3411_v8  ;;  %v3630_v8 = vperm.slane %v3618_v27, 1 }
 0xd9c   :  { %5813 = vmatmul.msk.f32.vlgmr.msrb.gmra.mxu0 %vm1135_vm0, %v3413_v12  ;;  %5815 = vmatmul.msk.f32.vlgmr.msrb.gmra.mxu1 %vm1135_vm0, %v3413_v12 }
 0xd9d   :  { %5820 = vmatpush.msk.msrb.mxu0 %vm579_vm8, %v3423_v17  ;;  %5822 = vmatpush.msk.msrb.mxu1 %vm579_vm8, %v3424_v23  ;;  %v3619_v17 = vperm.slane %v2038_v6, 7 }
 0xd9f   :  { %v3631_v36 = vperm.slane %v3619_v17, 1 }
 0xda4   :  { %5817 = vmatmul.msk.f32.vlgmr.msra.gmra.mxu0 %vm1135_vm0, %v3413_v12  ;;  %5819 = vmatmul.msk.f32.vlgmr.msra.gmra.mxu1 %vm1135_vm0, %v3413_v12 }
 0xdac   :  { %5821 = vmatmul.msk.f32.vlgmr.msrb.gmra.mxu0 %vm1135_vm0, %v3413_v12  ;;  %5823 = vmatmul.msk.f32.vlgmr.msrb.gmra.mxu1 %vm1135_vm0, %v3413_v12 }
 0xe19   :  { %v3457_v56 = vpop.f32.mrf.mxu0  ;;  %v3477_v44 = vpop.f32.mrf.mxu1 }
 0xe1a   :  { %v3560_v41 = vmul.f32 %v3457_v56, %v9482_v15  ;;  %v3572_v62 = vrot.slane %v3457_v56, 4  ;;  %v3561_v2 = vmul.f32 %v3477_v44, %v9485_v59  ;;  %v3573_v13 = vrot.slane %v3477_v44, 4  ;;  %v2039_v56 = vld [vmem:[#allocation27 + $0x8] sm:$0xf] }
 0xe1b   :  { %v3620_v35 = vperm.slane %v2039_v56, 1 }
 0xe1c   :  { %v3584_v45 = vadd.f32 %v3572_v62, %v3560_v41  ;;  %v3585_v61 = vadd.f32 %v3573_v13, %v3561_v2  ;;  %v3597_v62 = vperm.slane %v2039_v56, 2 }
 0xe1e   :  { %v3610_v3 = vmul.f32 %v3604_v63, %v3584_v45  ;;  %v3611_v32 = vmul.f32 %v3605_v40, %v3585_v61  ;;  %v3609_v45 = vperm.slane %v3597_v62, 0  ;;  %v3596_v61 = vperm.slane %v2039_v56, 0 }
 0xe20   :  { %v3634_v51 = vadd.f32 %v3628_v57, %v3610_v3  ;;  %v3635_v47 = vadd.f32 %v3629_v31, %v3611_v32  ;;  %v3608_v32 = vperm.slane %v3596_v61, 0 }
 0xe21   :  { %v3497_v38 = vpop.f32.mrf.mxu0  ;;  %v3517_v22 = vpop.f32.mrf.mxu1 }
 0xe22   :  { %v3640_v15 = vmax.f32 %v3634_v51, 0.0  ;;  %v3641_v23 = vmax.f32 %v3635_v47, 0.0  ;;  %v3562_v59 = vmul.f32 %v3497_v38, %v9470_v29  ;;  %v3574_v60 = vrot.slane %v3497_v38, 4 }
 0xe23   :  { %v3563_v16 = vmul.f32 %v3517_v22, %v9509_v28  ;;  %v3575_v55 = vrot.slane %v3517_v22, 4  ;;  %v3632_v38 = vperm.slane %v3620_v35, 1 }
 0xe24   :  { %v9538_v18 = vadd.f32 %v3640_v15, %v8091_v14  ;;  %v9541_v11 = vadd.f32 %v3641_v23, %v8087_v7  ;;  %v3586_v30 = vadd.f32 %v3574_v60, %v3562_v59 }
 0xe25   :  { %v3587_v12 = vadd.f32 %v3575_v55, %v3563_v16 }
 0xe26   :  { %v3612_v6 = vmul.f32 %v3606_v54, %v3586_v30  ;;  %3783 = vrot.lane.b32.xlu2 %v9541_v11, %s7259_s29  ;;  %3781 = vrot.lane.b32.xlu1 %v9538_v18, %s7259_s29  ;;  %v6391_v29 = vpack.i.bf16 %v9541_v11, %v9538_v18 }
 0xe27   :  { %v3613_v28 = vmul.f32 %v3607_v25, %v3587_v12 }
 0xe28   :  { %v3636_v14 = vadd.f32 %v3630_v8, %v3612_v6  ;;  %6392 = vrot.lane.b32.xlu0 %v6391_v29, %s7260_s10 }
 0xe29   :  { %v3637_v7 = vadd.f32 %v3631_v36, %v3613_v28  ;;  %v3557_v63 = vpop.f32.mrf.mxu1  ;;  %v3537_v57 = vpop.f32.mrf.mxu0 }
 0xe2a   :  { %v3642_v10 = vmax.f32 %v3636_v14, 0.0  ;;  %v3565_v40 = vmul.f32 %v3557_v63, %v9502_v39  ;;  %v3577_v41 = vrot.slane %v3557_v63, 4  ;;  %v3564_v39 = vmul.f32 %v3537_v57, %v9499_v58 }
 0xe2b   :  { %v3643_v9 = vmax.f32 %v3637_v7, 0.0  ;;  %v3576_v31 = vrot.slane %v3537_v57, 4 }
 0xe2c   :  { %v9551_v0 = vadd.f32 %v3642_v10, %v8102_v33  ;;  %v3621_v33 = vperm.slane %v2039_v56, 3  ;;  %v3589_v13 = vadd.f32 %v3577_v41, %v3565_v40 }
 0xe2d   :  { %v9554_v44 = vadd.f32 %v3643_v9, %v8098_v19  ;;  %v3588_v3 = vadd.f32 %v3576_v31, %v3564_v39 }
 0xe2e   :  { %6402 = vrot.lane.b32.xlu1 %v6391_v29, %s7261_s0  ;;  %v3633_v19 = vperm.slane %v3621_v33, 1  ;;  %v3615_v53 = vmul.f32 %v3609_v45, %v3589_v13  ;;  %v6421_v47 = vpack.i.bf16 %v9551_v0, %v9541_v11 }
 0xe2f   :  { %v6406_v2 = vpack.i.bf16 %v9554_v44, %v9551_v0  ;;  %v3614_v27 = vmul.f32 %v3608_v32, %v3588_v3 }
 0xe30   :  { %6397 = vrot.lane.b32.xlu0 %v6391_v29, %s7251_s2  ;;  %v3639_v51 = vadd.f32 %v3633_v19, %v3615_v53 }
 0xe31   :  { %6407 = vrot.lane.b32.xlu2 %v6406_v2, %s7260_s10  ;;  %v3638_v58 = vadd.f32 %v3632_v38, %v3614_v27 }
 0xe32   :  { %v3645_v54 = vmax.f32 %v3639_v51, 0.0 }
 0xe33   :  { %v3644_v17 = vmax.f32 %v3638_v58, 0.0 }
 0xe34   :  { %v9574_v22 = vadd.f32 %v3645_v54, %v8117_v34 }
 0xe35   :  { %v9582_v23 = vadd.f32 %v3644_v17, %v8127_v42 }
 0xe36   :  { %3787 = vrot.lane.b32.xlu1 %v9554_v44, %s7259_s29  ;;  %v6446_v15 = vpack.i.bf16 %v9574_v22, %v9538_v18 }
 0xe37   :  { %v6456_v59 = vpack.i.bf16 %v9574_v22, %v9582_v23  ;;  %v6476_v34 = vpack.i.bf16 %v9582_v23, %v9554_v44 }
 0xe38   :  { %3785 = vrot.lane.b32.xlu0 %v9551_v0, %s7259_s29 }
 0xe39   :  { %6412 = vrot.lane.b32.xlu2 %v6406_v2, %s7251_s2 }
 0xe3e   :  { %6422 = vrot.lane.b32.xlu1 %v6421_v47, %s7255_s7 }
 0xe40   :  { %6417 = vrot.lane.b32.xlu0 %v6406_v2, %s7261_s0 }
 0xe41   :  { %6427 = vrot.lane.b32.xlu2 %v6421_v47, %s7264_s3 }
 0xe46   :  { %6437 = vrot.lane.b32.xlu1 %v6421_v47, %s7262_s16 }
 0xe48   :  { %6432 = vrot.lane.b32.xlu0 %v6421_v47, %s7263_s12 }
 0xe49   :  { %6447 = vrot.lane.b32.xlu2 %v6446_v15, %s7264_s3 }
 0xe4e   :  { %6442 = vrot.lane.b32.xlu1 %v6446_v15, %s7255_s7 }
 0xe50   :  { %6452 = vrot.lane.b32.xlu0 %v6446_v15, %s7263_s12 }
 0xe51   :  { %6457 = vrot.lane.b32.xlu2 %v6456_v59, %s7260_s10 }
 0xe56   :  { %6462 = vrot.lane.b32.xlu1 %v6446_v15, %s7262_s16 }
 0xe58   :  { %3789 = vrot.lane.b32.xlu0 %v9582_v23, %s7259_s29 }
 0xe59   :  { %6472 = vrot.lane.b32.xlu2 %v6456_v59, %s7261_s0 }
 0xe5e   :  { %6467 = vrot.lane.b32.xlu1 %v6456_v59, %s7251_s2 }
 0xe60   :  { %3791 = vrot.lane.b32.xlu0 %v9574_v22, %s7259_s29 }
 0xe61   :  { %6477 = vrot.lane.b32.xlu2 %v6476_v34, %s7255_s7 }
 0xe66   :  { %6487 = vrot.lane.b32.xlu1 %v6476_v34, %s7263_s12 }
 0xe68   :  { %6482 = vrot.lane.b32.xlu0 %v6476_v34, %s7264_s3 }
 0xe69   :  { %6492 = vrot.lane.b32.xlu2 %v6476_v34, %s7262_s16 }
 0xe80   :  { %v3784_v42 = vpop.permute.xlu2 %3783 }
 0xe8b   :  { %v9602_v60 = vpop.permute.xlu2 %6407 }
 0xe8c   :  { %v6410_v31 = vunpack.i.h.bf16 %v9602_v60  ;;  %v6409_v53 = vunpack.i.l.bf16 %v9602_v60  ;;  %v6613_v60 = vld [vmem:[%s10690_s28 + $0x58] sm:$0xff] }
 0xe8e   :  { %v3777_v51 = vsel %vm2164_vm11, %v6409_v53, %v6410_v31 }
 0xe8f   :  { %v3861_v59 = vrot.slane %v3777_v51, 4 }
 0xe93   :  { %v9613_v8 = vpop.permute.xlu2 %6412 }
 0xe94   :  { %v6414_v3 = vunpack.i.l.bf16 %v9613_v8 }
 0xe98   :  { %v9604_v16 = vpop.permute.xlu1 %3781 }
 0xe99   :  { %v3797_v55 = vsel %vm2183_vm7, %v9604_v16, %v3784_v42 }
 0xe9a   :  { %v3895_v25 = vsel %vm585_vm10, %v3797_v55, %v8152_v48  ;;  %v9611_v30 = vpop.permute.xlu0 %6392 }
 0xe9b   :  { %v6395_v12 = vunpack.i.h.bf16 %v9611_v30  ;;  %v6394_v36 = vunpack.i.l.bf16 %v9611_v30  ;;  %5824 = vmatpush.msk.msra.mxu0 %vm588_vm12, %v3895_v25  ;;  %v9635_v41 = vpop.permute.xlu2 %6427 }
 0xe9d   :  { %v3779_v6 = vsel %vm2164_vm11, %v6394_v36, %v6395_v12  ;;  %v3778_v27 = vsel %vm2164_vm11, %v6395_v12, %v6409_v53 }
 0xe9e   :  { %v3859_v10 = vrot.slane %v3779_v6, 4  ;;  %v3860_v15 = vrot.slane %v3778_v27, 4 }
 0xea0   :  { %v9622_v29 = vpop.permute.xlu1 %6402 }
 0xea1   :  { %v6405_v28 = vunpack.i.h.bf16 %v9622_v29  ;;  %v6404_v14 = vunpack.i.l.bf16 %v9622_v29  ;;  %v6616_v29 = vld [vmem:[%s10690_s28 + $0x40] sm:$0xff] }
 0xea2   :  { %v9626_v7 = vpop.permute.xlu0 %6397 }
 0xea3   :  { %v6400_v9 = vunpack.i.h.bf16 %v9626_v7  ;;  %v6399_v56 = vunpack.i.l.bf16 %v9626_v7  ;;  %v3761_v63 = vsel %vm2145_vm13, %v6404_v14, %v6405_v28  ;;  %v9660_v32 = vpop.permute.xlu2 %6447 }
 0xea4   :  { %v3889_v40 = vsel %vm585_vm10, %v3761_v63, %v3859_v10  ;;  %v6430_v63 = vunpack.i.h.bf16 %v9635_v41 }
 0xea5   :  { %v3743_v62 = vsel %vm506_vm2, %v6399_v56, %v6400_v9  ;;  %3934 = vmatpush.msra.mxu0 %v3889_v40  ;;  %v3742_v38 = vsel %vm506_vm2, %v6400_v9, %v6414_v3  ;;  %v6429_v40 = vunpack.i.l.bf16 %v9635_v41 }
 0xea6   :  { %v3841_v2 = vrot.slane %v3743_v62, 4  ;;  %v3842_v34 = vrot.slane %v3742_v38, 4 }
 0xea8   :  { %v9641_v33 = vpop.permute.xlu1 %3787  ;;  %v3883_v13 = vsel %vm585_vm10, %v9538_v18, %v3841_v2  ;;  %v6415_v18 = vunpack.i.h.bf16 %v9613_v8 }
 0xea9   :  { %3935 = vmatpush.msra.mxu0 %v3883_v13 }
 0xeaa   :  { %v3786_v45 = vpop.permute.xlu0 %3785  ;;  %v3741_v47 = vsel %vm506_vm2, %v6414_v3, %v6415_v18 }
 0xeab   :  { %v3795_v57 = vsel %vm2183_vm7, %v3786_v45, %v9641_v33  ;;  %v3796_v61 = vsel %vm2183_vm7, %v3784_v42, %v3786_v45  ;;  %v3843_v42 = vrot.slane %v3741_v47, 4  ;;  %v9698_v13 = vpop.permute.xlu2 %6457 }
 0xeac   :  { %v3896_v19 = vsel %vm585_vm10, %v3796_v61, %v8191_v5  ;;  %v3897_v39 = vsel %vm585_vm10, %v3795_v57, %v8250_v21 }
 0xead   :  { %5826 = vmatpush.msk.msra.mxu1 %vm588_vm12, %v3896_v19  ;;  %5828 = vmatpush.msk.msrb.mxu2 %vm588_vm12, %v3897_v39  ;;  %v3885_v2 = vsel %vm585_vm10, %v9551_v0, %v3843_v42  ;;  %v6450_v42 = vunpack.i.h.bf16 %v9660_v32 }
 0xeb0   :  { %v9662_v35 = vpop.permute.xlu1 %6422 }
 0xeb1   :  { %v6425_v55 = vunpack.i.h.bf16 %v9662_v35  ;;  %v6424_v25 = vunpack.i.l.bf16 %v9662_v35 }
 0xeb2   :  { %v9676_v54 = vpop.permute.xlu0 %6417 }
 0xeb3   :  { %v6420_v58 = vunpack.i.h.bf16 %v9676_v54  ;;  %v6419_v17 = vunpack.i.l.bf16 %v9676_v54  ;;  %v3724_v45 = vsel %vm499_vm5, %v6424_v25, %v6425_v55  ;;  %v6614_v54 = vld [vmem:[%s10690_s28 + $0x50] sm:$0xff] }
 0xeb4   :  { %v3825_v53 = vrot.slane %v3724_v45, 4  ;;  %v6609_v45 = vld [vmem:[%s10690_s28 + $0x78] sm:$0xff] }
 0xeb5   :  { %v3760_v12 = vsel %vm2145_vm13, %v6405_v28, %v6419_v17  ;;  %v3759_v6 = vsel %vm2145_vm13, %v6419_v17, %v6420_v58  ;;  %v3884_v28 = vsel %vm585_vm10, %v9541_v11, %v3842_v34  ;;  %v3688_v11 = vsel %vm2071_vm14, %v6429_v40, %v6430_v63  ;;  %v9728_v34 = vld [vmem:[#allocation28] sm:$0xf] }
 0xeb6   :  { %v3890_v10 = vsel %vm585_vm10, %v3760_v12, %v3860_v15  ;;  %v3891_v9 = vsel %vm585_vm10, %v3759_v6, %v3861_v59  ;;  %v3807_v27 = vrot.slane %v3688_v11, 4  ;;  %v6449_v6 = vunpack.i.l.bf16 %v9660_v32  ;;  %v6621_v32 = vld [vmem:[%s10690_s28 + $0x18] sm:$0xff] }
 0xeb7   :  { %3954 = vmatpush.msra.mxu1 %v3890_v10  ;;  %3974 = vmatpush.msrb.mxu2 %v3891_v9  ;;  %v9736_v10 = vpop.permute.xlu2 %6472 }
 0xeb8   :  { %v9692_v62 = vpop.permute.xlu1 %6437 }
 0xeb9   :  { %v6440_v57 = vunpack.i.h.bf16 %v9692_v62  ;;  %v6439_v61 = vunpack.i.l.bf16 %v9692_v62  ;;  %3955 = vmatpush.msra.mxu1 %v3884_v28  ;;  %3975 = vmatpush.msrb.mxu2 %v3885_v2  ;;  %v6622_v62 = vld [vmem:[%s10690_s28 + $0x10] sm:$0xff] }
 0xeba   :  { %v9706_v19 = vpop.permute.xlu0 %6432 }
 0xebb   :  { %v6435_v0 = vunpack.i.h.bf16 %v9706_v19  ;;  %v6434_v39 = vunpack.i.l.bf16 %v9706_v19  ;;  %v3670_v51 = vsel %vm2052_vm15, %v6439_v61, %v6440_v57  ;;  %v6620_v19 = vld [vmem:[%s10690_s28 + $0x20] sm:$0xff] }
 0xebc   :  { %v3873_v17 = vsel %vm585_vm10, %v3670_v51, %v3807_v27  ;;  %v6459_v51 = vunpack.i.l.bf16 %v9698_v13 }
 0xebd   :  { %v3706_v3 = vsel %vm2090_vm1, %v6434_v39, %v6435_v0 }
 0xebe   :  { %v3879_v47 = vsel %vm585_vm10, %v3706_v3, %v3825_v53 }
 0xebf   :  { %3976 = vmatpush.msrb.mxu2 %v3879_v47 }
 0xec0   :  { %v9723_v38 = vpop.permute.xlu1 %6442 }
 0xec1   :  { %v6445_v15 = vunpack.i.h.bf16 %v9723_v38  ;;  %v6444_v59 = vunpack.i.l.bf16 %v9723_v38  ;;  %3977 = vmatpush.msrb.mxu2 %v3873_v17  ;;  %v3689_v17 = vsel %vm2071_vm14, %v6449_v6, %v6429_v40 }
 0xec2   :  { %v9731_v12 = vpop.permute.xlu0 %6452  ;;  %5829 = vmatmul.msk.f32.vlgmr.msrb.gmra.mxu2 %vm737_vm9, %v9728_v34 }
 0xec3   :  { %v3725_v9 = vsel %vm499_vm5, %v6444_v59, %v6424_v25  ;;  %v3726_v28 = vsel %vm499_vm5, %v6445_v15, %v6444_v59  ;;  %v6455_v2 = vunpack.i.h.bf16 %v9731_v12  ;;  %4078 = vmatpush.msra.mxu2 %v6609_v45  ;;  %v6454_v11 = vunpack.i.l.bf16 %v9731_v12  ;;  %v6610_v25 = vld [vmem:[%s10690_s28 + $0x70] sm:$0xff]  ;;  %v6611_v45 = vld [vmem:[%s10690_s28 + $0x68] sm:$0xff] }
 0xec4   :  { %v3823_v53 = vrot.slane %v3726_v28, 4  ;;  %v3824_v3 = vrot.slane %v3725_v9, 4  ;;  %v3690_v59 = vsel %vm2071_vm14, %v6450_v42, %v6449_v6  ;;  %v6612_v6 = vld [vmem:[%s10690_s28 + $0x60] sm:$0xff] }
 0xec5   :  { %4079 = vmatpush.msra.mxu2 %v6610_v25  ;;  %v3708_v47 = vsel %vm2090_vm1, %v6455_v2, %v6454_v11  ;;  %v3707_v27 = vsel %vm2090_vm1, %v6454_v11, %v6434_v39  ;;  %v6474_v25 = vunpack.i.l.bf16 %v9736_v10 }
 0xec6   :  { %v3877_v9 = vsel %vm585_vm10, %v3708_v47, %v3823_v53  ;;  %v3878_v28 = vsel %vm585_vm10, %v3707_v27, %v3824_v3  ;;  %v6460_v53 = vunpack.i.h.bf16 %v9698_v13  ;;  %v3776_v3 = vsel %vm2164_vm11, %v6410_v31, %v6459_v51 }
 0xec7   :  { %4080 = vmatpush.msra.mxu2 %v6611_v45  ;;  %3936 = vmatpush.msra.mxu0 %v3877_v9  ;;  %v3805_v27 = vrot.slane %v3690_v59, 4  ;;  %v3806_v9 = vrot.slane %v3689_v17, 4  ;;  %v3758_v59 = vsel %vm2145_vm13, %v6420_v58, %v6474_v25 }
 0xec8   :  { %3956 = vmatpush.msra.mxu1 %v3878_v28  ;;  %v9771_v39 = vpop.permute.xlu1 %6462 }
 0xec9   :  { %v6465_v40 = vunpack.i.h.bf16 %v9771_v39  ;;  %v6464_v11 = vunpack.i.l.bf16 %v9771_v39  ;;  %4081 = vmatpush.msra.mxu2 %v6612_v6  ;;  %v6478_v6 = vpop.permute.xlu2 %6477  ;;  %v6624_v39 = vld [vmem:[%s10690_s28 + $0x8] sm:$0xff] }
 0xeca   :  { %v3790_v47 = vpop.permute.xlu0 %3789 }
 0xecb   :  { %v3794_v28 = vsel %vm2183_vm7, %v9641_v33, %v3790_v47  ;;  %v3672_v45 = vsel %vm2052_vm15, %v6465_v40, %v6464_v11  ;;  %v3671_v13 = vsel %vm2052_vm15, %v6464_v11, %v6439_v61  ;;  %4082 = vmatpush.msra.mxu2 %v6613_v60  ;;  %v3862_v61 = vrot.slane %v3776_v3, 4 }
 0xecc   :  { %v3898_v31 = vsel %vm585_vm10, %v3794_v28, %v8257_v46  ;;  %v3871_v17 = vsel %vm585_vm10, %v3672_v45, %v3805_v27  ;;  %v3872_v33 = vsel %vm585_vm10, %v3671_v13, %v3806_v9  ;;  %v3775_v11 = vsel %vm2164_vm11, %v6459_v51, %v6460_v53  ;;  %v6615_v28 = vld [vmem:[%s10690_s28 + $0x48] sm:$0xff] }
 0xecd   :  { %3937 = vmatpush.msra.mxu0 %v3871_v17  ;;  %3957 = vmatpush.msra.mxu1 %v3872_v33  ;;  %v6475_v60 = vunpack.i.h.bf16 %v9736_v10  ;;  %v3892_v27 = vsel %vm585_vm10, %v3758_v59, %v3862_v61  ;;  %v3780_v10 = vsel %vm2164_vm11, %v6460_v53, %v6394_v36  ;;  %v3863_v9 = vrot.slane %v3775_v11, 4 }
 0xece   :  { %5830 = vmatpush.msk.msrb.mxu3 %vm588_vm12, %v3898_v31  ;;  %5825 = vmatmul.msk.f32.vlgmr.msra.gmra.mxu0 %vm737_vm9, %v9728_v34  ;;  %v6480_v45 = vunpack.i.h.bf16 %v6478_v6  ;;  %v6479_v13 = vunpack.i.l.bf16 %v6478_v6  ;;  %v6617_v6 = vld [vmem:[%s10690_s28 + $0x38] sm:$0xff] }
 0xecf   :  { %5827 = vmatmul.msk.f32.vlgmr.msra.gmra.mxu1 %vm737_vm9, %v9728_v34  ;;  %4083 = vmatpush.msra.mxu2 %v6614_v54  ;;  %v3757_v17 = vsel %vm2145_vm13, %v6474_v25, %v6475_v60  ;;  %v3762_v30 = vsel %vm2145_vm13, %v6475_v60, %v6404_v14 }
 0xed0   :  { %3994 = vmatpush.msrb.mxu3 %v3892_v27  ;;  %v6468_v58 = vpop.permute.xlu1 %6467  ;;  %v3893_v61 = vsel %vm585_vm10, %v3757_v17, %v3863_v9  ;;  %v3722_v11 = vsel %vm499_vm5, %v6479_v13, %v6480_v45  ;;  %v3723_v60 = vsel %vm499_vm5, %v6425_v55, %v6479_v13  ;;  %v3721_v35 = vsel %vm499_vm5, %v6480_v45, %v6445_v15  ;;  %v6619_v17 = vld [vmem:[%s10690_s28 + $0x28] sm:$0xff] }
 0xed1   :  { %v6470_v51 = vunpack.i.h.bf16 %v6468_v58  ;;  %v6469_v3 = vunpack.i.l.bf16 %v6468_v58  ;;  %4084 = vmatpush.msra.mxu2 %v6615_v28  ;;  %v6493_v27 = vpop.permute.xlu2 %6492  ;;  %v3826_v13 = vrot.slane %v3723_v60, 4  ;;  %v6633_v60 = vld [vmem:[%s10690_s28 + $0x168] sm:$0xff] }
 0xed2   :  { %v3792_v31 = vpop.permute.xlu0 %3791  ;;  %v6495_v9 = vunpack.i.h.bf16 %v6493_v27  ;;  %v6494_v28 = vunpack.i.l.bf16 %v6493_v27  ;;  %v6634_v27 = vld [vmem:[%s10690_s28 + $0x270] sm:$0xff] }
 0xed3   :  { %v3744_v36 = vsel %vm506_vm2, %v6470_v51, %v6399_v56  ;;  %v3739_v53 = vsel %vm506_vm2, %v6469_v3, %v6470_v51  ;;  %v3740_v33 = vsel %vm506_vm2, %v6415_v18, %v6469_v3  ;;  %v3793_v25 = vsel %vm2183_vm7, %v3790_v47, %v3792_v31  ;;  %4085 = vmatpush.msra.mxu2 %v6616_v29 }
 0xed4   :  { %v3798_v14 = vsel %vm2183_vm7, %v3792_v31, %v9604_v16  ;;  %v3899_v7 = vsel %vm585_vm10, %v3793_v25, %v8294_v37  ;;  %v3844_v56 = vrot.slane %v3740_v33, 4  ;;  %v3845_v8 = vrot.slane %v3739_v53, 4 }
 0xed5   :  { %v3900_v18 = vsel %vm585_vm10, %v3798_v14, %v8208_v52  ;;  %5832 = vmatpush.msk.msrb.mxu0 %vm588_vm12, %v3899_v7  ;;  %v3864_v47 = vrot.slane %v3780_v10, 4  ;;  %v3846_v59 = vrot.slane %v3744_v36, 4  ;;  %4086 = vmatpush.msra.mxu2 %v6617_v6  ;;  %v6618_v10 = vld [vmem:[%s10690_s28 + $0x30] sm:$0xff]  ;;  %v3827_v31 = vrot.slane %v3722_v11, 4 }
 0xed6   :  { %5834 = vmatpush.msk.msrb.mxu1 %vm588_vm12, %v3900_v18  ;;  %v3886_v16 = vsel %vm585_vm10, %v9554_v44, %v3844_v56  ;;  %v3887_v44 = vsel %vm585_vm10, %v9582_v23, %v3845_v8  ;;  %v3828_v33 = vrot.slane %v3721_v35, 4  ;;  %v3669_v41 = vsel %vm2052_vm15, %v6440_v57, %v6494_v28  ;;  %v6623_v57 = vld [vmem:[%s10690_s28 + $0xf8] sm:$0xff]  ;;  %v6629_v6 = vld [vmem:[%s10690_s28 + $0x170] sm:$0xff] }
 0xed7   :  { %3995 = vmatpush.msrb.mxu3 %v3886_v16  ;;  %4014 = vmatpush.msrb.mxu0 %v3893_v61  ;;  %v3894_v54 = vsel %vm585_vm10, %v3762_v30, %v3864_v47  ;;  %v3888_v3 = vsel %vm585_vm10, %v9574_v22, %v3846_v59  ;;  %v6626_v47 = vld [vmem:[%s10690_s28 + $0x1f8] sm:$0xff]  ;;  %v6628_v59 = vld [vmem:[%s10690_s28] sm:$0xff]  ;;  %v6631_v61 = vld [vmem:[%s10690_s28 + $0xe8] sm:$0xff] }
 0xed8   :  { %4034 = vmatpush.msrb.mxu1 %v3894_v54  ;;  %v6488_v58 = vpop.permute.xlu1 %6487  ;;  %4087 = vmatpush.msra.mxu2 %v6618_v10  ;;  %v6630_v16 = vld [vmem:[%s10690_s28 + $0x278] sm:$0xff]  ;;  %v6632_v11 = vld [vmem:[%s10690_s28 + $0x1f0] sm:$0xff]  ;;  %v6635_v54 = vld [vmem:[%s10690_s28 + $0xe0] sm:$0xff] }
 0xed9   :  { %v6490_v55 = vunpack.i.h.bf16 %v6488_v58  ;;  %v6489_v51 = vunpack.i.l.bf16 %v6488_v58  ;;  %4015 = vmatpush.msrb.mxu0 %v3887_v44  ;;  %v6636_v58 = vld [vmem:[%s10690_s28 + $0x1e8] sm:$0xff]  ;;  %v6637_v44 = vld [vmem:[%s10690_s28 + $0x160] sm:$0xff]  ;;  %v6639_v35 = vld [vmem:[%s10690_s28 + $0xd8] sm:$0xff] }
 0xeda   :  { %4035 = vmatpush.msrb.mxu1 %v3888_v3  ;;  %v6483_v23 = vpop.permute.xlu0 %6482  ;;  %4088 = vmatpush.msra.mxu2 %v6619_v17  ;;  %v6638_v10 = vld [vmem:[%s10690_s28 + $0x268] sm:$0xff]  ;;  %v6642_v3 = vld [vmem:[%s10690_s28 + $0x260] sm:$0xff]  ;;  %v6648_v17 = vld [vmem:[%s10690_s28 + $0x1d0] sm:$0xff] }
 0xedb   :  { %v6485_v38 = vunpack.i.h.bf16 %v6483_v23  ;;  %v6484_v30 = vunpack.i.l.bf16 %v6483_v23  ;;  %v3705_v15 = vsel %vm2090_vm1, %v6435_v0, %v6489_v51  ;;  %v3704_v22 = vsel %vm2090_vm1, %v6489_v51, %v6490_v55  ;;  %v6641_v51 = vld [vmem:[%s10690_s28 + $0x158] sm:$0xff]  ;;  %v6645_v23 = vld [vmem:[%s10690_s28 + $0x150] sm:$0xff] }
 0xedc   :  { %v3880_v45 = vsel %vm585_vm10, %v3705_v15, %v3826_v13  ;;  %v3881_v36 = vsel %vm585_vm10, %v3704_v22, %v3827_v31  ;;  %v3703_v53 = vsel %vm2090_vm1, %v6490_v55, %v6455_v2  ;;  %4089 = vmatpush.msra.mxu2 %v6620_v19  ;;  %v6640_v55 = vld [vmem:[%s10690_s28 + $0x1e0] sm:$0xff]  ;;  %v6646_v13 = vld [vmem:[%s10690_s28 + $0x258] sm:$0xff]  ;;  %v6647_v31 = vld [vmem:[%s10690_s28 + $0xc8] sm:$0xff] }
 0xedd   :  { %v3685_v0 = vsel %vm2071_vm14, %v6485_v38, %v6450_v42  ;;  %v3686_v25 = vsel %vm2071_vm14, %v6484_v30, %v6485_v38  ;;  %v3687_v12 = vsel %vm2071_vm14, %v6430_v63, %v6484_v30  ;;  %3996 = vmatpush.msrb.mxu3 %v3880_v45  ;;  %4016 = vmatpush.msrb.mxu0 %v3881_v36  ;;  %v6649_v38 = vld [vmem:[%s10690_s28 + $0x148] sm:$0xff]  ;;  %v6650_v30 = vld [vmem:[%s10690_s28 + $0x250] sm:$0xff]  ;;  %v6651_v15 = vld [vmem:[%s10690_s28 + $0xc0] sm:$0xff] }
 0xede   :  { %v3882_v2 = vsel %vm585_vm10, %v3703_v53, %v3828_v33  ;;  %v3808_v29 = vrot.slane %v3687_v12, 4  ;;  %v3809_v14 = vrot.slane %v3686_v25, 4  ;;  %v3810_v7 = vrot.slane %v3685_v0, 4  ;;  %4090 = vmatpush.msra.mxu2 %v6621_v32  ;;  %v6652_v22 = vld [vmem:[%s10690_s28 + $0x1c8] sm:$0xff]  ;;  %v6653_v45 = vld [vmem:[%s10690_s28 + $0x140] sm:$0xff]  ;;  %v6655_v53 = vld [vmem:[%s10690_s28 + $0xb8] sm:$0xff] }
 0xedf   :  { %4036 = vmatpush.msrb.mxu1 %v3882_v2  ;;  %v3668_v63 = vsel %vm2052_vm15, %v6494_v28, %v6495_v9  ;;  %v3667_v42 = vsel %vm2052_vm15, %v6495_v9, %v6465_v40  ;;  %v6625_v40 = vld [vmem:[%s10690_s28 + $0x178] sm:$0xff]  ;;  %v6643_v9 = vld [vmem:[%s10690_s28 + $0xd0] sm:$0xff]  ;;  %v6654_v36 = vld [vmem:[%s10690_s28 + $0x248] sm:$0xff] }
 0xee0   :  { %v3874_v56 = vsel %vm585_vm10, %v3669_v41, %v3808_v29  ;;  %v3875_v8 = vsel %vm585_vm10, %v3668_v63, %v3809_v14  ;;  %v3876_v18 = vsel %vm585_vm10, %v3667_v42, %v3810_v7  ;;  %4091 = vmatpush.msra.mxu2 %v6622_v62  ;;  %v6644_v28 = vld [vmem:[%s10690_s28 + $0x1d8] sm:$0xff]  ;;  %v6656_v33 = vld [vmem:[%s10690_s28 + $0x1c0] sm:$0xff]  ;;  %v6659_v25 = vld [vmem:[%s10690_s28 + $0xb0] sm:$0xff] }
 0xee1   :  { %3997 = vmatpush.msrb.mxu3 %v3874_v56  ;;  %4017 = vmatpush.msrb.mxu0 %v3875_v8  ;;  %v6657_v19 = vld [vmem:[%s10690_s28 + $0x138] sm:$0xff]  ;;  %v6658_v0 = vld [vmem:[%s10690_s28 + $0x240] sm:$0xff]  ;;  %v6661_v2 = vld [vmem:[%s10690_s28 + $0x130] sm:$0xff] }
 0xee2   :  { %4037 = vmatpush.msrb.mxu1 %v3876_v18  ;;  %5831 = vmatmul.msk.f32.vlgmr.msrb.gmra.mxu3 %vm737_vm9, %v9728_v34  ;;  %v6660_v12 = vld [vmem:[%s10690_s28 + $0x1b8] sm:$0xff]  ;;  %v6663_v14 = vld [vmem:[%s10690_s28 + $0xa8] sm:$0xff]  ;;  %v6665_v32 = vld [vmem:[%s10690_s28 + $0x230] sm:$0xff] }
 0xee3   :  { %5833 = vmatmul.msk.f32.vlgmr.msrb.gmra.mxu0 %vm737_vm9, %v9728_v34  ;;  %5835 = vmatmul.msk.f32.vlgmr.msrb.gmra.mxu1 %vm737_vm9, %v9728_v34  ;;  %v6627_v34 = vld [vmem:[%s10690_s28 + $0xf0] sm:$0xff]  ;;  %v6662_v29 = vld [vmem:[%s10690_s28 + $0x238] sm:$0xff]  ;;  %v6664_v7 = vld [vmem:[%s10690_s28 + $0x128] sm:$0xff] }
 0xee4   :  { %4098 = vmatpush.msra.mxu3 %v6623_v57  ;;  %4092 = vmatpush.msra.mxu2 %v6624_v39  ;;  %v6666_v41 = vld [vmem:[%s10690_s28 + $0xa0] sm:$0xff]  ;;  %v6668_v63 = vld [vmem:[%s10690_s28 + $0x228] sm:$0xff]  ;;  %v6669_v42 = vld [vmem:[%s10690_s28 + $0x98] sm:$0xff] }
 0xee5   :  { %4118 = vmatpush.msra.mxu0 %v6625_v40  ;;  %4138 = vmatpush.msra.mxu1 %v6626_v47  ;;  %v6671_v56 = vld [vmem:[%s10690_s28 + $0x220] sm:$0xff]  ;;  %v6672_v8 = vld [vmem:[%s10690_s28 + $0x90] sm:$0xff]  ;;  %v6674_v18 = vld [vmem:[%s10690_s28 + $0x218] sm:$0xff] }
 0xee6   :  { %4099 = vmatpush.msra.mxu3 %v6627_v34  ;;  %4093 = vmatpush.msra.mxu2 %v6628_v59  ;;  %v6675_v62 = vld [vmem:[%s10690_s28 + $0x88] sm:$0xff]  ;;  %v6677_v57 = vld [vmem:[%s10690_s28 + $0x210] sm:$0xff]  ;;  %v6678_v39 = vld [vmem:[%s10690_s28 + $0x80] sm:$0xff] }
 0xee7   :  { %4119 = vmatpush.msra.mxu0 %v6629_v6  ;;  %4139 = vmatpush.msra.mxu1 %v6632_v11  ;;  %v6680_v40 = vld [vmem:[%s10690_s28 + $0x100] sm:$0xff]  ;;  %v6681_v47 = vld [vmem:[%s10690_s28 + $0x208] sm:$0xff] }
 0xee8   :  { %4158 = vmatpush.msrb.mxu2 %v6630_v16  ;;  %4100 = vmatpush.msra.mxu3 %v6631_v61  ;;  %v6683_v34 = vld [vmem:[%s10690_s28 + $0x200] sm:$0xff]  ;;  %v6684_v59 = vld [vmem:[%s10690_s28 + $0x2e8] sm:$0xff]  ;;  %v6687_v16 = vld [vmem:[%s10690_s28 + $0x2d0] sm:$0xff] }
 0xee9   :  { %4120 = vmatpush.msra.mxu0 %v6633_v60  ;;  %4140 = vmatpush.msra.mxu1 %v6636_v58  ;;  %v6685_v6 = vld [vmem:[%s10690_s28 + $0x2e0] sm:$0xff]  ;;  %v6688_v61 = vld [vmem:[%s10690_s28 + $0x2c8] sm:$0xff]  ;;  %v6690_v60 = vld [vmem:[%s10690_s28 + $0x2b8] sm:$0xff] }
 0xeea   :  { %4159 = vmatpush.msrb.mxu2 %v6634_v27  ;;  %4101 = vmatpush.msra.mxu3 %v6635_v54  ;;  %v6689_v11 = vld [vmem:[%s10690_s28 + $0x2c0] sm:$0xff]  ;;  %v6691_v27 = vld [vmem:[%s10690_s28 + $0x2b0] sm:$0xff]  ;;  %v6692_v54 = vld [vmem:[%s10690_s28 + $0x2a8] sm:$0xff] }
 0xeeb   :  { %4121 = vmatpush.msra.mxu0 %v6637_v44  ;;  %4141 = vmatpush.msra.mxu1 %v6640_v55  ;;  %v6693_v58 = vld [vmem:[%s10690_s28 + $0x2a0] sm:$0xff]  ;;  %v6694_v44 = vld [vmem:[%s10690_s28 + $0x298] sm:$0xff] }
 0xeec   :  { %4160 = vmatpush.msrb.mxu2 %v6638_v10  ;;  %4102 = vmatpush.msra.mxu3 %v6639_v35  ;;  %v6695_v10 = vld [vmem:[%s10690_s28 + $0x290] sm:$0xff]  ;;  %v6696_v35 = vld [vmem:[%s10690_s28 + $0x288] sm:$0xff]  ;;  %v6697_v55 = vld [vmem:[%s10690_s28 + $0x280] sm:$0xff] }
 0xeed   :  { %4122 = vmatpush.msra.mxu0 %v6641_v51  ;;  %4142 = vmatpush.msra.mxu1 %v6644_v28 }
 0xeee   :  { %4161 = vmatpush.msrb.mxu2 %v6642_v3  ;;  %4103 = vmatpush.msra.mxu3 %v6643_v9 }
 0xeef   :  { %4123 = vmatpush.msra.mxu0 %v6645_v23  ;;  %4143 = vmatpush.msra.mxu1 %v6648_v17 }
 0xef0   :  { %4162 = vmatpush.msrb.mxu2 %v6646_v13  ;;  %4104 = vmatpush.msra.mxu3 %v6647_v31 }
 0xef1   :  { %4124 = vmatpush.msra.mxu0 %v6649_v38  ;;  %4144 = vmatpush.msra.mxu1 %v6652_v22 }
 0xef2   :  { %4163 = vmatpush.msrb.mxu2 %v6650_v30  ;;  %4105 = vmatpush.msra.mxu3 %v6651_v15 }
 0xef3   :  { %4125 = vmatpush.msra.mxu0 %v6653_v45  ;;  %4145 = vmatpush.msra.mxu1 %v6656_v33 }
 0xef4   :  { %4164 = vmatpush.msrb.mxu2 %v6654_v36  ;;  %4106 = vmatpush.msra.mxu3 %v6655_v53 }
 0xef5   :  { %4126 = vmatpush.msra.mxu0 %v6657_v19  ;;  %4146 = vmatpush.msra.mxu1 %v6660_v12 }
 0xef6   :  { %4165 = vmatpush.msrb.mxu2 %v6658_v0  ;;  %4107 = vmatpush.msra.mxu3 %v6659_v25 }
 0xef7   :  { %4127 = vmatpush.msra.mxu0 %v6661_v2  ;;  %4147 = vmatpush.msra.mxu1 %v9408_v1  ;;  %v6667_v1 = vld [vmem:[%s10690_s28 + $0x120] sm:$0xff] }
 0xef8   :  { %4166 = vmatpush.msrb.mxu2 %v6662_v29  ;;  %4108 = vmatpush.msra.mxu3 %v6663_v14 }
 0xef9   :  { %4128 = vmatpush.msra.mxu0 %v6664_v7  ;;  %4148 = vmatpush.msra.mxu1 %v9423_v4  ;;  %v6670_v4 = vld [vmem:[%s10690_s28 + $0x118] sm:$0xff] }
 0xefa   :  { %4167 = vmatpush.msrb.mxu2 %v6665_v32  ;;  %4109 = vmatpush.msra.mxu3 %v6666_v41 }
 0xefb   :  { %4129 = vmatpush.msra.mxu0 %v6667_v1  ;;  %4149 = vmatpush.msra.mxu1 %v9438_v49  ;;  %v6673_v49 = vld [vmem:[%s10690_s28 + $0x110] sm:$0xff] }
 0xefc   :  { %4168 = vmatpush.msrb.mxu2 %v6668_v63  ;;  %4110 = vmatpush.msra.mxu3 %v6669_v42 }
 0xefd   :  { %4130 = vmatpush.msra.mxu0 %v6670_v4  ;;  %4150 = vmatpush.msra.mxu1 %v9450_v43  ;;  %v6676_v43 = vld [vmem:[%s10690_s28 + $0x108] sm:$0xff] }
 0xefe   :  { %4169 = vmatpush.msrb.mxu2 %v6671_v56  ;;  %4111 = vmatpush.msra.mxu3 %v6672_v8 }
 0xeff   :  { %4131 = vmatpush.msra.mxu0 %v6673_v49  ;;  %4151 = vmatpush.msra.mxu1 %v9461_v26  ;;  %v6679_v26 = vld [vmem:[%s10690_s28 + $0x2f8] sm:$0xff] }
 0xf00   :  { %4170 = vmatpush.msrb.mxu2 %v6674_v18  ;;  %4112 = vmatpush.msra.mxu3 %v6675_v62 }
 0xf01   :  { %4132 = vmatpush.msra.mxu0 %v6676_v43  ;;  %4152 = vmatpush.msra.mxu1 %v9467_v20  ;;  %v6682_v20 = vld [vmem:[%s10690_s28 + $0x2f0] sm:$0xff] }
 0xf02   :  { %4171 = vmatpush.msrb.mxu2 %v6677_v57  ;;  %4113 = vmatpush.msra.mxu3 %v6678_v39 }
 0xf03   :  { %4133 = vmatpush.msra.mxu0 %v6680_v40  ;;  %4153 = vmatpush.msra.mxu1 %v9476_v50  ;;  %v6686_v50 = vld [vmem:[%s10690_s28 + $0x2d8] sm:$0xff] }
 0xf04   :  { %4178 = vmatpush.msrb.mxu3 %v6679_v26  ;;  %4172 = vmatpush.msrb.mxu2 %v6681_v47 }
 0xf06   :  { %4179 = vmatpush.msrb.mxu3 %v6682_v20  ;;  %4173 = vmatpush.msrb.mxu2 %v6683_v34  ;;  %v4227_v34 = vld.sshfl [vmem:[#allocation1] sm:$0xff pattern:$0x73625140] }
 0xf07   :  { %5836 = vmatpush.msk.msrb.mxu0 %vm579_vm8, %v4227_v34 }
 0xf08   :  { %4180 = vmatpush.msrb.mxu3 %v6684_v59  ;;  %v4228_v59 = vld.sshfl [vmem:[#allocation1 + $0x8] sm:$0xff pattern:$0x73625140] }
 0xf09   :  { %5838 = vmatpush.msk.msrb.mxu1 %vm579_vm8, %v4228_v59 }
 0xf0a   :  { %4181 = vmatpush.msrb.mxu3 %v6685_v6 }
 0xf0c   :  { %4182 = vmatpush.msrb.mxu3 %v6686_v50  ;;  %v4229_v50 = vld.sshfl [vmem:[#allocation1 + $0x10] sm:$0xff pattern:$0x73625140] }
 0xf0e   :  { %4183 = vmatpush.msrb.mxu3 %v6687_v16  ;;  %v4230_v16 = vld.sshfl [vmem:[#allocation1 + $0x18] sm:$0xff pattern:$0x73625140] }
 0xf10   :  { %4184 = vmatpush.msrb.mxu3 %v6688_v61 }
 0xf12   :  { %4185 = vmatpush.msrb.mxu3 %v6689_v11 }
 0xf14   :  { %4186 = vmatpush.msrb.mxu3 %v6690_v60 }
 0xf16   :  { %4187 = vmatpush.msrb.mxu3 %v6691_v27 }
 0xf18   :  { %4188 = vmatpush.msrb.mxu3 %v6692_v54 }
 0xf1a   :  { %4189 = vmatpush.msrb.mxu3 %v6693_v58 }
 0xf1c   :  { %4190 = vmatpush.msrb.mxu3 %v6694_v44 }
 0xf1e   :  { %4191 = vmatpush.msrb.mxu3 %v6695_v10 }
 0xf20   :  { %4192 = vmatpush.msrb.mxu3 %v6696_v35 }
 0xf22   :  { %4193 = vmatpush.msrb.mxu3 %v6697_v55 }
 0xf45   :  { %v3979_v51 = vpop.f32.mrf.mxu2 }
 0xf46   :  { %v10163_v3 = vmul.f32 %v3979_v51, %v8250_v21 }
 0xf48   :  { %v4050_v9 = vmul.f32 %v10163_v3, %v10163_v3 }
 0xf4a   :  { %v4062_v28 = vrot.slane %v4050_v9, 4 }
 0xf4b   :  { %v3939_v23 = vpop.f32.mrf.mxu0 }
 0xf4c   :  { %v10168_v13 = vmul.f32 %v3939_v23, %v8152_v48  ;;  %v3959_v31 = vpop.f32.mrf.mxu1  ;;  %v4074_v17 = vsel %vm585_vm10, %v10163_v3, %v4062_v28 }
 0xf4d   :  { %v10173_v38 = vmul.f32 %v3959_v31, %v8191_v5  ;;  %4134 = vmatmul.f32.vlgmr.msra.gmra.mxu0 %v4074_v17  ;;  %v4231_v31 = vld.sshfl [vmem:[#allocation1 + $0x20] sm:$0xff pattern:$0x73625140]  ;;  %v4232_v17 = vld.sshfl [vmem:[#allocation1 + $0x28] sm:$0xff pattern:$0x73625140] }
 0xf4e   :  { %v4048_v30 = vmul.f32 %v10168_v13, %v10168_v13  ;;  %5840 = vmatpush.msk.msra.mxu0 %vm579_vm8, %v4229_v50 }
 0xf4f   :  { %v4049_v15 = vmul.f32 %v10173_v38, %v10173_v38 }
 0xf50   :  { %v4060_v22 = vrot.slane %v4048_v30, 4 }
 0xf51   :  { %v4061_v45 = vrot.slane %v4049_v15, 4  ;;  %v3653_v15 = vld [vmem:[#allocation30] sm:$0xff] }
 0xf52   :  { %v4072_v36 = vsel %vm585_vm10, %v10168_v13, %v4060_v22  ;;  %v4400_v22 = vperm.slane %v3653_v15, 0 }
 0xf53   :  { %4094 = vmatmul.f32.vlgmr.msra.gmra.mxu2 %v4072_v36  ;;  %v4073_v53 = vsel %vm585_vm10, %v10173_v38, %v4061_v45  ;;  %v4401_v45 = vperm.slane %v3653_v15, 2  ;;  %v4424_v36 = vperm.slane %v3653_v15, 1 }
 0xf54   :  { %4114 = vmatmul.f32.vlgmr.msra.gmra.mxu3 %v4073_v53  ;;  %v4425_v53 = vperm.slane %v3653_v15, 3 }
 0xf60   :  { %v4019_v33 = vpop.f32.mrf.mxu0  ;;  %v4039_v19 = vpop.f32.mrf.mxu1 }
 0xf61   :  { %v10184_v0 = vmul.f32 %v4019_v33, %v8294_v37  ;;  %v10187_v25 = vmul.f32 %v4039_v19, %v8208_v52  ;;  %v4412_v19 = vperm.slane %v4400_v22, 0 }
 0xf63   :  { %v4052_v12 = vmul.f32 %v10184_v0, %v10184_v0  ;;  %v4053_v2 = vmul.f32 %v10187_v25, %v10187_v25 }
 0xf65   :  { %v4064_v29 = vrot.slane %v4052_v12, 4  ;;  %v4065_v14 = vrot.slane %v4053_v2, 4  ;;  %v3999_v7 = vpop.f32.mrf.mxu3  ;;  %v4413_v2 = vperm.slane %v4401_v45, 0 }
 0xf66   :  { %v10194_v32 = vmul.f32 %v3999_v7, %v8257_v46 }
 0xf67   :  { %v4076_v41 = vsel %vm585_vm10, %v10184_v0, %v4064_v29  ;;  %v4077_v1 = vsel %vm585_vm10, %v10187_v25, %v4065_v14 }
 0xf68   :  { %v4051_v63 = vmul.f32 %v10194_v32, %v10194_v32  ;;  %4174 = vmatmul.f32.vlgmr.msrb.gmra.mxu2 %v4076_v41  ;;  %4194 = vmatmul.f32.vlgmr.msrb.gmra.mxu3 %v4077_v1 }
 0xf6a   :  { %v4063_v42 = vrot.slane %v4051_v63, 4  ;;  %v4436_v63 = vperm.slane %v4424_v36, 1 }
 0xf6c   :  { %v4075_v4 = vsel %vm585_vm10, %v10194_v32, %v4063_v42 }
 0xf6d   :  { %4154 = vmatmul.f32.vlgmr.msra.gmra.mxu1 %v4075_v4  ;;  %v4437_v4 = vperm.slane %v4425_v53, 1 }
 0xf6e   :  { %5842 = vmatpush.msk.msra.mxu1 %vm579_vm8, %v4230_v16 }
 0xfca   :  { %v4135_v18 = vpop.f32.mrf.mxu0 }
 0xfd6   :  { %v4095_v56 = vpop.f32.mrf.mxu2 }
 0xfd7   :  { %v4115_v8 = vpop.f32.mrf.mxu3 }
 0xfd8   :  { %v4116_v49 = vadd.f32 %v4115_v8, %v4095_v56  ;;  %v4402_v56 = vperm.slane %v3653_v15, 4 }
 0xfda   :  { %v4136_v62 = vadd.f32 %v4135_v18, %v4116_v49  ;;  %v4403_v18 = vperm.slane %v3653_v15, 6 }
 0xfdc   :  { %v4415_v50 = vperm.slane %v4403_v18, 0 }
 0xfea   :  { %v4155_v43 = vpop.f32.mrf.mxu1 }
 0xfeb   :  { %v4156_v57 = vadd.f32 %v4155_v43, %v4136_v62  ;;  %v4175_v39 = vpop.f32.mrf.mxu2  ;;  %v4195_v40 = vpop.f32.mrf.mxu3 }
 0xfed   :  { %v4176_v26 = vadd.f32 %v4175_v39, %v4156_v57  ;;  %v4426_v57 = vperm.slane %v3653_v15, 5 }
 0xfef   :  { %v4196_v47 = vadd.f32 %v4195_v40, %v4176_v26  ;;  %v4414_v26 = vperm.slane %v4402_v56, 0 }
 0xff1   :  { %v4198_v20 = vmul.f32 0.00390625, %v4196_v47  ;;  %v4427_v47 = vperm.slane %v3653_v15, 7 }
 0xff3   :  { %v4199_v6 = vmul.f32 %v4198_v20, %v4198_v20  ;;  %v4215_v51 = vsub.f32 0.0, %v4198_v20 }
 0xff5   :  { %v4201_v61 = vrot.slane %v4199_v6, 4 }
 0xff7   :  { %v4203_v11 = vsub.f32 %v4198_v20, %v4201_v61  ;;  %v4438_v61 = vperm.slane %v4426_v57, 1 }
 0xff9   :  { %v4204_v60 = vadd.f32 1e-05, %v4203_v11 }
 0xffb   :  { %6607 = vrsqrt.f32 %v4204_v60  ;;  %vm4211_vm4 = vweird.f32 %v4204_v60 }
0x1001   :  { %v6608_v27 = vpop.eup %6607 }
0x1002   :  { %v4206_v54 = vmul.f32 %v6608_v27, %v4204_v60  ;;  %vm4212_vm3 = vweird.f32 %v6608_v27 }
0x1003   :  { %vm4213_vm6 = vmor %vm4211_vm4, %vm4212_vm3 }
0x1004   :  { %v4207_v58 = vmul.f32 %v6608_v27, %v4206_v54 }
0x1006   :  { %v4208_v44 = vmul.f32 0.5, %v4207_v58 }
0x1008   :  { %v4209_v10 = vsub.f32 1.5, %v4208_v44 }
0x100a   :  { %v4210_v35 = vmul.f32 %v6608_v27, %v4209_v10 }
0x100c   :  { %v4214_v55 = vsel %vm4213_vm6, %v6608_v27, %v4210_v35  ;;  %v4439_v27 = vperm.slane %v4427_v47, 1 }
0x100d   :  { %v4217_v9 = vrot.slane %v4214_v55, 4  ;;  %v3654_v55 = vld [vmem:[#allocation30 + $0x8] sm:$0xf] }
0x100e   :  { %v4404_v22 = vperm.slane %v3654_v55, 0 }
0x100f   :  { %v4219_v28 = vmul.f32 %v4217_v9, %v4215_v51 }
0x1011   :  { %v4221_v23 = vrot.slane %v4219_v28, 4 }
0x1013   :  { %v4223_v30 = vsel %vm585_vm10, %v4217_v9, %v4221_v23  ;;  %v4405_v23 = vperm.slane %v3654_v55, 2 }
0x1014   :  { %5837 = vmatmul.msk.f32.vlgmr.msrb.gmra.mxu0 %vm1135_vm0, %v4223_v30  ;;  %5839 = vmatmul.msk.f32.vlgmr.msrb.gmra.mxu1 %vm1135_vm0, %v4223_v30 }
0x1015   :  { %5844 = vmatpush.msk.msrb.mxu0 %vm579_vm8, %v4231_v31  ;;  %5846 = vmatpush.msk.msrb.mxu1 %vm579_vm8, %v4232_v17  ;;  %v4417_v17 = vperm.slane %v4405_v23, 0 }
0x101c   :  { %5841 = vmatmul.msk.f32.vlgmr.msra.gmra.mxu0 %vm1135_vm0, %v4223_v30  ;;  %5843 = vmatmul.msk.f32.vlgmr.msra.gmra.mxu1 %vm1135_vm0, %v4223_v30 }
0x1024   :  { %5845 = vmatmul.msk.f32.vlgmr.msrb.gmra.mxu0 %vm1135_vm0, %v4223_v30  ;;  %5847 = vmatmul.msk.f32.vlgmr.msrb.gmra.mxu1 %vm1135_vm0, %v4223_v30  ;;  %v4429_v30 = vperm.slane %v3654_v55, 3  ;;  %vm5720_vm0 = vcmask 1042434  }
0x1091   :  { %v4265_v33 = vpop.f32.mrf.mxu0  ;;  %v4285_v12 = vpop.f32.mrf.mxu1 }
0x1092   :  { %v4368_v29 = vmul.f32 %v4265_v33, %v10168_v13  ;;  %v4380_v14 = vrot.slane %v4265_v33, 4  ;;  %v4369_v7 = vmul.f32 %v4285_v12, %v10173_v38  ;;  %v4381_v41 = vrot.slane %v4285_v12, 4 }
0x1094   :  { %v4392_v1 = vadd.f32 %v4380_v14, %v4368_v29  ;;  %v4393_v42 = vadd.f32 %v4381_v41, %v4369_v7 }
0x1096   :  { %v4418_v8 = vmul.f32 %v4412_v19, %v4392_v1  ;;  %v4419_v49 = vmul.f32 %v4413_v2, %v4393_v42  ;;  %v4416_v19 = vperm.slane %v4404_v22, 0  ;;  %v4428_v2 = vperm.slane %v3654_v55, 1 }
0x1098   :  { %v4442_v62 = vadd.f32 %v4436_v63, %v4418_v8  ;;  %v4443_v43 = vadd.f32 %v4437_v4, %v4419_v49  ;;  %v4440_v7 = vperm.slane %v4428_v2, 1 }
0x1099   :  { %v4305_v39 = vpop.f32.mrf.mxu0  ;;  %v4325_v40 = vpop.f32.mrf.mxu1 }
0x109a   :  { %v10219_v13 = vmax.f32 %v4442_v62, 0.0  ;;  %v10221_v20 = vmax.f32 %v4443_v43, 0.0  ;;  %v4370_v38 = vmul.f32 %v4305_v39, %v10163_v3  ;;  %v4382_v34 = vrot.slane %v4305_v39, 4 }
0x109b   :  { %v4371_v59 = vmul.f32 %v4325_v40, %v10194_v32  ;;  %v4383_v6 = vrot.slane %v4325_v40, 4 }
0x109c   :  { %v4394_v16 = vadd.f32 %v4382_v34, %v4370_v38  ;;  %4967 = vrot.lane.b32.xlu2 %v10221_v20, %s7259_s29  ;;  %4965 = vrot.lane.b32.xlu1 %v10219_v13, %s7259_s29  ;;  %v6496_v11 = vpack.i.bf16 %v10221_v20, %v10219_v13 }
0x109d   :  { %v4395_v60 = vadd.f32 %v4383_v6, %v4371_v59 }
0x109e   :  { %v4420_v54 = vmul.f32 %v4414_v26, %v4394_v16  ;;  %6497 = vrot.lane.b32.xlu0 %v6496_v11, %s7260_s10 }
0x109f   :  { %v4421_v3 = vmul.f32 %v4415_v50, %v4395_v60 }
0x10a0   :  { %v4444_v32 = vadd.f32 %v4438_v61, %v4420_v54 }
0x10a1   :  { %v4445_v58 = vadd.f32 %v4439_v27, %v4421_v3  ;;  %v4365_v51 = vpop.f32.mrf.mxu1  ;;  %v4345_v15 = vpop.f32.mrf.mxu0 }
0x10a2   :  { %v10232_v44 = vmax.f32 %v4444_v32, 0.0  ;;  %v4373_v9 = vmul.f32 %v4365_v51, %v10187_v25  ;;  %v4385_v28 = vrot.slane %v4365_v51, 4  ;;  %v4372_v45 = vmul.f32 %v4345_v15, %v10184_v0 }
0x10a3   :  { %v10234_v10 = vmax.f32 %v4445_v58, 0.0  ;;  %v4384_v36 = vrot.slane %v4345_v15, 4  ;;  %v4441_v25 = vperm.slane %v4429_v30, 1 }
0x10a4   :  { %6507 = vrot.lane.b32.xlu1 %v6496_v11, %s7261_s0  ;;  %v4397_v31 = vadd.f32 %v4385_v28, %v4373_v9  ;;  %v6526_v33 = vpack.i.bf16 %v10232_v44, %v10221_v20 }
0x10a5   :  { %v6511_v35 = vpack.i.bf16 %v10234_v10, %v10232_v44  ;;  %v4396_v12 = vadd.f32 %v4384_v36, %v4372_v45 }
0x10a6   :  { %6502 = vrot.lane.b32.xlu0 %v6496_v11, %s7251_s2  ;;  %v4423_v53 = vmul.f32 %v4417_v17, %v4397_v31 }
0x10a7   :  { %6512 = vrot.lane.b32.xlu2 %v6511_v35, %s7260_s10  ;;  %v4422_v14 = vmul.f32 %v4416_v19, %v4396_v12 }
0x10a8   :  { %v4447_v29 = vadd.f32 %v4441_v25, %v4423_v53 }
0x10a9   :  { %v4446_v0 = vadd.f32 %v4440_v7, %v4422_v14 }
0x10aa   :  { %v10253_v41 = vmax.f32 %v4447_v29, 0.0 }
0x10ab   :  { %v10260_v63 = vmax.f32 %v4446_v0, 0.0 }
0x10ac   :  { %4971 = vrot.lane.b32.xlu1 %v10234_v10, %s7259_s29  ;;  %v6551_v1 = vpack.i.bf16 %v10253_v41, %v10219_v13 }
0x10ad   :  { %v6561_v42 = vpack.i.bf16 %v10253_v41, %v10260_v63  ;;  %v6581_v4 = vpack.i.bf16 %v10260_v63, %v10234_v10 }
0x10ae   :  { %4969 = vrot.lane.b32.xlu0 %v10232_v44, %s7259_s29 }
0x10af   :  { %6517 = vrot.lane.b32.xlu2 %v6511_v35, %s7251_s2 }
0x10b4   :  { %6527 = vrot.lane.b32.xlu1 %v6526_v33, %s7255_s7 }
0x10b6   :  { %6522 = vrot.lane.b32.xlu0 %v6511_v35, %s7261_s0 }
0x10b7   :  { %6532 = vrot.lane.b32.xlu2 %v6526_v33, %s7264_s3 }
0x10bc   :  { %6542 = vrot.lane.b32.xlu1 %v6526_v33, %s7262_s16 }
0x10be   :  { %6537 = vrot.lane.b32.xlu0 %v6526_v33, %s7263_s12 }
0x10bf   :  { %6552 = vrot.lane.b32.xlu2 %v6551_v1, %s7264_s3 }
0x10c4   :  { %6547 = vrot.lane.b32.xlu1 %v6551_v1, %s7255_s7 }
0x10c6   :  { %6557 = vrot.lane.b32.xlu0 %v6551_v1, %s7263_s12 }
0x10c7   :  { %6562 = vrot.lane.b32.xlu2 %v6561_v42, %s7260_s10 }
0x10cc   :  { %6567 = vrot.lane.b32.xlu1 %v6551_v1, %s7262_s16 }
0x10ce   :  { %4973 = vrot.lane.b32.xlu0 %v10260_v63, %s7259_s29 }
0x10cf   :  { %6577 = vrot.lane.b32.xlu2 %v6561_v42, %s7261_s0 }
0x10d4   :  { %6572 = vrot.lane.b32.xlu1 %v6561_v42, %s7251_s2 }
0x10d6   :  { %4975 = vrot.lane.b32.xlu0 %v10253_v41, %s7259_s29  ;;  %s10700_s29 = sld [smem:[#allocation55_spill]] }
0x10d7   :  { %6582 = vrot.lane.b32.xlu2 %v6581_v4, %s7255_s7 }
0x10dc   :  { %6592 = vrot.lane.b32.xlu1 %v6581_v4, %s7263_s12 }
0x10de   :  { %6587 = vrot.lane.b32.xlu0 %v6581_v4, %s7264_s3 }
0x10df   :  { %6597 = vrot.lane.b32.xlu2 %v6581_v4, %s7262_s16 }
0x10f6   :  { %v4968_v56 = vpop.permute.xlu2 %4967 }
0x1101   :  { %v10280_v8 = vpop.permute.xlu2 %6512 }
0x1102   :  { %v6515_v28 = vunpack.i.h.bf16 %v10280_v8  ;;  %v6514_v23 = vunpack.i.l.bf16 %v10280_v8 }
0x1104   :  { %v4961_v15 = vsel %vm2164_vm11, %v6514_v23, %v6515_v28 }
0x1105   :  { %v5045_v12 = vrot.slane %v4961_v15, 4 }
0x1109   :  { %v10291_v57 = vpop.permute.xlu2 %6517 }
0x110a   :  { %v6519_v31 = vunpack.i.l.bf16 %v10291_v57 }
0x110e   :  { %v10282_v49 = vpop.permute.xlu1 %4965 }
0x110f   :  { %v4981_v18 = vsel %vm2183_vm7, %v10282_v49, %v4968_v56 }
0x1110   :  { %v5079_v62 = vsel %vm585_vm10, %v4981_v18, %v8152_v48  ;;  %v10289_v43 = vpop.permute.xlu0 %6497 }
0x1111   :  { %v6500_v39 = vunpack.i.h.bf16 %v10289_v43  ;;  %v6499_v26 = vunpack.i.l.bf16 %v10289_v43  ;;  %5848 = vmatpush.msk.msra.mxu0 %vm588_vm12, %v5079_v62  ;;  %v10313_v60 = vpop.permute.xlu2 %6532 }
0x1112   :  { %v6534_v18 = vunpack.i.l.bf16 %v10313_v60 }
0x1113   :  { %v4963_v40 = vsel %vm2164_vm11, %v6499_v26, %v6500_v39  ;;  %v4962_v45 = vsel %vm2164_vm11, %v6500_v39, %v6514_v23 }
0x1114   :  { %v5043_v6 = vrot.slane %v4963_v40, 4  ;;  %v5044_v19 = vrot.slane %v4962_v45, 4 }
0x1116   :  { %v10300_v47 = vpop.permute.xlu1 %6507 }
0x1117   :  { %v6510_v38 = vunpack.i.h.bf16 %v10300_v47  ;;  %v6509_v34 = vunpack.i.l.bf16 %v10300_v47 }
0x1118   :  { %v10304_v59 = vpop.permute.xlu0 %6502 }
0x1119   :  { %v6505_v50 = vunpack.i.h.bf16 %v10304_v59  ;;  %v6504_v16 = vunpack.i.l.bf16 %v10304_v59  ;;  %v4945_v61 = vsel %vm2145_vm13, %v6509_v34, %v6510_v38  ;;  %v10338_v17 = vpop.permute.xlu2 %6552 }
0x111a   :  { %v5073_v11 = vsel %vm585_vm10, %v4945_v61, %v5043_v6 }
0x111b   :  { %v4927_v27 = vsel %vm506_vm2, %v6504_v16, %v6505_v50  ;;  %5118 = vmatpush.msra.mxu0 %v5073_v11  ;;  %v4926_v36 = vsel %vm506_vm2, %v6505_v50, %v6519_v31 }
0x111c   :  { %v5025_v54 = vrot.slane %v4927_v27, 4  ;;  %v5026_v2 = vrot.slane %v4926_v36, 4  ;;  %v6554_v36 = vunpack.i.l.bf16 %v10338_v17 }
0x111e   :  { %v10319_v3 = vpop.permute.xlu1 %4971  ;;  %v5067_v32 = vsel %vm585_vm10, %v10219_v13, %v5025_v54  ;;  %v6520_v13 = vunpack.i.h.bf16 %v10291_v57  ;;  %v5068_v39 = vsel %vm585_vm10, %v10221_v20, %v5026_v2 }
0x111f   :  { %5119 = vmatpush.msra.mxu0 %v5067_v32 }
0x1120   :  { %v4970_v58 = vpop.permute.xlu0 %4969  ;;  %v4925_v22 = vsel %vm506_vm2, %v6519_v31, %v6520_v13 }
0x1121   :  { %v4979_v35 = vsel %vm2183_vm7, %v4970_v58, %v10319_v3  ;;  %v4980_v55 = vsel %vm2183_vm7, %v4968_v56, %v4970_v58  ;;  %v5027_v29 = vrot.slane %v4925_v22, 4  ;;  %v6535_v56 = vunpack.i.h.bf16 %v10313_v60 }
0x1122   :  { %v5080_v51 = vsel %vm585_vm10, %v4980_v55, %v8191_v5  ;;  %v5081_v9 = vsel %vm585_vm10, %v4979_v35, %v8250_v21  ;;  %v6555_v22 = vunpack.i.h.bf16 %v10338_v17 }
0x1123   :  { %5850 = vmatpush.msk.msra.mxu1 %vm588_vm12, %v5080_v51  ;;  %5852 = vmatpush.msk.msra.mxu2 %vm588_vm12, %v5081_v9  ;;  %v5069_v40 = vsel %vm585_vm10, %v10232_v44, %v5027_v29  ;;  %v4872_v20 = vsel %vm2071_vm14, %v6534_v18, %v6535_v56  ;;  %v10401_v51 = vld [vmem:[#allocation31] sm:$0x1] }
0x1124   :  { %v4991_v55 = vrot.slane %v4872_v20, 4 }
0x1126   :  { %v10340_v30 = vpop.permute.xlu1 %6527 }
0x1127   :  { %v6530_v14 = vunpack.i.h.bf16 %v10340_v30  ;;  %v6529_v7 = vunpack.i.l.bf16 %v10340_v30 }
0x1128   :  { %v10354_v53 = vpop.permute.xlu0 %6522 }
0x1129   :  { %v6525_v25 = vunpack.i.h.bf16 %v10354_v53  ;;  %v6524_v33 = vunpack.i.l.bf16 %v10354_v53  ;;  %v4908_v6 = vsel %vm499_vm5, %v6529_v7, %v6530_v14 }
0x112a   :  { %v5009_v54 = vrot.slane %v4908_v6, 4 }
0x112b   :  { %v4944_v0 = vsel %vm2145_vm13, %v6510_v38, %v6524_v33  ;;  %v4943_v1 = vsel %vm2145_vm13, %v6524_v33, %v6525_v25  ;;  %v10376_v38 = vpop.permute.xlu2 %6562 }
0x112c   :  { %v5074_v42 = vsel %vm585_vm10, %v4944_v0, %v5044_v19  ;;  %v5075_v4 = vsel %vm585_vm10, %v4943_v1, %v5045_v12 }
0x112d   :  { %5138 = vmatpush.msra.mxu1 %v5074_v42  ;;  %5158 = vmatpush.msra.mxu2 %v5075_v4  ;;  %v6564_v42 = vunpack.i.l.bf16 %v10376_v38 }
0x112e   :  { %v10370_v62 = vpop.permute.xlu1 %6542 }
0x112f   :  { %v6545_v50 = vunpack.i.h.bf16 %v10370_v62  ;;  %v6544_v61 = vunpack.i.l.bf16 %v10370_v62  ;;  %5139 = vmatpush.msra.mxu1 %v5068_v39  ;;  %5159 = vmatpush.msra.mxu2 %v5069_v40  ;;  %v4873_v39 = vsel %vm2071_vm14, %v6554_v36, %v6534_v18  ;;  %v4874_v40 = vsel %vm2071_vm14, %v6555_v22, %v6554_v36  ;;  %v4643_v62 = vld [vmem:[#allocation33 + $0x5e0] sm:$0xff] }
0x1130   :  { %v10384_v11 = vpop.permute.xlu0 %6537  ;;  %v4990_v36 = vrot.slane %v4873_v39, 4 }
0x1131   :  { %v6540_v44 = vunpack.i.h.bf16 %v10384_v11  ;;  %v6539_v27 = vunpack.i.l.bf16 %v10384_v11  ;;  %v4854_v58 = vsel %vm2052_vm15, %v6544_v61, %v6545_v50 }
0x1132   :  { %v5057_v23 = vsel %vm585_vm10, %v4854_v58, %v4991_v55  ;;  %v4515_v58 = vld [vmem:[#allocation33 + $0x1e0] sm:$0xff]  ;;  %v4960_v55 = vsel %vm2164_vm11, %v6515_v28, %v6564_v42 }
0x1133   :  { %v4890_v32 = vsel %vm2090_vm1, %v6539_v27, %v6540_v44  ;;  %v10414_v33 = vpop.permute.xlu2 %6577 }
0x1134   :  { %v5063_v35 = vsel %vm585_vm10, %v4890_v32, %v5009_v54  ;;  %v6579_v54 = vunpack.i.l.bf16 %v10414_v33  ;;  %v6580_v39 = vunpack.i.h.bf16 %v10414_v33 }
0x1135   :  { %5160 = vmatpush.msra.mxu2 %v5063_v35  ;;  %v6565_v35 = vunpack.i.h.bf16 %v10376_v38 }
0x1136   :  { %v10403_v9 = vpop.permute.xlu1 %6547 }
0x1137   :  { %v6550_v31 = vunpack.i.h.bf16 %v10403_v9  ;;  %v6549_v15 = vunpack.i.l.bf16 %v10403_v9  ;;  %5161 = vmatpush.msra.mxu2 %v5057_v23  ;;  %v4964_v33 = vsel %vm2164_vm11, %v6565_v35, %v6499_v26 }
0x1138   :  { %v10409_v45 = vpop.permute.xlu0 %6557  ;;  %5853 = vmatmul.msk.f32.vlgmr.msra.gmra.mxu2 %vm737_vm9, %v10401_v51  ;;  %v5048_v57 = vrot.slane %v4964_v33, 4 }
0x1139   :  { %v4909_v19 = vsel %vm499_vm5, %v6549_v15, %v6529_v7  ;;  %v4910_v12 = vsel %vm499_vm5, %v6550_v31, %v6549_v15  ;;  %v6560_v2 = vunpack.i.h.bf16 %v10409_v45  ;;  %v6559_v29 = vunpack.i.l.bf16 %v10409_v45  ;;  %5232 = vmatpush.msrb.mxu2 %v4515_v58  ;;  %v4475_v45 = vld [vmem:[#allocation33 + $0xa0] sm:$0xff] }
0x113a   :  { %v5007_v0 = vrot.slane %v4910_v12, 4  ;;  %v5008_v1 = vrot.slane %v4909_v19, 4  ;;  %v4989_v15 = vrot.slane %v4874_v40, 4  ;;  %v4511_v19 = vld [vmem:[#allocation33 + $0x1c0] sm:$0xff] }
0x113b   :  { %v4892_v4 = vsel %vm2090_vm1, %v6560_v2, %v6559_v29  ;;  %v4891_v7 = vsel %vm2090_vm1, %v6559_v29, %v6539_v27  ;;  %5233 = vmatpush.msrb.mxu2 %v4511_v19  ;;  %v4503_v40 = vld [vmem:[#allocation33 + $0x180] sm:$0xff]  ;;  %v4946_v19 = vsel %vm2145_vm13, %v6580_v39, %v6509_v34 }
0x113c   :  { %v5061_v6 = vsel %vm585_vm10, %v4892_v4, %v5007_v0  ;;  %v5062_v20 = vsel %vm585_vm10, %v4891_v7, %v5008_v1  ;;  %v4507_v1 = vld [vmem:[#allocation33 + $0x1a0] sm:$0xff]  ;;  %v6583_v4 = vpop.permute.xlu2 %6582  ;;  %v5046_v7 = vrot.slane %v4960_v55, 4 }
0x113d   :  { %5120 = vmatpush.msra.mxu0 %v5061_v6  ;;  %5140 = vmatpush.msra.mxu1 %v5062_v20  ;;  %v4499_v6 = vld [vmem:[#allocation33 + $0x160] sm:$0xff]  ;;  %v6584_v55 = vunpack.i.l.bf16 %v6583_v4 }
0x113e   :  { %v10440_v32 = vpop.permute.xlu1 %6567  ;;  %5234 = vmatpush.msrb.mxu2 %v4507_v1  ;;  %v4487_v1 = vld [vmem:[#allocation33 + $0x100] sm:$0xff] }
0x113f   :  { %v6570_v27 = vunpack.i.h.bf16 %v10440_v32  ;;  %v6569_v18 = vunpack.i.l.bf16 %v10440_v32  ;;  %v4575_v32 = vld [vmem:[#allocation33 + $0x3c0] sm:$0xff] }
0x1140   :  { %v4974_v23 = vpop.permute.xlu0 %4973  ;;  %5235 = vmatpush.msrb.mxu2 %v4503_v40 }
0x1141   :  { %v4978_v12 = vsel %vm2183_vm7, %v10319_v3, %v4974_v23  ;;  %v4856_v29 = vsel %vm2052_vm15, %v6570_v27, %v6569_v18  ;;  %v4855_v38 = vsel %vm2052_vm15, %v6569_v18, %v6544_v61  ;;  %v4942_v3 = vsel %vm2145_vm13, %v6525_v25, %v6579_v54 }
0x1142   :  { %v5082_v8 = vsel %vm585_vm10, %v4978_v12, %v8257_v46  ;;  %v5055_v28 = vsel %vm585_vm10, %v4856_v29, %v4989_v15  ;;  %v5056_v0 = vsel %vm585_vm10, %v4855_v38, %v4990_v36  ;;  %v4959_v61 = vsel %vm2164_vm11, %v6564_v42, %v6565_v35  ;;  %v4495_v12 = vld [vmem:[#allocation33 + $0x140] sm:$0xff]  ;;  %5236 = vmatpush.msrb.mxu2 %v4499_v6 }
0x1143   :  { %5121 = vmatpush.msra.mxu0 %v5055_v28  ;;  %5141 = vmatpush.msra.mxu1 %v5056_v0  ;;  %v5076_v53 = vsel %vm585_vm10, %v4942_v3, %v5046_v7  ;;  %v5047_v58 = vrot.slane %v4959_v61, 4  ;;  %v6585_v18 = vunpack.i.h.bf16 %v6583_v4  ;;  %v4941_v36 = vsel %vm2145_vm13, %v6579_v54, %v6580_v39  ;;  %v4491_v38 = vld [vmem:[#allocation33 + $0x120] sm:$0xff] }
0x1144   :  { %5854 = vmatpush.msk.msra.mxu3 %vm588_vm12, %v5082_v8  ;;  %5849 = vmatmul.msk.f32.vlgmr.msra.gmra.mxu0 %vm737_vm9, %v10401_v51  ;;  %v4907_v28 = vsel %vm499_vm5, %v6530_v14, %v6584_v55  ;;  %v6598_v0 = vpop.permute.xlu2 %6597  ;;  %v5078_v3 = vsel %vm585_vm10, %v4946_v19, %v5048_v57  ;;  %v4483_v39 = vld [vmem:[#allocation33 + $0xe0] sm:$0xff] }
0x1145   :  { %5851 = vmatmul.msk.f32.vlgmr.msra.gmra.mxu1 %vm737_vm9, %v10401_v51  ;;  %5237 = vmatpush.msrb.mxu2 %v4495_v12  ;;  %v4906_v8 = vsel %vm499_vm5, %v6584_v55, %v6585_v18  ;;  %v4905_v30 = vsel %vm499_vm5, %v6585_v18, %v6550_v31  ;;  %v6600_v40 = vunpack.i.h.bf16 %v6598_v0  ;;  %v5010_v6 = vrot.slane %v4907_v28, 4  ;;  %v4567_v57 = vld [vmem:[#allocation33 + $0x380] sm:$0xff] }
0x1146   :  { %5178 = vmatpush.msra.mxu3 %v5076_v53  ;;  %v6573_v25 = vpop.permute.xlu1 %6572  ;;  %v6599_v53 = vunpack.i.l.bf16 %v6598_v0  ;;  %v5011_v33 = vrot.slane %v4906_v8, 4  ;;  %v5012_v55 = vrot.slane %v4905_v30, 4  ;;  %v4455_v8 = vld [vmem:[#allocation33] sm:$0xff]  ;;  %vm10699_vm5 = vcmask 1040384  }
0x1147   :  { %v6575_v42 = vunpack.i.h.bf16 %v6573_v25  ;;  %v6574_v20 = vunpack.i.l.bf16 %v6573_v25  ;;  %5238 = vmatpush.msrb.mxu2 %v4491_v38  ;;  %v4627_v38 = vld [vmem:[#allocation33 + $0x560] sm:$0xff] }
0x1148   :  { %v4976_v15 = vpop.permute.xlu0 %4975  ;;  %v4853_v17 = vsel %vm2052_vm15, %v6545_v50, %v6599_v53  ;;  %v4852_v60 = vsel %vm2052_vm15, %v6599_v53, %v6600_v40  ;;  %v4471_v50 = vld [vmem:[#allocation33 + $0x80] sm:$0xff] }
0x1149   :  { %v4928_v43 = vsel %vm506_vm2, %v6575_v42, %v6504_v16  ;;  %v4923_v26 = vsel %vm506_vm2, %v6574_v20, %v6575_v42  ;;  %v4924_v35 = vsel %vm506_vm2, %v6520_v13, %v6574_v20  ;;  %v4977_v47 = vsel %vm2183_vm7, %v4974_v23, %v4976_v15  ;;  %5239 = vmatpush.msrb.mxu2 %v4487_v1  ;;  %v4479_v20 = vld [vmem:[#allocation33 + $0xc0] sm:$0xff] }
0x114a   :  { %v4982_v34 = vsel %vm2183_vm7, %v4976_v15, %v10282_v49  ;;  %v5083_v59 = vsel %vm585_vm10, %v4977_v47, %v8294_v37  ;;  %v5028_v16 = vrot.slane %v4924_v35, 4  ;;  %v5029_v54 = vrot.slane %v4923_v26, 4  ;;  %v4579_v35 = vld [vmem:[#allocation33 + $0x3e0] sm:$0xff] }
0x114b   :  { %v5084_v29 = vsel %vm585_vm10, %v4982_v34, %v8208_v52  ;;  %5856 = vmatpush.msk.msrb.mxu0 %vm588_vm12, %v5083_v59  ;;  %v5030_v13 = vrot.slane %v4928_v43, 4  ;;  %v5077_v49 = vsel %vm585_vm10, %v4941_v36, %v5047_v58  ;;  %5240 = vmatpush.msrb.mxu2 %v4483_v39  ;;  %v4467_v47 = vld [vmem:[#allocation33 + $0x60] sm:$0xff] }
0x114c   :  { %5858 = vmatpush.msk.msrb.mxu1 %vm588_vm12, %v5084_v29  ;;  %v5070_v23 = vsel %vm585_vm10, %v10234_v10, %v5028_v16  ;;  %v5071_v10 = vsel %vm585_vm10, %v10260_v63, %v5029_v54  ;;  %v4635_v34 = vld [vmem:[#allocation33 + $0x5a0] sm:$0xff] }
0x114d   :  { %5179 = vmatpush.msra.mxu3 %v5070_v23  ;;  %5198 = vmatpush.msrb.mxu0 %v5077_v49  ;;  %v5072_v14 = vsel %vm585_vm10, %v10253_v41, %v5030_v13  ;;  %v4571_v59 = vld [vmem:[#allocation33 + $0x3a0] sm:$0xff] }
0x114e   :  { %5218 = vmatpush.msrb.mxu1 %v5078_v3  ;;  %v6593_v4 = vpop.permute.xlu1 %6592  ;;  %5241 = vmatpush.msrb.mxu2 %v4479_v20  ;;  %v4703_v16 = vld [vmem:[#allocation33 + $0x7c0] sm:$0xff] }
0x114f   :  { %v6595_v7 = vunpack.i.h.bf16 %v6593_v4  ;;  %v6594_v61 = vunpack.i.l.bf16 %v6593_v4  ;;  %5199 = vmatpush.msrb.mxu0 %v5071_v10  ;;  %v4463_v54 = vld [vmem:[#allocation33 + $0x40] sm:$0xff] }
0x1150   :  { %5219 = vmatpush.msrb.mxu1 %v5072_v14  ;;  %v6588_v25 = vpop.permute.xlu0 %6587  ;;  %5242 = vmatpush.msrb.mxu2 %v4475_v45  ;;  %v4631_v29 = vld [vmem:[#allocation33 + $0x580] sm:$0xff] }
0x1151   :  { %v6590_v63 = vunpack.i.h.bf16 %v6588_v25  ;;  %v6589_v42 = vunpack.i.l.bf16 %v6588_v25  ;;  %v4889_v9 = vsel %vm2090_vm1, %v6540_v44, %v6594_v61  ;;  %v4888_v31 = vsel %vm2090_vm1, %v6594_v61, %v6595_v7  ;;  %v4699_v13 = vld [vmem:[#allocation33 + $0x7a0] sm:$0xff] }
0x1152   :  { %v5064_v41 = vsel %vm585_vm10, %v4889_v9, %v5010_v6  ;;  %v5065_v58 = vsel %vm585_vm10, %v4888_v31, %v5011_v33  ;;  %v4887_v18 = vsel %vm2090_vm1, %v6595_v7, %v6560_v2  ;;  %5243 = vmatpush.msrb.mxu2 %v4471_v50  ;;  %v4563_v23 = vld [vmem:[#allocation33 + $0x360] sm:$0xff] }
0x1153   :  { %v4869_v11 = vsel %vm2071_vm14, %v6590_v63, %v6555_v22  ;;  %v4870_v44 = vsel %vm2071_vm14, %v6589_v42, %v6590_v63  ;;  %v4871_v15 = vsel %vm2071_vm14, %v6535_v56, %v6589_v42  ;;  %5180 = vmatpush.msra.mxu3 %v5064_v41  ;;  %5200 = vmatpush.msrb.mxu0 %v5065_v58  ;;  %v4695_v49 = vld [vmem:[#allocation33 + $0x780] sm:$0xff] }
0x1154   :  { %v4994_v36 = vrot.slane %v4869_v11, 4  ;;  %v4992_v2 = vrot.slane %v4871_v15, 4  ;;  %v4993_v19 = vrot.slane %v4870_v44, 4  ;;  %v5066_v12 = vsel %vm585_vm10, %v4887_v18, %v5012_v55  ;;  %5244 = vmatpush.msrb.mxu2 %v4467_v47  ;;  %v4623_v28 = vld [vmem:[#allocation33 + $0x540] sm:$0xff]  ;;  %v4512_v47 = vld [vmem:[#allocation33 + $0x1c8] sm:$0xff] }
0x1155   :  { %5220 = vmatpush.msrb.mxu1 %v5066_v12  ;;  %v4851_v56 = vsel %vm2052_vm15, %v6600_v40, %v6570_v27  ;;  %v4707_v27 = vld [vmem:[#allocation33 + $0x7e0] sm:$0xff] }
0x1156   :  { %v5058_v22 = vsel %vm585_vm10, %v4853_v17, %v4992_v2  ;;  %v5059_v43 = vsel %vm585_vm10, %v4852_v60, %v4993_v19  ;;  %v5060_v26 = vsel %vm585_vm10, %v4851_v56, %v4994_v36  ;;  %5245 = vmatpush.msrb.mxu2 %v4463_v54  ;;  %v4559_v0 = vld [vmem:[#allocation33 + $0x340] sm:$0xff]  ;;  %v4504_v54 = vld [vmem:[#allocation33 + $0x188] sm:$0xff] }
0x1157   :  { %5181 = vmatpush.msra.mxu3 %v5058_v22  ;;  %5201 = vmatpush.msrb.mxu0 %v5059_v43  ;;  %v4691_v3 = vld [vmem:[#allocation33 + $0x760] sm:$0xff] }
0x1158   :  { %5221 = vmatpush.msrb.mxu1 %v5060_v26  ;;  %5855 = vmatmul.msk.f32.vlgmr.msra.gmra.mxu3 %vm737_vm9, %v10401_v51  ;;  %v4771_v1 = vld [vmem:[#allocation33 + $0x9e0] sm:$0xff] }
0x1159   :  { %5857 = vmatmul.msk.f32.vlgmr.msrb.gmra.mxu0 %vm737_vm9, %v10401_v51  ;;  %5859 = vmatmul.msk.f32.vlgmr.msrb.gmra.mxu1 %vm737_vm9, %v10401_v51  ;;  %v4459_v51 = vld [vmem:[#allocation33 + $0x20] sm:$0xff] }
0x115a   :  { %5272 = vmatpush.msra.mxu0 %v4643_v62  ;;  %5252 = vmatpush.msrb.mxu3 %v4579_v35  ;;  %v4619_v4 = vld [vmem:[#allocation33 + $0x520] sm:$0xff] }
0x115b   :  { %5292 = vmatpush.msra.mxu1 %v4707_v27  ;;  %5246 = vmatpush.msrb.mxu2 %v4459_v51  ;;  %v4555_v10 = vld [vmem:[#allocation33 + $0x320] sm:$0xff]  ;;  %v4496_v51 = vld [vmem:[#allocation33 + $0x148] sm:$0xff] }
0x115c   :  { %5273 = vmatpush.msra.mxu0 %v4639_v24  ;;  %5253 = vmatpush.msrb.mxu3 %v4575_v32  ;;  %v4687_v30 = vld [vmem:[#allocation33 + $0x740] sm:$0xff]  ;;  %v4516_v24 = vld [vmem:[#allocation33 + $0x1e8] sm:$0xff] }
0x115d   :  { %5293 = vmatpush.msra.mxu1 %v4703_v16  ;;  %5247 = vmatpush.msrb.mxu2 %v4455_v8  ;;  %v4767_v7 = vld [vmem:[#allocation33 + $0x9c0] sm:$0xff]  ;;  %v4488_v8 = vld [vmem:[#allocation33 + $0x108] sm:$0xff] }
0x115e   :  { %5274 = vmatpush.msra.mxu0 %v4635_v34  ;;  %5254 = vmatpush.msrb.mxu3 %v4571_v59  ;;  %v4615_v61 = vld [vmem:[#allocation33 + $0x500] sm:$0xff]  ;;  %v4508_v59 = vld [vmem:[#allocation33 + $0x1a8] sm:$0xff] }
0x115f   :  { %5294 = vmatpush.msra.mxu1 %v4699_v13  ;;  %v4551_v14 = vld [vmem:[#allocation33 + $0x300] sm:$0xff]  ;;  %5312 = vmatpush.msra.mxu2 %v4771_v1  ;;  %v4480_v1 = vld [vmem:[#allocation33 + $0xc8] sm:$0xff] }
0x1160   :  { %5275 = vmatpush.msra.mxu0 %v4631_v29  ;;  %5255 = vmatpush.msrb.mxu3 %v4567_v57  ;;  %v4683_v39 = vld [vmem:[#allocation33 + $0x720] sm:$0xff]  ;;  %v4500_v57 = vld [vmem:[#allocation33 + $0x168] sm:$0xff] }
0x1161   :  { %5295 = vmatpush.msra.mxu1 %v4695_v49  ;;  %v4763_v40 = vld [vmem:[#allocation33 + $0x9a0] sm:$0xff]  ;;  %5313 = vmatpush.msra.mxu2 %v4767_v7  ;;  %v4472_v7 = vld [vmem:[#allocation33 + $0x88] sm:$0xff] }
0x1162   :  { %5276 = vmatpush.msra.mxu0 %v4627_v38  ;;  %5256 = vmatpush.msrb.mxu3 %v4563_v23  ;;  %v4611_v53 = vld [vmem:[#allocation33 + $0x4e0] sm:$0xff]  ;;  %v4492_v23 = vld [vmem:[#allocation33 + $0x128] sm:$0xff] }
0x1163   :  { %5296 = vmatpush.msra.mxu1 %v4691_v3  ;;  %v4547_v25 = vld [vmem:[#allocation33 + $0x2e0] sm:$0xff]  ;;  %5314 = vmatpush.msra.mxu2 %v4763_v40 }
0x1164   :  { %5277 = vmatpush.msra.mxu0 %v4623_v28  ;;  %5257 = vmatpush.msrb.mxu3 %v4559_v0  ;;  %v4679_v6 = vld [vmem:[#allocation33 + $0x700] sm:$0xff]  ;;  %v4484_v0 = vld [vmem:[#allocation33 + $0xe8] sm:$0xff] }
0x1165   :  { %5297 = vmatpush.msra.mxu1 %v4687_v30  ;;  %v4759_v33 = vld [vmem:[#allocation33 + $0x980] sm:$0xff] }
0x1166   :  { %5278 = vmatpush.msra.mxu0 %v4619_v4  ;;  %5258 = vmatpush.msrb.mxu3 %v4555_v10  ;;  %v4607_v63 = vld [vmem:[#allocation33 + $0x4c0] sm:$0xff]  ;;  %v4476_v10 = vld [vmem:[#allocation33 + $0xa8] sm:$0xff] }
0x1167   :  { %5298 = vmatpush.msra.mxu1 %v4683_v39  ;;  %v4543_v42 = vld [vmem:[#allocation33 + $0x2c0] sm:$0xff]  ;;  %5315 = vmatpush.msra.mxu2 %v4759_v33 }
0x1168   :  { %5279 = vmatpush.msra.mxu0 %v4615_v61  ;;  %5259 = vmatpush.msrb.mxu3 %v4551_v14  ;;  %v4675_v9 = vld [vmem:[#allocation33 + $0x6e0] sm:$0xff]  ;;  %v4468_v61 = vld [vmem:[#allocation33 + $0x68] sm:$0xff] }
0x1169   :  { %5299 = vmatpush.msra.mxu1 %v4679_v6  ;;  %v4755_v31 = vld [vmem:[#allocation33 + $0x960] sm:$0xff]  ;;  %v4464_v14 = vld [vmem:[#allocation33 + $0x48] sm:$0xff] }
0x116a   :  { %5280 = vmatpush.msra.mxu0 %v4611_v53  ;;  %5260 = vmatpush.msrb.mxu3 %v4547_v25  ;;  %v4603_v20 = vld [vmem:[#allocation33 + $0x4a0] sm:$0xff]  ;;  %v4460_v53 = vld [vmem:[#allocation33 + $0x28] sm:$0xff] }
0x116b   :  { %v4539_v41 = vld [vmem:[#allocation33 + $0x2a0] sm:$0xff]  ;;  %5300 = vmatpush.msra.mxu1 %v4675_v9  ;;  %5316 = vmatpush.msra.mxu2 %v4755_v31 }
0x116c   :  { %v4671_v58 = vld [vmem:[#allocation33 + $0x6c0] sm:$0xff]  ;;  %5281 = vmatpush.msra.mxu0 %v4607_v63  ;;  %5261 = vmatpush.msrb.mxu3 %v4543_v42  ;;  %v4456_v63 = vld [vmem:[#allocation33 + $0x8] sm:$0xff] }
0x116d   :  { %v4751_v18 = vld [vmem:[#allocation33 + $0x940] sm:$0xff]  ;;  %5301 = vmatpush.msra.mxu1 %v4671_v58 }
0x116e   :  { %v4599_v55 = vld [vmem:[#allocation33 + $0x480] sm:$0xff]  ;;  %5282 = vmatpush.msra.mxu0 %v4603_v20  ;;  %5262 = vmatpush.msrb.mxu3 %v4539_v41  ;;  %v4580_v20 = vld [vmem:[#allocation33 + $0x3e8] sm:$0xff] }
0x116f   :  { %v4535_v11 = vld [vmem:[#allocation33 + $0x280] sm:$0xff]  ;;  %5317 = vmatpush.msra.mxu2 %v4751_v18  ;;  %v4576_v18 = vld [vmem:[#allocation33 + $0x3c8] sm:$0xff] }
0x1170   :  { %v4667_v44 = vld [vmem:[#allocation33 + $0x6a0] sm:$0xff]  ;;  %5283 = vmatpush.msra.mxu0 %v4599_v55  ;;  %5263 = vmatpush.msrb.mxu3 %v4535_v11 }
0x1171   :  { %v4747_v15 = vld [vmem:[#allocation33 + $0x920] sm:$0xff]  ;;  %5302 = vmatpush.msra.mxu1 %v4667_v44  ;;  %v4572_v44 = vld [vmem:[#allocation33 + $0x3a8] sm:$0xff] }
0x1172   :  { %v4595_v45 = vld [vmem:[#allocation33 + $0x460] sm:$0xff]  ;;  %5318 = vmatpush.msra.mxu2 %v4747_v15  ;;  %v4568_v15 = vld [vmem:[#allocation33 + $0x388] sm:$0xff] }
0x1173   :  { %v4531_v36 = vld [vmem:[#allocation33 + $0x260] sm:$0xff]  ;;  %5284 = vmatpush.msra.mxu0 %v4595_v45  ;;  %v4564_v45 = vld [vmem:[#allocation33 + $0x368] sm:$0xff] }
0x1174   :  { %v4663_v2 = vld [vmem:[#allocation33 + $0x680] sm:$0xff]  ;;  %5264 = vmatpush.msrb.mxu3 %v4531_v36  ;;  %v4560_v36 = vld [vmem:[#allocation33 + $0x348] sm:$0xff] }
0x1175   :  { %v4743_v19 = vld [vmem:[#allocation33 + $0x900] sm:$0xff]  ;;  %5303 = vmatpush.msra.mxu1 %v4663_v2  ;;  %v4556_v2 = vld [vmem:[#allocation33 + $0x328] sm:$0xff] }
0x1176   :  { %v4591_v12 = vld [vmem:[#allocation33 + $0x440] sm:$0xff]  ;;  %5319 = vmatpush.msra.mxu2 %v4743_v19  ;;  %v4552_v19 = vld [vmem:[#allocation33 + $0x308] sm:$0xff] }
0x1177   :  { %v4527_v17 = vld [vmem:[#allocation33 + $0x240] sm:$0xff]  ;;  %5285 = vmatpush.msra.mxu0 %v4591_v12  ;;  %v4548_v12 = vld [vmem:[#allocation33 + $0x2e8] sm:$0xff] }
0x1178   :  { %v4659_v60 = vld [vmem:[#allocation33 + $0x660] sm:$0xff]  ;;  %5265 = vmatpush.msrb.mxu3 %v4527_v17  ;;  %v4544_v17 = vld [vmem:[#allocation33 + $0x2c8] sm:$0xff] }
0x1179   :  { %v4739_v56 = vld [vmem:[#allocation33 + $0x8e0] sm:$0xff]  ;;  %5304 = vmatpush.msra.mxu1 %v4659_v60  ;;  %v4540_v60 = vld [vmem:[#allocation33 + $0x2a8] sm:$0xff] }
0x117a   :  { %v4587_v22 = vld [vmem:[#allocation33 + $0x420] sm:$0xff]  ;;  %5320 = vmatpush.msra.mxu2 %v4739_v56  ;;  %v4536_v56 = vld [vmem:[#allocation33 + $0x288] sm:$0xff] }
0x117b   :  { %v4523_v43 = vld [vmem:[#allocation33 + $0x220] sm:$0xff]  ;;  %5286 = vmatpush.msra.mxu0 %v4587_v22  ;;  %v4532_v22 = vld [vmem:[#allocation33 + $0x268] sm:$0xff] }
0x117c   :  { %v4655_v26 = vld [vmem:[#allocation33 + $0x640] sm:$0xff]  ;;  %5266 = vmatpush.msrb.mxu3 %v4523_v43  ;;  %v4528_v43 = vld [vmem:[#allocation33 + $0x248] sm:$0xff] }
0x117d   :  { %v4735_v62 = vld [vmem:[#allocation33 + $0x8c0] sm:$0xff]  ;;  %5305 = vmatpush.msra.mxu1 %v4655_v26 }
0x117e   :  { %v4583_v35 = vld [vmem:[#allocation33 + $0x400] sm:$0xff]  ;;  %5321 = vmatpush.msra.mxu2 %v4735_v62 }
0x117f   :  { %v4519_v50 = vld [vmem:[#allocation33 + $0x200] sm:$0xff]  ;;  %5287 = vmatpush.msra.mxu0 %v4583_v35  ;;  %v4772_v35 = vld [vmem:[#allocation33 + $0x9e8] sm:$0xff] }
0x1180   :  { %v4835_v32 = vld [vmem:[#allocation33 + $0xbe0] sm:$0xff]  ;;  %5267 = vmatpush.msrb.mxu3 %v4519_v50  ;;  %v4524_v50 = vld [vmem:[#allocation33 + $0x228] sm:$0xff] }
0x1181   :  { %v4731_v27 = vld [vmem:[#allocation33 + $0x8a0] sm:$0xff]  ;;  %5352 = vmatpush.msrb.mxu0 %v4516_v24  ;;  %v4768_v24 = vld [vmem:[#allocation33 + $0x9c8] sm:$0xff] }
0x1182   :  { %v4831_v34 = vld [vmem:[#allocation33 + $0xbc0] sm:$0xff]  ;;  %5332 = vmatpush.msra.mxu3 %v4835_v32  ;;  %5322 = vmatpush.msra.mxu2 %v4731_v27  ;;  %v4520_v32 = vld [vmem:[#allocation33 + $0x208] sm:$0xff] }
0x1183   :  { %v4827_v16 = vld [vmem:[#allocation33 + $0xba0] sm:$0xff]  ;;  %5353 = vmatpush.msrb.mxu0 %v4512_v47  ;;  %v4764_v27 = vld [vmem:[#allocation33 + $0x9a8] sm:$0xff] }
0x1184   :  { %5333 = vmatpush.msra.mxu3 %v4831_v34  ;;  %v4823_v29 = vld [vmem:[#allocation33 + $0xb80] sm:$0xff] }
0x1185   :  { %5354 = vmatpush.msrb.mxu0 %v4508_v59  ;;  %v4819_v13 = vld [vmem:[#allocation33 + $0xb60] sm:$0xff] }
0x1186   :  { %5334 = vmatpush.msra.mxu3 %v4827_v16  ;;  %v4815_v38 = vld [vmem:[#allocation33 + $0xb40] sm:$0xff]  ;;  %v4644_v16 = vld [vmem:[#allocation33 + $0x5e8] sm:$0xff] }
0x1187   :  { %5355 = vmatpush.msrb.mxu0 %v4504_v54  ;;  %v4811_v49 = vld [vmem:[#allocation33 + $0xb20] sm:$0xff]  ;;  %v4708_v54 = vld [vmem:[#allocation33 + $0x7e8] sm:$0xff] }
0x1188   :  { %5335 = vmatpush.msra.mxu3 %v4823_v29  ;;  %v4807_v28 = vld [vmem:[#allocation33 + $0xb00] sm:$0xff]  ;;  %v4760_v29 = vld [vmem:[#allocation33 + $0x988] sm:$0xff] }
0x1189   :  { %5356 = vmatpush.msrb.mxu0 %v4500_v57  ;;  %v4803_v3 = vld [vmem:[#allocation33 + $0xae0] sm:$0xff]  ;;  %v4640_v57 = vld [vmem:[#allocation33 + $0x5c8] sm:$0xff] }
0x118a   :  { %5336 = vmatpush.msra.mxu3 %v4819_v13  ;;  %v4799_v4 = vld [vmem:[#allocation33 + $0xac0] sm:$0xff]  ;;  %v4704_v13 = vld [vmem:[#allocation33 + $0x7c8] sm:$0xff] }
0x118b   :  { %5357 = vmatpush.msrb.mxu0 %v4496_v51  ;;  %v4795_v30 = vld [vmem:[#allocation33 + $0xaa0] sm:$0xff]  ;;  %v4756_v51 = vld [vmem:[#allocation33 + $0x968] sm:$0xff] }
0x118c   :  { %5337 = vmatpush.msra.mxu3 %v4815_v38  ;;  %v4727_v39 = vld [vmem:[#allocation33 + $0x880] sm:$0xff]  ;;  %v4700_v38 = vld [vmem:[#allocation33 + $0x7a8] sm:$0xff] }
0x118d   :  { %5358 = vmatpush.msrb.mxu0 %v4492_v23  ;;  %v4791_v40 = vld [vmem:[#allocation33 + $0xa80] sm:$0xff]  ;;  %5323 = vmatpush.msra.mxu2 %v4727_v39  ;;  %v4752_v23 = vld [vmem:[#allocation33 + $0x948] sm:$0xff] }
0x118e   :  { %5338 = vmatpush.msra.mxu3 %v4811_v49  ;;  %v4651_v25 = vld [vmem:[#allocation33 + $0x620] sm:$0xff]  ;;  %v4696_v49 = vld [vmem:[#allocation33 + $0x788] sm:$0xff] }
0x118f   :  { %5359 = vmatpush.msrb.mxu0 %v4488_v8  ;;  %v4723_v6 = vld [vmem:[#allocation33 + $0x860] sm:$0xff]  ;;  %5306 = vmatpush.msra.mxu1 %v4651_v25  ;;  %v4748_v8 = vld [vmem:[#allocation33 + $0x928] sm:$0xff] }
0x1190   :  { %5339 = vmatpush.msra.mxu3 %v4807_v28  ;;  %v4787_v33 = vld [vmem:[#allocation33 + $0xa60] sm:$0xff]  ;;  %5324 = vmatpush.msra.mxu2 %v4723_v6  ;;  %v4628_v28 = vld [vmem:[#allocation33 + $0x568] sm:$0xff] }
0x1191   :  { %5360 = vmatpush.msrb.mxu0 %v4484_v0  ;;  %v4647_v42 = vld [vmem:[#allocation33 + $0x600] sm:$0xff]  ;;  %v4692_v0 = vld [vmem:[#allocation33 + $0x768] sm:$0xff] }
0x1192   :  { %5340 = vmatpush.msra.mxu3 %v4803_v3  ;;  %v4719_v9 = vld [vmem:[#allocation33 + $0x840] sm:$0xff]  ;;  %5307 = vmatpush.msra.mxu1 %v4647_v42  ;;  %v4744_v3 = vld [vmem:[#allocation33 + $0x908] sm:$0xff] }
0x1193   :  { %5361 = vmatpush.msrb.mxu0 %v4480_v1  ;;  %v4783_v31 = vld [vmem:[#allocation33 + $0xa40] sm:$0xff]  ;;  %5325 = vmatpush.msra.mxu2 %v4719_v9  ;;  %v4624_v1 = vld [vmem:[#allocation33 + $0x548] sm:$0xff] }
0x1194   :  { %5341 = vmatpush.msra.mxu3 %v4799_v4  ;;  %5372 = vmatpush.msrb.mxu1 %v4580_v20  ;;  %v4715_v41 = vld [vmem:[#allocation33 + $0x820] sm:$0xff]  ;;  %v4688_v4 = vld [vmem:[#allocation33 + $0x748] sm:$0xff] }
0x1195   :  { %5362 = vmatpush.msrb.mxu0 %v4476_v10  ;;  %v4779_v58 = vld [vmem:[#allocation33 + $0xa20] sm:$0xff]  ;;  %5326 = vmatpush.msra.mxu2 %v4715_v41  ;;  %v4740_v10 = vld [vmem:[#allocation33 + $0x8e8] sm:$0xff] }
0x1196   :  { %5342 = vmatpush.msra.mxu3 %v4795_v30  ;;  %v4711_v55 = vld [vmem:[#allocation33 + $0x800] sm:$0xff]  ;;  %5373 = vmatpush.msrb.mxu1 %v4576_v18  ;;  %v4620_v30 = vld [vmem:[#allocation33 + $0x528] sm:$0xff] }
0x1197   :  { %5363 = vmatpush.msrb.mxu0 %v4472_v7  ;;  %v4775_v11 = vld [vmem:[#allocation33 + $0xa00] sm:$0xff]  ;;  %5327 = vmatpush.msra.mxu2 %v4711_v55  ;;  %v4684_v7 = vld [vmem:[#allocation33 + $0x728] sm:$0xff] }
0x1198   :  { %5343 = vmatpush.msra.mxu3 %v4791_v40  ;;  %5374 = vmatpush.msrb.mxu1 %v4572_v44  ;;  %v4680_v39 = vld [vmem:[#allocation33 + $0x708] sm:$0xff] }
0x1199   :  { %5364 = vmatpush.msrb.mxu0 %v4468_v61  ;;  %v4736_v61 = vld [vmem:[#allocation33 + $0x8c8] sm:$0xff] }
0x119a   :  { %5344 = vmatpush.msra.mxu3 %v4787_v33  ;;  %5375 = vmatpush.msrb.mxu1 %v4568_v15  ;;  %v4732_v40 = vld [vmem:[#allocation33 + $0x8a8] sm:$0xff] }
0x119b   :  { %5365 = vmatpush.msrb.mxu0 %v4464_v14  ;;  %v4616_v14 = vld [vmem:[#allocation33 + $0x508] sm:$0xff] }
0x119c   :  { %5345 = vmatpush.msra.mxu3 %v4783_v31  ;;  %5376 = vmatpush.msrb.mxu1 %v4564_v45  ;;  %v4676_v25 = vld [vmem:[#allocation33 + $0x6e8] sm:$0xff] }
0x119d   :  { %5366 = vmatpush.msrb.mxu0 %v4460_v53  ;;  %v4612_v53 = vld [vmem:[#allocation33 + $0x4e8] sm:$0xff] }
0x119e   :  { %5346 = vmatpush.msra.mxu3 %v4779_v58  ;;  %5377 = vmatpush.msrb.mxu1 %v4560_v36  ;;  %v4728_v6 = vld [vmem:[#allocation33 + $0x888] sm:$0xff] }
0x119f   :  { %5367 = vmatpush.msrb.mxu0 %v4456_v63  ;;  %v4608_v33 = vld [vmem:[#allocation33 + $0x4c8] sm:$0xff] }
0x11a0   :  { %5347 = vmatpush.msra.mxu3 %v4775_v11  ;;  %5378 = vmatpush.msrb.mxu1 %v4556_v2  ;;  %v4672_v63 = vld [vmem:[#allocation33 + $0x6c8] sm:$0xff] }
0x11a1   :  { %v4724_v42 = vld [vmem:[#allocation33 + $0x868] sm:$0xff] }
0x11a2   :  { %5379 = vmatpush.msrb.mxu1 %v4552_v19  ;;  %v4604_v20 = vld [vmem:[#allocation33 + $0x4a8] sm:$0xff]  ;;  %v4645_v19 = vld [vmem:[#allocation33 + $0x5f0] sm:$0xff] }
0x11a3   :  { %v4668_v18 = vld [vmem:[#allocation33 + $0x6a8] sm:$0xff] }
0x11a4   :  { %5380 = vmatpush.msrb.mxu1 %v4548_v12  ;;  %v4720_v55 = vld [vmem:[#allocation33 + $0x848] sm:$0xff] }
0x11a5   :  { %v4600_v11 = vld [vmem:[#allocation33 + $0x488] sm:$0xff] }
0x11a6   :  { %5381 = vmatpush.msrb.mxu1 %v4544_v17  ;;  %v4664_v44 = vld [vmem:[#allocation33 + $0x688] sm:$0xff] }
0x11a7   :  { %v4716_v15 = vld [vmem:[#allocation33 + $0x828] sm:$0xff] }
0x11a8   :  { %5382 = vmatpush.msrb.mxu1 %v4540_v60  ;;  %v4660_v36 = vld [vmem:[#allocation33 + $0x668] sm:$0xff] }
0x11a9   :  { %v4712_v2 = vld [vmem:[#allocation33 + $0x808] sm:$0xff] }
0x11aa   :  { %5383 = vmatpush.msrb.mxu1 %v4536_v56  ;;  %v4592_v12 = vld [vmem:[#allocation33 + $0x448] sm:$0xff]  ;;  %v4641_v56 = vld [vmem:[#allocation33 + $0x5d0] sm:$0xff] }
0x11ab   :  { %v4656_v17 = vld [vmem:[#allocation33 + $0x648] sm:$0xff] }
0x11ac   :  { %5384 = vmatpush.msrb.mxu1 %v4532_v22  ;;  %v4836_v60 = vld [vmem:[#allocation33 + $0xbe8] sm:$0xff] }
0x11ad   :  { %v4588_v22 = vld [vmem:[#allocation33 + $0x428] sm:$0xff] }
0x11ae   :  { %5385 = vmatpush.msrb.mxu1 %v4528_v43  ;;  %v4652_v43 = vld [vmem:[#allocation33 + $0x628] sm:$0xff] }
0x11b0   :  { %5386 = vmatpush.msrb.mxu1 %v4524_v50  ;;  %v4648_v50 = vld [vmem:[#allocation33 + $0x608] sm:$0xff] }
0x11b2   :  { %5387 = vmatpush.msrb.mxu1 %v4520_v32  ;;  %v4517_v32 = vld [vmem:[#allocation33 + $0x1f0] sm:$0xff] }
0x11bb   :  { %v5163_v26 = vpop.f32.mrf.mxu2 }
0x11bc   :  { %v10567_v62 = vmul.f32 %v5163_v26, %v8250_v21  ;;  %v4832_v26 = vld [vmem:[#allocation33 + $0xbc8] sm:$0xff] }
0x11be   :  { %5288 = vmatmul.f32.vlgmr.msra.gmra.mxu0 %v10567_v62 }
0x11bf   :  { %5432 = vmatpush.msra.mxu0 %v4772_v35  ;;  %v4584_v35 = vld [vmem:[#allocation33 + $0x408] sm:$0xff] }
0x11c1   :  { %5433 = vmatpush.msra.mxu0 %v4768_v24  ;;  %v5123_v47 = vpop.f32.mrf.mxu0  ;;  %v4828_v24 = vld [vmem:[#allocation33 + $0xba8] sm:$0xff] }
0x11c2   :  { %v10571_v34 = vmul.f32 %v5123_v47, %v8152_v48  ;;  %v5143_v59 = vpop.f32.mrf.mxu1  ;;  %v4636_v48 = vld [vmem:[#allocation33 + $0x5a8] sm:$0xff]  ;;  %v4633_v47 = vld [vmem:[#allocation33 + $0x590] sm:$0xff] }
0x11c3   :  { %v10574_v21 = vmul.f32 %v5143_v59, %v8191_v5  ;;  %5434 = vmatpush.msra.mxu0 %v4764_v27  ;;  %v4632_v5 = vld [vmem:[#allocation33 + $0x588] sm:$0xff]  ;;  %v4581_v27 = vld [vmem:[#allocation33 + $0x3f0] sm:$0xff] }
0x11c4   :  { %5248 = vmatmul.f32.vlgmr.msrb.gmra.mxu2 %v10571_v34  ;;  %v4824_v59 = vld [vmem:[#allocation33 + $0xb88] sm:$0xff] }
0x11c5   :  { %5268 = vmatmul.f32.vlgmr.msrb.gmra.mxu3 %v10574_v21  ;;  %5392 = vmatpush.msrb.mxu2 %v4644_v16  ;;  %v4513_v16 = vld [vmem:[#allocation33 + $0x1d0] sm:$0xff] }
0x11c6   :  { %5412 = vmatpush.msrb.mxu3 %v4708_v54  ;;  %5435 = vmatpush.msra.mxu0 %v4760_v29  ;;  %v4577_v54 = vld [vmem:[#allocation33 + $0x3d0] sm:$0xff] }
0x11c7   :  { %5393 = vmatpush.msrb.mxu2 %v4640_v57  ;;  %5368 = vmatmul.f32.vlgmr.msrb.gmra.mxu0 %v10571_v34  ;;  %v4629_v29 = vld [vmem:[#allocation33 + $0x570] sm:$0xff]  ;;  %v4820_v57 = vld [vmem:[#allocation33 + $0xb68] sm:$0xff] }
0x11c8   :  { %5413 = vmatpush.msrb.mxu3 %v4704_v13  ;;  %5436 = vmatpush.msra.mxu0 %v4756_v51  ;;  %v4509_v13 = vld [vmem:[#allocation33 + $0x1b0] sm:$0xff] }
0x11c9   :  { %5394 = vmatpush.msrb.mxu2 %v4636_v48  ;;  %v4573_v51 = vld [vmem:[#allocation33 + $0x3b0] sm:$0xff] }
0x11ca   :  { %5414 = vmatpush.msrb.mxu3 %v4700_v38  ;;  %5437 = vmatpush.msra.mxu0 %v4752_v23  ;;  %v4625_v48 = vld [vmem:[#allocation33 + $0x550] sm:$0xff]  ;;  %v4816_v38 = vld [vmem:[#allocation33 + $0xb48] sm:$0xff] }
0x11cb   :  { %5395 = vmatpush.msrb.mxu2 %v4632_v5  ;;  %v4505_v23 = vld [vmem:[#allocation33 + $0x190] sm:$0xff] }
0x11cc   :  { %5415 = vmatpush.msrb.mxu3 %v4696_v49  ;;  %5438 = vmatpush.msra.mxu0 %v4748_v8  ;;  %v4569_v5 = vld [vmem:[#allocation33 + $0x390] sm:$0xff]  ;;  %v4812_v8 = vld [vmem:[#allocation33 + $0xb28] sm:$0xff] }
0x11cd   :  { %5396 = vmatpush.msrb.mxu2 %v4628_v28  ;;  %v4621_v49 = vld [vmem:[#allocation33 + $0x530] sm:$0xff] }
0x11ce   :  { %5416 = vmatpush.msrb.mxu3 %v4692_v0  ;;  %5439 = vmatpush.msra.mxu0 %v4744_v3  ;;  %v4501_v28 = vld [vmem:[#allocation33 + $0x170] sm:$0xff] }
0x11cf   :  { %5397 = vmatpush.msrb.mxu2 %v4624_v1  ;;  %v4565_v0 = vld [vmem:[#allocation33 + $0x370] sm:$0xff]  ;;  %v4808_v1 = vld [vmem:[#allocation33 + $0xb08] sm:$0xff] }
0x11d0   :  { %5417 = vmatpush.msrb.mxu3 %v4688_v4  ;;  %5440 = vmatpush.msra.mxu0 %v4740_v10  ;;  %v4617_v3 = vld [vmem:[#allocation33 + $0x510] sm:$0xff] }
0x11d1   :  { %5398 = vmatpush.msrb.mxu2 %v4620_v30  ;;  %v4497_v4 = vld [vmem:[#allocation33 + $0x150] sm:$0xff] }
0x11d2   :  { %5418 = vmatpush.msrb.mxu3 %v4684_v7  ;;  %5441 = vmatpush.msra.mxu0 %v4736_v61  ;;  %v4561_v10 = vld [vmem:[#allocation33 + $0x350] sm:$0xff]  ;;  %v4804_v7 = vld [vmem:[#allocation33 + $0xae8] sm:$0xff] }
0x11d3   :  { %5399 = vmatpush.msrb.mxu2 %v4616_v14  ;;  %v4613_v30 = vld [vmem:[#allocation33 + $0x4f0] sm:$0xff] }
0x11d4   :  { %5419 = vmatpush.msrb.mxu3 %v4680_v39  ;;  %5442 = vmatpush.msra.mxu0 %v4732_v40  ;;  %v4493_v61 = vld [vmem:[#allocation33 + $0x130] sm:$0xff]  ;;  %v4800_v40 = vld [vmem:[#allocation33 + $0xac8] sm:$0xff] }
0x11d5   :  { %5400 = vmatpush.msrb.mxu2 %v4612_v53  ;;  %v4557_v14 = vld [vmem:[#allocation33 + $0x330] sm:$0xff] }
0x11d6   :  { %5420 = vmatpush.msrb.mxu3 %v4676_v25  ;;  %5443 = vmatpush.msra.mxu0 %v4728_v6  ;;  %v5203_v9 = vpop.f32.mrf.mxu0  ;;  %v5223_v31 = vpop.f32.mrf.mxu1  ;;  %v4609_v39 = vld [vmem:[#allocation33 + $0x4d0] sm:$0xff] }
0x11d7   :  { %5401 = vmatpush.msrb.mxu2 %v4608_v33  ;;  %v10580_v41 = vmul.f32 %v5203_v9, %v8294_v37  ;;  %v10583_v58 = vmul.f32 %v5223_v31, %v8208_v52  ;;  %v4596_v37 = vld [vmem:[#allocation33 + $0x468] sm:$0xff]  ;;  %v4489_v53 = vld [vmem:[#allocation33 + $0x110] sm:$0xff] }
0x11d8   :  { %5421 = vmatpush.msrb.mxu3 %v4672_v63  ;;  %5444 = vmatpush.msra.mxu0 %v4724_v42  ;;  %v4553_v25 = vld [vmem:[#allocation33 + $0x310] sm:$0xff]  ;;  %v4796_v33 = vld [vmem:[#allocation33 + $0xaa8] sm:$0xff] }
0x11d9   :  { %5402 = vmatpush.msrb.mxu2 %v4604_v20  ;;  %5348 = vmatmul.f32.vlgmr.msra.gmra.mxu3 %v10583_v58  ;;  %v4605_v6 = vld [vmem:[#allocation33 + $0x4b0] sm:$0xff]  ;;  %v4792_v31 = vld [vmem:[#allocation33 + $0xa88] sm:$0xff] }
0x11da   :  { %5422 = vmatpush.msrb.mxu3 %v4668_v18  ;;  %5445 = vmatpush.msra.mxu0 %v4720_v55  ;;  %v4485_v63 = vld [vmem:[#allocation33 + $0xf0] sm:$0xff] }
0x11db   :  { %5328 = vmatmul.f32.vlgmr.msra.gmra.mxu2 %v10580_v41  ;;  %v5183_v45 = vpop.f32.mrf.mxu3  ;;  %v4549_v42 = vld [vmem:[#allocation33 + $0x2f0] sm:$0xff] }
0x11dc   :  { %5403 = vmatpush.msrb.mxu2 %v4600_v11  ;;  %5423 = vmatpush.msrb.mxu3 %v4664_v44  ;;  %v10588_v52 = vmul.f32 %v5183_v45, %v8257_v46  ;;  %v4637_v46 = vld [vmem:[#allocation33 + $0x5b0] sm:$0xff]  ;;  %v4788_v11 = vld [vmem:[#allocation33 + $0xa68] sm:$0xff] }
0x11dd   :  { %5446 = vmatpush.msra.mxu0 %v4716_v15  ;;  %v4601_v9 = vld [vmem:[#allocation33 + $0x490] sm:$0xff] }
0x11de   :  { %5404 = vmatpush.msrb.mxu2 %v4596_v37  ;;  %5424 = vmatpush.msrb.mxu3 %v4660_v36  ;;  %v4481_v20 = vld [vmem:[#allocation33 + $0xd0] sm:$0xff]  ;;  %v4784_v37 = vld [vmem:[#allocation33 + $0xa48] sm:$0xff] }
0x11df   :  { %5447 = vmatpush.msra.mxu0 %v4712_v2  ;;  %5308 = vmatmul.f32.vlgmr.msra.gmra.mxu1 %v10588_v52  ;;  %v4545_v18 = vld [vmem:[#allocation33 + $0x2d0] sm:$0xff] }
0x11e0   :  { %5405 = vmatpush.msrb.mxu2 %v4592_v12  ;;  %5425 = vmatpush.msrb.mxu3 %v4656_v17  ;;  %v4597_v55 = vld [vmem:[#allocation33 + $0x470] sm:$0xff]  ;;  %v4780_v12 = vld [vmem:[#allocation33 + $0xa28] sm:$0xff] }
0x11e1   :  { %5512 = vmatpush.msrb.mxu0 %v4645_v19  ;;  %5452 = vmatpush.msra.mxu1 %v4836_v60  ;;  %v4477_v44 = vld [vmem:[#allocation33 + $0xb0] sm:$0xff] }
0x11e2   :  { %5406 = vmatpush.msrb.mxu2 %v4588_v22  ;;  %5426 = vmatpush.msrb.mxu3 %v4652_v43  ;;  %v4541_v15 = vld [vmem:[#allocation33 + $0x2b0] sm:$0xff]  ;;  %v4776_v22 = vld [vmem:[#allocation33 + $0xa08] sm:$0xff]  ;;  %v4518_v43 = vld [vmem:[#allocation33 + $0x1f8] sm:$0xff] }
0x11e3   :  { %5513 = vmatpush.msrb.mxu0 %v4641_v56  ;;  %5453 = vmatpush.msra.mxu1 %v4832_v26  ;;  %v4593_v45 = vld [vmem:[#allocation33 + $0x450] sm:$0xff] }
0x11e4   :  { %5407 = vmatpush.msrb.mxu2 %v4584_v35  ;;  %5427 = vmatpush.msrb.mxu3 %v4648_v50  ;;  %v4473_v36 = vld [vmem:[#allocation33 + $0x90] sm:$0xff]  ;;  %v4514_v50 = vld [vmem:[#allocation33 + $0x1d8] sm:$0xff] }
0x11e5   :  { %5514 = vmatpush.msrb.mxu0 %v4637_v46  ;;  %5454 = vmatpush.msra.mxu1 %v4828_v24  ;;  %v4537_v2 = vld [vmem:[#allocation33 + $0x290] sm:$0xff] }
0x11e6   :  { %5408 = vmatmul.f32.vlgmr.msrb.gmra.mxu2 %v10567_v62  ;;  %5428 = vmatmul.f32.vlgmr.msrb.gmra.mxu3 %v10588_v52  ;;  %v4589_v19 = vld [vmem:[#allocation33 + $0x430] sm:$0xff] }
0x11e7   :  { %5472 = vmatpush.msra.mxu2 %v4517_v32  ;;  %5492 = vmatpush.msra.mxu3 %v4581_v27  ;;  %v4469_v17 = vld [vmem:[#allocation33 + $0x70] sm:$0xff] }
0x11e8   :  { %5515 = vmatpush.msrb.mxu0 %v4633_v47  ;;  %5455 = vmatpush.msra.mxu1 %v4824_v59  ;;  %v4533_v60 = vld [vmem:[#allocation33 + $0x270] sm:$0xff]  ;;  %v4510_v47 = vld [vmem:[#allocation33 + $0x1b8] sm:$0xff] }
0x11e9   :  { %5473 = vmatpush.msra.mxu2 %v4513_v16  ;;  %5493 = vmatpush.msra.mxu3 %v4577_v54  ;;  %v4585_v56 = vld [vmem:[#allocation33 + $0x410] sm:$0xff] }
0x11ea   :  { %5516 = vmatpush.msrb.mxu0 %v4629_v29  ;;  %5388 = vmatmul.f32.vlgmr.msrb.gmra.mxu1 %v10574_v21  ;;  %v4465_v26 = vld [vmem:[#allocation33 + $0x50] sm:$0xff] }
0x11eb   :  { %5456 = vmatpush.msra.mxu1 %v4820_v57  ;;  %5474 = vmatpush.msra.mxu2 %v4509_v13  ;;  %v4529_v46 = vld [vmem:[#allocation33 + $0x250] sm:$0xff]  ;;  %v4506_v13 = vld [vmem:[#allocation33 + $0x198] sm:$0xff] }
0x11ec   :  { %5494 = vmatpush.msra.mxu3 %v4573_v51  ;;  %5517 = vmatpush.msrb.mxu0 %v4625_v48  ;;  %v4709_v35 = vld [vmem:[#allocation33 + $0x7f0] sm:$0xff] }
0x11ed   :  { %5457 = vmatpush.msra.mxu1 %v4816_v38  ;;  %5475 = vmatpush.msra.mxu2 %v4505_v23  ;;  %v4461_v24 = vld [vmem:[#allocation33 + $0x30] sm:$0xff]  ;;  %v4502_v23 = vld [vmem:[#allocation33 + $0x178] sm:$0xff] }
0x11ee   :  { %5495 = vmatpush.msra.mxu3 %v4569_v5  ;;  %5518 = vmatpush.msrb.mxu0 %v4621_v49  ;;  %v4525_v32 = vld [vmem:[#allocation33 + $0x230] sm:$0xff] }
0x11ef   :  { %5458 = vmatpush.msra.mxu1 %v4812_v8  ;;  %5476 = vmatpush.msra.mxu2 %v4501_v28  ;;  %v4705_v27 = vld [vmem:[#allocation33 + $0x7d0] sm:$0xff]  ;;  %v4498_v28 = vld [vmem:[#allocation33 + $0x158] sm:$0xff] }
0x11f0   :  { %5496 = vmatpush.msra.mxu3 %v4565_v0  ;;  %5519 = vmatpush.msrb.mxu0 %v4617_v3  ;;  %v4457_v59 = vld [vmem:[#allocation33 + $0x10] sm:$0xff] }
0x11f1   :  { %5459 = vmatpush.msra.mxu1 %v4808_v1  ;;  %5448 = vmatmul.f32.vlgmr.msra.gmra.mxu0 %v10580_v41  ;;  %v4521_v16 = vld [vmem:[#allocation33 + $0x210] sm:$0xff] }
0x11f2   :  { %5477 = vmatpush.msra.mxu2 %v4497_v4  ;;  %5497 = vmatpush.msra.mxu3 %v4561_v10  ;;  %v4701_v54 = vld [vmem:[#allocation33 + $0x7b0] sm:$0xff]  ;;  %v4494_v4 = vld [vmem:[#allocation33 + $0x138] sm:$0xff] }
0x11f3   :  { %5520 = vmatpush.msrb.mxu0 %v4613_v30  ;;  %5460 = vmatpush.msra.mxu1 %v4804_v7  ;;  %v4773_v29 = vld [vmem:[#allocation33 + $0x9f0] sm:$0xff] }
0x11f4   :  { %5478 = vmatpush.msra.mxu2 %v4493_v61  ;;  %5498 = vmatpush.msra.mxu3 %v4557_v14  ;;  %v4837_v57 = vld [vmem:[#allocation33 + $0xbf0] sm:$0xff]  ;;  %v4490_v61 = vld [vmem:[#allocation33 + $0x118] sm:$0xff] }
0x11f5   :  { %5521 = vmatpush.msrb.mxu0 %v4609_v39  ;;  %5461 = vmatpush.msra.mxu1 %v4800_v40  ;;  %v4697_v51 = vld [vmem:[#allocation33 + $0x790] sm:$0xff] }
0x11f6   :  { %5479 = vmatpush.msra.mxu2 %v4489_v53  ;;  %5499 = vmatpush.msra.mxu3 %v4553_v25  ;;  %v4769_v48 = vld [vmem:[#allocation33 + $0x9d0] sm:$0xff]  ;;  %v4486_v53 = vld [vmem:[#allocation33 + $0xf8] sm:$0xff] }
0x11f7   :  { %5522 = vmatpush.msrb.mxu0 %v4605_v6  ;;  %5462 = vmatpush.msra.mxu1 %v4796_v33  ;;  %v4833_v38 = vld [vmem:[#allocation33 + $0xbd0] sm:$0xff] }
0x11f8   :  { %5480 = vmatpush.msra.mxu2 %v4485_v63  ;;  %5500 = vmatpush.msra.mxu3 %v4549_v42  ;;  %v4693_v5 = vld [vmem:[#allocation33 + $0x770] sm:$0xff]  ;;  %v4482_v63 = vld [vmem:[#allocation33 + $0xd8] sm:$0xff] }
0x11f9   :  { %5523 = vmatpush.msrb.mxu0 %v4601_v9  ;;  %5463 = vmatpush.msra.mxu1 %v4792_v31  ;;  %v4765_v49 = vld [vmem:[#allocation33 + $0x9b0] sm:$0xff] }
0x11fa   :  { %5481 = vmatpush.msra.mxu2 %v4481_v20  ;;  %5501 = vmatpush.msra.mxu3 %v4545_v18  ;;  %v4829_v8 = vld [vmem:[#allocation33 + $0xbb0] sm:$0xff]  ;;  %v4478_v20 = vld [vmem:[#allocation33 + $0xb8] sm:$0xff] }
0x11fb   :  { %5524 = vmatpush.msrb.mxu0 %v4597_v55  ;;  %5464 = vmatpush.msra.mxu1 %v4788_v11  ;;  %v4689_v0 = vld [vmem:[#allocation33 + $0x750] sm:$0xff] }
0x11fc   :  { %5482 = vmatpush.msra.mxu2 %v4477_v44  ;;  %5502 = vmatpush.msra.mxu3 %v4541_v15  ;;  %v4761_v3 = vld [vmem:[#allocation33 + $0x990] sm:$0xff]  ;;  %v4474_v44 = vld [vmem:[#allocation33 + $0x98] sm:$0xff] }
0x11fd   :  { %5525 = vmatpush.msrb.mxu0 %v4593_v45  ;;  %5465 = vmatpush.msra.mxu1 %v4784_v37  ;;  %v4825_v1 = vld [vmem:[#allocation33 + $0xb90] sm:$0xff] }
0x11fe   :  { %5483 = vmatpush.msra.mxu2 %v4473_v36  ;;  %5503 = vmatpush.msra.mxu3 %v4537_v2  ;;  %v4685_v10 = vld [vmem:[#allocation33 + $0x730] sm:$0xff]  ;;  %v4470_v36 = vld [vmem:[#allocation33 + $0x78] sm:$0xff] }
0x11ff   :  { %5526 = vmatpush.msrb.mxu0 %v4589_v19  ;;  %5466 = vmatpush.msra.mxu1 %v4780_v12  ;;  %v4757_v30 = vld [vmem:[#allocation33 + $0x970] sm:$0xff] }
0x1200   :  { %5484 = vmatpush.msra.mxu2 %v4469_v17  ;;  %5504 = vmatpush.msra.mxu3 %v4533_v60  ;;  %v4821_v7 = vld [vmem:[#allocation33 + $0xb70] sm:$0xff]  ;;  %v4466_v17 = vld [vmem:[#allocation33 + $0x58] sm:$0xff] }
0x1201   :  { %5527 = vmatpush.msrb.mxu0 %v4585_v56  ;;  %5467 = vmatpush.msra.mxu1 %v4776_v22  ;;  %v4681_v14 = vld [vmem:[#allocation33 + $0x710] sm:$0xff] }
0x1202   :  { %5528 = vmatmul.f32.vlgmr.msrb.gmra.mxu0 %v10567_v62  ;;  %5468 = vmatmul.f32.vlgmr.msra.gmra.mxu1 %v10583_v58  ;;  %v4753_v39 = vld [vmem:[#allocation33 + $0x950] sm:$0xff] }
0x1203   :  { %5592 = vmatpush.msra.mxu0 %v4518_v43  ;;  %5485 = vmatpush.msra.mxu2 %v4465_v26  ;;  %v4817_v40 = vld [vmem:[#allocation33 + $0xb50] sm:$0xff]  ;;  %v4462_v43 = vld [vmem:[#allocation33 + $0x38] sm:$0xff] }
0x1204   :  { %5505 = vmatpush.msra.mxu3 %v4529_v46  ;;  %5532 = vmatpush.msrb.mxu1 %v4709_v35  ;;  %v4677_v25 = vld [vmem:[#allocation33 + $0x6f0] sm:$0xff] }
0x1205   :  { %5593 = vmatpush.msra.mxu0 %v4514_v50  ;;  %5486 = vmatpush.msra.mxu2 %v4461_v24  ;;  %v4749_v6 = vld [vmem:[#allocation33 + $0x930] sm:$0xff]  ;;  %v4458_v50 = vld [vmem:[#allocation33 + $0x18] sm:$0xff] }
0x1206   :  { %5506 = vmatpush.msra.mxu3 %v4525_v32  ;;  %5533 = vmatpush.msrb.mxu1 %v4705_v27  ;;  %v4813_v33 = vld [vmem:[#allocation33 + $0xb30] sm:$0xff]  ;;  %v4774_v32 = vld [vmem:[#allocation33 + $0x9f8] sm:$0xff] }
0x1207   :  { %5594 = vmatpush.msra.mxu0 %v4510_v47  ;;  %5487 = vmatpush.msra.mxu2 %v4457_v59  ;;  %v4673_v42 = vld [vmem:[#allocation33 + $0x6d0] sm:$0xff]  ;;  %v4582_v59 = vld [vmem:[#allocation33 + $0x3f8] sm:$0xff] }
0x1208   :  { %5507 = vmatpush.msra.mxu3 %v4521_v16  ;;  %5534 = vmatpush.msrb.mxu1 %v4701_v54  ;;  %v4745_v9 = vld [vmem:[#allocation33 + $0x910] sm:$0xff]  ;;  %v4770_v16 = vld [vmem:[#allocation33 + $0x9d8] sm:$0xff] }
0x1209   :  { %5488 = vmatmul.f32.vlgmr.msra.gmra.mxu2 %v10571_v34  ;;  %5508 = vmatmul.f32.vlgmr.msra.gmra.mxu3 %v10574_v21  ;;  %v4809_v31 = vld [vmem:[#allocation33 + $0xb10] sm:$0xff] }
0x120a   :  { %5552 = vmatpush.msrb.mxu2 %v4773_v29  ;;  %5572 = vmatpush.msrb.mxu3 %v4837_v57  ;;  %v4669_v18 = vld [vmem:[#allocation33 + $0x6b0] sm:$0xff]  ;;  %v4578_v57 = vld [vmem:[#allocation33 + $0x3d8] sm:$0xff] }
0x120b   :  { %5595 = vmatpush.msra.mxu0 %v4506_v13  ;;  %5535 = vmatpush.msrb.mxu1 %v4697_v51  ;;  %v4741_v55 = vld [vmem:[#allocation33 + $0x8f0] sm:$0xff]  ;;  %v4766_v13 = vld [vmem:[#allocation33 + $0x9b8] sm:$0xff] }
0x120c   :  { %5553 = vmatpush.msrb.mxu2 %v4769_v48  ;;  %5573 = vmatpush.msrb.mxu3 %v4833_v38  ;;  %v4805_v11 = vld [vmem:[#allocation33 + $0xaf0] sm:$0xff]  ;;  %v4574_v38 = vld [vmem:[#allocation33 + $0x3b8] sm:$0xff] }
0x120d   :  { %5596 = vmatpush.msra.mxu0 %v4502_v23  ;;  %5536 = vmatpush.msrb.mxu1 %v4693_v5  ;;  %v4665_v15 = vld [vmem:[#allocation33 + $0x690] sm:$0xff]  ;;  %v4710_v23 = vld [vmem:[#allocation33 + $0x7f8] sm:$0xff] }
0x120e   :  { %5554 = vmatpush.msrb.mxu2 %v4765_v49  ;;  %5574 = vmatpush.msrb.mxu3 %v4829_v8  ;;  %v4737_v45 = vld [vmem:[#allocation33 + $0x8d0] sm:$0xff]  ;;  %v4762_v5 = vld [vmem:[#allocation33 + $0x998] sm:$0xff] }
0x120f   :  { %5597 = vmatpush.msra.mxu0 %v4498_v28  ;;  %5537 = vmatpush.msrb.mxu1 %v4689_v0  ;;  %v4801_v37 = vld [vmem:[#allocation33 + $0xad0] sm:$0xff]  ;;  %v4570_v49 = vld [vmem:[#allocation33 + $0x398] sm:$0xff] }
0x1210   :  { %5555 = vmatpush.msrb.mxu2 %v4761_v3  ;;  %5575 = vmatpush.msrb.mxu3 %v4825_v1  ;;  %v4661_v2 = vld [vmem:[#allocation33 + $0x670] sm:$0xff]  ;;  %v4642_v8 = vld [vmem:[#allocation33 + $0x5d8] sm:$0xff] }
0x1211   :  { %5598 = vmatpush.msra.mxu0 %v4494_v4  ;;  %5538 = vmatpush.msrb.mxu1 %v4685_v10  ;;  %v4733_v19 = vld [vmem:[#allocation33 + $0x8b0] sm:$0xff]  ;;  %v4706_v28 = vld [vmem:[#allocation33 + $0x7d8] sm:$0xff] }
0x1212   :  { %5556 = vmatpush.msrb.mxu2 %v4757_v30  ;;  %5576 = vmatpush.msrb.mxu3 %v4821_v7  ;;  %v4797_v12 = vld [vmem:[#allocation33 + $0xab0] sm:$0xff]  ;;  %v4758_v0 = vld [vmem:[#allocation33 + $0x978] sm:$0xff] }
0x1213   :  { %5599 = vmatpush.msra.mxu0 %v4490_v61  ;;  %5539 = vmatpush.msrb.mxu1 %v4681_v14  ;;  %v4657_v60 = vld [vmem:[#allocation33 + $0x650] sm:$0xff]  ;;  %v4566_v3 = vld [vmem:[#allocation33 + $0x378] sm:$0xff] }
0x1214   :  { %5557 = vmatpush.msrb.mxu2 %v4753_v39  ;;  %5577 = vmatpush.msrb.mxu3 %v4817_v40  ;;  %v4729_v56 = vld [vmem:[#allocation33 + $0x890] sm:$0xff]  ;;  %v4638_v1 = vld [vmem:[#allocation33 + $0x5b8] sm:$0xff] }
0x1215   :  { %5600 = vmatpush.msra.mxu0 %v4486_v53  ;;  %5540 = vmatpush.msrb.mxu1 %v4677_v25  ;;  %v4793_v22 = vld [vmem:[#allocation33 + $0xa90] sm:$0xff]  ;;  %v4702_v4 = vld [vmem:[#allocation33 + $0x7b8] sm:$0xff] }
0x1216   :  { %5558 = vmatpush.msrb.mxu2 %v4749_v6  ;;  %5578 = vmatpush.msrb.mxu3 %v4813_v33  ;;  %v4653_v26 = vld [vmem:[#allocation33 + $0x630] sm:$0xff]  ;;  %v4754_v10 = vld [vmem:[#allocation33 + $0x958] sm:$0xff] }
0x1217   :  { %5601 = vmatpush.msra.mxu0 %v4482_v63  ;;  %5541 = vmatpush.msrb.mxu1 %v4673_v42  ;;  %v4725_v46 = vld [vmem:[#allocation33 + $0x870] sm:$0xff]  ;;  %v4562_v30 = vld [vmem:[#allocation33 + $0x358] sm:$0xff] }
0x1218   :  { %5559 = vmatpush.msrb.mxu2 %v4745_v9  ;;  %5579 = vmatpush.msrb.mxu3 %v4809_v31  ;;  %v4789_v35 = vld [vmem:[#allocation33 + $0xa70] sm:$0xff]  ;;  %v4634_v7 = vld [vmem:[#allocation33 + $0x598] sm:$0xff] }
0x1219   :  { %5602 = vmatpush.msra.mxu0 %v4478_v20  ;;  %5542 = vmatpush.msrb.mxu1 %v4669_v18  ;;  %v4649_v24 = vld [vmem:[#allocation33 + $0x610] sm:$0xff]  ;;  %v4698_v61 = vld [vmem:[#allocation33 + $0x798] sm:$0xff] }
0x121a   :  { %5560 = vmatpush.msrb.mxu2 %v4741_v55  ;;  %5580 = vmatpush.msrb.mxu3 %v4805_v11  ;;  %v4721_v27 = vld [vmem:[#allocation33 + $0x850] sm:$0xff]  ;;  %v4750_v14 = vld [vmem:[#allocation33 + $0x938] sm:$0xff] }
0x121b   :  { %5603 = vmatpush.msra.mxu0 %v4474_v44  ;;  %5543 = vmatpush.msrb.mxu1 %v4665_v15  ;;  %v4785_v47 = vld [vmem:[#allocation33 + $0xa50] sm:$0xff]  ;;  %v4558_v39 = vld [vmem:[#allocation33 + $0x338] sm:$0xff] }
0x121c   :  { %5561 = vmatpush.msrb.mxu2 %v4737_v45  ;;  %5581 = vmatpush.msrb.mxu3 %v4801_v37  ;;  %v4717_v54 = vld [vmem:[#allocation33 + $0x830] sm:$0xff]  ;;  %v4630_v40 = vld [vmem:[#allocation33 + $0x578] sm:$0xff] }
0x121d   :  { %5604 = vmatpush.msra.mxu0 %v4470_v36  ;;  %5544 = vmatpush.msrb.mxu1 %v4661_v2  ;;  %v4781_v29 = vld [vmem:[#allocation33 + $0xa30] sm:$0xff]  ;;  %v4694_v53 = vld [vmem:[#allocation33 + $0x778] sm:$0xff] }
0x121e   :  { %5562 = vmatpush.msrb.mxu2 %v4733_v19  ;;  %5582 = vmatpush.msrb.mxu3 %v4797_v12  ;;  %v4713_v51 = vld [vmem:[#allocation33 + $0x810] sm:$0xff]  ;;  %v4746_v25 = vld [vmem:[#allocation33 + $0x918] sm:$0xff] }
0x121f   :  { %5605 = vmatpush.msra.mxu0 %v4466_v17  ;;  %5545 = vmatpush.msrb.mxu1 %v4657_v60  ;;  %v4777_v48 = vld [vmem:[#allocation33 + $0xa10] sm:$0xff]  ;;  %v4554_v6 = vld [vmem:[#allocation33 + $0x318] sm:$0xff] }
0x1220   :  { %5563 = vmatpush.msrb.mxu2 %v4729_v56  ;;  %5583 = vmatpush.msrb.mxu3 %v4793_v22  ;;  %v4626_v33 = vld [vmem:[#allocation33 + $0x558] sm:$0xff] }
0x1221   :  { %5606 = vmatpush.msra.mxu0 %v4462_v43  ;;  %5546 = vmatpush.msrb.mxu1 %v4653_v26  ;;  %v4690_v63 = vld [vmem:[#allocation33 + $0x758] sm:$0xff] }
0x1222   :  { %5564 = vmatpush.msrb.mxu2 %v4725_v46  ;;  %5584 = vmatpush.msrb.mxu3 %v4789_v35  ;;  %v4742_v42 = vld [vmem:[#allocation33 + $0x8f8] sm:$0xff] }
0x1223   :  { %5607 = vmatpush.msra.mxu0 %v4458_v50  ;;  %5547 = vmatpush.msrb.mxu1 %v4649_v24  ;;  %v4550_v9 = vld [vmem:[#allocation33 + $0x2f8] sm:$0xff] }
0x1224   :  { %5608 = vmatmul.f32.vlgmr.msra.gmra.mxu0 %v10571_v34  ;;  %5548 = vmatmul.f32.vlgmr.msrb.gmra.mxu1 %v10588_v52  ;;  %v4646_v34 = vld [vmem:[#allocation33 + $0x5f8] sm:$0xff] }
0x1225   :  { %5672 = vmatpush.msrb.mxu0 %v4774_v32  ;;  %5565 = vmatpush.msrb.mxu2 %v4721_v27  ;;  %v4622_v31 = vld [vmem:[#allocation33 + $0x538] sm:$0xff] }
0x1226   :  { %5585 = vmatpush.msrb.mxu3 %v4785_v47  ;;  %5612 = vmatpush.msra.mxu1 %v4582_v59  ;;  %v4686_v20 = vld [vmem:[#allocation33 + $0x738] sm:$0xff] }
0x1227   :  { %5673 = vmatpush.msrb.mxu0 %v4770_v16  ;;  %5566 = vmatpush.msrb.mxu2 %v4717_v54  ;;  %v4738_v18 = vld [vmem:[#allocation33 + $0x8d8] sm:$0xff] }
0x1228   :  { %5586 = vmatpush.msrb.mxu3 %v4781_v29  ;;  %5613 = vmatpush.msra.mxu1 %v4578_v57  ;;  %v4546_v55 = vld [vmem:[#allocation33 + $0x2d8] sm:$0xff] }
0x1229   :  { %5674 = vmatpush.msrb.mxu0 %v4766_v13  ;;  %5567 = vmatpush.msrb.mxu2 %v4713_v51  ;;  %v4618_v11 = vld [vmem:[#allocation33 + $0x518] sm:$0xff] }
0x122a   :  { %5587 = vmatpush.msrb.mxu3 %v4777_v48  ;;  %5614 = vmatpush.msra.mxu1 %v4574_v38  ;;  %v4682_v44 = vld [vmem:[#allocation33 + $0x718] sm:$0xff] }
0x122b   :  { %5568 = vmatmul.f32.vlgmr.msrb.gmra.mxu2 %v10580_v41  ;;  %5588 = vmatmul.f32.vlgmr.msrb.gmra.mxu3 %v10583_v58  ;;  %v4734_v15 = vld [vmem:[#allocation33 + $0x8b8] sm:$0xff] }
0x122c   :  { %5632 = vmatpush.msra.mxu2 %v4646_v34  ;;  %5652 = vmatpush.msra.mxu3 %v4710_v23  ;;  %v4542_v45 = vld [vmem:[#allocation33 + $0x2b8] sm:$0xff] }
0x122d   :  { %5675 = vmatpush.msrb.mxu0 %v4762_v5  ;;  %5615 = vmatpush.msra.mxu1 %v4570_v49  ;;  %v4614_v37 = vld [vmem:[#allocation33 + $0x4f8] sm:$0xff] }
0x122e   :  { %5633 = vmatpush.msra.mxu2 %v4642_v8  ;;  %5653 = vmatpush.msra.mxu3 %v4706_v28  ;;  %v4678_v36 = vld [vmem:[#allocation33 + $0x6f8] sm:$0xff] }
0x122f   :  { %5676 = vmatpush.msrb.mxu0 %v4758_v0  ;;  %5616 = vmatpush.msra.mxu1 %v4566_v3  ;;  %v4730_v2 = vld [vmem:[#allocation33 + $0x898] sm:$0xff] }
0x1230   :  { %5634 = vmatpush.msra.mxu2 %v4638_v1  ;;  %5654 = vmatpush.msra.mxu3 %v4702_v4  ;;  %v4538_v19 = vld [vmem:[#allocation33 + $0x298] sm:$0xff] }
0x1231   :  { %5677 = vmatpush.msrb.mxu0 %v4754_v10  ;;  %5617 = vmatpush.msra.mxu1 %v4562_v30  ;;  %v4610_v12 = vld [vmem:[#allocation33 + $0x4d8] sm:$0xff] }
0x1232   :  { %5635 = vmatpush.msra.mxu2 %v4634_v7  ;;  %5655 = vmatpush.msra.mxu3 %v4698_v61  ;;  %v4674_v17 = vld [vmem:[#allocation33 + $0x6d8] sm:$0xff] }
0x1233   :  { %5678 = vmatpush.msrb.mxu0 %v4750_v14  ;;  %5618 = vmatpush.msra.mxu1 %v4558_v39  ;;  %v4726_v60 = vld [vmem:[#allocation33 + $0x878] sm:$0xff] }
0x1234   :  { %5636 = vmatpush.msra.mxu2 %v4630_v40  ;;  %5656 = vmatpush.msra.mxu3 %v4694_v53  ;;  %v4534_v56 = vld [vmem:[#allocation33 + $0x278] sm:$0xff] }
0x1235   :  { %5679 = vmatpush.msrb.mxu0 %v4746_v25  ;;  %5619 = vmatpush.msra.mxu1 %v4554_v6  ;;  %v4606_v22 = vld [vmem:[#allocation33 + $0x4b8] sm:$0xff] }
0x1236   :  { %5637 = vmatpush.msra.mxu2 %v4626_v33  ;;  %5657 = vmatpush.msra.mxu3 %v4690_v63  ;;  %v4670_v43 = vld [vmem:[#allocation33 + $0x6b8] sm:$0xff] }
0x1237   :  { %5680 = vmatpush.msrb.mxu0 %v4742_v42  ;;  %5620 = vmatpush.msra.mxu1 %v4550_v9  ;;  %v4722_v26 = vld [vmem:[#allocation33 + $0x858] sm:$0xff] }
0x1238   :  { %5638 = vmatpush.msra.mxu2 %v4622_v31  ;;  %5658 = vmatpush.msra.mxu3 %v4686_v20  ;;  %v4530_v46 = vld [vmem:[#allocation33 + $0x258] sm:$0xff] }
0x1239   :  { %5681 = vmatpush.msrb.mxu0 %v4738_v18  ;;  %5621 = vmatpush.msra.mxu1 %v4546_v55  ;;  %v4602_v35 = vld [vmem:[#allocation33 + $0x498] sm:$0xff] }
0x123a   :  { %5639 = vmatpush.msra.mxu2 %v4618_v11  ;;  %5659 = vmatpush.msra.mxu3 %v4682_v44  ;;  %v4666_v50 = vld [vmem:[#allocation33 + $0x698] sm:$0xff] }
0x123b   :  { %5682 = vmatpush.msrb.mxu0 %v4734_v15  ;;  %5622 = vmatpush.msra.mxu1 %v4542_v45  ;;  %v4718_v24 = vld [vmem:[#allocation33 + $0x838] sm:$0xff]  ;;  %v5289_v14 = vpop.f32.mrf.mxu0 }
0x123c   :  { %5640 = vmatpush.msra.mxu2 %v4614_v37  ;;  %5660 = vmatpush.msra.mxu3 %v4678_v36  ;;  %v4526_v32 = vld [vmem:[#allocation33 + $0x238] sm:$0xff] }
0x123d   :  { %5683 = vmatpush.msrb.mxu0 %v4730_v2  ;;  %5623 = vmatpush.msra.mxu1 %v4538_v19  ;;  %v4598_v27 = vld [vmem:[#allocation33 + $0x478] sm:$0xff] }
0x123e   :  { %5641 = vmatpush.msra.mxu2 %v4610_v12  ;;  %5661 = vmatpush.msra.mxu3 %v4674_v17  ;;  %v4662_v47 = vld [vmem:[#allocation33 + $0x678] sm:$0xff] }
0x123f   :  { %5684 = vmatpush.msrb.mxu0 %v4726_v60  ;;  %5624 = vmatpush.msra.mxu1 %v4534_v56  ;;  %v4714_v59 = vld [vmem:[#allocation33 + $0x818] sm:$0xff] }
0x1240   :  { %5642 = vmatpush.msra.mxu2 %v4606_v22  ;;  %5662 = vmatpush.msra.mxu3 %v4670_v43  ;;  %v4522_v16 = vld [vmem:[#allocation33 + $0x218] sm:$0xff] }
0x1241   :  { %5685 = vmatpush.msrb.mxu0 %v4722_v26  ;;  %5625 = vmatpush.msra.mxu1 %v4530_v46  ;;  %v4594_v54 = vld [vmem:[#allocation33 + $0x458] sm:$0xff] }
0x1242   :  { %5643 = vmatpush.msra.mxu2 %v4602_v35  ;;  %5663 = vmatpush.msra.mxu3 %v4666_v50  ;;  %v4658_v29 = vld [vmem:[#allocation33 + $0x658] sm:$0xff] }
0x1243   :  { %5686 = vmatpush.msrb.mxu0 %v4718_v24  ;;  %5626 = vmatpush.msra.mxu1 %v4526_v32  ;;  %v4838_v57 = vld [vmem:[#allocation33 + $0xbf8] sm:$0xff] }
0x1244   :  { %5644 = vmatpush.msra.mxu2 %v4598_v27  ;;  %5664 = vmatpush.msra.mxu3 %v4662_v47  ;;  %v4590_v13 = vld [vmem:[#allocation33 + $0x438] sm:$0xff]  ;;  %v5369_v25 = vpop.f32.mrf.mxu0 }
0x1245   :  { %5687 = vmatpush.msrb.mxu0 %v4714_v59  ;;  %5627 = vmatpush.msra.mxu1 %v4522_v16  ;;  %v4654_v51 = vld [vmem:[#allocation33 + $0x638] sm:$0xff] }
0x1246   :  { %5688 = vmatmul.f32.vlgmr.msrb.gmra.mxu0 %v10580_v41  ;;  %5628 = vmatmul.f32.vlgmr.msra.gmra.mxu1 %v10574_v21  ;;  %v4834_v48 = vld [vmem:[#allocation33 + $0xbd8] sm:$0xff] }
0x1247   :  { %5645 = vmatpush.msra.mxu2 %v4594_v54  ;;  %5665 = vmatpush.msra.mxu3 %v4658_v29  ;;  %v4586_v38 = vld [vmem:[#allocation33 + $0x418] sm:$0xff]  ;;  %v5249_v30 = vpop.f32.mrf.mxu2 }
0x1248   :  { %5692 = vmatpush.msrb.mxu1 %v4838_v57  ;;  %v4650_v34 = vld [vmem:[#allocation33 + $0x618] sm:$0xff]  ;;  %v5269_v7 = vpop.f32.mrf.mxu3 }
0x1249   :  { %5646 = vmatpush.msra.mxu2 %v4590_v13  ;;  %5666 = vmatpush.msra.mxu3 %v4654_v51  ;;  %v4830_v23 = vld [vmem:[#allocation33 + $0xbb8] sm:$0xff]  ;;  %v5270_v2 = vadd.f32 %v5269_v7, %v5249_v30 }
0x124a   :  { %5693 = vmatpush.msrb.mxu1 %v4834_v48  ;;  %v4826_v5 = vld [vmem:[#allocation33 + $0xb98] sm:$0xff]  ;;  %v10698_v48 = vlaneseq }
0x124b   :  { %5647 = vmatpush.msra.mxu2 %v4586_v38  ;;  %5667 = vmatpush.msra.mxu3 %v4650_v34  ;;  %v4822_v21 = vld [vmem:[#allocation33 + $0xb78] sm:$0xff]  ;;  %v5290_v56 = vadd.f32 %v5289_v14, %v5270_v2 }
0x124c   :  { %5694 = vmatpush.msrb.mxu1 %v4830_v23  ;;  %5648 = vmatmul.f32.vlgmr.msra.gmra.mxu2 %v10567_v62  ;;  %v4818_v41 = vld [vmem:[#allocation33 + $0xb58] sm:$0xff]  ;;  %vm5726_vm2 = vcmp.lt.s32.totalorder %v10698_v48, 512 }
0x124d   :  { %5668 = vmatmul.f32.vlgmr.msra.gmra.mxu3 %v10588_v52  ;;  %v4814_v49 = vld [vmem:[#allocation33 + $0xb38] sm:$0xff] }
0x124e   :  { %5695 = vmatpush.msrb.mxu1 %v4826_v5  ;;  %v4810_v8 = vld [vmem:[#allocation33 + $0xb18] sm:$0xff] }
0x124f   :  { %v4806_v28 = vld [vmem:[#allocation33 + $0xaf8] sm:$0xff] }
0x1250   :  { %5696 = vmatpush.msrb.mxu1 %v4822_v21  ;;  %v4802_v0 = vld [vmem:[#allocation33 + $0xad8] sm:$0xff] }
0x1251   :  { %v4798_v3 = vld [vmem:[#allocation33 + $0xab8] sm:$0xff] }
0x1252   :  { %5697 = vmatpush.msrb.mxu1 %v4818_v41  ;;  %v4794_v1 = vld [vmem:[#allocation33 + $0xa98] sm:$0xff] }
0x1253   :  { %v4790_v4 = vld [vmem:[#allocation33 + $0xa78] sm:$0xff] }
0x1254   :  { %5698 = vmatpush.msrb.mxu1 %v4814_v49  ;;  %v4786_v62 = vld [vmem:[#allocation33 + $0xa58] sm:$0xff] }
0x1255   :  { %v4782_v52 = vld [vmem:[#allocation33 + $0xa38] sm:$0xff] }
0x1256   :  { %5699 = vmatpush.msrb.mxu1 %v4810_v8  ;;  %v4778_v10 = vld [vmem:[#allocation33 + $0xa18] sm:$0xff] }
0x1258   :  { %5700 = vmatpush.msrb.mxu1 %v4806_v28 }
0x125a   :  { %5701 = vmatpush.msrb.mxu1 %v4802_v0 }
0x125c   :  { %5702 = vmatpush.msrb.mxu1 %v4798_v3  ;;  %v5309_v61 = vpop.f32.mrf.mxu1  ;;  %v5349_v40 = vpop.f32.mrf.mxu3 }
0x125d   :  { %v5310_v26 = vadd.f32 %v5309_v61, %v5290_v56 }
0x125e   :  { %5703 = vmatpush.msrb.mxu1 %v4794_v1  ;;  %v5329_v39 = vpop.f32.mrf.mxu2 }
0x125f   :  { %v5330_v27 = vadd.f32 %v5329_v39, %v5310_v26 }
0x1260   :  { %5704 = vmatpush.msrb.mxu1 %v4790_v4 }
0x1261   :  { %v5350_v57 = vadd.f32 %v5349_v40, %v5330_v27 }
0x1262   :  { %5705 = vmatpush.msrb.mxu1 %v4786_v62 }
0x1264   :  { %5706 = vmatpush.msrb.mxu1 %v4782_v52 }
0x1266   :  { %5707 = vmatpush.msrb.mxu1 %v4778_v10 }
0x1267   :  { %5708 = vmatmul.f32.vlgmr.msrb.gmra.mxu1 %v10583_v58  ;;  %v5389_v53 = vpop.f32.mrf.mxu1 }
0x1268   :  { %v5390_v11 = vadd.f32 %v5389_v53, %v5369_v25 }
0x1269   :  { %v5409_v6 = vpop.f32.mrf.mxu2  ;;  %v5429_v33 = vpop.f32.mrf.mxu3 }
0x126a   :  { %v5410_v15 = vadd.f32 %v5409_v6, %v5390_v11 }
0x126c   :  { %v5430_v12 = vadd.f32 %v5429_v33, %v5410_v15 }
0x126e   :  { %v5449_v42 = vpop.f32.mrf.mxu0 }
0x126f   :  { %v5450_v46 = vadd.f32 %v5449_v42, %v5430_v12 }
0x127f   :  { %v5469_v63 = vpop.f32.mrf.mxu1  ;;  %v5529_v18 = vpop.f32.mrf.mxu0 }
0x1280   :  { %v5470_v24 = vadd.f32 %v5469_v63, %v5450_v46 }
0x1282   :  { %v5716_v54 = vrot.slane %v5470_v24, 7 }
0x1284   :  { %v5719_v38 = vsel %vm10699_vm5, %v5350_v57, %v5716_v54 }
0x128c   :  { %v5489_v9 = vpop.f32.mrf.mxu2  ;;  %v5509_v31 = vpop.f32.mrf.mxu3 }
0x128d   :  { %v5510_v45 = vadd.f32 %v5509_v31, %v5489_v9 }
0x128f   :  { %v5530_v17 = vadd.f32 %v5529_v18, %v5510_v45 }
0x12a1   :  { %v5549_v20 = vpop.f32.mrf.mxu1  ;;  %v5609_v37 = vpop.f32.mrf.mxu0 }
0x12a2   :  { %v5550_v22 = vadd.f32 %v5549_v20, %v5530_v17 }
0x12ae   :  { %v5569_v55 = vpop.f32.mrf.mxu2  ;;  %v5589_v44 = vpop.f32.mrf.mxu3 }
0x12af   :  { %v5570_v35 = vadd.f32 %v5569_v55, %v5550_v22 }
0x12b1   :  { %v5590_v47 = vadd.f32 %v5589_v44, %v5570_v35 }
0x12b3   :  { %v5717_v13 = vrot.slane %v5590_v47, 6 }
0x12c3   :  { %v5629_v58 = vpop.f32.mrf.mxu1  ;;  %v5689_v32 = vpop.f32.mrf.mxu0 }
0x12c4   :  { %v5630_v19 = vadd.f32 %v5629_v58, %v5609_v37 }
0x12cf   :  { %v5649_v36 = vpop.f32.mrf.mxu2 }
0x12d0   :  { %v5650_v60 = vadd.f32 %v5649_v36, %v5630_v19  ;;  %v5669_v43 = vpop.f32.mrf.mxu3 }
0x12d2   :  { %v5670_v50 = vadd.f32 %v5669_v43, %v5650_v60 }
0x12d4   :  { %v5690_v59 = vadd.f32 %v5689_v32, %v5670_v50 }
0x12e4   :  { %v5709_v16 = vpop.f32.mrf.mxu1 }
0x12e5   :  { %v5710_v29 = vadd.f32 %v5709_v16, %v5690_v59 }
0x12e7   :  { %v5718_v51 = vrot.slane %v5710_v29, 5 }
0x12e9   :  { %v5721_v34 = vsel %vm5720_vm0, %v5717_v13, %v5718_v51 }
0x12ea   :  { %v5722_v23 = vsel %vm579_vm8, %v5719_v38, %v5721_v34 }
0x12eb   :  { %5728 = vst.msk [vmem:[%s10700_s29] sm:$0xf] %vm5726_vm2, %v5722_v23 }
0x12ec   :  { %5733 = vsyncpa [#allocation3], 1 }
0x12ed   :  { %5734 = vsyncpa [#allocation5], 1 }
0x12ee   :  { %5735 = vsyncpa [#allocation8], 1 }
0x12ef   :  { %5736 = vsyncpa [#allocation11], 1 }
0x12f0   :  { %5737 = vsyncpa [#allocation14], 1 }
0x12f1   :  { %5738 = vsyncpa [#allocation17], 1 }
0x12f2   :  { %5739 = vsyncpa [#allocation20], 1 }
0x12f3   :  { %5740 = vsyncpa [#allocation23], 1 }
0x12f4   :  { %5741 = vsyncpa [#allocation26], 1 }
0x12f5   :  { %5742 = vsyncpa [#allocation29], 1 }
0x12f6   :  { %5743 = vsyncpa [#allocation32], 1 }

</bundles_post_ra>
